<compile_context>
chip_gen: v5e
topology: v5e:2x2
jax: 0.10.0
libtpu: 0.0.40
codegen_flags: <defaults>
</compile_context>

<pallas_src>
import functools

import jax
import jax.numpy as jnp
from jax.experimental import pallas as pl
from jax.experimental.pallas import tpu as pltpu


def _silu(x):
    return x * jax.nn.sigmoid(x)


def _pick_chunk(hwp, cap=96):
    """Largest register-accumulator chunk <= cap that divides hwp (prefer bf16
    sublane-tile alignment so chunk stores are unmasked)."""
    for align in (16, 8):
        for d in range(cap - cap % align, align - 1, -align):
            if d <= hwp and hwp % d == 0:
                return d
    return hwp


def _refine_step_kernel(h, w, c, chunk,
                        s_ref, ir_ref, rgb_ref,
                        sim_w1_ref, sim_s1_ref, sim_b1_ref,
                        bn2_s_ref, bn2_b_ref,
                        sim_w2_ref, sim_s2_ref, sim_b2_ref,
                        ca_w1_ref, ca_b1_ref, ca_w2_ref, ca_b2_ref,
                        sa_t_ref, sa_sb_ref,
                        enh_w_ref, enh_s_ref, enh_b_ref,
                        out_ir_ref, off_ref,
                        pad2d_ref, pad_sa_ref):
    f32 = jnp.float32
    bf16 = jnp.bfloat16
    hw = h * w
    wp = w + 2                      # pitch of the padded 3x3-conv buffer / IR feedback layout
    wp6 = w + 6                     # padded width for the 7x7 SA conv
    hwp = h * wp

    # Scratch clears (~25 vregs of stores total per step).  In the flattened pad2d
    # layout the border rows are scattered single rows, so a full clear is fewer vst
    # ops than border-only zeroing; interiors are overwritten below.  Cleared every
    # step so there is no cross-grid-iteration scratch dependence (safe with
    # "parallel" batch semantics / megacore sharding).
    pad2d_ref[...] = jnp.zeros_like(pad2d_ref)
    pad_sa_ref[...] = jnp.zeros_like(pad_sa_ref)

    # ---- 1) bilinear homography warp: one (HW, HWP) @ (HWP, C) MXU matmul.
    # Junk (pad-pitch) columns of ir have exactly-zero weight in S.
    warped = jnp.dot(s_ref[...], ir_ref[...], preferred_element_type=f32)      # (HW, C) f32
    warped_bf = warped.astype(bf16)

    # ---- 2) similarity head: 1x1 Conv+BN+SiLU -> BN -> ReLU -> 1x1 Conv+BN+SiLU
    # concat([rgb, warped]) presented as a single K=2C operand (lane-block concat is
    # free at vreg level); offsets reduced in-kernel to a per-batch sum.
    cat = jnp.concatenate([rgb_ref[...], warped_bf], axis=-1)                  # (HW, 2C) bf16
    h1 = jnp.dot(cat, sim_w1_ref[...], preferred_element_type=f32)             # (HW, C//2)
    h1 = _silu(h1 * sim_s1_ref[...] + sim_b1_ref[...])
    h1 = jnp.maximum(h1 * bn2_s_ref[...] + bn2_b_ref[...], 0.0)
    off = jnp.dot(h1, sim_w2_ref[...], preferred_element_type=f32)             # (HW, 2)
    off = _silu(off * sim_s2_ref[...] + sim_b2_ref[...])
    off_ref[...] = jnp.sum(off, axis=0, keepdims=True)                         # (1, 2)

    # ---- 3) channel attention: GAP -> 1x1 -> ReLU -> 1x1 -> sigmoid
    gap = jnp.mean(warped, axis=0, keepdims=True)                              # (1, C)
    a = jnp.maximum(
        jnp.dot(gap, ca_w1_ref[...], preferred_element_type=f32) + ca_b1_ref[...], 0.0)
    a = jax.nn.sigmoid(
        jnp.dot(a, ca_w2_ref[...], preferred_element_type=f32) + ca_b2_ref[...])  # (1, C)
    wi = warped * a                                                            # (HW, C) f32
    wi3 = wi.reshape(h, w, c)

    # ---- 4) spatial attention: 7x7 conv over [avg, max] as 7 bf16 Toeplitz matmuls
    # on a lane-packed slab, then BN + SiLU + sigmoid.
    pad_sa_ref[3:3 + h, 3:3 + w] = jnp.mean(wi3, axis=-1).astype(bf16)         # avg block
    pad_sa_ref[3:3 + h, wp6 + 3:wp6 + 3 + w] = jnp.max(wi3, axis=-1).astype(bf16)  # max block
    slab = pad_sa_ref[...]                                                     # (h+6, 2*wp6) bf16
    sa_acc = jnp.zeros((h, w), f32)
    for dy in range(7):
        sa_acc = sa_acc + jnp.dot(slab[dy:dy + h, :], sa_t_ref[dy],
                                  preferred_element_type=f32)
    sa = jax.nn.sigmoid(_silu(sa_acc * sa_sb_ref[0] + sa_sb_ref[1]))           # (h, w)

    # Attended features into the flattened zero-padded buffer:
    #   feature pixel (y, x) -> pad2d row (y+1)*wp + (x+1).
    # One small masked store per image row; all 9 conv taps below become contiguous
    # row windows of this buffer (no strided-slice relayout copies).
    attended3 = (wi3 * sa[:, :, None]).astype(bf16)                            # (h, w, c) bf16
    for y in range(h):
        base = (y + 1) * wp + 1
        pad2d_ref[base:base + w, :] = attended3[y]

    # ---- 5) enhancement 3x3 Conv+BN+SiLU: register-chunked accumulation over the
    # padded-pitch output rows (output row r = y*wp + x; rows with x >= w are junk and
    # are simply never read downstream).  Taps are K-packed in pairs (K=2C) so the
    # 256-wide MXU on v6e/v7x runs full-width; the pairing is exact (pair 5's second
    # half has zero weights).
    pairs = ((0, 1), (2, 3), (4, 5), (6, 7), (8, 8))
    for r0 in range(0, hwp, chunk):
        acc = jnp.zeros((chunk, c), f32)
        for j, (ka, kb) in enumerate(pairs):
            oa = (ka // 3) * wp + (ka % 3)
            ob = (kb // 3) * wp + (kb % 3)
            lhs = jnp.concatenate(
                [pad2d_ref[r0 + oa:r0 + oa + chunk, :],
                 pad2d_ref[r0 + ob:r0 + ob + chunk, :]], axis=-1)              # (chunk, 2C) bf16
            acc = acc + jnp.dot(lhs, enh_w_ref[j], preferred_element_type=f32)
        out_ir_ref[r0:r0 + chunk, :] = (
            _silu(acc * enh_s_ref[...] + enh_b_ref[...]).astype(out_ir_ref.dtype))


def _make_step_call(b, h, w, c):
    hw = h * w
    wp = w + 2
    hwp = h * wp
    wp6 = w + 6
    c2 = c // 2
    c16 = max(c // 16, 1)
    chunk = _pick_chunk(hwp)
    kern = functools.partial(_refine_step_kernel, h, w, c, chunk)

    def full(shape):
        n = len(shape)
        return pl.BlockSpec(shape, lambda i, n=n: (0,) * n)

    smem = pl.BlockSpec(memory_space=pltpu.MemorySpace.SMEM)

    in_specs = [
        pl.BlockSpec((None, hw, hwp), lambda i: (i, 0, 0)),   # S (bf16)
        pl.BlockSpec((None, hwp, c), lambda i: (i, 0, 0)),    # current ir (bf16, pitch-padded)
        pl.BlockSpec((None, hw, c), lambda i: (i, 0, 0)),     # rgb (bf16, NHWC flat)
        full((2 * c, c2)), full((1, c2)), full((1, c2)),      # similarity conv1 (K=2C) + BN1
        full((1, c2)), full((1, c2)),                         # standalone BN2
        full((c2, 2)), full((1, 2)), full((1, 2)),            # similarity conv2 + BN3
        full((c, c16)), full((1, c16)), full((c16, c)), full((1, c)),  # channel attention
        full((7, 2 * wp6, w)),                                 # SA Toeplitz taps (bf16)
        smem,                                                  # SA BN scale/shift
        full((5, 2 * c, c)), full((1, c)), full((1, c)),       # enhancement (K-packed) + BN
    ]
    out_specs = [
        pl.BlockSpec((None, hwp, c), lambda i: (i, 0, 0)),    # enhanced IR (bf16, pitch-padded)
        pl.BlockSpec((None, 1, 2), lambda i: (i, 0, 0)),      # per-batch offset sum
    ]
    out_shape = [jax.ShapeDtypeStruct((b, hwp, c), jnp.bfloat16),
                 jax.ShapeDtypeStruct((b, 1, 2), jnp.float32)]

    return pl.pallas_call(
        kern,
        out_shape=out_shape,
        grid_spec=pltpu.PrefetchScalarGridSpec(
            num_scalar_prefetch=0,
            grid=(b,),
            in_specs=in_specs,
            out_specs=out_specs,
            scratch_shapes=[
                # flattened zero-padded buffer for the 3x3 conv (+8 safety rows so the
                # last-chunk tap windows never read past the allocation)
                pltpu.VMEM(((h + 2) * wp + 8, c), jnp.bfloat16),
                pltpu.VMEM((h + 6, 2 * wp6), jnp.bfloat16),
            ],
        ),
        compiler_params=pltpu.CompilerParams(
            dimension_semantics=("parallel",),
            vmem_limit_bytes=32 * 1024 * 1024,
        ),
    )


def _sampling_matrix(H_mat, h, w, dtype=jnp.bfloat16):
    """Dense bilinear sampling matrix for F.grid_sample(mode='bilinear',
    padding_mode='border', align_corners=True) with a homography-generated grid.
    Rows are standard flat output pixels (y*w + x); columns index the kernel's
    pitch-padded IR layout (y*(w+2) + x), so pad columns get exactly zero weight.
    Built with a single scatter-add (no (B,HW,HW) one_hot intermediates)."""
    hw = h * w
    wp = w + 2
    hwp = h * wp
    b = H_mat.shape[0]
    ys = jnp.linspace(-1.0, 1.0, h, dtype=jnp.float32)
    xs = jnp.linspace(-1.0, 1.0, w, dtype=jnp.float32)
    yy, xx = jnp.meshgrid(ys, xs, indexing='ij')
    pts = jnp.stack([xx.reshape(-1), yy.reshape(-1),
                     jnp.ones((hw,), jnp.float32)], axis=0)                     # (3, HW)
    t = jnp.einsum('bij,jn->bin', H_mat, pts)                                   # (B, 3, HW)
    t = t / (t[:, 2:3, :] + 1e-8)                                               # matches reference
    gx, gy = t[:, 0, :], t[:, 1, :]
    ix = jnp.clip((gx + 1.0) * 0.5 * (w - 1), 0.0, w - 1.0)
    iy = jnp.clip((gy + 1.0) * 0.5 * (h - 1), 0.0, h - 1.0)
    x0 = jnp.floor(ix)
    y0 = jnp.floor(iy)
    x1 = jnp.minimum(x0 + 1.0, w - 1.0)
    y1 = jnp.minimum(y0 + 1.0, h - 1.0)
    wx1 = ix - x0
    wx0 = 1.0 - wx1
    wy1 = iy - y0
    wy0 = 1.0 - wy1
    x0i, x1i = x0.astype(jnp.int32), x1.astype(jnp.int32)
    y0i, y1i = y0.astype(jnp.int32), y1.astype(jnp.int32)
    cols = jnp.stack([y0i * wp + x0i, y0i * wp + x1i,
                      y1i * wp + x0i, y1i * wp + x1i], axis=-1)                 # (B, HW, 4)
    wts = jnp.stack([wy0 * wx0, wy0 * wx1, wy1 * wx0, wy1 * wx1], axis=-1)      # (B, HW, 4)
    bidx = jnp.broadcast_to(jnp.arange(b)[:, None, None], cols.shape)
    ridx = jnp.broadcast_to(jnp.arange(hw)[None, :, None], cols.shape)
    S = jnp.zeros((b, hw, hwp), jnp.float32)
    S = S.at[bidx, ridx, cols].add(wts)
    return S.astype(dtype)                                                      # (B, HW, HWP)


def _build_sa_taps(sa_w, w):
    """Toeplitz tap matrices for the 7x7 spatial-attention conv (zero padding 3):
    T[dy, ch*(w+6)+j, x] = sa_w[ch, dy, j-x] for 0 <= j-x <= 6, else 0."""
    wq = w + 6
    jj = jnp.arange(wq)[:, None]
    xx = jnp.arange(w)[None, :]
    d = jj - xx                                                                 # (wq, w)
    valid = (d >= 0) & (d <= 6)
    dc = jnp.clip(d, 0, 6)
    taps = sa_w[:, :, dc]                                                       # (2, 7, wq, w)
    taps = jnp.where(valid[None, None], taps, 0.0)
    taps = jnp.transpose(taps, (1, 0, 2, 3))                                    # (7, 2, wq, w)
    return taps.reshape(7, 2 * wq, w).astype(jnp.bfloat16)


def _pack_enh_weights(enh_w, c):
    """Pack 9 (C,C) taps into 5 (2C,C) K-blocks (last block's second half is zero)."""
    blocks = []
    for j in range(5):
        wa = enh_w[2 * j]
        wb = enh_w[2 * j + 1] if 2 * j + 1 < 9 else jnp.zeros((c, c), enh_w.dtype)
        blocks.append(jnp.concatenate([wa, wb], axis=0)[None])
    return jnp.concatenate(blocks, axis=0).astype(jnp.bfloat16)                 # (5, 2C, C)


def _fold_bn(key, n):
    k1, k2 = jax.random.split(key)
    scale = 1.0 + 0.1 * jax.random.normal(k1, (1, n), jnp.float32)
    shift = 0.05 * jax.random.normal(k2, (1, n), jnp.float32)
    return scale, shift


def init_params(key, channels):
    c = channels
    c2 = c // 2
    c16 = max(c // 16, 1)
    ks = jax.random.split(key, 14)
    p = {}
    p['sim_w1a'] = 0.2 * jax.random.normal(ks[0], (c, c2), jnp.float32)   # rgb half of 1x1 conv
    p['sim_w1b'] = 0.2 * jax.random.normal(ks[1], (c, c2), jnp.float32)   # warped-ir half
    p['sim_s1'], p['sim_b1'] = _fold_bn(ks[2], c2)
    p['bn2_s'], p['bn2_b'] = _fold_bn(ks[3], c2)
    p['sim_w2'] = 0.2 * jax.random.normal(ks[4], (c2, 2), jnp.float32)
    p['sim_s2'], p['sim_b2'] = _fold_bn(ks[5], 2)
    p['ca_w1'] = 0.2 * jax.random.normal(ks[6], (c, c16), jnp.float32)
    p['ca_b1'] = 0.05 * jax.random.normal(ks[7], (1, c16), jnp.float32)
    p['ca_w2'] = 0.2 * jax.random.normal(ks[8], (c16, c), jnp.float32)
    p['ca_b2'] = 0.05 * jax.random.normal(ks[9], (1, c), jnp.float32)
    p['sa_w'] = 0.1 * jax.random.normal(ks[10], (2, 7, 7), jnp.float32)   # [avg/max, ky, kx]
    sa_s, sa_b = _fold_bn(ks[11], 1)
    p['sa_sb'] = jnp.array([sa_s[0, 0], sa_b[0, 0]], jnp.float32)
    p['enh_w'] = 0.1 * jax.random.normal(ks[12], (9, c, c), jnp.float32)  # (ky*3+kx, c_in, c_out)
    p['enh_s'], p['enh_b'] = _fold_bn(ks[13], c)
    return p


def efficient_feature_alignment(rgb_feat_nchw, ir_feat_nchw, homography, params,
                                refinement_steps=3):
    b, c, h, w = rgb_feat_nchw.shape
    hw = h * w
    wp = w + 2
    hwp = h * wp
    bf = jnp.bfloat16

    cur_H = homography.astype(jnp.float32)
    if cur_H.ndim == 2:
        cur_H = jnp.tile(cur_H[None], (b, 1, 1))
    if refinement_steps == 0:
        return rgb_feat_nchw * 0 + ir_feat_nchw, cur_H

    rgb_nhwc = jnp.transpose(rgb_feat_nchw, (0, 2, 3, 1)).astype(jnp.float32)
    ir_nhwc = jnp.transpose(ir_feat_nchw, (0, 2, 3, 1)).astype(jnp.float32)
    rgb_bf = rgb_nhwc.reshape(b, hw, c).astype(bf)
    # IR features in the kernel's pitch-padded flat layout: pixel (y,x) -> row y*wp + x.
    ir_pp = jnp.pad(ir_nhwc, ((0, 0), (0, 0), (0, wp - w), (0, 0))).reshape(b, hwp, c).astype(bf)

    step = _make_step_call(b, h, w, c)

    sa_taps = _build_sa_taps(params['sa_w'], w)
    sim_w1 = jnp.concatenate([params['sim_w1a'], params['sim_w1b']], axis=0).astype(bf)
    enh_w_packed = _pack_enh_weights(params['enh_w'], c)
    plist = [
        sim_w1, params['sim_s1'], params['sim_b1'], params['bn2_s'], params['bn2_b'],
        params['sim_w2'], params['sim_s2'], params['sim_b2'],
        params['ca_w1'], params['ca_b1'], params['ca_w2'], params['ca_b2'],
        sa_taps, params['sa_sb'],
        enh_w_packed, params['enh_s'], params['enh_b'],
    ]

    cur_ir = ir_pp                                                          # (B, HWP, C) bf16
    out_ir = cur_ir
    for i in range(refinement_steps):
        S = _sampling_matrix(cur_H, h, w)                                   # (B, HW, HWP) bf16
        out_ir, off_sum = step(S, cur_ir, rgb_bf, *plist)
        # offset_to_H: mean over the whole batch & spatial extent (matches PyTorch ref)
        denom = float(b * hw)
        dx = jnp.sum(off_sum[:, 0, 0]) / denom / w
        dy = jnp.sum(off_sum[:, 0, 1]) / denom / h
        delta = jnp.tile(jnp.eye(3, dtype=jnp.float32)[None], (b, 1, 1))
        delta = delta.at[:, 0, 2].set(dx).at[:, 1, 2].set(dy)
        cur_H = jnp.einsum('bij,bjk->bik', cur_H, delta)
        cur_ir = out_ir                                                     # bf16, pitch-padded

    # crop the pitch padding and apply the last-step residual in f32
    final = out_ir.reshape(b, h, wp, c)[:, :, :w, :].astype(jnp.float32) + ir_nhwc
    out_nchw = jnp.transpose(final, (0, 3, 1, 2))
    return out_nchw, cur_H


if __name__ == "__main__":
    key = jax.random.PRNGKey(0)
    kx, ki, kp = jax.random.split(key, 3)

    # C=128 keeps every big matmul N-dim and the output store fully lane-dense.
    B, C, H, W = 2, 128, 16, 16
    rgb_feat = jax.random.normal(kx, (B, C, H, W), jnp.float32)
    ir_feat = jax.random.normal(ki, (B, C, H, W), jnp.float32)
    homography = jnp.array([[1.00, 0.02, 0.05],
                            [-0.01, 1.00, -0.03],
                            [0.001, 0.00, 1.00]], jnp.float32)

    params = init_params(kp, C)

    fwd = jax.jit(functools.partial(efficient_feature_alignment, refinement_steps=3))
    out_ir, out_H = fwd(rgb_feat, ir_feat, homography, params)
    out_ir = jax.block_until_ready(out_ir)
    out_H = jax.block_until_ready(out_H)

    assert out_ir.shape == (B, C, H, W), out_ir.shape
    assert out_H.shape == (B, 3, 3), out_H.shape
    assert bool(jnp.all(jnp.isfinite(out_ir))) and bool(jnp.all(jnp.isfinite(out_H)))
    print("KERNEL_OK")
</pallas_src>

<mosaic_0001>
module attributes {stable_mosaic.version = 11 : i64} {
  func.func @_refine_step_kernel(%arg0: i32, %arg1: memref<1x256x288xbf16, #tpu.memory_space<vmem>>, %arg2: memref<1x288x128xbf16, #tpu.memory_space<vmem>>, %arg3: memref<1x256x128xbf16, #tpu.memory_space<vmem>>, %arg4: memref<256x64xbf16, #tpu.memory_space<vmem>>, %arg5: memref<1x64xf32, #tpu.memory_space<vmem>>, %arg6: memref<1x64xf32, #tpu.memory_space<vmem>>, %arg7: memref<1x64xf32, #tpu.memory_space<vmem>>, %arg8: memref<1x64xf32, #tpu.memory_space<vmem>>, %arg9: memref<64x2xf32, #tpu.memory_space<vmem>>, %arg10: memref<1x2xf32, #tpu.memory_space<vmem>>, %arg11: memref<1x2xf32, #tpu.memory_space<vmem>>, %arg12: memref<128x8xf32, #tpu.memory_space<vmem>>, %arg13: memref<1x8xf32, #tpu.memory_space<vmem>>, %arg14: memref<8x128xf32, #tpu.memory_space<vmem>>, %arg15: memref<1x128xf32, #tpu.memory_space<vmem>>, %arg16: memref<7x44x16xbf16, #tpu.memory_space<vmem>>, %arg17: memref<2xf32, #tpu.memory_space<smem>>, %arg18: memref<5x256x128xbf16, #tpu.memory_space<vmem>>, %arg19: memref<1x128xf32, #tpu.memory_space<vmem>>, %arg20: memref<1x128xf32, #tpu.memory_space<vmem>>, %arg21: memref<1x288x128xbf16, #tpu.memory_space<vmem>>, %arg22: memref<1x1x2xf32, #tpu.memory_space<vmem>>, %arg23: memref<332x128xbf16, #tpu.memory_space<vmem>>, %arg24: memref<22x44xbf16, #tpu.memory_space<vmem>>) attributes {dimension_semantics = [#tpu.dimension_semantics<parallel>], iteration_bounds = array<i64: 2>, scalar_prefetch = 0 : i64, scratch_operands = 2 : i64, tpu.core_type = #tpu.core_type<tc>, window_params = [{transform_indices = @transform_0, window_bounds = array<i64: 1, 256, 288>}, {transform_indices = @transform_1, window_bounds = array<i64: 1, 288, 128>}, {transform_indices = @transform_2, window_bounds = array<i64: 1, 256, 128>}, {pipeline_mode = #tpu.pipeline_mode<synchronous>, transform_indices = @transform_3, window_bounds = array<i64: 256, 64>}, {pipeline_mode = #tpu.pipeline_mode<synchronous>, transform_indices = @transform_4, window_bounds = array<i64: 1, 64>}, {pipeline_mode = #tpu.pipeline_mode<synchronous>, transform_indices = @transform_5, window_bounds = array<i64: 1, 64>}, {pipeline_mode = #tpu.pipeline_mode<synchronous>, transform_indices = @transform_6, window_bounds = array<i64: 1, 64>}, {pipeline_mode = #tpu.pipeline_mode<synchronous>, transform_indices = @transform_7, window_bounds = array<i64: 1, 64>}, {pipeline_mode = #tpu.pipeline_mode<synchronous>, transform_indices = @transform_8, window_bounds = array<i64: 64, 2>}, {pipeline_mode = #tpu.pipeline_mode<synchronous>, transform_indices = @transform_9, window_bounds = array<i64: 1, 2>}, {pipeline_mode = #tpu.pipeline_mode<synchronous>, transform_indices = @transform_10, window_bounds = array<i64: 1, 2>}, {pipeline_mode = #tpu.pipeline_mode<synchronous>, transform_indices = @transform_11, window_bounds = array<i64: 128, 8>}, {pipeline_mode = #tpu.pipeline_mode<synchronous>, transform_indices = @transform_12, window_bounds = array<i64: 1, 8>}, {pipeline_mode = #tpu.pipeline_mode<synchronous>, transform_indices = @transform_13, window_bounds = array<i64: 8, 128>}, {pipeline_mode = #tpu.pipeline_mode<synchronous>, transform_indices = @transform_14, window_bounds = array<i64: 1, 128>}, {pipeline_mode = #tpu.pipeline_mode<synchronous>, transform_indices = @transform_15, window_bounds = array<i64: 7, 44, 16>}, {transform_indices = @transform_16, window_bounds = array<i64: 2>}, {pipeline_mode = #tpu.pipeline_mode<synchronous>, transform_indices = @transform_17, window_bounds = array<i64: 5, 256, 128>}, {pipeline_mode = #tpu.pipeline_mode<synchronous>, transform_indices = @transform_18, window_bounds = array<i64: 1, 128>}, {pipeline_mode = #tpu.pipeline_mode<synchronous>, transform_indices = @transform_19, window_bounds = array<i64: 1, 128>}, {transform_indices = @transform_20, window_bounds = array<i64: 1, 288, 128>}, {transform_indices = @transform_21, window_bounds = array<i64: 1, 1, 2>}]} {
    %cst = arith.constant 0.000000e+00 : bf16
    %0 = vector.broadcast %cst : bf16 to vector<332x128xbf16>
    %c0 = arith.constant 0 : index
    %c0_0 = arith.constant 0 : index
    %1 = vector.load %arg23[%c0, %c0_0] : memref<332x128xbf16, #tpu.memory_space<vmem>>, vector<332x128xbf16>
    tpu.vector_store %arg23[%c0, %c0_0], %0 {strides = array<i32>} : memref<332x128xbf16, #tpu.memory_space<vmem>>, vector<332x128xbf16>,
    %cst_1 = arith.constant 0.000000e+00 : bf16
    %2 = vector.broadcast %cst_1 : bf16 to vector<22x44xbf16>
    %c0_2 = arith.constant 0 : index
    %c0_3 = arith.constant 0 : index
    %3 = vector.load %arg24[%c0_2, %c0_3] : memref<22x44xbf16, #tpu.memory_space<vmem>>, vector<22x44xbf16>
    tpu.vector_store %arg24[%c0_2, %c0_3], %2 {strides = array<i32>} : memref<22x44xbf16, #tpu.memory_space<vmem>>, vector<22x44xbf16>,
    %c0_4 = arith.constant 0 : index
    %c0_5 = arith.constant 0 : index
    %c0_6 = arith.constant 0 : index
    %4 = vector.load %arg1[%c0_4, %c0_5, %c0_6] : memref<1x256x288xbf16, #tpu.memory_space<vmem>>, vector<1x256x288xbf16>
    %5 = vector.shape_cast %4 : vector<1x256x288xbf16> to vector<256x288xbf16>
    %c0_7 = arith.constant 0 : index
    %c0_8 = arith.constant 0 : index
    %c0_9 = arith.constant 0 : index
    %6 = vector.load %arg2[%c0_7, %c0_8, %c0_9] : memref<1x288x128xbf16, #tpu.memory_space<vmem>>, vector<1x288x128xbf16>
    %7 = vector.shape_cast %6 : vector<1x288x128xbf16> to vector<288x128xbf16>
    %cst_10 = arith.constant dense<0.000000e+00> : vector<256x128xf32>
    %8 = tpu.matmul %5, %7, %cst_10 {dimension_numbers = #tpu.dot_dimension_numbers<[1], [0], [0], [1], [0, 0, 1, 1], [], []>} : vector<256x288xbf16>, vector<288x128xbf16>, vector<256x128xf32> -> vector<256x128xf32>
    %9 = arith.truncf %8 : vector<256x128xf32> to vector<256x128xbf16>
    %c0_11 = arith.constant 0 : index
    %c0_12 = arith.constant 0 : index
    %c0_13 = arith.constant 0 : index
    %10 = vector.load %arg3[%c0_11, %c0_12, %c0_13] : memref<1x256x128xbf16, #tpu.memory_space<vmem>>, vector<1x256x128xbf16>
    %11 = vector.shape_cast %10 : vector<1x256x128xbf16> to vector<256x128xbf16>
    %12 = tpu.concatenate %11, %9 in 1 : vector<256x128xbf16>, vector<256x128xbf16> -> vector<256x256xbf16>
    %c0_14 = arith.constant 0 : index
    %c0_15 = arith.constant 0 : index
    %13 = vector.load %arg4[%c0_14, %c0_15] : memref<256x64xbf16, #tpu.memory_space<vmem>>, vector<256x64xbf16>
    %cst_16 = arith.constant dense<0.000000e+00> : vector<256x64xf32>
    %14 = tpu.matmul %12, %13, %cst_16 {dimension_numbers = #tpu.dot_dimension_numbers<[1], [0], [0], [1], [0, 0, 1, 1], [], []>} : vector<256x256xbf16>, vector<256x64xbf16>, vector<256x64xf32> -> vector<256x64xf32>
    %c0_17 = arith.constant 0 : index
    %c0_18 = arith.constant 0 : index
    %15 = vector.load %arg5[%c0_17, %c0_18] : memref<1x64xf32, #tpu.memory_space<vmem>>, vector<1x64xf32>
    %16 = vector.broadcast %15 : vector<1x64xf32> to vector<256x64xf32>
    %17 = arith.mulf %14, %16 : vector<256x64xf32>
    %c0_19 = arith.constant 0 : index
    %c0_20 = arith.constant 0 : index
    %18 = vector.load %arg6[%c0_19, %c0_20] : memref<1x64xf32, #tpu.memory_space<vmem>>, vector<1x64xf32>
    %19 = vector.broadcast %18 : vector<1x64xf32> to vector<256x64xf32>
    %20 = arith.addf %17, %19 : vector<256x64xf32>
    %21 = arith.negf %20 : vector<256x64xf32>
    %22 = math.exp %21 : vector<256x64xf32>
    %cst_21 = arith.constant 1.000000e+00 : f32
    %23 = vector.broadcast %cst_21 : f32 to vector<256x64xf32>
    %24 = arith.addf %23, %22 : vector<256x64xf32>
    %25 = arith.divf %23, %24 : vector<256x64xf32>
    %26 = arith.mulf %20, %25 : vector<256x64xf32>
    %c0_22 = arith.constant 0 : index
    %c0_23 = arith.constant 0 : index
    %27 = vector.load %arg7[%c0_22, %c0_23] : memref<1x64xf32, #tpu.memory_space<vmem>>, vector<1x64xf32>
    %28 = vector.broadcast %27 : vector<1x64xf32> to vector<256x64xf32>
    %29 = arith.mulf %26, %28 : vector<256x64xf32>
    %c0_24 = arith.constant 0 : index
    %c0_25 = arith.constant 0 : index
    %30 = vector.load %arg8[%c0_24, %c0_25] : memref<1x64xf32, #tpu.memory_space<vmem>>, vector<1x64xf32>
    %31 = vector.broadcast %30 : vector<1x64xf32> to vector<256x64xf32>
    %32 = arith.addf %29, %31 : vector<256x64xf32>
    %cst_26 = arith.constant 0.000000e+00 : f32
    %33 = vector.broadcast %cst_26 : f32 to vector<256x64xf32>
    %34 = arith.maximumf %32, %33 : vector<256x64xf32>
    %c0_27 = arith.constant 0 : index
    %c0_28 = arith.constant 0 : index
    %35 = vector.load %arg9[%c0_27, %c0_28] : memref<64x2xf32, #tpu.memory_space<vmem>>, vector<64x2xf32>
    %cst_29 = arith.constant dense<0.000000e+00> : vector<256x2xf32>
    %36 = tpu.matmul %34, %35, %cst_29 {dimension_numbers = #tpu.dot_dimension_numbers<[1], [0], [0], [1], [0, 0, 1, 1], [], []>} : vector<256x64xf32>, vector<64x2xf32>, vector<256x2xf32> -> vector<256x2xf32>
    %c0_30 = arith.constant 0 : index
    %c0_31 = arith.constant 0 : index
    %37 = vector.load %arg10[%c0_30, %c0_31] : memref<1x2xf32, #tpu.memory_space<vmem>>, vector<1x2xf32>
    %38 = vector.broadcast %37 : vector<1x2xf32> to vector<256x2xf32>
    %39 = arith.mulf %36, %38 : vector<256x2xf32>
    %c0_32 = arith.constant 0 : index
    %c0_33 = arith.constant 0 : index
    %40 = vector.load %arg11[%c0_32, %c0_33] : memref<1x2xf32, #tpu.memory_space<vmem>>, vector<1x2xf32>
    %41 = vector.broadcast %40 : vector<1x2xf32> to vector<256x2xf32>
    %42 = arith.addf %39, %41 : vector<256x2xf32>
    %43 = arith.negf %42 : vector<256x2xf32>
    %44 = math.exp %43 : vector<256x2xf32>
    %cst_34 = arith.constant 1.000000e+00 : f32
    %45 = vector.broadcast %cst_34 : f32 to vector<256x2xf32>
    %46 = arith.addf %45, %44 : vector<256x2xf32>
    %47 = arith.divf %45, %46 : vector<256x2xf32>
    %48 = arith.mulf %42, %47 : vector<256x2xf32>
    %cst_35 = arith.constant dense<0.000000e+00> : vector<2xf32>
    %49 = vector.multi_reduction <add>, %48, %cst_35 [0] : vector<256x2xf32> to vector<2xf32>
    %50 = vector.shape_cast %49 : vector<2xf32> to vector<1x2xf32>
    %c0_36 = arith.constant 0 : index
    %c0_37 = arith.constant 0 : index
    %c0_38 = arith.constant 0 : index
    %51 = vector.load %arg22[%c0_36, %c0_37, %c0_38] : memref<1x1x2xf32, #tpu.memory_space<vmem>>, vector<1x1x2xf32>
    %52 = vector.shape_cast %51 : vector<1x1x2xf32> to vector<1x2xf32>
    %53 = vector.shape_cast %50 : vector<1x2xf32> to vector<1x1x2xf32>
    tpu.vector_store %arg22[%c0_36, %c0_37, %c0_38], %53 {strides = array<i32>} : memref<1x1x2xf32, #tpu.memory_space<vmem>>, vector<1x1x2xf32>,
    %cst_39 = arith.constant dense<0.000000e+00> : vector<128xf32>
    %54 = vector.multi_reduction <add>, %8, %cst_39 [0] : vector<256x128xf32> to vector<128xf32>
    %55 = vector.shape_cast %54 : vector<128xf32> to vector<1x128xf32>
    %cst_40 = arith.constant 2.560000e+02 : f32
    %56 = vector.broadcast %cst_40 : f32 to vector<1x128xf32>
    %57 = arith.divf %55, %56 : vector<1x128xf32>
    %c0_41 = arith.constant 0 : index
    %c0_42 = arith.constant 0 : index
    %58 = vector.load %arg12[%c0_41, %c0_42] : memref<128x8xf32, #tpu.memory_space<vmem>>, vector<128x8xf32>
    %cst_43 = arith.constant dense<0.000000e+00> : vector<1x8xf32>
    %59 = tpu.matmul %57, %58, %cst_43 {dimension_numbers = #tpu.dot_dimension_numbers<[1], [0], [0], [1], [0, 0, 1, 1], [], []>} : vector<1x128xf32>, vector<128x8xf32>, vector<1x8xf32> -> vector<1x8xf32>
    %c0_44 = arith.constant 0 : index
    %c0_45 = arith.constant 0 : index
    %60 = vector.load %arg13[%c0_44, %c0_45] : memref<1x8xf32, #tpu.memory_space<vmem>>, vector<1x8xf32>
    %61 = arith.addf %59, %60 : vector<1x8xf32>
    %cst_46 = arith.constant 0.000000e+00 : f32
    %62 = vector.broadcast %cst_46 : f32 to vector<1x8xf32>
    %63 = arith.maximumf %61, %62 : vector<1x8xf32>
    %c0_47 = arith.constant 0 : index
    %c0_48 = arith.constant 0 : index
    %64 = vector.load %arg14[%c0_47, %c0_48] : memref<8x128xf32, #tpu.memory_space<vmem>>, vector<8x128xf32>
    %cst_49 = arith.constant dense<0.000000e+00> : vector<1x128xf32>
    %65 = tpu.matmul %63, %64, %cst_49 {dimension_numbers = #tpu.dot_dimension_numbers<[1], [0], [0], [1], [0, 0, 1, 1], [], []>} : vector<1x8xf32>, vector<8x128xf32>, vector<1x128xf32> -> vector<1x128xf32>
    %c0_50 = arith.constant 0 : index
    %c0_51 = arith.constant 0 : index
    %66 = vector.load %arg15[%c0_50, %c0_51] : memref<1x128xf32, #tpu.memory_space<vmem>>, vector<1x128xf32>
    %67 = arith.addf %65, %66 : vector<1x128xf32>
    %68 = arith.negf %67 : vector<1x128xf32>
    %69 = math.exp %68 : vector<1x128xf32>
    %cst_52 = arith.constant 1.000000e+00 : f32
    %70 = vector.broadcast %cst_52 : f32 to vector<1x128xf32>
    %71 = arith.addf %70, %69 : vector<1x128xf32>
    %72 = arith.divf %70, %71 : vector<1x128xf32>
    %73 = vector.broadcast %72 : vector<1x128xf32> to vector<256x128xf32>
    %74 = arith.mulf %8, %73 : vector<256x128xf32>
    %75 = vector.shape_cast %74 : vector<256x128xf32> to vector<16x16x128xf32>
    %cst_53 = arith.constant dense<0.000000e+00> : vector<16x16xf32>
    %76 = vector.multi_reduction <add>, %75, %cst_53 [2] : vector<16x16x128xf32> to vector<16x16xf32>
    %cst_54 = arith.constant 1.280000e+02 : f32
    %77 = vector.broadcast %cst_54 : f32 to vector<16x16xf32>
    %78 = arith.divf %76, %77 : vector<16x16xf32>
    %79 = arith.truncf %78 : vector<16x16xf32> to vector<16x16xbf16>
    %c3 = arith.constant 3 : index
    %c3_55 = arith.constant 3 : index
    %80 = vector.load %arg24[%c3, %c3_55] : memref<22x44xbf16, #tpu.memory_space<vmem>>, vector<16x16xbf16>
    tpu.vector_store %arg24[%c3, %c3_55], %79 {strides = array<i32>} : memref<22x44xbf16, #tpu.memory_space<vmem>>, vector<16x16xbf16>,
    %cst_56 = arith.constant dense<0xFF800000> : vector<16x16xf32>
    %81 = vector.multi_reduction <maximumf>, %75, %cst_56 [2] : vector<16x16x128xf32> to vector<16x16xf32>
    %82 = arith.truncf %81 : vector<16x16xf32> to vector<16x16xbf16>
    %c3_57 = arith.constant 3 : index
    %c25 = arith.constant 25 : index
    %83 = vector.load %arg24[%c3_57, %c25] : memref<22x44xbf16, #tpu.memory_space<vmem>>, vector<16x16xbf16>
    tpu.vector_store %arg24[%c3_57, %c25], %82 {strides = array<i32>} : memref<22x44xbf16, #tpu.memory_space<vmem>>, vector<16x16xbf16>,
    %c0_58 = arith.constant 0 : index
    %c0_59 = arith.constant 0 : index
    %84 = vector.load %arg24[%c0_58, %c0_59] : memref<22x44xbf16, #tpu.memory_space<vmem>>, vector<22x44xbf16>
    %cst_60 = arith.constant 0.000000e+00 : f32
    %85 = vector.broadcast %cst_60 : f32 to vector<16x16xf32>
    %86 = vector.extract_strided_slice %84 {offsets = [0, 0], sizes = [16, 44], strides = [1, 1]} : vector<22x44xbf16> to vector<16x44xbf16>
    %c0_61 = arith.constant 0 : index
    %c0_62 = arith.constant 0 : index
    %c0_63 = arith.constant 0 : index
    %87 = vector.load %arg16[%c0_61, %c0_62, %c0_63] : memref<7x44x16xbf16, #tpu.memory_space<vmem>>, vector<1x44x16xbf16>
    %88 = vector.shape_cast %87 : vector<1x44x16xbf16> to vector<44x16xbf16>
    %cst_64 = arith.constant dense<0.000000e+00> : vector<16x16xf32>
    %89 = tpu.matmul %86, %88, %cst_64 {dimension_numbers = #tpu.dot_dimension_numbers<[1], [0], [0], [1], [0, 0, 1, 1], [], []>} : vector<16x44xbf16>, vector<44x16xbf16>, vector<16x16xf32> -> vector<16x16xf32>
    %90 = arith.addf %85, %89 : vector<16x16xf32>
    %91 = vector.extract_strided_slice %84 {offsets = [1, 0], sizes = [16, 44], strides = [1, 1]} : vector<22x44xbf16> to vector<16x44xbf16>
    %c1 = arith.constant 1 : index
    %c0_65 = arith.constant 0 : index
    %c0_66 = arith.constant 0 : index
    %92 = vector.load %arg16[%c1, %c0_65, %c0_66] : memref<7x44x16xbf16, #tpu.memory_space<vmem>>, vector<1x44x16xbf16>
    %93 = vector.shape_cast %92 : vector<1x44x16xbf16> to vector<44x16xbf16>
    %cst_67 = arith.constant dense<0.000000e+00> : vector<16x16xf32>
    %94 = tpu.matmul %91, %93, %cst_67 {dimension_numbers = #tpu.dot_dimension_numbers<[1], [0], [0], [1], [0, 0, 1, 1], [], []>} : vector<16x44xbf16>, vector<44x16xbf16>, vector<16x16xf32> -> vector<16x16xf32>
    %95 = arith.addf %90, %94 : vector<16x16xf32>
    %96 = vector.extract_strided_slice %84 {offsets = [2, 0], sizes = [16, 44], strides = [1, 1]} : vector<22x44xbf16> to vector<16x44xbf16>
    %c2 = arith.constant 2 : index
    %c0_68 = arith.constant 0 : index
    %c0_69 = arith.constant 0 : index
    %97 = vector.load %arg16[%c2, %c0_68, %c0_69] : memref<7x44x16xbf16, #tpu.memory_space<vmem>>, vector<1x44x16xbf16>
    %98 = vector.shape_cast %97 : vector<1x44x16xbf16> to vector<44x16xbf16>
    %cst_70 = arith.constant dense<0.000000e+00> : vector<16x16xf32>
    %99 = tpu.matmul %96, %98, %cst_70 {dimension_numbers = #tpu.dot_dimension_numbers<[1], [0], [0], [1], [0, 0, 1, 1], [], []>} : vector<16x44xbf16>, vector<44x16xbf16>, vector<16x16xf32> -> vector<16x16xf32>
    %100 = arith.addf %95, %99 : vector<16x16xf32>
    %101 = vector.extract_strided_slice %84 {offsets = [3, 0], sizes = [16, 44], strides = [1, 1]} : vector<22x44xbf16> to vector<16x44xbf16>
    %c3_71 = arith.constant 3 : index
    %c0_72 = arith.constant 0 : index
    %c0_73 = arith.constant 0 : index
    %102 = vector.load %arg16[%c3_71, %c0_72, %c0_73] : memref<7x44x16xbf16, #tpu.memory_space<vmem>>, vector<1x44x16xbf16>
    %103 = vector.shape_cast %102 : vector<1x44x16xbf16> to vector<44x16xbf16>
    %cst_74 = arith.constant dense<0.000000e+00> : vector<16x16xf32>
    %104 = tpu.matmul %101, %103, %cst_74 {dimension_numbers = #tpu.dot_dimension_numbers<[1], [0], [0], [1], [0, 0, 1, 1], [], []>} : vector<16x44xbf16>, vector<44x16xbf16>, vector<16x16xf32> -> vector<16x16xf32>
    %105 = arith.addf %100, %104 : vector<16x16xf32>
    %106 = vector.extract_strided_slice %84 {offsets = [4, 0], sizes = [16, 44], strides = [1, 1]} : vector<22x44xbf16> to vector<16x44xbf16>
    %c4 = arith.constant 4 : index
    %c0_75 = arith.constant 0 : index
    %c0_76 = arith.constant 0 : index
    %107 = vector.load %arg16[%c4, %c0_75, %c0_76] : memref<7x44x16xbf16, #tpu.memory_space<vmem>>, vector<1x44x16xbf16>
    %108 = vector.shape_cast %107 : vector<1x44x16xbf16> to vector<44x16xbf16>
    %cst_77 = arith.constant dense<0.000000e+00> : vector<16x16xf32>
    %109 = tpu.matmul %106, %108, %cst_77 {dimension_numbers = #tpu.dot_dimension_numbers<[1], [0], [0], [1], [0, 0, 1, 1], [], []>} : vector<16x44xbf16>, vector<44x16xbf16>, vector<16x16xf32> -> vector<16x16xf32>
    %110 = arith.addf %105, %109 : vector<16x16xf32>
    %111 = vector.extract_strided_slice %84 {offsets = [5, 0], sizes = [16, 44], strides = [1, 1]} : vector<22x44xbf16> to vector<16x44xbf16>
    %c5 = arith.constant 5 : index
    %c0_78 = arith.constant 0 : index
    %c0_79 = arith.constant 0 : index
    %112 = vector.load %arg16[%c5, %c0_78, %c0_79] : memref<7x44x16xbf16, #tpu.memory_space<vmem>>, vector<1x44x16xbf16>
    %113 = vector.shape_cast %112 : vector<1x44x16xbf16> to vector<44x16xbf16>
    %cst_80 = arith.constant dense<0.000000e+00> : vector<16x16xf32>
    %114 = tpu.matmul %111, %113, %cst_80 {dimension_numbers = #tpu.dot_dimension_numbers<[1], [0], [0], [1], [0, 0, 1, 1], [], []>} : vector<16x44xbf16>, vector<44x16xbf16>, vector<16x16xf32> -> vector<16x16xf32>
    %115 = arith.addf %110, %114 : vector<16x16xf32>
    %116 = vector.extract_strided_slice %84 {offsets = [6, 0], sizes = [16, 44], strides = [1, 1]} : vector<22x44xbf16> to vector<16x44xbf16>
    %c6 = arith.constant 6 : index
    %c0_81 = arith.constant 0 : index
    %c0_82 = arith.constant 0 : index
    %117 = vector.load %arg16[%c6, %c0_81, %c0_82] : memref<7x44x16xbf16, #tpu.memory_space<vmem>>, vector<1x44x16xbf16>
    %118 = vector.shape_cast %117 : vector<1x44x16xbf16> to vector<44x16xbf16>
    %cst_83 = arith.constant dense<0.000000e+00> : vector<16x16xf32>
    %119 = tpu.matmul %116, %118, %cst_83 {dimension_numbers = #tpu.dot_dimension_numbers<[1], [0], [0], [1], [0, 0, 1, 1], [], []>} : vector<16x44xbf16>, vector<44x16xbf16>, vector<16x16xf32> -> vector<16x16xf32>
    %120 = arith.addf %115, %119 : vector<16x16xf32>
    %c0_84 = arith.constant 0 : index
    %121 = memref.load %arg17[%c0_84] : memref<2xf32, #tpu.memory_space<smem>>
    %122 = vector.broadcast %121 : f32 to vector<16x16xf32>
    %123 = arith.mulf %120, %122 : vector<16x16xf32>
    %c1_85 = arith.constant 1 : index
    %124 = memref.load %arg17[%c1_85] : memref<2xf32, #tpu.memory_space<smem>>
    %125 = vector.broadcast %124 : f32 to vector<16x16xf32>
    %126 = arith.addf %123, %125 : vector<16x16xf32>
    %127 = arith.negf %126 : vector<16x16xf32>
    %128 = math.exp %127 : vector<16x16xf32>
    %cst_86 = arith.constant 1.000000e+00 : f32
    %129 = vector.broadcast %cst_86 : f32 to vector<16x16xf32>
    %130 = arith.addf %129, %128 : vector<16x16xf32>
    %131 = arith.divf %129, %130 : vector<16x16xf32>
    %132 = arith.mulf %126, %131 : vector<16x16xf32>
    %133 = arith.negf %132 : vector<16x16xf32>
    %134 = math.exp %133 : vector<16x16xf32>
    %cst_87 = arith.constant 1.000000e+00 : f32
    %135 = vector.broadcast %cst_87 : f32 to vector<16x16xf32>
    %136 = arith.addf %135, %134 : vector<16x16xf32>
    %137 = arith.divf %135, %136 : vector<16x16xf32>
    %138 = vector.shape_cast %137 : vector<16x16xf32> to vector<16x16x1xf32>
    %139 = vector.broadcast %138 : vector<16x16x1xf32> to vector<16x16x128xf32>
    %140 = arith.mulf %75, %139 : vector<16x16x128xf32>
    %141 = arith.truncf %140 : vector<16x16x128xf32> to vector<16x16x128xbf16>
    %142 = vector.extract_strided_slice %141 {offsets = [0, 0, 0], sizes = [1, 16, 128], strides = [1, 1, 1]} : vector<16x16x128xbf16> to vector<1x16x128xbf16>
    %143 = vector.shape_cast %142 : vector<1x16x128xbf16> to vector<16x128xbf16>
    %c19 = arith.constant 19 : index
    %c0_88 = arith.constant 0 : index
    %144 = vector.load %arg23[%c19, %c0_88] : memref<332x128xbf16, #tpu.memory_space<vmem>>, vector<16x128xbf16>
    tpu.vector_store %arg23[%c19, %c0_88], %143 {strides = array<i32>} : memref<332x128xbf16, #tpu.memory_space<vmem>>, vector<16x128xbf16>,
    %145 = vector.extract_strided_slice %141 {offsets = [1, 0, 0], sizes = [1, 16, 128], strides = [1, 1, 1]} : vector<16x16x128xbf16> to vector<1x16x128xbf16>
    %146 = vector.shape_cast %145 : vector<1x16x128xbf16> to vector<16x128xbf16>
    %c37 = arith.constant 37 : index
    %c0_89 = arith.constant 0 : index
    %147 = vector.load %arg23[%c37, %c0_89] : memref<332x128xbf16, #tpu.memory_space<vmem>>, vector<16x128xbf16>
    tpu.vector_store %arg23[%c37, %c0_89], %146 {strides = array<i32>} : memref<332x128xbf16, #tpu.memory_space<vmem>>, vector<16x128xbf16>,
    %148 = vector.extract_strided_slice %141 {offsets = [2, 0, 0], sizes = [1, 16, 128], strides = [1, 1, 1]} : vector<16x16x128xbf16> to vector<1x16x128xbf16>
    %149 = vector.shape_cast %148 : vector<1x16x128xbf16> to vector<16x128xbf16>
    %c55 = arith.constant 55 : index
    %c0_90 = arith.constant 0 : index
    %150 = vector.load %arg23[%c55, %c0_90] : memref<332x128xbf16, #tpu.memory_space<vmem>>, vector<16x128xbf16>
    tpu.vector_store %arg23[%c55, %c0_90], %149 {strides = array<i32>} : memref<332x128xbf16, #tpu.memory_space<vmem>>, vector<16x128xbf16>,
    %151 = vector.extract_strided_slice %141 {offsets = [3, 0, 0], sizes = [1, 16, 128], strides = [1, 1, 1]} : vector<16x16x128xbf16> to vector<1x16x128xbf16>
    %152 = vector.shape_cast %151 : vector<1x16x128xbf16> to vector<16x128xbf16>
    %c73 = arith.constant 73 : index
    %c0_91 = arith.constant 0 : index
    %153 = vector.load %arg23[%c73, %c0_91] : memref<332x128xbf16, #tpu.memory_space<vmem>>, vector<16x128xbf16>
    tpu.vector_store %arg23[%c73, %c0_91], %152 {strides = array<i32>} : memref<332x128xbf16, #tpu.memory_space<vmem>>, vector<16x128xbf16>,
    %154 = vector.extract_strided_slice %141 {offsets = [4, 0, 0], sizes = [1, 16, 128], strides = [1, 1, 1]} : vector<16x16x128xbf16> to vector<1x16x128xbf16>
    %155 = vector.shape_cast %154 : vector<1x16x128xbf16> to vector<16x128xbf16>
    %c91 = arith.constant 91 : index
    %c0_92 = arith.constant 0 : index
    %156 = vector.load %arg23[%c91, %c0_92] : memref<332x128xbf16, #tpu.memory_space<vmem>>, vector<16x128xbf16>
    tpu.vector_store %arg23[%c91, %c0_92], %155 {strides = array<i32>} : memref<332x128xbf16, #tpu.memory_space<vmem>>, vector<16x128xbf16>,
    %157 = vector.extract_strided_slice %141 {offsets = [5, 0, 0], sizes = [1, 16, 128], strides = [1, 1, 1]} : vector<16x16x128xbf16> to vector<1x16x128xbf16>
    %158 = vector.shape_cast %157 : vector<1x16x128xbf16> to vector<16x128xbf16>
    %c109 = arith.constant 109 : index
    %c0_93 = arith.constant 0 : index
    %159 = vector.load %arg23[%c109, %c0_93] : memref<332x128xbf16, #tpu.memory_space<vmem>>, vector<16x128xbf16>
    tpu.vector_store %arg23[%c109, %c0_93], %158 {strides = array<i32>} : memref<332x128xbf16, #tpu.memory_space<vmem>>, vector<16x128xbf16>,
    %160 = vector.extract_strided_slice %141 {offsets = [6, 0, 0], sizes = [1, 16, 128], strides = [1, 1, 1]} : vector<16x16x128xbf16> to vector<1x16x128xbf16>
    %161 = vector.shape_cast %160 : vector<1x16x128xbf16> to vector<16x128xbf16>
    %c127 = arith.constant 127 : index
    %c0_94 = arith.constant 0 : index
    %162 = vector.load %arg23[%c127, %c0_94] : memref<332x128xbf16, #tpu.memory_space<vmem>>, vector<16x128xbf16>
    tpu.vector_store %arg23[%c127, %c0_94], %161 {strides = array<i32>} : memref<332x128xbf16, #tpu.memory_space<vmem>>, vector<16x128xbf16>,
    %163 = vector.extract_strided_slice %141 {offsets = [7, 0, 0], sizes = [1, 16, 128], strides = [1, 1, 1]} : vector<16x16x128xbf16> to vector<1x16x128xbf16>
    %164 = vector.shape_cast %163 : vector<1x16x128xbf16> to vector<16x128xbf16>
    %c145 = arith.constant 145 : index
    %c0_95 = arith.constant 0 : index
    %165 = vector.load %arg23[%c145, %c0_95] : memref<332x128xbf16, #tpu.memory_space<vmem>>, vector<16x128xbf16>
    tpu.vector_store %arg23[%c145, %c0_95], %164 {strides = array<i32>} : memref<332x128xbf16, #tpu.memory_space<vmem>>, vector<16x128xbf16>,
    %166 = vector.extract_strided_slice %141 {offsets = [8, 0, 0], sizes = [1, 16, 128], strides = [1, 1, 1]} : vector<16x16x128xbf16> to vector<1x16x128xbf16>
    %167 = vector.shape_cast %166 : vector<1x16x128xbf16> to vector<16x128xbf16>
    %c163 = arith.constant 163 : index
    %c0_96 = arith.constant 0 : index
    %168 = vector.load %arg23[%c163, %c0_96] : memref<332x128xbf16, #tpu.memory_space<vmem>>, vector<16x128xbf16>
    tpu.vector_store %arg23[%c163, %c0_96], %167 {strides = array<i32>} : memref<332x128xbf16, #tpu.memory_space<vmem>>, vector<16x128xbf16>,
    %169 = vector.extract_strided_slice %141 {offsets = [9, 0, 0], sizes = [1, 16, 128], strides = [1, 1, 1]} : vector<16x16x128xbf16> to vector<1x16x128xbf16>
    %170 = vector.shape_cast %169 : vector<1x16x128xbf16> to vector<16x128xbf16>
    %c181 = arith.constant 181 : index
    %c0_97 = arith.constant 0 : index
    %171 = vector.load %arg23[%c181, %c0_97] : memref<332x128xbf16, #tpu.memory_space<vmem>>, vector<16x128xbf16>
    tpu.vector_store %arg23[%c181, %c0_97], %170 {strides = array<i32>} : memref<332x128xbf16, #tpu.memory_space<vmem>>, vector<16x128xbf16>,
    %172 = vector.extract_strided_slice %141 {offsets = [10, 0, 0], sizes = [1, 16, 128], strides = [1, 1, 1]} : vector<16x16x128xbf16> to vector<1x16x128xbf16>
    %173 = vector.shape_cast %172 : vector<1x16x128xbf16> to vector<16x128xbf16>
    %c199 = arith.constant 199 : index
    %c0_98 = arith.constant 0 : index
    %174 = vector.load %arg23[%c199, %c0_98] : memref<332x128xbf16, #tpu.memory_space<vmem>>, vector<16x128xbf16>
    tpu.vector_store %arg23[%c199, %c0_98], %173 {strides = array<i32>} : memref<332x128xbf16, #tpu.memory_space<vmem>>, vector<16x128xbf16>,
    %175 = vector.extract_strided_slice %141 {offsets = [11, 0, 0], sizes = [1, 16, 128], strides = [1, 1, 1]} : vector<16x16x128xbf16> to vector<1x16x128xbf16>
    %176 = vector.shape_cast %175 : vector<1x16x128xbf16> to vector<16x128xbf16>
    %c217 = arith.constant 217 : index
    %c0_99 = arith.constant 0 : index
    %177 = vector.load %arg23[%c217, %c0_99] : memref<332x128xbf16, #tpu.memory_space<vmem>>, vector<16x128xbf16>
    tpu.vector_store %arg23[%c217, %c0_99], %176 {strides = array<i32>} : memref<332x128xbf16, #tpu.memory_space<vmem>>, vector<16x128xbf16>,
    %178 = vector.extract_strided_slice %141 {offsets = [12, 0, 0], sizes = [1, 16, 128], strides = [1, 1, 1]} : vector<16x16x128xbf16> to vector<1x16x128xbf16>
    %179 = vector.shape_cast %178 : vector<1x16x128xbf16> to vector<16x128xbf16>
    %c235 = arith.constant 235 : index
    %c0_100 = arith.constant 0 : index
    %180 = vector.load %arg23[%c235, %c0_100] : memref<332x128xbf16, #tpu.memory_space<vmem>>, vector<16x128xbf16>
    tpu.vector_store %arg23[%c235, %c0_100], %179 {strides = array<i32>} : memref<332x128xbf16, #tpu.memory_space<vmem>>, vector<16x128xbf16>,
    %181 = vector.extract_strided_slice %141 {offsets = [13, 0, 0], sizes = [1, 16, 128], strides = [1, 1, 1]} : vector<16x16x128xbf16> to vector<1x16x128xbf16>
    %182 = vector.shape_cast %181 : vector<1x16x128xbf16> to vector<16x128xbf16>
    %c253 = arith.constant 253 : index
    %c0_101 = arith.constant 0 : index
    %183 = vector.load %arg23[%c253, %c0_101] : memref<332x128xbf16, #tpu.memory_space<vmem>>, vector<16x128xbf16>
    tpu.vector_store %arg23[%c253, %c0_101], %182 {strides = array<i32>} : memref<332x128xbf16, #tpu.memory_space<vmem>>, vector<16x128xbf16>,
    %184 = vector.extract_strided_slice %141 {offsets = [14, 0, 0], sizes = [1, 16, 128], strides = [1, 1, 1]} : vector<16x16x128xbf16> to vector<1x16x128xbf16>
    %185 = vector.shape_cast %184 : vector<1x16x128xbf16> to vector<16x128xbf16>
    %c271 = arith.constant 271 : index
    %c0_102 = arith.constant 0 : index
    %186 = vector.load %arg23[%c271, %c0_102] : memref<332x128xbf16, #tpu.memory_space<vmem>>, vector<16x128xbf16>
    tpu.vector_store %arg23[%c271, %c0_102], %185 {strides = array<i32>} : memref<332x128xbf16, #tpu.memory_space<vmem>>, vector<16x128xbf16>,
    %187 = vector.extract_strided_slice %141 {offsets = [15, 0, 0], sizes = [1, 16, 128], strides = [1, 1, 1]} : vector<16x16x128xbf16> to vector<1x16x128xbf16>
    %188 = vector.shape_cast %187 : vector<1x16x128xbf16> to vector<16x128xbf16>
    %c289 = arith.constant 289 : index
    %c0_103 = arith.constant 0 : index
    %189 = vector.load %arg23[%c289, %c0_103] : memref<332x128xbf16, #tpu.memory_space<vmem>>, vector<16x128xbf16>
    tpu.vector_store %arg23[%c289, %c0_103], %188 {strides = array<i32>} : memref<332x128xbf16, #tpu.memory_space<vmem>>, vector<16x128xbf16>,
    %cst_104 = arith.constant 0.000000e+00 : f32
    %190 = vector.broadcast %cst_104 : f32 to vector<96x128xf32>
    %c0_105 = arith.constant 0 : index
    %c0_106 = arith.constant 0 : index
    %191 = vector.load %arg23[%c0_105, %c0_106] : memref<332x128xbf16, #tpu.memory_space<vmem>>, vector<96x128xbf16>
    %c1_107 = arith.constant 1 : index
    %c0_108 = arith.constant 0 : index
    %192 = vector.load %arg23[%c1_107, %c0_108] : memref<332x128xbf16, #tpu.memory_space<vmem>>, vector<96x128xbf16>
    %193 = tpu.concatenate %191, %192 in 1 : vector<96x128xbf16>, vector<96x128xbf16> -> vector<96x256xbf16>
    %c0_109 = arith.constant 0 : index
    %c0_110 = arith.constant 0 : index
    %c0_111 = arith.constant 0 : index
    %194 = vector.load %arg18[%c0_109, %c0_110, %c0_111] : memref<5x256x128xbf16, #tpu.memory_space<vmem>>, vector<1x256x128xbf16>
    %195 = vector.shape_cast %194 : vector<1x256x128xbf16> to vector<256x128xbf16>
    %cst_112 = arith.constant dense<0.000000e+00> : vector<96x128xf32>
    %196 = tpu.matmul %193, %195, %cst_112 {dimension_numbers = #tpu.dot_dimension_numbers<[1], [0], [0], [1], [0, 0, 1, 1], [], []>} : vector<96x256xbf16>, vector<256x128xbf16>, vector<96x128xf32> -> vector<96x128xf32>
    %197 = arith.addf %190, %196 : vector<96x128xf32>
    %c2_113 = arith.constant 2 : index
    %c0_114 = arith.constant 0 : index
    %198 = vector.load %arg23[%c2_113, %c0_114] : memref<332x128xbf16, #tpu.memory_space<vmem>>, vector<96x128xbf16>
    %c18 = arith.constant 18 : index
    %c0_115 = arith.constant 0 : index
    %199 = vector.load %arg23[%c18, %c0_115] : memref<332x128xbf16, #tpu.memory_space<vmem>>, vector<96x128xbf16>
    %200 = tpu.concatenate %198, %199 in 1 : vector<96x128xbf16>, vector<96x128xbf16> -> vector<96x256xbf16>
    %c1_116 = arith.constant 1 : index
    %c0_117 = arith.constant 0 : index
    %c0_118 = arith.constant 0 : index
    %201 = vector.load %arg18[%c1_116, %c0_117, %c0_118] : memref<5x256x128xbf16, #tpu.memory_space<vmem>>, vector<1x256x128xbf16>
    %202 = vector.shape_cast %201 : vector<1x256x128xbf16> to vector<256x128xbf16>
    %cst_119 = arith.constant dense<0.000000e+00> : vector<96x128xf32>
    %203 = tpu.matmul %200, %202, %cst_119 {dimension_numbers = #tpu.dot_dimension_numbers<[1], [0], [0], [1], [0, 0, 1, 1], [], []>} : vector<96x256xbf16>, vector<256x128xbf16>, vector<96x128xf32> -> vector<96x128xf32>
    %204 = arith.addf %197, %203 : vector<96x128xf32>
    %c19_120 = arith.constant 19 : index
    %c0_121 = arith.constant 0 : index
    %205 = vector.load %arg23[%c19_120, %c0_121] : memref<332x128xbf16, #tpu.memory_space<vmem>>, vector<96x128xbf16>
    %c20 = arith.constant 20 : index
    %c0_122 = arith.constant 0 : index
    %206 = vector.load %arg23[%c20, %c0_122] : memref<332x128xbf16, #tpu.memory_space<vmem>>, vector<96x128xbf16>
    %207 = tpu.concatenate %205, %206 in 1 : vector<96x128xbf16>, vector<96x128xbf16> -> vector<96x256xbf16>
    %c2_123 = arith.constant 2 : index
    %c0_124 = arith.constant 0 : index
    %c0_125 = arith.constant 0 : index
    %208 = vector.load %arg18[%c2_123, %c0_124, %c0_125] : memref<5x256x128xbf16, #tpu.memory_space<vmem>>, vector<1x256x128xbf16>
    %209 = vector.shape_cast %208 : vector<1x256x128xbf16> to vector<256x128xbf16>
    %cst_126 = arith.constant dense<0.000000e+00> : vector<96x128xf32>
    %210 = tpu.matmul %207, %209, %cst_126 {dimension_numbers = #tpu.dot_dimension_numbers<[1], [0], [0], [1], [0, 0, 1, 1], [], []>} : vector<96x256xbf16>, vector<256x128xbf16>, vector<96x128xf32> -> vector<96x128xf32>
    %211 = arith.addf %204, %210 : vector<96x128xf32>
    %c36 = arith.constant 36 : index
    %c0_127 = arith.constant 0 : index
    %212 = vector.load %arg23[%c36, %c0_127] : memref<332x128xbf16, #tpu.memory_space<vmem>>, vector<96x128xbf16>
    %c37_128 = arith.constant 37 : index
    %c0_129 = arith.constant 0 : index
    %213 = vector.load %arg23[%c37_128, %c0_129] : memref<332x128xbf16, #tpu.memory_space<vmem>>, vector<96x128xbf16>
    %214 = tpu.concatenate %212, %213 in 1 : vector<96x128xbf16>, vector<96x128xbf16> -> vector<96x256xbf16>
    %c3_130 = arith.constant 3 : index
    %c0_131 = arith.constant 0 : index
    %c0_132 = arith.constant 0 : index
    %215 = vector.load %arg18[%c3_130, %c0_131, %c0_132] : memref<5x256x128xbf16, #tpu.memory_space<vmem>>, vector<1x256x128xbf16>
    %216 = vector.shape_cast %215 : vector<1x256x128xbf16> to vector<256x128xbf16>
    %cst_133 = arith.constant dense<0.000000e+00> : vector<96x128xf32>
    %217 = tpu.matmul %214, %216, %cst_133 {dimension_numbers = #tpu.dot_dimension_numbers<[1], [0], [0], [1], [0, 0, 1, 1], [], []>} : vector<96x256xbf16>, vector<256x128xbf16>, vector<96x128xf32> -> vector<96x128xf32>
    %218 = arith.addf %211, %217 : vector<96x128xf32>
    %c38 = arith.constant 38 : index
    %c0_134 = arith.constant 0 : index
    %219 = vector.load %arg23[%c38, %c0_134] : memref<332x128xbf16, #tpu.memory_space<vmem>>, vector<96x128xbf16>
    %c38_135 = arith.constant 38 : index
    %c0_136 = arith.constant 0 : index
    %220 = vector.load %arg23[%c38_135, %c0_136] : memref<332x128xbf16, #tpu.memory_space<vmem>>, vector<96x128xbf16>
    %221 = tpu.concatenate %219, %220 in 1 : vector<96x128xbf16>, vector<96x128xbf16> -> vector<96x256xbf16>
    %c4_137 = arith.constant 4 : index
    %c0_138 = arith.constant 0 : index
    %c0_139 = arith.constant 0 : index
    %222 = vector.load %arg18[%c4_137, %c0_138, %c0_139] : memref<5x256x128xbf16, #tpu.memory_space<vmem>>, vector<1x256x128xbf16>
    %223 = vector.shape_cast %222 : vector<1x256x128xbf16> to vector<256x128xbf16>
    %cst_140 = arith.constant dense<0.000000e+00> : vector<96x128xf32>
    %224 = tpu.matmul %221, %223, %cst_140 {dimension_numbers = #tpu.dot_dimension_numbers<[1], [0], [0], [1], [0, 0, 1, 1], [], []>} : vector<96x256xbf16>, vector<256x128xbf16>, vector<96x128xf32> -> vector<96x128xf32>
    %225 = arith.addf %218, %224 : vector<96x128xf32>
    %c0_141 = arith.constant 0 : index
    %c0_142 = arith.constant 0 : index
    %226 = vector.load %arg19[%c0_141, %c0_142] : memref<1x128xf32, #tpu.memory_space<vmem>>, vector<1x128xf32>
    %227 = vector.broadcast %226 : vector<1x128xf32> to vector<96x128xf32>
    %228 = arith.mulf %225, %227 : vector<96x128xf32>
    %c0_143 = arith.constant 0 : index
    %c0_144 = arith.constant 0 : index
    %229 = vector.load %arg20[%c0_143, %c0_144] : memref<1x128xf32, #tpu.memory_space<vmem>>, vector<1x128xf32>
    %230 = vector.broadcast %229 : vector<1x128xf32> to vector<96x128xf32>
    %231 = arith.addf %228, %230 : vector<96x128xf32>
    %232 = arith.negf %231 : vector<96x128xf32>
    %233 = math.exp %232 : vector<96x128xf32>
    %cst_145 = arith.constant 1.000000e+00 : f32
    %234 = vector.broadcast %cst_145 : f32 to vector<96x128xf32>
    %235 = arith.addf %234, %233 : vector<96x128xf32>
    %236 = arith.divf %234, %235 : vector<96x128xf32>
    %237 = arith.mulf %231, %236 : vector<96x128xf32>
    %238 = arith.truncf %237 : vector<96x128xf32> to vector<96x128xbf16>
    %c0_146 = arith.constant 0 : index
    %c0_147 = arith.constant 0 : index
    %c0_148 = arith.constant 0 : index
    %239 = vector.load %arg21[%c0_146, %c0_147, %c0_148] : memref<1x288x128xbf16, #tpu.memory_space<vmem>>, vector<1x96x128xbf16>
    %240 = vector.shape_cast %239 : vector<1x96x128xbf16> to vector<96x128xbf16>
    %241 = vector.shape_cast %238 : vector<96x128xbf16> to vector<1x96x128xbf16>
    tpu.vector_store %arg21[%c0_146, %c0_147, %c0_148], %241 {strides = array<i32>} : memref<1x288x128xbf16, #tpu.memory_space<vmem>>, vector<1x96x128xbf16>,
    %cst_149 = arith.constant 0.000000e+00 : f32
    %242 = vector.broadcast %cst_149 : f32 to vector<96x128xf32>
    %c96 = arith.constant 96 : index
    %c0_150 = arith.constant 0 : index
    %243 = vector.load %arg23[%c96, %c0_150] : memref<332x128xbf16, #tpu.memory_space<vmem>>, vector<96x128xbf16>
    %c97 = arith.constant 97 : index
    %c0_151 = arith.constant 0 : index
    %244 = vector.load %arg23[%c97, %c0_151] : memref<332x128xbf16, #tpu.memory_space<vmem>>, vector<96x128xbf16>
    %245 = tpu.concatenate %243, %244 in 1 : vector<96x128xbf16>, vector<96x128xbf16> -> vector<96x256xbf16>
    %c0_152 = arith.constant 0 : index
    %c0_153 = arith.constant 0 : index
    %c0_154 = arith.constant 0 : index
    %246 = vector.load %arg18[%c0_152, %c0_153, %c0_154] : memref<5x256x128xbf16, #tpu.memory_space<vmem>>, vector<1x256x128xbf16>
    %247 = vector.shape_cast %246 : vector<1x256x128xbf16> to vector<256x128xbf16>
    %cst_155 = arith.constant dense<0.000000e+00> : vector<96x128xf32>
    %248 = tpu.matmul %245, %247, %cst_155 {dimension_numbers = #tpu.dot_dimension_numbers<[1], [0], [0], [1], [0, 0, 1, 1], [], []>} : vector<96x256xbf16>, vector<256x128xbf16>, vector<96x128xf32> -> vector<96x128xf32>
    %249 = arith.addf %242, %248 : vector<96x128xf32>
    %c98 = arith.constant 98 : index
    %c0_156 = arith.constant 0 : index
    %250 = vector.load %arg23[%c98, %c0_156] : memref<332x128xbf16, #tpu.memory_space<vmem>>, vector<96x128xbf16>
    %c114 = arith.constant 114 : index
    %c0_157 = arith.constant 0 : index
    %251 = vector.load %arg23[%c114, %c0_157] : memref<332x128xbf16, #tpu.memory_space<vmem>>, vector<96x128xbf16>
    %252 = tpu.concatenate %250, %251 in 1 : vector<96x128xbf16>, vector<96x128xbf16> -> vector<96x256xbf16>
    %c1_158 = arith.constant 1 : index
    %c0_159 = arith.constant 0 : index
    %c0_160 = arith.constant 0 : index
    %253 = vector.load %arg18[%c1_158, %c0_159, %c0_160] : memref<5x256x128xbf16, #tpu.memory_space<vmem>>, vector<1x256x128xbf16>
    %254 = vector.shape_cast %253 : vector<1x256x128xbf16> to vector<256x128xbf16>
    %cst_161 = arith.constant dense<0.000000e+00> : vector<96x128xf32>
    %255 = tpu.matmul %252, %254, %cst_161 {dimension_numbers = #tpu.dot_dimension_numbers<[1], [0], [0], [1], [0, 0, 1, 1], [], []>} : vector<96x256xbf16>, vector<256x128xbf16>, vector<96x128xf32> -> vector<96x128xf32>
    %256 = arith.addf %249, %255 : vector<96x128xf32>
    %c115 = arith.constant 115 : index
    %c0_162 = arith.constant 0 : index
    %257 = vector.load %arg23[%c115, %c0_162] : memref<332x128xbf16, #tpu.memory_space<vmem>>, vector<96x128xbf16>
    %c116 = arith.constant 116 : index
    %c0_163 = arith.constant 0 : index
    %258 = vector.load %arg23[%c116, %c0_163] : memref<332x128xbf16, #tpu.memory_space<vmem>>, vector<96x128xbf16>
    %259 = tpu.concatenate %257, %258 in 1 : vector<96x128xbf16>, vector<96x128xbf16> -> vector<96x256xbf16>
    %c2_164 = arith.constant 2 : index
    %c0_165 = arith.constant 0 : index
    %c0_166 = arith.constant 0 : index
    %260 = vector.load %arg18[%c2_164, %c0_165, %c0_166] : memref<5x256x128xbf16, #tpu.memory_space<vmem>>, vector<1x256x128xbf16>
    %261 = vector.shape_cast %260 : vector<1x256x128xbf16> to vector<256x128xbf16>
    %cst_167 = arith.constant dense<0.000000e+00> : vector<96x128xf32>
    %262 = tpu.matmul %259, %261, %cst_167 {dimension_numbers = #tpu.dot_dimension_numbers<[1], [0], [0], [1], [0, 0, 1, 1], [], []>} : vector<96x256xbf16>, vector<256x128xbf16>, vector<96x128xf32> -> vector<96x128xf32>
    %263 = arith.addf %256, %262 : vector<96x128xf32>
    %c132 = arith.constant 132 : index
    %c0_168 = arith.constant 0 : index
    %264 = vector.load %arg23[%c132, %c0_168] : memref<332x128xbf16, #tpu.memory_space<vmem>>, vector<96x128xbf16>
    %c133 = arith.constant 133 : index
    %c0_169 = arith.constant 0 : index
    %265 = vector.load %arg23[%c133, %c0_169] : memref<332x128xbf16, #tpu.memory_space<vmem>>, vector<96x128xbf16>
    %266 = tpu.concatenate %264, %265 in 1 : vector<96x128xbf16>, vector<96x128xbf16> -> vector<96x256xbf16>
    %c3_170 = arith.constant 3 : index
    %c0_171 = arith.constant 0 : index
    %c0_172 = arith.constant 0 : index
    %267 = vector.load %arg18[%c3_170, %c0_171, %c0_172] : memref<5x256x128xbf16, #tpu.memory_space<vmem>>, vector<1x256x128xbf16>
    %268 = vector.shape_cast %267 : vector<1x256x128xbf16> to vector<256x128xbf16>
    %cst_173 = arith.constant dense<0.000000e+00> : vector<96x128xf32>
    %269 = tpu.matmul %266, %268, %cst_173 {dimension_numbers = #tpu.dot_dimension_numbers<[1], [0], [0], [1], [0, 0, 1, 1], [], []>} : vector<96x256xbf16>, vector<256x128xbf16>, vector<96x128xf32> -> vector<96x128xf32>
    %270 = arith.addf %263, %269 : vector<96x128xf32>
    %c134 = arith.constant 134 : index
    %c0_174 = arith.constant 0 : index
    %271 = vector.load %arg23[%c134, %c0_174] : memref<332x128xbf16, #tpu.memory_space<vmem>>, vector<96x128xbf16>
    %c134_175 = arith.constant 134 : index
    %c0_176 = arith.constant 0 : index
    %272 = vector.load %arg23[%c134_175, %c0_176] : memref<332x128xbf16, #tpu.memory_space<vmem>>, vector<96x128xbf16>
    %273 = tpu.concatenate %271, %272 in 1 : vector<96x128xbf16>, vector<96x128xbf16> -> vector<96x256xbf16>
    %c4_177 = arith.constant 4 : index
    %c0_178 = arith.constant 0 : index
    %c0_179 = arith.constant 0 : index
    %274 = vector.load %arg18[%c4_177, %c0_178, %c0_179] : memref<5x256x128xbf16, #tpu.memory_space<vmem>>, vector<1x256x128xbf16>
    %275 = vector.shape_cast %274 : vector<1x256x128xbf16> to vector<256x128xbf16>
    %cst_180 = arith.constant dense<0.000000e+00> : vector<96x128xf32>
    %276 = tpu.matmul %273, %275, %cst_180 {dimension_numbers = #tpu.dot_dimension_numbers<[1], [0], [0], [1], [0, 0, 1, 1], [], []>} : vector<96x256xbf16>, vector<256x128xbf16>, vector<96x128xf32> -> vector<96x128xf32>
    %277 = arith.addf %270, %276 : vector<96x128xf32>
    %c0_181 = arith.constant 0 : index
    %c0_182 = arith.constant 0 : index
    %278 = vector.load %arg19[%c0_181, %c0_182] : memref<1x128xf32, #tpu.memory_space<vmem>>, vector<1x128xf32>
    %279 = vector.broadcast %278 : vector<1x128xf32> to vector<96x128xf32>
    %280 = arith.mulf %277, %279 : vector<96x128xf32>
    %c0_183 = arith.constant 0 : index
    %c0_184 = arith.constant 0 : index
    %281 = vector.load %arg20[%c0_183, %c0_184] : memref<1x128xf32, #tpu.memory_space<vmem>>, vector<1x128xf32>
    %282 = vector.broadcast %281 : vector<1x128xf32> to vector<96x128xf32>
    %283 = arith.addf %280, %282 : vector<96x128xf32>
    %284 = arith.negf %283 : vector<96x128xf32>
    %285 = math.exp %284 : vector<96x128xf32>
    %cst_185 = arith.constant 1.000000e+00 : f32
    %286 = vector.broadcast %cst_185 : f32 to vector<96x128xf32>
    %287 = arith.addf %286, %285 : vector<96x128xf32>
    %288 = arith.divf %286, %287 : vector<96x128xf32>
    %289 = arith.mulf %283, %288 : vector<96x128xf32>
    %290 = arith.truncf %289 : vector<96x128xf32> to vector<96x128xbf16>
    %c0_186 = arith.constant 0 : index
    %c96_187 = arith.constant 96 : index
    %c0_188 = arith.constant 0 : index
    %291 = vector.load %arg21[%c0_186, %c96_187, %c0_188] : memref<1x288x128xbf16, #tpu.memory_space<vmem>>, vector<1x96x128xbf16>
    %292 = vector.shape_cast %291 : vector<1x96x128xbf16> to vector<96x128xbf16>
    %293 = vector.shape_cast %290 : vector<96x128xbf16> to vector<1x96x128xbf16>
    tpu.vector_store %arg21[%c0_186, %c96_187, %c0_188], %293 {strides = array<i32>} : memref<1x288x128xbf16, #tpu.memory_space<vmem>>, vector<1x96x128xbf16>,
    %cst_189 = arith.constant 0.000000e+00 : f32
    %294 = vector.broadcast %cst_189 : f32 to vector<96x128xf32>
    %c192 = arith.constant 192 : index
    %c0_190 = arith.constant 0 : index
    %295 = vector.load %arg23[%c192, %c0_190] : memref<332x128xbf16, #tpu.memory_space<vmem>>, vector<96x128xbf16>
    %c193 = arith.constant 193 : index
    %c0_191 = arith.constant 0 : index
    %296 = vector.load %arg23[%c193, %c0_191] : memref<332x128xbf16, #tpu.memory_space<vmem>>, vector<96x128xbf16>
    %297 = tpu.concatenate %295, %296 in 1 : vector<96x128xbf16>, vector<96x128xbf16> -> vector<96x256xbf16>
    %c0_192 = arith.constant 0 : index
    %c0_193 = arith.constant 0 : index
    %c0_194 = arith.constant 0 : index
    %298 = vector.load %arg18[%c0_192, %c0_193, %c0_194] : memref<5x256x128xbf16, #tpu.memory_space<vmem>>, vector<1x256x128xbf16>
    %299 = vector.shape_cast %298 : vector<1x256x128xbf16> to vector<256x128xbf16>
    %cst_195 = arith.constant dense<0.000000e+00> : vector<96x128xf32>
    %300 = tpu.matmul %297, %299, %cst_195 {dimension_numbers = #tpu.dot_dimension_numbers<[1], [0], [0], [1], [0, 0, 1, 1], [], []>} : vector<96x256xbf16>, vector<256x128xbf16>, vector<96x128xf32> -> vector<96x128xf32>
    %301 = arith.addf %294, %300 : vector<96x128xf32>
    %c194 = arith.constant 194 : index
    %c0_196 = arith.constant 0 : index
    %302 = vector.load %arg23[%c194, %c0_196] : memref<332x128xbf16, #tpu.memory_space<vmem>>, vector<96x128xbf16>
    %c210 = arith.constant 210 : index
    %c0_197 = arith.constant 0 : index
    %303 = vector.load %arg23[%c210, %c0_197] : memref<332x128xbf16, #tpu.memory_space<vmem>>, vector<96x128xbf16>
    %304 = tpu.concatenate %302, %303 in 1 : vector<96x128xbf16>, vector<96x128xbf16> -> vector<96x256xbf16>
    %c1_198 = arith.constant 1 : index
    %c0_199 = arith.constant 0 : index
    %c0_200 = arith.constant 0 : index
    %305 = vector.load %arg18[%c1_198, %c0_199, %c0_200] : memref<5x256x128xbf16, #tpu.memory_space<vmem>>, vector<1x256x128xbf16>
    %306 = vector.shape_cast %305 : vector<1x256x128xbf16> to vector<256x128xbf16>
    %cst_201 = arith.constant dense<0.000000e+00> : vector<96x128xf32>
    %307 = tpu.matmul %304, %306, %cst_201 {dimension_numbers = #tpu.dot_dimension_numbers<[1], [0], [0], [1], [0, 0, 1, 1], [], []>} : vector<96x256xbf16>, vector<256x128xbf16>, vector<96x128xf32> -> vector<96x128xf32>
    %308 = arith.addf %301, %307 : vector<96x128xf32>
    %c211 = arith.constant 211 : index
    %c0_202 = arith.constant 0 : index
    %309 = vector.load %arg23[%c211, %c0_202] : memref<332x128xbf16, #tpu.memory_space<vmem>>, vector<96x128xbf16>
    %c212 = arith.constant 212 : index
    %c0_203 = arith.constant 0 : index
    %310 = vector.load %arg23[%c212, %c0_203] : memref<332x128xbf16, #tpu.memory_space<vmem>>, vector<96x128xbf16>
    %311 = tpu.concatenate %309, %310 in 1 : vector<96x128xbf16>, vector<96x128xbf16> -> vector<96x256xbf16>
    %c2_204 = arith.constant 2 : index
    %c0_205 = arith.constant 0 : index
    %c0_206 = arith.constant 0 : index
    %312 = vector.load %arg18[%c2_204, %c0_205, %c0_206] : memref<5x256x128xbf16, #tpu.memory_space<vmem>>, vector<1x256x128xbf16>
    %313 = vector.shape_cast %312 : vector<1x256x128xbf16> to vector<256x128xbf16>
    %cst_207 = arith.constant dense<0.000000e+00> : vector<96x128xf32>
    %314 = tpu.matmul %311, %313, %cst_207 {dimension_numbers = #tpu.dot_dimension_numbers<[1], [0], [0], [1], [0, 0, 1, 1], [], []>} : vector<96x256xbf16>, vector<256x128xbf16>, vector<96x128xf32> -> vector<96x128xf32>
    %315 = arith.addf %308, %314 : vector<96x128xf32>
    %c228 = arith.constant 228 : index
    %c0_208 = arith.constant 0 : index
    %316 = vector.load %arg23[%c228, %c0_208] : memref<332x128xbf16, #tpu.memory_space<vmem>>, vector<96x128xbf16>
    %c229 = arith.constant 229 : index
    %c0_209 = arith.constant 0 : index
    %317 = vector.load %arg23[%c229, %c0_209] : memref<332x128xbf16, #tpu.memory_space<vmem>>, vector<96x128xbf16>
    %318 = tpu.concatenate %316, %317 in 1 : vector<96x128xbf16>, vector<96x128xbf16> -> vector<96x256xbf16>
    %c3_210 = arith.constant 3 : index
    %c0_211 = arith.constant 0 : index
    %c0_212 = arith.constant 0 : index
    %319 = vector.load %arg18[%c3_210, %c0_211, %c0_212] : memref<5x256x128xbf16, #tpu.memory_space<vmem>>, vector<1x256x128xbf16>
    %320 = vector.shape_cast %319 : vector<1x256x128xbf16> to vector<256x128xbf16>
    %cst_213 = arith.constant dense<0.000000e+00> : vector<96x128xf32>
    %321 = tpu.matmul %318, %320, %cst_213 {dimension_numbers = #tpu.dot_dimension_numbers<[1], [0], [0], [1], [0, 0, 1, 1], [], []>} : vector<96x256xbf16>, vector<256x128xbf16>, vector<96x128xf32> -> vector<96x128xf32>
    %322 = arith.addf %315, %321 : vector<96x128xf32>
    %c230 = arith.constant 230 : index
    %c0_214 = arith.constant 0 : index
    %323 = vector.load %arg23[%c230, %c0_214] : memref<332x128xbf16, #tpu.memory_space<vmem>>, vector<96x128xbf16>
    %c230_215 = arith.constant 230 : index
    %c0_216 = arith.constant 0 : index
    %324 = vector.load %arg23[%c230_215, %c0_216] : memref<332x128xbf16, #tpu.memory_space<vmem>>, vector<96x128xbf16>
    %325 = tpu.concatenate %323, %324 in 1 : vector<96x128xbf16>, vector<96x128xbf16> -> vector<96x256xbf16>
    %c4_217 = arith.constant 4 : index
    %c0_218 = arith.constant 0 : index
    %c0_219 = arith.constant 0 : index
    %326 = vector.load %arg18[%c4_217, %c0_218, %c0_219] : memref<5x256x128xbf16, #tpu.memory_space<vmem>>, vector<1x256x128xbf16>
    %327 = vector.shape_cast %326 : vector<1x256x128xbf16> to vector<256x128xbf16>
    %cst_220 = arith.constant dense<0.000000e+00> : vector<96x128xf32>
    %328 = tpu.matmul %325, %327, %cst_220 {dimension_numbers = #tpu.dot_dimension_numbers<[1], [0], [0], [1], [0, 0, 1, 1], [], []>} : vector<96x256xbf16>, vector<256x128xbf16>, vector<96x128xf32> -> vector<96x128xf32>
    %329 = arith.addf %322, %328 : vector<96x128xf32>
    %c0_221 = arith.constant 0 : index
    %c0_222 = arith.constant 0 : index
    %330 = vector.load %arg19[%c0_221, %c0_222] : memref<1x128xf32, #tpu.memory_space<vmem>>, vector<1x128xf32>
    %331 = vector.broadcast %330 : vector<1x128xf32> to vector<96x128xf32>
    %332 = arith.mulf %329, %331 : vector<96x128xf32>
    %c0_223 = arith.constant 0 : index
    %c0_224 = arith.constant 0 : index
    %333 = vector.load %arg20[%c0_223, %c0_224] : memref<1x128xf32, #tpu.memory_space<vmem>>, vector<1x128xf32>
    %334 = vector.broadcast %333 : vector<1x128xf32> to vector<96x128xf32>
    %335 = arith.addf %332, %334 : vector<96x128xf32>
    %336 = arith.negf %335 : vector<96x128xf32>
    %337 = math.exp %336 : vector<96x128xf32>
    %cst_225 = arith.constant 1.000000e+00 : f32
    %338 = vector.broadcast %cst_225 : f32 to vector<96x128xf32>
    %339 = arith.addf %338, %337 : vector<96x128xf32>
    %340 = arith.divf %338, %339 : vector<96x128xf32>
    %341 = arith.mulf %335, %340 : vector<96x128xf32>
    %342 = arith.truncf %341 : vector<96x128xf32> to vector<96x128xbf16>
    %c0_226 = arith.constant 0 : index
    %c192_227 = arith.constant 192 : index
    %c0_228 = arith.constant 0 : index
    %343 = vector.load %arg21[%c0_226, %c192_227, %c0_228] : memref<1x288x128xbf16, #tpu.memory_space<vmem>>, vector<1x96x128xbf16>
    %344 = vector.shape_cast %343 : vector<1x96x128xbf16> to vector<96x128xbf16>
    %345 = vector.shape_cast %342 : vector<96x128xbf16> to vector<1x96x128xbf16>
    tpu.vector_store %arg21[%c0_226, %c192_227, %c0_228], %345 {strides = array<i32>} : memref<1x288x128xbf16, #tpu.memory_space<vmem>>, vector<1x96x128xbf16>,
    return
  }
  func.func @transform_0(%arg0: i32) -> (i32, i32, i32) {
    %c0_i32 = arith.constant 0 : i32
    %c0_i32_0 = arith.constant 0 : i32
    %c0_i32_1 = arith.constant 0 : i32
    return %arg0, %c0_i32, %c0_i32_0 : i32, i32, i32
  }
  func.func @transform_1(%arg0: i32) -> (i32, i32, i32) {
    %c0_i32 = arith.constant 0 : i32
    %c0_i32_0 = arith.constant 0 : i32
    %c0_i32_1 = arith.constant 0 : i32
    return %arg0, %c0_i32, %c0_i32_0 : i32, i32, i32
  }
  func.func @transform_2(%arg0: i32) -> (i32, i32, i32) {
    %c0_i32 = arith.constant 0 : i32
    %c0_i32_0 = arith.constant 0 : i32
    %c0_i32_1 = arith.constant 0 : i32
    return %arg0, %c0_i32, %c0_i32_0 : i32, i32, i32
  }
  func.func @transform_3(%arg0: i32) -> (i32, i32) {
    %c0_i32 = arith.constant 0 : i32
    %c0_i32_0 = arith.constant 0 : i32
    %c0_i32_1 = arith.constant 0 : i32
    return %c0_i32, %c0_i32_0 : i32, i32
  }
  func.func @transform_4(%arg0: i32) -> (i32, i32) {
    %c0_i32 = arith.constant 0 : i32
    %c0_i32_0 = arith.constant 0 : i32
    %c0_i32_1 = arith.constant 0 : i32
    return %c0_i32, %c0_i32_0 : i32, i32
  }
  func.func @transform_5(%arg0: i32) -> (i32, i32) {
    %c0_i32 = arith.constant 0 : i32
    %c0_i32_0 = arith.constant 0 : i32
    %c0_i32_1 = arith.constant 0 : i32
    return %c0_i32, %c0_i32_0 : i32, i32
  }
  func.func @transform_6(%arg0: i32) -> (i32, i32) {
    %c0_i32 = arith.constant 0 : i32
    %c0_i32_0 = arith.constant 0 : i32
    %c0_i32_1 = arith.constant 0 : i32
    return %c0_i32, %c0_i32_0 : i32, i32
  }
  func.func @transform_7(%arg0: i32) -> (i32, i32) {
    %c0_i32 = arith.constant 0 : i32
    %c0_i32_0 = arith.constant 0 : i32
    %c0_i32_1 = arith.constant 0 : i32
    return %c0_i32, %c0_i32_0 : i32, i32
  }
  func.func @transform_8(%arg0: i32) -> (i32, i32) {
    %c0_i32 = arith.constant 0 : i32
    %c0_i32_0 = arith.constant 0 : i32
    %c0_i32_1 = arith.constant 0 : i32
    return %c0_i32, %c0_i32_0 : i32, i32
  }
  func.func @transform_9(%arg0: i32) -> (i32, i32) {
    %c0_i32 = arith.constant 0 : i32
    %c0_i32_0 = arith.constant 0 : i32
    %c0_i32_1 = arith.constant 0 : i32
    return %c0_i32, %c0_i32_0 : i32, i32
  }
  func.func @transform_10(%arg0: i32) -> (i32, i32) {
    %c0_i32 = arith.constant 0 : i32
    %c0_i32_0 = arith.constant 0 : i32
    %c0_i32_1 = arith.constant 0 : i32
    return %c0_i32, %c0_i32_0 : i32, i32
  }
  func.func @transform_11(%arg0: i32) -> (i32, i32) {
    %c0_i32 = arith.constant 0 : i32
    %c0_i32_0 = arith.constant 0 : i32
    %c0_i32_1 = arith.constant 0 : i32
    return %c0_i32, %c0_i32_0 : i32, i32
  }
  func.func @transform_12(%arg0: i32) -> (i32, i32) {
    %c0_i32 = arith.constant 0 : i32
    %c0_i32_0 = arith.constant 0 : i32
    %c0_i32_1 = arith.constant 0 : i32
    return %c0_i32, %c0_i32_0 : i32, i32
  }
  func.func @transform_13(%arg0: i32) -> (i32, i32) {
    %c0_i32 = arith.constant 0 : i32
    %c0_i32_0 = arith.constant 0 : i32
    %c0_i32_1 = arith.constant 0 : i32
    return %c0_i32, %c0_i32_0 : i32, i32
  }
  func.func @transform_14(%arg0: i32) -> (i32, i32) {
    %c0_i32 = arith.constant 0 : i32
    %c0_i32_0 = arith.constant 0 : i32
    %c0_i32_1 = arith.constant 0 : i32
    return %c0_i32, %c0_i32_0 : i32, i32
  }
  func.func @transform_15(%arg0: i32) -> (i32, i32, i32) {
    %c0_i32 = arith.constant 0 : i32
    %c0_i32_0 = arith.constant 0 : i32
    %c0_i32_1 = arith.constant 0 : i32
    %c0_i32_2 = arith.constant 0 : i32
    return %c0_i32, %c0_i32_0, %c0_i32_1 : i32, i32, i32
  }
  func.func @transform_16(%arg0: i32) -> i32 {
    %c0_i32 = arith.constant 0 : i32
    %c0_i32_0 = arith.constant 0 : i32
    return %c0_i32 : i32
  }
  func.func @transform_17(%arg0: i32) -> (i32, i32, i32) {
    %c0_i32 = arith.constant 0 : i32
    %c0_i32_0 = arith.constant 0 : i32
    %c0_i32_1 = arith.constant 0 : i32
    %c0_i32_2 = arith.constant 0 : i32
    return %c0_i32, %c0_i32_0, %c0_i32_1 : i32, i32, i32
  }
  func.func @transform_18(%arg0: i32) -> (i32, i32) {
    %c0_i32 = arith.constant 0 : i32
    %c0_i32_0 = arith.constant 0 : i32
    %c0_i32_1 = arith.constant 0 : i32
    return %c0_i32, %c0_i32_0 : i32, i32
  }
  func.func @transform_19(%arg0: i32) -> (i32, i32) {
    %c0_i32 = arith.constant 0 : i32
    %c0_i32_0 = arith.constant 0 : i32
    %c0_i32_1 = arith.constant 0 : i32
    return %c0_i32, %c0_i32_0 : i32, i32
  }
  func.func @transform_20(%arg0: i32) -> (i32, i32, i32) {
    %c0_i32 = arith.constant 0 : i32
    %c0_i32_0 = arith.constant 0 : i32
    %c0_i32_1 = arith.constant 0 : i32
    return %arg0, %c0_i32, %c0_i32_0 : i32, i32, i32
  }
  func.func @transform_21(%arg0: i32) -> (i32, i32, i32) {
    %c0_i32 = arith.constant 0 : i32
    %c0_i32_0 = arith.constant 0 : i32
    %c0_i32_1 = arith.constant 0 : i32
    return %arg0, %c0_i32, %c0_i32_0 : i32, i32, i32
  }
}

</mosaic_0001>

<bundles_post_ra>
// kernel: efficient_feature_alignment.3
= control target key start
LH: loop header
LB: loop body
LE: loop exit
PB: predicated region body
PF: predicated region fallthrough
CT: control target
= control target key end

     0   :  { %s20846_s0 = inlined_call_operand.vmem [shape: bf16[2,256,288], index: 0, kind: input, shape index: {}]   ;;  %s20847_s1 = inlined_call_operand.vmem [shape: bf16[2,288,128], index: 1, kind: input, shape index: {}]   ;;  %s20848_s2 = inlined_call_operand.vmem [shape: bf16[2,256,128], index: 2, kind: input, shape index: {}]   ;;  %s20849_s3 = inlined_call_operand.vmem [shape: bf16[256,64], index: 3, kind: input, shape index: {}]   ;;  %s20850_s4 = inlined_call_operand.vmem [shape: f32[1,64], index: 4, kind: input, shape index: {}]   ;;  %s20851_s5 = inlined_call_operand.vmem [shape: f32[1,64], index: 5, kind: input, shape index: {}]   ;;  %s20852_s6 = inlined_call_operand.vmem [shape: f32[1,64], index: 6, kind: input, shape index: {}]   ;;  %s20853_s7 = inlined_call_operand.vmem [shape: f32[1,64], index: 7, kind: input, shape index: {}]   ;;  %s20854_s8 = inlined_call_operand.vmem [shape: f32[64,2], index: 8, kind: input, shape index: {}]   ;;  %s20855_s9 = inlined_call_operand.vmem [shape: f32[1,2], index: 9, kind: input, shape index: {}]   ;;  %s20856_s10 = inlined_call_operand.vmem [shape: f32[1,2], index: 10, kind: input, shape index: {}]   ;;  %s20857_s11 = inlined_call_operand.vmem [shape: f32[128,8], index: 11, kind: input, shape index: {}]   ;;  %s20858_s12 = inlined_call_operand.vmem [shape: f32[1,8], index: 12, kind: input, shape index: {}]   ;;  %s20859_s13 = inlined_call_operand.vmem [shape: f32[8,128], index: 13, kind: input, shape index: {}]   ;;  %s20860_s14 = inlined_call_operand.vmem [shape: f32[1,128], index: 14, kind: input, shape index: {}]   ;;  %s20861_s15 = inlined_call_operand.vmem [shape: bf16[7,44,16], index: 15, kind: input, shape index: {}]   ;;  %s20862_s16 = inlined_call_operand.vmem [shape: f32[2], index: 16, kind: input, shape index: {}]   ;;  %s20863_s17 = inlined_call_operand.vmem [shape: bf16[5,256,128], index: 17, kind: input, shape index: {}]   ;;  %s20864_s18 = inlined_call_operand.vmem [shape: f32[1,128], index: 18, kind: input, shape index: {}]   ;;  %s20865_s19 = inlined_call_operand.vmem [shape: f32[1,128], index: 19, kind: input, shape index: {}]   ;;  %s20866_s20 = inlined_call_operand.vmem [shape: bf16[2,288,128], index: 20, kind: output, shape index: {0}]   ;;  %s20867_s21 = inlined_call_operand.vmem [shape: f32[2,1,2], index: 21, kind: output, shape index: {1}]  }
   0x1   :  { %20954 = sst [smem:[#allocation55_spill]] %s20846_s0 }
   0x2   :  { %20955 = sst [smem:[#allocation56_spill]] %s20847_s1 }
   0x3   :  { %20956 = sst [smem:[#allocation57_spill]] %s20848_s2 }
   0x4   :  { %20957 = sst [smem:[#allocation58_spill]] %s20849_s3 }
   0x5   :  { %20958 = sst [smem:[#allocation59_spill]] %s20850_s4 }
   0x6   :  { %20959 = sst [smem:[#allocation60_spill]] %s20851_s5 }
   0x7   :  { %27 = vsyncpa [#allocation5], 0  ;;  %s14770_s2 = smov 0  }
   0x8 LB: > { %s11411_s25 = sadd.s32 4294967295, %s14654_s2   ;;  %p11413_p0 = scmp.ge.s32.totalorder %s14654_s2, 1  ;;  %s14654_s2 = sphi %s14770_s2, %s33_s2  }
   0x9   : > { %p525_p1 = scmp.lt.s32.totalorder %s14654_s2, 3  ;;  %s576_s3 = sshll.u32 %s20862_s16, 4  ;;  %s577_s3 = int_to_ptr.vmem [resolvable:$true] %s576_s3 }
   0xa   : > { %p14129_p3 = scmp.eq.s32.totalorder %s11411_s25, 0  ;;  %s14656_s28 = smov [#allocation4]  }
   0xb   : > { %p526_p2 = pnand %p11413_p0, %p525_p1 }
   0xd   : > { %p14125_p4 = pneg %p526_p2  ;;  %622 = sbr.rel (%p526_p2) target bundleno = 2590 (0xa1e), region = 100 }
   0xf   : > { %p14126_p5 = pnand %p14129_p3, %p14125_p4 }
  0x11   : > { %14128 = dma.vmem_to_smem (!%p14126_p5), %s577_s3, 16, %s14656_s28, [#allocation5]  }
  0x12   : > { %14649 = dma.done.wait (%p14129_p3), [#allocation5], 16  }
  0x13   : > { %14651 = vsyncadd (%p14129_p3), [#allocation5], 4294967280 }
  0x14   : > { %629 = sfence }
  0x15   : > { %p697_p6 = scmp.lt.s32.totalorder %s11411_s25, 1  ;;  %s20960_s5 = sld [smem:[#allocation56_spill]]  ;;  %vm1216_vm0 = vcmask 261120   ;;  %vm2918_vm9 = vcmask 523264  }
  0x16   : > { %s20961_s24 = sld [smem:[#allocation55_spill]] }
  0x17   : > { %s21468_s25 = smov (!%p697_p6, %s11411_s25), 1  ;;  %s20962_s28 = sld [smem:[#allocation58_spill]] }
  0x18   : > { %s14119_s29 = smul.u32 384, %s21468_s25  ;;  %s13567_s27 = sshll.u32 %s21468_s25, 7 }
  0x19   : > { %s14120_s0 = smul.u32 144, %s21468_s25  ;;  %s20978_s30 = sld [smem:[#allocation59_spill]] }
  0x1a   : > { %s20979_s23 = sld [smem:[#allocation60_spill]] }
  0x1b   : > { %s14790_s22 = scalar_lea.vmem %s20960_s5, %s14120_s0  ;;  %s20963_s5 = sld [smem:[#allocation57_spill]] }
  0x1c   : > { %s14795_s26 = scalar_lea.vmem %s20961_s24, %s14119_s29  ;;  %v13623_v0 = vld [vmem:[%s14790_s22 + $0x38] sm:$0xff]  ;;  %v13633_v2 = vld [vmem:[%s14790_s22 + $0x88] sm:$0xff]  ;;  %v13622_v3 = vld [vmem:[%s14790_s22 + $0x30] sm:$0xff]  ;;  %s12060_s3 = sld [smem:[#allocation4 + $0x1]] }
  0x1d   : > { %v13631_v1 = vld [vmem:[%s14790_s22 + $0x78] sm:$0xff]  ;;  %1265 = vmatpush.bf16.msra.mxu0 %v13623_v0  ;;  %v13630_v4 = vld [vmem:[%s14790_s22 + $0x70] sm:$0xff]  ;;  %1449 = vmatpush.bf16.msra.mxu2 %v13633_v2  ;;  %v13632_v5 = vld [vmem:[%s14790_s22 + $0x80] sm:$0xff]  ;;  %s19395_s29 = scalar_lea.vmem %s20866_s20, %s14120_s0 }
  0x1e   : > { %1354 = vmatpush.bf16.msra.mxu1 %v13631_v1  ;;  %v11433_v6 = vld [vmem:[%s14795_s26 + $0x8] sm:$0xf]  ;;  %v13570_v7 = vld [vmem:[%s14795_s26 + $0x10] sm:$0xf0]  ;;  %v13665_v8 = vld [vmem:[%s20962_s28 + $0x78] sm:$0xff] }
  0x1f   : > { %v11434_v9 = vor.u32 %v13570_v7, %v11433_v6  ;;  %v13621_v10 = vld [vmem:[%s14790_s22 + $0x28] sm:$0xff]  ;;  %v13620_v12 = vld [vmem:[%s14790_s22 + $0x20] sm:$0xff]  ;;  %v13664_v13 = vld [vmem:[%s20962_s28 + $0x70] sm:$0xff] }
  0x20   : > { %v13629_v11 = vld [vmem:[%s14790_s22 + $0x68] sm:$0xff]  ;;  %v13628_v14 = vld [vmem:[%s14790_s22 + $0x60] sm:$0xff]  ;;  %v13619_v15 = vld [vmem:[%s14790_s22 + $0x18] sm:$0xff] }
  0x21   : > { %1266 = vmatpush.bf16.msra.mxu0 %v13622_v3  ;;  %1450 = vmatpush.bf16.msra.mxu2 %v13632_v5  ;;  %v13627_v16 = vld [vmem:[%s14790_s22 + $0x58] sm:$0xff]  ;;  %v13618_v17 = vld [vmem:[%s14790_s22 + $0x10] sm:$0xff]  ;;  %v11445_v19 = vld [vmem:[%s14795_s26 + $0x20] sm:$0xf] }
  0x22   : > { %1355 = vmatpush.bf16.msra.mxu1 %v13630_v4  ;;  %v13626_v18 = vld [vmem:[%s14790_s22 + $0x50] sm:$0xff]  ;;  %v13573_v20 = vld [vmem:[%s14795_s26 + $0x28] sm:$0xf0]  ;;  %v13616_v24 = vld [vmem:[%s14790_s22] sm:$0xff] }
  0x23   : > { %v11446_v21 = vor.u32 %v13573_v20, %v11445_v19  ;;  %v13617_v22 = vld [vmem:[%s14790_s22 + $0x8] sm:$0xff]  ;;  %v11425_v25 = vld [vmem:[%s14795_s26] sm:$0xf]  ;;  %v13568_v28 = vld [vmem:[%s14795_s26 + $0x4] sm:$0xf] }
  0x24   : > { %11687 = vmatmul.msk.bf16.vlgmr.msra.gmra.mxu2 %vm1216_vm0, %v11434_v9  ;;  %v13625_v23 = vld [vmem:[%s14790_s22 + $0x48] sm:$0xff]  ;;  %v13624_v27 = vld [vmem:[%s14790_s22 + $0x40] sm:$0xff]  ;;  %v11427_v29 = vld [vmem:[%s14795_s26 + $0xc] sm:$0xf0]  ;;  %s14981_s22 = scalar_lea.vmem %s20963_s5, %s13567_s27  ;;  %s4979_s27 = sld [smem:[#allocation4]] }
  0x25   : > { %2005 = vmatpush.bf16.msrb.mxu2 %v13665_v8  ;;  %1267 = vmatpush.bf16.msra.mxu0 %v13621_v10  ;;  %v13569_v26 = vld [vmem:[%s14795_s26 + $0x8] sm:$0xf0]  ;;  %v11430_v31 = vor.u32 %v13568_v28, %v11427_v29  ;;  %v11457_v32 = vld [vmem:[%s14795_s26 + $0x38] sm:$0xf]  ;;  %v13576_v33 = vld [vmem:[%s14795_s26 + $0x40] sm:$0xf0] }
  0x26   : > { %1356 = vmatpush.bf16.msra.mxu1 %v13629_v11  ;;  %v11426_v30 = vor.u32 %v13569_v26, %v11425_v25  ;;  %v11458_v34 = vor.u32 %v13576_v33, %v11457_v32  ;;  %v11437_v35 = vld [vmem:[%s14795_s26 + $0x18] sm:$0xf]  ;;  %v13572_v36 = vld [vmem:[%s14795_s26 + $0x20] sm:$0xf0]  ;;  %v13663_v37 = vld [vmem:[%s20962_s28 + $0x68] sm:$0xff] }
  0x27   : > { %v13571_v38 = vld [vmem:[%s14795_s26 + $0x1c] sm:$0xf]  ;;  %v11439_v39 = vld [vmem:[%s14795_s26 + $0x24] sm:$0xf0]  ;;  %v11438_v40 = vor.u32 %v13572_v36, %v11437_v35  ;;  %v11469_v42 = vld [vmem:[%s14795_s26 + $0x50] sm:$0xf] }
  0x28   : > { %v11442_v41 = vor.u32 %v13571_v38, %v11439_v39  ;;  %v13579_v43 = vld [vmem:[%s14795_s26 + $0x58] sm:$0xf0]  ;;  %v11449_v45 = vld [vmem:[%s14795_s26 + $0x30] sm:$0xf]  ;;  %v13574_v47 = vld [vmem:[%s14795_s26 + $0x34] sm:$0xf] }
  0x29   : > { %2006 = vmatpush.bf16.msrb.mxu2 %v13664_v13  ;;  %1268 = vmatpush.bf16.msra.mxu0 %v13620_v12  ;;  %v11470_v44 = vor.u32 %v13579_v43, %v11469_v42  ;;  %v13575_v46 = vld [vmem:[%s14795_s26 + $0x38] sm:$0xf0]  ;;  %v11451_v48 = vld [vmem:[%s14795_s26 + $0x3c] sm:$0xf0]  ;;  %v11481_v51 = vld [vmem:[%s14795_s26 + $0x68] sm:$0xf] }
  0x2a   : > { %1357 = vmatpush.bf16.msra.mxu1 %v13628_v14  ;;  %v11450_v49 = vor.u32 %v13575_v46, %v11449_v45  ;;  %v11454_v50 = vor.u32 %v13574_v47, %v11451_v48  ;;  %v13582_v52 = vld [vmem:[%s14795_s26 + $0x70] sm:$0xf0]  ;;  %v11461_v54 = vld [vmem:[%s14795_s26 + $0x48] sm:$0xf]  ;;  %v13662_v56 = vld [vmem:[%s20962_s28 + $0x60] sm:$0xff] }
  0x2b   : > { %v11482_v53 = vor.u32 %v13582_v52, %v11481_v51  ;;  %v13578_v55 = vld [vmem:[%s14795_s26 + $0x50] sm:$0xf0]  ;;  %v13577_v57 = vld [vmem:[%s14795_s26 + $0x4c] sm:$0xf]  ;;  %v11463_v58 = vld [vmem:[%s14795_s26 + $0x54] sm:$0xf0] }
  0x2c   : > { %v11462_v59 = vor.u32 %v13578_v55, %v11461_v54  ;;  %v11466_v60 = vor.u32 %v13577_v57, %v11463_v58  ;;  %v11493_v61 = vld [vmem:[%s14795_s26 + $0x80] sm:$0xf]  ;;  %v13585_v62 = vld [vmem:[%s14795_s26 + $0x88] sm:$0xf0]  ;;  %v13580_v2 = vld [vmem:[%s14795_s26 + $0x64] sm:$0xf] }
  0x2d   : > { %1269 = vmatpush.bf16.msra.mxu0 %v13619_v15  ;;  %2007 = vmatpush.bf16.msrb.mxu2 %v13663_v37  ;;  %v11494_v63 = vor.u32 %v13585_v62, %v11493_v61  ;;  %v11473_v0 = vld [vmem:[%s14795_s26 + $0x60] sm:$0xf]  ;;  %v13581_v1 = vld [vmem:[%s14795_s26 + $0x68] sm:$0xf0]  ;;  %v11475_v3 = vld [vmem:[%s14795_s26 + $0x6c] sm:$0xf0] }
  0x2e   : > { %1358 = vmatpush.bf16.msra.mxu1 %v13627_v16  ;;  %v11474_v4 = vor.u32 %v13581_v1, %v11473_v0  ;;  %v11478_v5 = vor.u32 %v13580_v2, %v11475_v3  ;;  %v11505_v6 = vld [vmem:[%s14795_s26 + $0x98] sm:$0xf]  ;;  %v13588_v7 = vld [vmem:[%s14795_s26 + $0xa0] sm:$0xf0]  ;;  %v13583_v12 = vld [vmem:[%s14795_s26 + $0x7c] sm:$0xf] }
  0x2f   : > { %v11506_v8 = vor.u32 %v13588_v7, %v11505_v6  ;;  %v11485_v9 = vld [vmem:[%s14795_s26 + $0x78] sm:$0xf]  ;;  %v13584_v10 = vld [vmem:[%s14795_s26 + $0x80] sm:$0xf0]  ;;  %v11487_v13 = vld [vmem:[%s14795_s26 + $0x84] sm:$0xf0] }
  0x30   : > { %v13661_v11 = vld [vmem:[%s20962_s28 + $0x58] sm:$0xff]  ;;  %v11486_v14 = vor.u32 %v13584_v10, %v11485_v9  ;;  %v11490_v15 = vor.u32 %v13583_v12, %v11487_v13  ;;  %v11517_v16 = vld [vmem:[%s14795_s26 + $0xb0] sm:$0xf]  ;;  %v11529_v25 = vld [vmem:[%s14795_s26 + $0xc8] sm:$0xf] }
  0x31   : > { %1270 = vmatpush.bf16.msra.mxu0 %v13618_v17  ;;  %2008 = vmatpush.bf16.msrb.mxu2 %v13662_v56  ;;  %v13591_v17 = vld [vmem:[%s14795_s26 + $0xb8] sm:$0xf0]  ;;  %v11497_v19 = vld [vmem:[%s14795_s26 + $0x90] sm:$0xf]  ;;  %v13594_v26 = vld [vmem:[%s14795_s26 + $0xd0] sm:$0xf0] }
  0x32   : > { %1359 = vmatpush.bf16.msra.mxu1 %v13626_v18  ;;  %v11518_v18 = vor.u32 %v13591_v17, %v11517_v16  ;;  %v13587_v20 = vld [vmem:[%s14795_s26 + $0x98] sm:$0xf0]  ;;  %v11509_v28 = vld [vmem:[%s14795_s26 + $0xa8] sm:$0xf]  ;;  %v13590_v29 = vld [vmem:[%s14795_s26 + $0xb0] sm:$0xf0] }
  0x33   : > { %v11510_v33 = vor.u32 %v13590_v29, %v11509_v28  ;;  %v13660_v35 = vld [vmem:[%s20962_s28 + $0x50] sm:$0xff]  ;;  %v11541_v36 = vld [vmem:[%s14795_s26 + $0xe0] sm:$0xf]  ;;  %v13597_v37 = vld [vmem:[%s14795_s26 + $0xe8] sm:$0xf0] }
  0x34   : > { %11688 = vmatmul.msk.bf16.gmra.mxu2 %vm1216_vm0, %v11446_v21  ;;  %v13586_v21 = vld [vmem:[%s14795_s26 + $0x94] sm:$0xf]  ;;  %v11542_v39 = vor.u32 %v13597_v37, %v11541_v36  ;;  %v13592_v42 = vld [vmem:[%s14795_s26 + $0xc4] sm:$0xf]  ;;  %v11523_v43 = vld [vmem:[%s14795_s26 + $0xcc] sm:$0xf0] }
  0x35   : > { %1271 = vmatpush.bf16.msra.mxu0 %v13617_v22  ;;  %2009 = vmatpush.bf16.msrb.mxu2 %v13661_v11  ;;  %v11499_v22 = vld [vmem:[%s14795_s26 + $0x9c] sm:$0xf0]  ;;  %v11526_v47 = vor.u32 %v13592_v42, %v11523_v43  ;;  %v11553_v51 = vld [vmem:[%s14795_s26 + $0xf8] sm:$0xf]  ;;  %v13600_v52 = vld [vmem:[%s14795_s26 + $0x100] sm:$0xf0] }
  0x36   : > { %1360 = vmatpush.bf16.msra.mxu1 %v13625_v23  ;;  %v11498_v23 = vor.u32 %v13587_v20, %v11497_v19  ;;  %v11554_v55 = vor.u32 %v13600_v52, %v11553_v51  ;;  %v13595_v61 = vld [vmem:[%s14795_s26 + $0xdc] sm:$0xf]  ;;  %v11535_v62 = vld [vmem:[%s14795_s26 + $0xe4] sm:$0xf0]  ;;  %v11565_v7 = vld [vmem:[%s14795_s26 + $0x110] sm:$0xf] }
  0x37   : > { %v11538_v3 = vor.u32 %v13595_v61, %v11535_v62  ;;  %v13599_v16 = vld [vmem:[%s14795_s26 + $0xf8] sm:$0xf0]  ;;  %v13598_v17 = vld [vmem:[%s14795_s26 + $0xf4] sm:$0xf]  ;;  %v11557_v37 = vld [vmem:[%s14795_s26 + $0x108] sm:$0xf] }
  0x38   : > { %v13606_v28 = vld [vmem:[%s14795_s26 + $0x130] sm:$0xf0]  ;;  %v11589_v52 = vld [vmem:[%s14795_s26 + $0x140] sm:$0xf]  ;;  %v13651_v61 = vld [vmem:[%s20962_s28 + $0x8] sm:$0xff] }
  0x39   : > { %1272 = vmatpush.bf16.msra.mxu0 %v13616_v24  ;;  %v11502_v24 = vor.u32 %v13586_v21, %v11499_v22  ;;  %2010 = vmatpush.bf16.msrb.mxu2 %v13660_v35  ;;  %v13655_v35 = vld [vmem:[%s20962_s28 + $0x28] sm:$0xff] }
  0x3a   : > { %1361 = vmatpush.bf16.msra.mxu1 %v13624_v27  ;;  %v11530_v27 = vor.u32 %v13594_v26, %v11529_v25  ;;  %v13657_v25 = vld [vmem:[%s20962_s28 + $0x38] sm:$0xff] }
  0x3b   : > { %1916 = vmatpush.bf16.msra.mxu3 %v13657_v25 }
  0x3c   : > { %1273 = vmatmul.bf16.vlgmr.msra.gmra.mxu0 %v11426_v30  ;;  %v13589_v30 = vld [vmem:[%s14795_s26 + $0xac] sm:$0xf] }
  0x3d   : > { %1362 = vmatmul.bf16.vlgmr.msra.gmra.mxu1 %v11430_v31  ;;  %v11511_v31 = vld [vmem:[%s14795_s26 + $0xb4] sm:$0xf0] }
  0x44   : > { %11689 = vmatmul.msk.bf16.gmra.mxu2 %vm1216_vm0, %v11458_v34  ;;  %v11514_v34 = vor.u32 %v13589_v30, %v11511_v31  ;;  %v13656_v30 = vld [vmem:[%s20962_s28 + $0x30] sm:$0xff] }
  0x45   : > { %1917 = vmatpush.bf16.msra.mxu3 %v13656_v30  ;;  %v13635_v30 = vld [vmem:[%s14981_s22 + $0x8] sm:$0xff] }
  0x49   : > { %1918 = vmatpush.bf16.msra.mxu3 %v13655_v35 }
  0x4c   : > { %1278 = vmatmul.bf16.gmra.mxu0 %v11438_v40  ;;  %v11521_v40 = vld [vmem:[%s14795_s26 + $0xc0] sm:$0xf] }
  0x4d   : > { %1367 = vmatmul.bf16.gmra.mxu1 %v11442_v41  ;;  %v13593_v41 = vld [vmem:[%s14795_s26 + $0xc8] sm:$0xf0] }
  0x4e   : > { %v11522_v45 = vor.u32 %v13593_v41, %v11521_v40  ;;  %v11559_v40 = vld [vmem:[%s14795_s26 + $0x114] sm:$0xf0]  ;;  %v13658_v41 = vld [vmem:[%s20962_s28 + $0x40] sm:$0xff] }
  0x54   : > { %11690 = vmatmul.msk.bf16.gmra.mxu2 %vm1216_vm0, %v11470_v44 }
  0x5c   : > { %1283 = vmatmul.bf16.gmra.mxu0 %v11450_v49 }
  0x5d   : > { %1372 = vmatmul.bf16.gmra.mxu1 %v11454_v50 }
  0x64   : > { %11691 = vmatmul.msk.bf16.gmra.mxu2 %vm1216_vm0, %v11482_v53 }
  0x6c   : > { %1288 = vmatmul.bf16.gmra.mxu0 %v11462_v59  ;;  %v11533_v59 = vld [vmem:[%s14795_s26 + $0xd8] sm:$0xf] }
  0x6d   : > { %1377 = vmatmul.bf16.gmra.mxu1 %v11466_v60  ;;  %v13596_v60 = vld [vmem:[%s14795_s26 + $0xe0] sm:$0xf0] }
  0x6e   : > { %v11534_v1 = vor.u32 %v13596_v60, %v11533_v59 }
  0x74   : > { %11692 = vmatmul.msk.bf16.gmra.mxu2 %vm1216_vm0, %v11494_v63  ;;  %v13659_v63 = vld [vmem:[%s20962_s28 + $0x48] sm:$0xff] }
  0x75   : > { %2011 = vmatpush.bf16.msrb.mxu2 %v13659_v63  ;;  %v11569_v63 = vld [vmem:[%s14795_s26 + $0x120] sm:$0xf] }
  0x79   : > { %2012 = vmatpush.bf16.msrb.mxu2 %v13658_v41  ;;  %v13611_v41 = vld [vmem:[%s14795_s26 + $0x158] sm:$0xf0] }
  0x7c   : > { %1293 = vmatmul.bf16.gmra.mxu0 %v11474_v4 }
  0x7d   : > { %1382 = vmatmul.bf16.gmra.mxu1 %v11478_v5 }
  0x84   : > { %11693 = vmatmul.msk.bf16.gmra.mxu2 %vm1216_vm0, %v11506_v8  ;;  %v13603_v8 = vld [vmem:[%s14795_s26 + $0x118] sm:$0xf0] }
  0x85   : > { %v11566_v11 = vor.u32 %v13603_v8, %v11565_v7 }
  0x8c   : > { %1298 = vmatmul.bf16.gmra.mxu0 %v11486_v14 }
  0x8d   : > { %1387 = vmatmul.bf16.gmra.mxu1 %v11490_v15  ;;  %v11545_v15 = vld [vmem:[%s14795_s26 + $0xf0] sm:$0xf] }
  0x8e   : > { %v11546_v20 = vor.u32 %v13599_v16, %v11545_v15 }
  0x94   : > { %11694 = vmatmul.msk.bf16.gmra.mxu2 %vm1216_vm0, %v11518_v18  ;;  %v11547_v18 = vld [vmem:[%s14795_s26 + $0xfc] sm:$0xf0] }
  0x95   : > { %v11550_v22 = vor.u32 %v13598_v17, %v11547_v18 }
  0x9c   : > { %1303 = vmatmul.bf16.gmra.mxu0 %v11498_v23 }
  0x9d   : > { %1392 = vmatmul.bf16.gmra.mxu1 %v11502_v24 }
  0xa4   : > { %11695 = vmatmul.msk.bf16.gmra.mxu2 %vm1216_vm0, %v11530_v27  ;;  %v11577_v27 = vld [vmem:[%s14795_s26 + $0x128] sm:$0xf] }
  0xa7   : > { %v1452_v32 = vpop.f32.mrf.mxu2 }
  0xac   : > { %1308 = vmatmul.bf16.gmra.mxu0 %v11510_v33 }
  0xad   : > { %1397 = vmatmul.bf16.gmra.mxu1 %v11514_v34 }
  0xaf   : > { %v1454_v38 = vpop.f32.mrf.mxu2 }
  0xb4   : > { %11696 = vmatmul.msk.bf16.gmra.mxu2 %vm1216_vm0, %v11542_v39  ;;  %v13601_v39 = vld [vmem:[%s14795_s26 + $0x10c] sm:$0xf] }
  0xb7   : > { %v1457_v44 = vpop.f32.mrf.mxu2 }
  0xb9   : > { %v1274_v46 = vpop.f32.mrf.mxu0 }
  0xba   : > { %v1363_v48 = vpop.f32.mrf.mxu1 }
  0xbb   : > { %v1364_v49 = vadd.f32 %v1363_v48, %v1274_v46  ;;  %v11562_v46 = vor.u32 %v13601_v39, %v11559_v40  ;;  %v11593_v40 = vld [vmem:[%s14795_s26 + $0x150] sm:$0xf] }
  0xbc   : > { %1313 = vmatmul.bf16.gmra.mxu0 %v11522_v45 }
  0xbd   : > { %v14899_v50 = vadd.f32 %v1452_v32, %v1364_v49  ;;  %1402 = vmatmul.bf16.gmra.mxu1 %v11526_v47  ;;  %v11578_v32 = vor.u32 %v13606_v28, %v11577_v27  ;;  %v13653_v49 = vld [vmem:[%s20962_s28 + $0x18] sm:$0xff] }
  0xbf   : > { %v1459_v53 = vpop.f32.mrf.mxu2 }
  0xc1   : > { %v1276_v54 = vpop.f32.mrf.mxu0 }
  0xc2   : > { %v1365_v56 = vpop.f32.mrf.mxu1 }
  0xc3   : > { %v1366_v57 = vadd.f32 %v1365_v56, %v1276_v54 }
  0xc4   : > { %11697 = vmatmul.msk.bf16.gmra.mxu2 %vm1216_vm0, %v11554_v55  ;;  %v13652_v55 = vld [vmem:[%s20962_s28 + $0x10] sm:$0xff] }
  0xc5   : > { %v14903_v58 = vadd.f32 %v1454_v38, %v1366_v57  ;;  %v13602_v38 = vld [vmem:[%s14795_s26 + $0x110] sm:$0xf0] }
  0xc6   : > { %v11558_v43 = vor.u32 %v13602_v38, %v11557_v37 }
  0xc7   : > { %v1462_v0 = vpop.f32.mrf.mxu2 }
  0xc9   : > { %v1279_v2 = vpop.f32.mrf.mxu0 }
  0xca   : > { %v1368_v4 = vpop.f32.mrf.mxu1 }
  0xcb   : > { %v1369_v5 = vadd.f32 %v1368_v4, %v1279_v2  ;;  %v11571_v2 = vld [vmem:[%s14795_s26 + $0x12c] sm:$0xf0] }
  0xcc   : > { %1318 = vmatmul.bf16.gmra.mxu0 %v11534_v1  ;;  %v13604_v1 = vld [vmem:[%s14795_s26 + $0x124] sm:$0xf] }
  0xcd   : > { %v14913_v6 = vadd.f32 %v1457_v44, %v1369_v5  ;;  %1407 = vmatmul.bf16.gmra.mxu1 %v11538_v3  ;;  %v13654_v44 = vld [vmem:[%s20962_s28 + $0x20] sm:$0xff]  ;;  %v11574_v8 = vor.u32 %v13604_v1, %v11571_v2  ;;  %v11605_v1 = vld [vmem:[%s14795_s26 + $0x168] sm:$0xf]  ;;  %v13614_v2 = vld [vmem:[%s14795_s26 + $0x170] sm:$0xf0] }
  0xce   : > { %1919 = vmatpush.bf16.msra.mxu3 %v13654_v44  ;;  %v13650_v5 = vld [vmem:[%s20962_s28] sm:$0xff] }
  0xcf   : > { %v1464_v9 = vpop.f32.mrf.mxu2  ;;  %v11595_v44 = vld [vmem:[%s14795_s26 + $0x15c] sm:$0xf0] }
  0xd1   : > { %v1281_v10 = vpop.f32.mrf.mxu0 }
  0xd2   : > { %v1370_v12 = vpop.f32.mrf.mxu1  ;;  %1920 = vmatpush.bf16.msra.mxu3 %v13653_v49 }
  0xd3   : > { %v1371_v13 = vadd.f32 %v1370_v12, %v1281_v10  ;;  %v13634_v10 = vld [vmem:[%s14981_s22] sm:$0xff] }
  0xd4   : > { %11698 = vmatmul.msk.bf16.gmra.mxu2 %vm1216_vm0, %v11566_v11  ;;  %v11601_v11 = vld [vmem:[%s14795_s26 + $0x158] sm:$0xf]  ;;  %v13612_v12 = vld [vmem:[%s14795_s26 + $0x160] sm:$0xf0] }
  0xd5   : > { %v14917_v14 = vadd.f32 %v1459_v53, %v1371_v13  ;;  %v13609_v53 = vld [vmem:[%s14795_s26 + $0x148] sm:$0xf0]  ;;  %v11602_v16 = vor.u32 %v13612_v12, %v11601_v11 }
  0xd6   : > { %v11590_v57 = vor.u32 %v13609_v53, %v11589_v52  ;;  %1921 = vmatpush.bf16.msra.mxu3 %v13652_v55  ;;  %v1533_v52 = vpack.c.bf16 %v14903_v58, %v14903_v58  ;;  %v13636_v53 = vld [vmem:[%s14981_s22 + $0x10] sm:$0xff] }
  0xd7   : > { %v1467_v19 = vpop.f32.mrf.mxu2 }
  0xd8   : > { %v1725_v55 = vunpack.c.l.b16 %v1533_v52 }
  0xd9   : > { %v1284_v21 = vpop.f32.mrf.mxu0 }
  0xda   : > { %v1373_v23 = vpop.f32.mrf.mxu1  ;;  %1922 = vmatpush.bf16.msra.mxu3 %v13651_v61 }
  0xdb   : > { %v1374_v24 = vadd.f32 %v1373_v23, %v1284_v21  ;;  %v13608_v21 = vld [vmem:[%s14795_s26 + $0x140] sm:$0xf0]  ;;  %v11583_v23 = vld [vmem:[%s14795_s26 + $0x144] sm:$0xf0] }
  0xdc   : > { %1323 = vmatmul.bf16.gmra.mxu0 %v11546_v20  ;;  %v11581_v20 = vld [vmem:[%s14795_s26 + $0x138] sm:$0xf] }
  0xdd   : > { %v14927_v26 = vadd.f32 %v1462_v0, %v1374_v24  ;;  %1412 = vmatmul.bf16.gmra.mxu1 %v11550_v22  ;;  %v13605_v0 = vld [vmem:[%s14795_s26 + $0x128] sm:$0xf0]  ;;  %v13607_v22 = vld [vmem:[%s14795_s26 + $0x13c] sm:$0xf]  ;;  %v11582_v25 = vor.u32 %v13608_v21, %v11581_v20 }
  0xde   : > { %v11570_v4 = vor.u32 %v13605_v0, %v11569_v63  ;;  %1923 = vmatpush.bf16.msra.mxu3 %v13650_v5  ;;  %v11586_v28 = vor.u32 %v13607_v22, %v11583_v23  ;;  %v11607_v5 = vld [vmem:[%s14795_s26 + $0x174] sm:$0xf0] }
  0xdf   : > { %v1469_v29 = vpop.f32.mrf.mxu2  ;;  %v3972_v21 = vld [vmem:[%s20857_s11 + $0x78] sm:$0xff] }
  0xe0   : > { %3974 = vmatpush.msrb.mxu1 %v3972_v21 }
  0xe1   : > { %v1286_v31 = vpop.f32.mrf.mxu0  ;;  %1924 = vmatmul.bf16.vlgmr.msra.gmra.mxu3 %v13634_v10  ;;  %v11606_v10 = vor.u32 %v13614_v2, %v11605_v1  ;;  %v3970_v2 = vld [vmem:[%s20857_s11 + $0x68] sm:$0xff] }
  0xe2   : > { %v1375_v33 = vpop.f32.mrf.mxu1 }
  0xe3   : > { %v1376_v34 = vadd.f32 %v1375_v33, %v1286_v31  ;;  %v11613_v31 = vld [vmem:[%s14795_s26 + $0x170] sm:$0xf] }
  0xe4   : > { %11699 = vmatmul.msk.bf16.gmra.mxu2 %vm1216_vm0, %v11578_v32  ;;  %v13615_v32 = vld [vmem:[%s14795_s26 + $0x178] sm:$0xf0] }
  0xe5   : > { %v14937_v36 = vadd.f32 %v1464_v9, %v1376_v34  ;;  %v11614_v35 = vor.u32 %v13615_v32, %v11613_v31 }
  0xe7   : > { %v14947_v42 = vpop.f32.mrf.mxu2 }
  0xe9   : > { %v1289_v45 = vpop.f32.mrf.mxu0 }
  0xea   : > { %v1378_v47 = vpop.f32.mrf.mxu1 }
  0xeb   : > { %v1379_v48 = vadd.f32 %v1378_v47, %v1289_v45 }
  0xec   : > { %1328 = vmatmul.bf16.gmra.mxu0 %v11558_v43  ;;  %v13610_v43 = vld [vmem:[%s14795_s26 + $0x154] sm:$0xf] }
  0xed   : > { %v14955_v51 = vadd.f32 %v1467_v19, %v1379_v48  ;;  %1417 = vmatmul.bf16.gmra.mxu1 %v11562_v46  ;;  %v11594_v46 = vor.u32 %v13611_v41, %v11593_v40  ;;  %v11598_v48 = vor.u32 %v13610_v43, %v11595_v44  ;;  %v3971_v43 = vld [vmem:[%s20857_s11 + $0x70] sm:$0xff] }
  0xee   : > { %3975 = vmatpush.msrb.mxu1 %v3971_v43 }
  0xef   : > { %v1474_v54 = vpop.f32.mrf.mxu2 }
  0xf0   : > { %3976 = vmatpush.msrb.mxu1 %v3970_v2 }
  0xf1   : > { %v1291_v56 = vpop.f32.mrf.mxu0  ;;  %1929 = vmatmul.bf16.gmra.mxu3 %v13635_v30 }
  0xf2   : > { %v1380_v59 = vpop.f32.mrf.mxu1 }
  0xf3   : > { %v1381_v60 = vadd.f32 %v1380_v59, %v1291_v56 }
  0xf4   : > { %11700 = vmatmul.msk.bf16.gmra.mxu2 %vm1216_vm0, %v11590_v57 }
  0xf5   : > { %v14965_v62 = vadd.f32 %v1469_v29, %v1381_v60 }
  0xf7   : > { %v14973_v3 = vpop.f32.mrf.mxu2 }
  0xf9   : > { %v14983_v7 = vpop.f32.mrf.mxu0 }
  0xfa   : > { %v14985_v9 = vpop.f32.mrf.mxu1 }
  0xfc   : > { %1333 = vmatmul.bf16.gmra.mxu0 %v11570_v4  ;;  %v13613_v4 = vld [vmem:[%s14795_s26 + $0x16c] sm:$0xf] }
  0xfd   : > { %1422 = vmatmul.bf16.gmra.mxu1 %v11574_v8  ;;  %v11610_v12 = vor.u32 %v13613_v4, %v11607_v5 }
  0xff   : > { %v1479_v13 = vpop.f32.mrf.mxu2 }
 0x101   : > { %v1296_v15 = vpop.f32.mrf.mxu0  ;;  %1934 = vmatmul.bf16.gmra.mxu3 %v13636_v53 }
 0x102   : > { %v1385_v17 = vpop.f32.mrf.mxu1 }
 0x103   : > { %v1386_v18 = vadd.f32 %v1385_v17, %v1296_v15  ;;  %v1535_v15 = vpack.c.bf16 %v14917_v14, %v14917_v14  ;;  %v1534_v17 = vpack.c.bf16 %v14913_v6, %v14913_v6 }
 0x104   : > { %11701 = vmatmul.msk.bf16.gmra.mxu2 %vm1216_vm0, %v11602_v16  ;;  %v13637_v16 = vld [vmem:[%s14981_s22 + $0x18] sm:$0xff] }
 0x105   : > { %v14990_v19 = vadd.f32 %v1474_v54, %v1386_v18  ;;  %v1532_v54 = vpack.c.bf16 %v14899_v50, %v14899_v50  ;;  %v1727_v18 = vunpack.c.l.b16 %v1535_v15  ;;  %v1726_v23 = vunpack.c.l.b16 %v1534_v17 }
 0x107   : > { %v14997_v24 = vpop.f32.mrf.mxu2  ;;  %v1724_v57 = vunpack.c.l.b16 %v1532_v54  ;;  %v1757_v30 = vpack.c.b16 %v1727_v18, %v1726_v23  ;;  %v1541_v23 = vpack.c.bf16 %v14990_v19, %v14990_v19 }
 0x109   : > { %v14999_v27 = vpop.f32.mrf.mxu0  ;;  %v1756_v63 = vpack.c.b16 %v1725_v55, %v1724_v57 }
 0x10a   : > { %v15001_v29 = vpop.f32.mrf.mxu1 }
 0x10c   : > { %1338 = vmatmul.bf16.gmra.mxu0 %v11582_v25 }
 0x10d   : > { %1427 = vmatmul.bf16.gmra.mxu1 %v11586_v28 }
 0x10f   : > { %v1484_v33 = vpop.f32.mrf.mxu2 }
 0x111   : > { %v1301_v34 = vpop.f32.mrf.mxu0  ;;  %1939 = vmatmul.bf16.gmra.mxu3 %v13637_v16  ;;  %v1384_v16 = vadd.f32 %v14985_v9, %v14983_v7  ;;  %v1733_v7 = vunpack.c.l.b16 %v1541_v23  ;;  %v13642_v23 = vld [vmem:[%s14981_s22 + $0x40] sm:$0xff] }
 0x112   : > { %v1390_v37 = vpop.f32.mrf.mxu1 }
 0x113   : > { %v1391_v38 = vadd.f32 %v1390_v37, %v1301_v34  ;;  %v13638_v37 = vld [vmem:[%s14981_s22 + $0x20] sm:$0xff] }
 0x114   : > { %11702 = vmatmul.msk.bf16.gmra.mxu2 %vm1216_vm0, %v11614_v35  ;;  %v1537_v35 = vpack.c.bf16 %v14937_v36, %v14937_v36 }
 0x115   : > { %v15006_v39 = vadd.f32 %v1479_v13, %v1391_v38  ;;  %v1536_v38 = vpack.c.bf16 %v14927_v26, %v14927_v26 }
 0x116   : > { %v1729_v40 = vunpack.c.l.b16 %v1537_v35 }
 0x117   : > { %v15013_v45 = vpop.f32.mrf.mxu2 }
 0x119   : > { %v15015_v47 = vpop.f32.mrf.mxu0 }
 0x11a   : > { %v15017_v49 = vpop.f32.mrf.mxu1 }
 0x11b   : > { %v1394_v2 = vadd.f32 %v15017_v49, %v15015_v47 }
 0x11c   : > { %1343 = vmatmul.bf16.gmra.mxu0 %v11594_v46  ;;  %v1728_v46 = vunpack.c.l.b16 %v1536_v38 }
 0x11d   : > { %1432 = vmatmul.bf16.gmra.mxu1 %v11598_v48 }
 0x11e   : > { %v1758_v53 = vpack.c.b16 %v1729_v40, %v1728_v46  ;;  %v1389_v40 = vadd.f32 %v15001_v29, %v14999_v27 }
 0x11f   : > { %v1489_v56 = vpop.f32.mrf.mxu2 }
 0x120   : > { %v15110_v43 = vadd.f32 %v14973_v3, %v1389_v40  ;;  %v3968_v3 = vld [vmem:[%s20857_s11 + $0x58] sm:$0xff] }
 0x121   : > { %v1306_v59 = vpop.f32.mrf.mxu0  ;;  %1944 = vmatmul.bf16.gmra.mxu3 %v13638_v37 }
 0x122   : > { %v1395_v60 = vpop.f32.mrf.mxu1 }
 0x123   : > { %v1396_v61 = vadd.f32 %v1395_v60, %v1306_v59  ;;  %v1539_v59 = vpack.c.bf16 %v14965_v62, %v14965_v62  ;;  %v13639_v60 = vld [vmem:[%s14981_s22 + $0x28] sm:$0xff] }
 0x124   : > { %2013 = vmatmul.bf16.vlgmr.msrb.gmra.mxu2 %v1756_v63 }
 0x125   : > { %v15024_v0 = vadd.f32 %v1484_v33, %v1396_v61  ;;  %v1538_v61 = vpack.c.bf16 %v14955_v51, %v14955_v51  ;;  %v1731_v63 = vunpack.c.l.b16 %v1539_v59 }
 0x127   : > { %20964 = vst [vmem:[#allocation7_spill] sm:$0xff] %v15024_v0  ;;  %v15030_v8 = vpop.f32.mrf.mxu2  ;;  %v1730_v5 = vunpack.c.l.b16 %v1538_v61 }
 0x129   : > { %v15032_v11 = vpop.f32.mrf.mxu0  ;;  %v1759_v15 = vpack.c.b16 %v1731_v63, %v1730_v5  ;;  %v15135_v5 = vadd.f32 %v14997_v24, %v1394_v2 }
 0x12a   : > { %v15034_v13 = vpop.f32.mrf.mxu1 }
 0x12b   : > { %20968 = vst [vmem:[#allocation11_spill] sm:$0xff] %v15135_v5  ;;  %v1544_v47 = vpack.c.bf16 %v15135_v5, %v15135_v5 }
 0x12c   : > { %1348 = vmatmul.bf16.gmra.mxu0 %v11606_v10 }
 0x12d   : > { %1437 = vmatmul.bf16.gmra.mxu1 %v11610_v12  ;;  %v1736_v40 = vunpack.c.l.b16 %v1544_v47 }
 0x12f   : > { %v1494_v20 = vpop.f32.mrf.mxu2 }
 0x131   : > { %v1311_v22 = vpop.f32.mrf.mxu0  ;;  %1949 = vmatmul.bf16.gmra.mxu3 %v13639_v60 }
 0x132   : > { %v1400_v25 = vpop.f32.mrf.mxu1 }
 0x133   : > { %v1401_v28 = vadd.f32 %v1400_v25, %v1311_v22  ;;  %v13640_v25 = vld [vmem:[%s14981_s22 + $0x30] sm:$0xff] }
 0x134   : > { %2018 = vmatmul.bf16.gmra.mxu2 %v1757_v30 }
 0x135   : > { %v15044_v31 = vadd.f32 %v1489_v56, %v1401_v28 }
 0x137   : > { %20965 = vst [vmem:[#allocation8_spill] sm:$0xff] %v15044_v31  ;;  %v15046_v32 = vpop.f32.mrf.mxu2 }
 0x139   : > { %v15048_v33 = vpop.f32.mrf.mxu0 }
 0x13a   : > { %v15050_v34 = vpop.f32.mrf.mxu1 }
 0x13f   : > { %v1499_v41 = vpop.f32.mrf.mxu2 }
 0x141   : > { %v1316_v44 = vpop.f32.mrf.mxu0  ;;  %1954 = vmatmul.bf16.gmra.mxu3 %v13640_v25 }
 0x142   : > { %v1405_v48 = vpop.f32.mrf.mxu1 }
 0x143   : > { %v1406_v52 = vadd.f32 %v1405_v48, %v1316_v44  ;;  %v1543_v48 = vpack.c.bf16 %v15006_v39, %v15006_v39 }
 0x144   : > { %2023 = vmatmul.bf16.gmra.mxu2 %v1758_v53  ;;  %v1542_v53 = vpack.c.bf16 %v15110_v43, %v15110_v43 }
 0x145   : > { %v15060_v54 = vadd.f32 %v1494_v20, %v1406_v52  ;;  %v15085_v20 = vadd.f32 %v14947_v42, %v1384_v16  ;;  %v3969_v42 = vld [vmem:[%s20857_s11 + $0x60] sm:$0xff]  ;;  %v13641_v52 = vld [vmem:[%s14981_s22 + $0x38] sm:$0xff]  ;;  %v1735_v59 = vunpack.c.l.b16 %v1543_v48  ;;  %v1545_v16 = vpack.c.bf16 %v15024_v0, %v15024_v0 }
 0x146   : > { %3977 = vmatpush.msrb.mxu1 %v3969_v42  ;;  %v1734_v60 = vunpack.c.l.b16 %v1542_v53 }
 0x147   : > { %20966 = vst [vmem:[#allocation9_spill] sm:$0xff] %v15060_v54  ;;  %v15062_v55 = vpop.f32.mrf.mxu2  ;;  %v1540_v28 = vpack.c.bf16 %v15085_v20, %v15085_v20  ;;  %v1737_v49 = vunpack.c.l.b16 %v1545_v16 }
 0x148   : > { %3978 = vmatpush.msrb.mxu1 %v3968_v3  ;;  %v1761_v63 = vpack.c.b16 %v1735_v59, %v1734_v60  ;;  %v1399_v3 = vadd.f32 %v15034_v13, %v15032_v11  ;;  %v1547_v11 = vpack.c.bf16 %v15044_v31, %v15044_v31  ;;  %v13643_v13 = vld [vmem:[%s14981_s22 + $0x48] sm:$0xff] }
 0x149   : > { %v15064_v56 = vpop.f32.mrf.mxu0  ;;  %v1732_v35 = vunpack.c.l.b16 %v1540_v28  ;;  %v1762_v53 = vpack.c.b16 %v1737_v49, %v1736_v40  ;;  %v1404_v40 = vadd.f32 %v15050_v34, %v15048_v33 }
 0x14a   : > { %v15066_v57 = vpop.f32.mrf.mxu1  ;;  %v15173_v16 = vadd.f32 %v15013_v45, %v1399_v3  ;;  %v1739_v45 = vunpack.c.l.b16 %v1547_v11  ;;  %v3966_v11 = vld [vmem:[%s20857_s11 + $0x48] sm:$0xff] }
 0x14b   : > { %v1760_v38 = vpack.c.b16 %v1733_v7, %v1732_v35  ;;  %v3967_v35 = vld [vmem:[%s20857_s11 + $0x50] sm:$0xff]  ;;  %v15204_v33 = vadd.f32 %v15030_v8, %v1404_v40  ;;  %v1409_v34 = vadd.f32 %v15066_v57, %v15064_v56  ;;  %v3964_v57 = vld [vmem:[%s20857_s11 + $0x38] sm:$0xff] }
 0x14c   : > { %3979 = vmatpush.msrb.mxu1 %v3967_v35  ;;  %20969 = vst [vmem:[#allocation12_spill] sm:$0xff] %v15173_v16  ;;  %v1546_v49 = vpack.c.bf16 %v15173_v16, %v15173_v16 }
 0x14d   : > { %20970 = vst [vmem:[#allocation13_spill] sm:$0xff] %v15204_v33 }
 0x14e   : > { %v1738_v3 = vunpack.c.l.b16 %v1546_v49  ;;  %3980 = vmatpush.msrb.mxu1 %v3966_v11 }
 0x14f   : > { %v15073_v1 = vpop.f32.mrf.mxu2 }
 0x151   : > { %v1321_v4 = vpop.f32.mrf.mxu0  ;;  %1959 = vmatmul.bf16.gmra.mxu3 %v13641_v52 }
 0x152   : > { %v1410_v10 = vpop.f32.mrf.mxu1 }
 0x153   : > { %v1411_v12 = vadd.f32 %v1410_v10, %v1321_v4 }
 0x154   : > { %2028 = vmatmul.bf16.gmra.mxu2 %v1759_v15 }
 0x155   : > { %v15080_v17 = vadd.f32 %v1499_v41, %v1411_v12  ;;  %v3912_v12 = vadd.f32 %v14903_v58, %v14899_v50 }
 0x157   : > { %20967 = vst [vmem:[#allocation10_spill] sm:$0xff] %v15080_v17  ;;  %v15082_v18 = vpop.f32.mrf.mxu2  ;;  %v3913_v25 = vadd.f32 %v3912_v12, %v14913_v6 }
 0x159   : > { %v15087_v21 = vpop.f32.mrf.mxu0  ;;  %v3914_v24 = vadd.f32 %v3913_v25, %v14917_v14 }
 0x15a   : > { %v15089_v22 = vpop.f32.mrf.mxu1 }
 0x15b   : > { %v3915_v28 = vadd.f32 %v3914_v24, %v14927_v26  ;;  %v1414_v8 = vadd.f32 %v15089_v22, %v15087_v21  ;;  %v3963_v21 = vld [vmem:[%s20857_s11 + $0x30] sm:$0xff]  ;;  %v1549_v22 = vpack.c.bf16 %v15060_v54, %v15060_v54 }
 0x15d   : > { %v3916_v48 = vadd.f32 %v3915_v28, %v14937_v36  ;;  %v15235_v11 = vadd.f32 %v15062_v55, %v1414_v8 }
 0x15f   : > { %v15096_v9 = vpop.f32.mrf.mxu2  ;;  %v3917_v59 = vadd.f32 %v3916_v48, %v14955_v51  ;;  %20972 = vst [vmem:[#allocation15_spill] sm:$0xff] %v15235_v11 }
 0x161   : > { %v15101_v30 = vpop.f32.mrf.mxu0  ;;  %1964 = vmatmul.bf16.gmra.mxu3 %v13642_v23  ;;  %v3918_v60 = vadd.f32 %v3917_v59, %v14965_v62 }
 0x162   : > { %v15103_v37 = vpop.f32.mrf.mxu1 }
 0x164   : > { %2033 = vmatmul.bf16.gmra.mxu2 %v1760_v38  ;;  %v15153_v42 = vpop.f32.mrf.mxu3 }
 0x167   : > { %v15107_v41 = vpop.f32.mrf.mxu2 }
 0x169   : > { %v15112_v44 = vpop.f32.mrf.mxu0 }
 0x16a   : > { %v15114_v46 = vpop.f32.mrf.mxu1 }
 0x16c   : > { %v15170_v12 = vpop.f32.mrf.mxu3 }
 0x16f   : > { %v15121_v27 = vpop.f32.mrf.mxu2 }
 0x171   : > { %v15126_v29 = vpop.f32.mrf.mxu0  ;;  %1969 = vmatmul.bf16.gmra.mxu3 %v13643_v13 }
 0x172   : > { %v15128_v61 = vpop.f32.mrf.mxu1 }
 0x173   : > { %v1421_v55 = vadd.f32 %v15128_v61, %v15126_v29  ;;  %v3960_v29 = vld [vmem:[%s20857_s11 + $0x18] sm:$0xff] }
 0x174   : > { %2038 = vmatmul.bf16.gmra.mxu2 %v1761_v63  ;;  %v3919_v63 = vadd.f32 %v3918_v60, %v15085_v20 }
 0x176   : > { %v3920_v25 = vadd.f32 %v3919_v63, %v14990_v19 }
 0x177   : > { %v15132_v4 = vpop.f32.mrf.mxu2 }
 0x178   : > { %v3921_v24 = vadd.f32 %v3920_v25, %v15110_v43  ;;  %v1763_v25 = vpack.c.b16 %v1739_v45, %v1738_v3  ;;  %v15214_v45 = vadd.f32 %v15046_v32, %v1409_v34  ;;  %v1416_v32 = vadd.f32 %v15103_v37, %v15101_v30  ;;  %v3962_v30 = vld [vmem:[%s20857_s11 + $0x28] sm:$0xff]  ;;  %v13644_v37 = vld [vmem:[%s14981_s22 + $0x50] sm:$0xff] }
 0x179   : > { %v15137_v10 = vpop.f32.mrf.mxu0  ;;  %v1548_v34 = vpack.c.bf16 %v15204_v33, %v15204_v33 }
 0x17a   : > { %v15141_v15 = vpop.f32.mrf.mxu1  ;;  %v3922_v28 = vadd.f32 %v3921_v24, %v15006_v39  ;;  %v3965_v24 = vld [vmem:[%s20857_s11 + $0x40] sm:$0xff]  ;;  %20971 = vst [vmem:[#allocation14_spill] sm:$0xff] %v15214_v45 }
 0x17b   : > { %3981 = vmatpush.msrb.mxu1 %v3965_v24 }
 0x17c   : > { %v3923_v35 = vadd.f32 %v3922_v28, %v15135_v5 }
 0x17d   : > { %3982 = vmatpush.msrb.mxu1 %v3964_v57  ;;  %v1424_v57 = vadd.f32 %v15141_v15, %v15137_v10  ;;  %v3959_v10 = vld [vmem:[%s20857_s11 + $0x10] sm:$0xff] }
 0x17e   : > { %v3924_v60 = vadd.f32 %v3923_v35, %v15024_v0 }
 0x17f   : > { %v15151_v7 = vpop.f32.mrf.mxu2  ;;  %3983 = vmatpush.msrb.mxu1 %v3963_v21  ;;  %v15267_v21 = vadd.f32 %v15096_v9, %v1421_v55  ;;  %v15281_v9 = vadd.f32 %v15107_v41, %v1424_v57  ;;  %v2916_v41 = vld [vmem:[%s20854_s8 + $0x30] sm:$0xff] }
 0x180   : > { %v3925_v13 = vadd.f32 %v3924_v60, %v15173_v16 }
 0x181   : > { %v15158_v38 = vpop.f32.mrf.mxu0  ;;  %3984 = vmatpush.msrb.mxu1 %v3962_v30  ;;  %1974 = vmatmul.bf16.gmra.mxu3 %v13644_v37  ;;  %20975 = vst [vmem:[#allocation18_spill] sm:$0xff] %v15267_v21 }
 0x182   : > { %v15161_v52 = vpop.f32.mrf.mxu1  ;;  %v3926_v49 = vadd.f32 %v3925_v13, %v15044_v31  ;;  %v1419_v13 = vadd.f32 %v15114_v46, %v15112_v44  ;;  %v3961_v44 = vld [vmem:[%s20857_s11 + $0x20] sm:$0xff]  ;;  %v1741_v46 = vunpack.c.l.b16 %v1549_v22  ;;  %20976 = vst [vmem:[#allocation19_spill] sm:$0xff] %v15281_v9 }
 0x183   : > { %3985 = vmatpush.msrb.mxu1 %v3961_v44 }
 0x184   : > { %2043 = vmatmul.bf16.gmra.mxu2 %v1762_v53  ;;  %v15192_v53 = vpop.f32.mrf.mxu3  ;;  %v3927_v28 = vadd.f32 %v3926_v49, %v15204_v33  ;;  %v15247_v49 = vadd.f32 %v15073_v1, %v1416_v32  ;;  %v15256_v8 = vadd.f32 %v15082_v18, %v1419_v13  ;;  %v1426_v18 = vadd.f32 %v15161_v52, %v15158_v38  ;;  %v2917_v13 = vld [vmem:[%s20854_s8 + $0x38] sm:$0xff]  ;;  %v3958_v38 = vld [vmem:[%s20857_s11 + $0x8] sm:$0xff] }
 0x185   : > { %3986 = vmatpush.msrb.mxu1 %v3960_v29  ;;  %14103 = vmatpush.msrb.mxu3 %v2917_v13 }
 0x186   : > { %v3928_v3 = vadd.f32 %v3927_v28, %v15060_v54  ;;  %20973 = vst [vmem:[#allocation16_spill] sm:$0xff] %v15247_v49  ;;  %3023 = vmatpush.msrb.mxu0 %v2917_v13  ;;  %v2914_v13 = vld [vmem:[%s20854_s8 + $0x20] sm:$0xff] }
 0x187   : > { %v15168_v2 = vpop.f32.mrf.mxu2  ;;  %20974 = vst [vmem:[#allocation17_spill] sm:$0xff] %v15256_v8  ;;  %3987 = vmatpush.msrb.mxu1 %v3959_v10  ;;  %14104 = vmatpush.msrb.mxu3 %v2916_v41 }
 0x188   : > { %3024 = vmatpush.msrb.mxu0 %v2916_v41  ;;  %v13645_v41 = vld [vmem:[%s14981_s22 + $0x58] sm:$0xff] }
 0x189   : > { %v15175_v23 = vpop.f32.mrf.mxu0  ;;  %3988 = vmatpush.msrb.mxu1 %v3958_v38 }
 0x18a   : > { %v15178_v47 = vpop.f32.mrf.mxu1 }
 0x18b   : > { %v1429_v52 = vadd.f32 %v15178_v47, %v15175_v23  ;;  %v15303_v23 = vld [vmem:[%s20978_s30] ss:$0 sm:$0xff] }
 0x18c   : > { %v15220_v56 = vpop.f32.mrf.mxu3 }
 0x18d   : > { %v15307_v44 = vadd.f32 %v15132_v4, %v1429_v52 }
 0x18f   : > { %v15190_v48 = vpop.f32.mrf.mxu2 }
 0x191   : > { %v15194_v59 = vpop.f32.mrf.mxu0  ;;  %1979 = vmatmul.bf16.gmra.mxu3 %v13645_v41 }
 0x192   : > { %v15197_v63 = vpop.f32.mrf.mxu1 }
 0x193   : > { %v1431_v55 = vadd.f32 %v15197_v63, %v15194_v59  ;;  %v15313_v59 = vld [vmem:[%s20979_s23] ss:$0 sm:$0xff] }
 0x194   : > { %2048 = vmatmul.bf16.gmra.mxu2 %v1763_v25  ;;  %v3929_v25 = vadd.f32 %v3928_v3, %v15214_v45  ;;  %v1740_v3 = vunpack.c.l.b16 %v1548_v34  ;;  %v15290_v34 = vadd.f32 %v15121_v27, %v1426_v18  ;;  %v1550_v18 = vpack.c.bf16 %v15214_v45, %v15214_v45 }
 0x196   : > { %v3930_v24 = vadd.f32 %v3929_v25, %v15080_v17  ;;  %v15271_v25 = vpop.f32.mrf.mxu3  ;;  %v1764_v15 = vpack.c.b16 %v1741_v46, %v1740_v3  ;;  %20977 = vst [vmem:[#allocation20_spill] sm:$0xff] %v15290_v34  ;;  %v1551_v3 = vpack.c.bf16 %v15080_v17, %v15080_v17 }
 0x197   : > { %v15218_v35 = vpop.f32.mrf.mxu2 }
 0x198   : > { %v3931_v28 = vadd.f32 %v3930_v24, %v15235_v11  ;;  %v3957_v24 = vld [vmem:[%s20857_s11] sm:$0xff] }
 0x199   : > { %v1344_v40 = vpop.f32.mrf.mxu0  ;;  %3989 = vmatpush.msrb.mxu1 %v3957_v24 }
 0x19a   : > { %v1433_v60 = vpop.f32.mrf.mxu1  ;;  %v3932_v32 = vadd.f32 %v3931_v28, %v15247_v49 }
 0x19b   : > { %v1434_v46 = vadd.f32 %v1433_v60, %v1344_v40  ;;  %v14657_v60 = vmov 256.0  }
 0x19c   : > { %v3933_v30 = vadd.f32 %v3932_v32, %v15256_v8  ;;  %v15319_v32 = vadd.f32 %v15151_v7, %v1431_v55  ;;  %14173 = vrcp.f32 %v14657_v60  ;;  %v1742_v55 = vunpack.c.l.b16 %v1550_v18 }
 0x19e   : > { %v3934_v37 = vadd.f32 %v3933_v30, %v15267_v21  ;;  %v15327_v10 = vpop.f32.mrf.mxu3 }
 0x19f   : > { %v15260_v1 = vpop.f32.mrf.mxu2 }
 0x1a0   : > { %v3935_v27 = vadd.f32 %v3934_v37, %v15281_v9  ;;  %v1743_v37 = vunpack.c.l.b16 %v1551_v3 }
 0x1a1   : > { %v1346_v61 = vpop.f32.mrf.mxu0 }
 0x1a2   : > { %v1435_v22 = vpop.f32.mrf.mxu1  ;;  %v3936_v57 = vadd.f32 %v3935_v27, %v15290_v34  ;;  %v15348_v27 = vpop.eup %14173 }
 0x1a3   : > { %v1436_v4 = vadd.f32 %v1435_v22, %v1346_v61  ;;  %v15331_v61 = vadd.f32 %v15168_v2, %v1434_v46  ;;  %v2913_v2 = vld [vmem:[%s20854_s8 + $0x18] sm:$0xff]  ;;  %vm3954_vm1 = vweird.f32 %v15348_v27 }
 0x1a4   : > { %2053 = vmatmul.bf16.gmra.mxu2 %v1764_v15  ;;  %v3937_v7 = vadd.f32 %v3936_v57, %v15307_v44 }
 0x1a5   : > { %v15341_v38 = vadd.f32 %v15190_v48, %v1436_v4 }
 0x1a6   : > { %v3938_v30 = vadd.f32 %v3937_v7, %v15319_v32  ;;  %v2910_v7 = vld [vmem:[%s20854_s8] sm:$0xff] }
 0x1a7   : > { %v2014_v47 = vpop.f32.mrf.mxu2 }
 0x1a8   : > { %v2015_v28 = vadd.f32 %v2014_v47, %v15153_v42  ;;  %v2915_v42 = vld [vmem:[%s20854_s8 + $0x28] sm:$0xff]  ;;  %v3939_v47 = vadd.f32 %v3938_v30, %v15331_v61 }
 0x1a9   : > { %v1349_v63 = vpop.f32.mrf.mxu0  ;;  %3025 = vmatpush.msrb.mxu0 %v2915_v42  ;;  %14105 = vmatpush.msrb.mxu3 %v2915_v42 }
 0x1aa   : > { %v1438_v29 = vpop.f32.mrf.mxu1  ;;  %v2098_v40 = vmul.f32 %v15303_v23, %v2015_v28 }
 0x1ab   : > { %v1439_v15 = vadd.f32 %v1438_v29, %v1349_v63  ;;  %3026 = vmatpush.msrb.mxu0 %v2914_v13  ;;  %14106 = vmatpush.msrb.mxu3 %v2914_v13  ;;  %v2912_v63 = vld [vmem:[%s20854_s8 + $0x10] sm:$0xff]  ;;  %v3940_v29 = vadd.f32 %v3939_v47, %v15341_v38 }
 0x1ac   : > { %v15334_v22 = vadd.f32 %v15313_v59, %v2098_v40  ;;  %v1765_v40 = vpack.c.b16 %v1743_v37, %v1742_v55 }
 0x1ad   : > { %3027 = vmatpush.msrb.mxu0 %v2913_v2  ;;  %14107 = vmatpush.msrb.mxu3 %v2913_v2  ;;  %v15352_v48 = vadd.f32 %v15218_v35, %v1439_v15  ;;  %v2911_v35 = vld [vmem:[%s20854_s8 + $0x8] sm:$0xff]  ;;  %v15374_v15 = vpop.f32.mrf.mxu3 }
 0x1ae   : > { %v11831_v52 = vmul.f32 -1.442695, %v15334_v22 }
 0x1af   : > { %v2016_v24 = vpop.f32.mrf.mxu2  ;;  %3028 = vmatpush.msrb.mxu0 %v2912_v63  ;;  %14108 = vmatpush.msrb.mxu3 %v2912_v63  ;;  %v3941_v60 = vadd.f32 %v3940_v29, %v15352_v48 }
 0x1b0   : > { %14175 = vpow2.f32 %v11831_v52  ;;  %v2017_v46 = vadd.f32 %v2016_v24, %v15170_v12  ;;  %v3950_v12 = vmul.f32 256.0, %v15348_v27 }
 0x1b1   : > { %v1351_v28 = vpop.f32.mrf.mxu0  ;;  %3029 = vmatpush.msrb.mxu0 %v2911_v35  ;;  %14109 = vmatpush.msrb.mxu3 %v2911_v35  ;;  %v13646_v35 = vld [vmem:[%s14981_s22 + $0x60] sm:$0xff] }
 0x1b2   : > { %v1440_v57 = vpop.f32.mrf.mxu1  ;;  %v2099_v3 = vmul.f32 %v15303_v23, %v2017_v46  ;;  %v3951_v41 = vsub.f32 1.0, %v3950_v12  ;;  %v1553_v46 = vpack.c.bf16 %v15247_v49, %v15247_v49  ;;  %1984 = vmatmul.bf16.gmra.mxu3 %v13646_v35 }
 0x1b3   : > { %v1441_v4 = vadd.f32 %v1440_v57, %v1351_v28  ;;  %3030 = vmatpush.msrb.mxu0 %v2910_v7  ;;  %14110 = vmatpush.msrb.mxu3 %v2910_v7  ;;  %v1552_v28 = vpack.c.bf16 %v15235_v11, %v15235_v11 }
 0x1b4   : > { %v15366_v42 = vadd.f32 %v15313_v59, %v2099_v3  ;;  %2058 = vmatmul.bf16.gmra.mxu2 %v1765_v40  ;;  %v3952_v63 = vmul.f32 %v15348_v27, %v3951_v41  ;;  %v1745_v40 = vunpack.c.l.b16 %v1553_v46 }
 0x1b5   : > { %v15369_v18 = vadd.f32 %v15260_v1, %v1441_v4 }
 0x1b6   : > { %v14176_v13 = vpop.eup %14175  ;;  %v11832_v30 = vmul.f32 -1.442695, %v15366_v42 }
 0x1b7   : > { %v3942_v52 = vadd.f32 %v3941_v60, %v15369_v18  ;;  %v2262_v37 = vadd.f32 1.0, %v14176_v13  ;;  %v2019_v2 = vpop.f32.mrf.mxu2  ;;  %v1744_v13 = vunpack.c.l.b16 %v1552_v28 }
 0x1b8   : > { %14177 = vpow2.f32 %v11832_v30  ;;  %v2020_v24 = vadd.f32 %v2019_v2, %v15192_v53  ;;  %v3953_v30 = vadd.f32 %v15348_v27, %v3952_v63 }
 0x1b9   : > { %v3943_v1 = vrot.slane %v3942_v52, 4  ;;  %14179 = vrcp.f32 %v2262_v37  ;;  %v2303_v46 = vand.u32 2147483647, %v2262_v37  ;;  %v2305_v28 = vand.u32 2147483648, %v2262_v37 }
 0x1ba   : > { %v2100_v47 = vmul.f32 %v15303_v23, %v2020_v24  ;;  %v3955_v63 = vsel %vm3954_vm1, %v15348_v27, %v3953_v30  ;;  %vm2299_vm3 = vweird.f32 %v2262_v37  ;;  %v15409_v30 = vld [vmem:[%s20852_s6] ss:$0 sm:$0xff] }
 0x1bb   : > { %v3944_v55 = vadd.f32 %v3943_v1, %v3942_v52  ;;  %v15393_v52 = vpop.f32.mrf.mxu3  ;;  %vm2304_vm5 = vcmp.eq.f32.partialorder %v2303_v46, 8.507059e+37 }
 0x1bc   : > { %v15386_v29 = vadd.f32 %v15313_v59, %v2100_v47 }
 0x1bd   : > { %v3945_v57 = vrot.slane %v3944_v55, 2 }
 0x1be   : > { %v14178_v3 = vpop.eup %14177  ;;  %v11833_v53 = vmul.f32 -1.442695, %v15386_v29 }
 0x1bf   : > { %v3946_v4 = vadd.f32 %v3945_v57, %v3944_v55  ;;  %v14180_v12 = vpop.eup %14179  ;;  %v15390_v60 = vadd.f32 1.0, %v14178_v3  ;;  %v2021_v7 = vpop.f32.mrf.mxu2  ;;  %v1766_v55 = vpack.c.b16 %v1745_v40, %v1744_v13  ;;  %v2306_v40 = vor.u32 1.1754944e-38, %v2305_v28 }
 0x1c0   : > { %v2295_v2 = vmul.f32 %v14180_v12, %v2262_v37  ;;  %14181 = vpow2.f32 %v11833_v53  ;;  %v2022_v41 = vadd.f32 %v2021_v7, %v15220_v56  ;;  %vm2300_vm2 = vweird.f32 %v14180_v12 }
 0x1c1   : > { %14183 = vrcp.f32 %v15390_v60  ;;  %v3947_v47 = vrot.slane %v3946_v4, 1  ;;  %vm2301_vm4 = vmor %vm2299_vm3, %vm2300_vm2  ;;  %v2318_v28 = vand.u32 2147483647, %v15390_v60  ;;  %vm2314_vm7 = vweird.f32 %v15390_v60 }
 0x1c2   : > { %v2296_v1 = vsub.f32 1.0, %v2295_v2  ;;  %v2101_v24 = vmul.f32 %v15303_v23, %v2022_v41 }
 0x1c3   : > { %v3948_v56 = vadd.f32 %v3947_v47, %v3946_v4  ;;  %vm2319_vm10 = vcmp.eq.f32.partialorder %v2318_v28, 8.507059e+37 }
 0x1c4   : > { %v2297_v57 = vmul.f32 %v14180_v12, %v2296_v1  ;;  %v15401_v3 = vadd.f32 %v15313_v59, %v2101_v24  ;;  %2063 = vmatmul.bf16.gmra.mxu2 %v1766_v55  ;;  %v1555_v1 = vpack.c.bf16 %v15267_v21, %v15267_v21  ;;  %v15415_v24 = vpop.f32.mrf.mxu3  ;;  %v15421_v55 = vld [vmem:[%s20853_s7] ss:$0 sm:$0xff] }
 0x1c5   : > { %v3956_v2 = vmul.f32 %v3955_v63, %v3948_v56  ;;  %v2320_v63 = vand.u32 2147483648, %v15390_v60 }
 0x1c6   : > { %v14182_v53 = vpop.eup %14181  ;;  %v2298_v35 = vadd.f32 %v14180_v12, %v2297_v57  ;;  %v11834_v7 = vmul.f32 -1.442695, %v15401_v3  ;;  %v1554_v57 = vpack.c.bf16 %v15256_v8, %v15256_v8 }
 0x1c7   : > { %v14184_v41 = vpop.eup %14183  ;;  %v15404_v13 = vadd.f32 1.0, %v14182_v53  ;;  %v2024_v11 = vpop.f32.mrf.mxu2  ;;  %3990 = vmatmul.f32.vlgmr.msrb.gmra.mxu1 %v3956_v2 }
 0x1c8   : > { %v2302_v27 = vsel %vm2301_vm4, %v14180_v12, %v2298_v35  ;;  %v2310_v4 = vmul.f32 %v14184_v41, %v15390_v60  ;;  %14185 = vpow2.f32 %v11834_v7  ;;  %v2025_v46 = vadd.f32 %v2024_v11, %v15271_v25  ;;  %v13647_v25 = vld [vmem:[%s14981_s22 + $0x68] sm:$0xff] }
 0x1c9   : > { %v2307_v37 = vsel %vm2304_vm5, %v2306_v40, %v2302_v27  ;;  %14187 = vrcp.f32 %v15404_v13  ;;  %vm2315_vm6 = vweird.f32 %v14184_v41  ;;  %v1747_v35 = vunpack.c.l.b16 %v1555_v1  ;;  %1989 = vmatmul.bf16.gmra.mxu3 %v13647_v25 }
 0x1ca   : > { %v2774_v12 = vmul.f32 %v2307_v37, %v15334_v22  ;;  %v2311_v47 = vsub.f32 1.0, %v2310_v4  ;;  %v2102_v22 = vmul.f32 %v15303_v23, %v2025_v46  ;;  %vm2316_vm8 = vmor %vm2314_vm7, %vm2315_vm6  ;;  %v2321_v4 = vor.u32 1.1754944e-38, %v2320_v63 }
 0x1cb   : > { %vm2329_vm12 = vweird.f32 %v15404_v13 }
 0x1cc   : > { %v2810_v56 = vmul.f32 %v15409_v30, %v2774_v12  ;;  %v2312_v53 = vmul.f32 %v14184_v41, %v2311_v47  ;;  %v15433_v11 = vadd.f32 %v15313_v59, %v2102_v22  ;;  %v1746_v47 = vunpack.c.l.b16 %v1554_v57  ;;  %v15446_v28 = vpop.f32.mrf.mxu3 }
 0x1cd   : > { %v2335_v57 = vand.u32 2147483648, %v15404_v13 }
 0x1ce   : > { %v14186_v7 = vpop.eup %14185  ;;  %v2846_v2 = vadd.f32 %v15421_v55, %v2810_v56  ;;  %v2313_v40 = vadd.f32 %v14184_v41, %v2312_v53  ;;  %v11835_v8 = vmul.f32 -1.442695, %v15433_v11  ;;  %v1767_v63 = vpack.c.b16 %v1747_v35, %v1746_v47 }
 0x1cf   : > { %v14188_v27 = vpop.eup %14187  ;;  %v15436_v37 = vadd.f32 1.0, %v14186_v7  ;;  %v2026_v12 = vpop.f32.mrf.mxu2  ;;  %v2333_v7 = vand.u32 2147483647, %v15404_v13  ;;  %v2336_v47 = vor.u32 1.1754944e-38, %v2335_v57 }
 0x1d0   : > { %v2878_v46 = vmax.f32 %v2846_v2, 0.0  ;;  %v2317_v1 = vsel %vm2316_vm8, %v14184_v41, %v2313_v40  ;;  %v2325_v56 = vmul.f32 %v14188_v27, %v15404_v13  ;;  %v2027_v41 = vadd.f32 %v2026_v12, %v15327_v10 }
 0x1d1   : > { %v2322_v53 = vsel %vm2319_vm10, %v2321_v4, %v2317_v1  ;;  %14189 = vrcp.f32 %v15436_v37  ;;  %vm2330_vm11 = vweird.f32 %v14188_v27  ;;  %vm2334_vm14 = vcmp.eq.f32.partialorder %v2333_v7, 8.507059e+37 }
 0x1d2   : > { %v2775_v60 = vmul.f32 %v2322_v53, %v15366_v42  ;;  %v2326_v22 = vsub.f32 1.0, %v2325_v56  ;;  %11863 = vmatmul.msk.f32.vlgmr.msrb.gmra.mxu0 %vm2918_vm9, %v2878_v46  ;;  %14191 = vpow2.f32 %v11835_v8  ;;  %v2103_v42 = vmul.f32 %v15303_v23, %v2027_v41  ;;  %vm2331_vm13 = vmor %vm2329_vm12, %vm2330_vm11 }
 0x1d3   : > { %v1557_v13 = vpack.c.bf16 %v15290_v34, %v15290_v34  ;;  %v2348_v7 = vand.u32 2147483647, %v15436_v37  ;;  %vm2344_vm0 = vweird.f32 %v15436_v37 }
 0x1d4   : > { %v2811_v2 = vmul.f32 %v15409_v30, %v2775_v60  ;;  %v2327_v40 = vmul.f32 %v14188_v27, %v2326_v22  ;;  %2068 = vmatmul.bf16.gmra.mxu2 %v1767_v63  ;;  %v15453_v10 = vadd.f32 %v15313_v59, %v2103_v42 }
 0x1d5   : > { %vm2349_vm2 = vcmp.eq.f32.partialorder %v2348_v7, 8.507059e+37 }
 0x1d6   : > { %v2328_v25 = vadd.f32 %v14188_v27, %v2327_v40  ;;  %v2847_v35 = vadd.f32 %v15421_v55, %v2811_v2  ;;  %v11836_v53 = vmul.f32 -1.442695, %v15453_v10 }
 0x1d7   : > { %v14190_v4 = vpop.eup %14189  ;;  %v2029_v12 = vpop.f32.mrf.mxu2 }
 0x1d8   : > { %v2332_v46 = vsel %vm2331_vm13, %v14188_v27, %v2328_v25  ;;  %v2340_v1 = vmul.f32 %v14190_v4, %v15436_v37  ;;  %v2030_v8 = vadd.f32 %v2029_v12, %v15374_v15  ;;  %v2879_v60 = vmax.f32 %v2847_v35, 0.0  ;;  %v14192_v22 = vpop.eup %14191  ;;  %v15474_v35 = vpop.f32.mrf.mxu3 }
 0x1d9   : > { %v2337_v56 = vsel %vm2334_vm14, %v2336_v47, %v2332_v46  ;;  %v1556_v27 = vpack.c.bf16 %v15281_v9, %v15281_v9  ;;  %v2350_v15 = vand.u32 2147483648, %v15436_v37  ;;  %v15466_v2 = vadd.f32 1.0, %v14192_v22 }
 0x1da   : > { %v2776_v63 = vmul.f32 %v2337_v56, %v15386_v29  ;;  %v2341_v57 = vsub.f32 1.0, %v2340_v1  ;;  %v2104_v41 = vmul.f32 %v15303_v23, %v2030_v8  ;;  %14193 = vpow2.f32 %v11836_v53  ;;  %11864 = vmatmul.msk.f32.gmra.mxu0 %vm2918_vm9, %v2879_v60  ;;  %v13648_v53 = vld [vmem:[%s14981_s22 + $0x70] sm:$0xff] }
 0x1db   : > { %vm2345_vm15 = vweird.f32 %v14190_v4  ;;  %14195 = vrcp.f32 %v15466_v2  ;;  %v1749_v25 = vunpack.c.l.b16 %v1557_v13  ;;  %v2351_v1 = vor.u32 1.1754944e-38, %v2350_v15  ;;  %1994 = vmatmul.bf16.gmra.mxu3 %v13648_v53 }
 0x1dc   : > { %v2812_v40 = vmul.f32 %v15409_v30, %v2776_v63  ;;  %v2342_v42 = vmul.f32 %v14190_v4, %v2341_v57  ;;  %v15471_v29 = vadd.f32 %v15313_v59, %v2104_v41  ;;  %vm2346_vm1 = vmor %vm2344_vm0, %vm2345_vm15  ;;  %v1748_v56 = vunpack.c.l.b16 %v1556_v27 }
 0x1dd   : > { %vm2359_vm4 = vweird.f32 %v15466_v2 }
 0x1de   : > { %v2343_v47 = vadd.f32 %v14190_v4, %v2342_v42  ;;  %v11837_v12 = vmul.f32 -1.442695, %v15471_v29  ;;  %v2848_v46 = vadd.f32 %v15421_v55, %v2812_v40  ;;  %v1768_v42 = vpack.c.b16 %v1749_v25, %v1748_v56 }
 0x1df   : > { %v2031_v8 = vpop.f32.mrf.mxu2  ;;  %v1559_v25 = vpack.c.bf16 %v15319_v32, %v15319_v32 }
 0x1e0   : > { %v2347_v60 = vsel %vm2346_vm1, %v14190_v4, %v2343_v47  ;;  %14197 = vpow2.f32 %v11837_v12  ;;  %v2032_v22 = vadd.f32 %v2031_v8, %v15393_v52  ;;  %v2880_v13 = vmax.f32 %v2848_v46, 0.0  ;;  %v14194_v63 = vpop.eup %14193  ;;  %v15500_v53 = vpop.f32.mrf.mxu3 }
 0x1e1   : > { %v2352_v57 = vsel %vm2349_vm2, %v2351_v1, %v2347_v60  ;;  %v15482_v41 = vadd.f32 1.0, %v14194_v63  ;;  %v14196_v7 = vpop.eup %14195  ;;  %v2363_v12 = vand.u32 2147483647, %v15466_v2  ;;  %v2365_v46 = vand.u32 2147483648, %v15466_v2 }
 0x1e2   : > { %v2777_v37 = vmul.f32 %v2352_v57, %v15401_v3  ;;  %v2105_v40 = vmul.f32 %v15303_v23, %v2032_v22  ;;  %11865 = vmatmul.msk.f32.gmra.mxu0 %vm2918_vm9, %v2880_v13  ;;  %v2355_v4 = vmul.f32 %v14196_v7, %v15466_v2  ;;  %vm2360_vm3 = vweird.f32 %v14196_v7 }
 0x1e3   : > { %14199 = vrcp.f32 %v15482_v41  ;;  %v1558_v63 = vpack.c.bf16 %v15307_v44, %v15307_v44  ;;  %vm2361_vm5 = vmor %vm2359_vm4, %vm2360_vm3  ;;  %vm2364_vm6 = vcmp.eq.f32.partialorder %v2363_v12, 8.507059e+37  ;;  %v13649_v12 = vld [vmem:[%s14981_s22 + $0x78] sm:$0xff]  ;;  %vm2374_vm8 = vweird.f32 %v15482_v41  ;;  %s719_s22 = scalar_lea.vmem %s20867_s21, %s21468_s25 }
 0x1e4   : > { %v2813_v27 = vmul.f32 %v15409_v30, %v2777_v37  ;;  %2073 = vmatmul.bf16.gmra.mxu2 %v1768_v42  ;;  %v15490_v52 = vadd.f32 %v15313_v59, %v2105_v40  ;;  %v2356_v3 = vsub.f32 1.0, %v2355_v4  ;;  %v2366_v42 = vor.u32 1.1754944e-38, %v2365_v46 }
 0x1e5   : > { %v2380_v46 = vand.u32 2147483648, %v15482_v41 }
 0x1e6   : > { %v14198_v15 = vpop.eup %14197  ;;  %v2849_v47 = vadd.f32 %v15421_v55, %v2813_v27  ;;  %v11838_v8 = vmul.f32 -1.442695, %v15490_v52  ;;  %v2357_v60 = vmul.f32 %v14196_v7, %v2356_v3 }
 0x1e7   : > { %v15497_v1 = vadd.f32 1.0, %v14198_v15  ;;  %v2034_v56 = vpop.f32.mrf.mxu2  ;;  %v1751_v15 = vunpack.c.l.b16 %v1559_v25 }
 0x1e8   : > { %v2035_v22 = vadd.f32 %v2034_v56, %v15415_v24  ;;  %v2881_v13 = vmax.f32 %v2849_v47, 0.0  ;;  %v2358_v37 = vadd.f32 %v14196_v7, %v2357_v60  ;;  %v1750_v56 = vunpack.c.l.b16 %v1558_v63 }
 0x1e9   : > { %14201 = vrcp.f32 %v15497_v1  ;;  %v14200_v57 = vpop.eup %14199  ;;  %vm2389_vm13 = vweird.f32 %v15497_v1 }
 0x1ea   : > { %14203 = vpow2.f32 %v11838_v8  ;;  %v2106_v40 = vmul.f32 %v15303_v23, %v2035_v22  ;;  %v2370_v27 = vmul.f32 %v14200_v57, %v15482_v41  ;;  %11866 = vmatmul.msk.f32.gmra.mxu0 %vm2918_vm9, %v2881_v13  ;;  %v2362_v24 = vsel %vm2361_vm5, %v14196_v7, %v2358_v37 }
 0x1eb   : > { %v2367_v3 = vsel %vm2364_vm6, %v2366_v42, %v2362_v24  ;;  %v2378_v8 = vand.u32 2147483647, %v15482_v41  ;;  %vm2375_vm7 = vweird.f32 %v14200_v57  ;;  %v1769_v63 = vpack.c.b16 %v1751_v15, %v1750_v56  ;;  %v15524_v24 = vpop.f32.mrf.mxu3  ;;  %1999 = vmatmul.bf16.gmra.mxu3 %v13649_v12 }
 0x1ec   : > { %v15511_v4 = vadd.f32 %v15313_v59, %v2106_v40  ;;  %v2371_v47 = vsub.f32 1.0, %v2370_v27  ;;  %v2778_v2 = vmul.f32 %v2367_v3, %v15433_v11  ;;  %vm2376_vm10 = vmor %vm2374_vm8, %vm2375_vm7  ;;  %v2381_v3 = vor.u32 1.1754944e-38, %v2380_v46 }
 0x1ed   : > { %vm2379_vm11 = vcmp.eq.f32.partialorder %v2378_v8, 8.507059e+37  ;;  %v2395_v15 = vand.u32 2147483648, %v15497_v1 }
 0x1ee   : > { %v11839_v60 = vmul.f32 -1.442695, %v15511_v4  ;;  %v2372_v13 = vmul.f32 %v14200_v57, %v2371_v47  ;;  %v2814_v40 = vmul.f32 %v15409_v30, %v2778_v2 }
 0x1ef   : > { %v14202_v22 = vpop.eup %14201  ;;  %v2036_v7 = vpop.f32.mrf.mxu2 }
 0x1f0   : > { %v14204_v37 = vpop.eup %14203  ;;  %v2385_v25 = vmul.f32 %v14202_v22, %v15497_v1  ;;  %14205 = vpow2.f32 %v11839_v60  ;;  %v2373_v42 = vadd.f32 %v14200_v57, %v2372_v13  ;;  %v2037_v27 = vadd.f32 %v2036_v7, %v15446_v28 }
 0x1f1   : > { %v15521_v11 = vadd.f32 1.0, %v14204_v37  ;;  %v2850_v2 = vadd.f32 %v15421_v55, %v2814_v40  ;;  %v2393_v60 = vand.u32 2147483647, %v15497_v1  ;;  %vm2390_vm12 = vweird.f32 %v14202_v22 }
 0x1f2   : > { %v2386_v47 = vsub.f32 1.0, %v2385_v25  ;;  %v2377_v9 = vsel %vm2376_vm10, %v14200_v57, %v2373_v42  ;;  %v2107_v28 = vmul.f32 %v15303_v23, %v2037_v27  ;;  %vm2391_vm14 = vmor %vm2389_vm13, %vm2390_vm12  ;;  %v2396_v37 = vor.u32 1.1754944e-38, %v2395_v15 }
 0x1f3   : > { %14207 = vrcp.f32 %v15521_v11  ;;  %v2382_v41 = vsel %vm2379_vm11, %v2381_v3, %v2377_v9  ;;  %v2882_v8 = vmax.f32 %v2850_v2, 0.0  ;;  %vm2394_vm15 = vcmp.eq.f32.partialorder %v2393_v60, 8.507059e+37  ;;  %v15551_v60 = vpop.f32.mrf.mxu3 }
 0x1f4   : > { %v2387_v56 = vmul.f32 %v14202_v22, %v2386_v47  ;;  %2078 = vmatmul.bf16.gmra.mxu2 %v1769_v63  ;;  %v2779_v13 = vmul.f32 %v2382_v41, %v15453_v10  ;;  %v15534_v57 = vadd.f32 %v15313_v59, %v2107_v28  ;;  %v1561_v10 = vpack.c.bf16 %v15341_v38, %v15341_v38 }
 0x1f5   : > { %11867 = vmatmul.msk.f32.gmra.mxu0 %vm2918_vm9, %v2882_v8  ;;  %v2408_v28 = vand.u32 2147483647, %v15521_v11  ;;  %vm2404_vm1 = vweird.f32 %v15521_v11 }
 0x1f6   : > { %v14206_v46 = vpop.eup %14205  ;;  %v2388_v7 = vadd.f32 %v14202_v22, %v2387_v56  ;;  %v2815_v12 = vmul.f32 %v15409_v30, %v2779_v13  ;;  %v11840_v63 = vmul.f32 -1.442695, %v15534_v57  ;;  %v1753_v56 = vunpack.c.l.b16 %v1561_v10 }
 0x1f7   : > { %v15537_v9 = vadd.f32 1.0, %v14206_v46  ;;  %v2039_v40 = vpop.f32.mrf.mxu2  ;;  %vm2409_vm3 = vcmp.eq.f32.partialorder %v2408_v28, 8.507059e+37 }
 0x1f8   : > { %v2392_v25 = vsel %vm2391_vm14, %v14202_v22, %v2388_v7  ;;  %v2040_v1 = vadd.f32 %v2039_v40, %v15474_v35  ;;  %v2851_v15 = vadd.f32 %v15421_v55, %v2815_v12  ;;  %v1560_v22 = vpack.c.bf16 %v15331_v61, %v15331_v61 }
 0x1f9   : > { %v14208_v42 = vpop.eup %14207  ;;  %v2397_v27 = vsel %vm2394_vm15, %v2396_v37, %v2392_v25  ;;  %14209 = vrcp.f32 %v15537_v9  ;;  %vm2419_vm5 = vweird.f32 %v15537_v9 }
 0x1fa   : > { %v2780_v3 = vmul.f32 %v2397_v27, %v15471_v29  ;;  %v2400_v47 = vmul.f32 %v14208_v42, %v15521_v11  ;;  %14211 = vpow2.f32 %v11840_v63  ;;  %v2108_v2 = vmul.f32 %v15303_v23, %v2040_v1 }
 0x1fb   : > { %v2410_v29 = vand.u32 2147483648, %v15521_v11  ;;  %v2883_v8 = vmax.f32 %v2851_v15, 0.0  ;;  %vm2405_vm0 = vweird.f32 %v14208_v42  ;;  %v1752_v25 = vunpack.c.l.b16 %v1560_v22 }
 0x1fc   : > { %v2816_v35 = vmul.f32 %v15409_v30, %v2780_v3  ;;  %v2401_v41 = vsub.f32 1.0, %v2400_v47  ;;  %v15557_v13 = vadd.f32 %v15313_v59, %v2108_v2  ;;  %vm2406_vm2 = vmor %vm2404_vm1, %vm2405_vm0  ;;  %v2423_v22 = vand.u32 2147483647, %v15537_v9 }
 0x1fd   : > { %11868 = vmatmul.msk.f32.gmra.mxu0 %vm2918_vm9, %v2883_v8  ;;  %v2411_v3 = vor.u32 1.1754944e-38, %v2410_v29  ;;  %v1770_v47 = vpack.c.b16 %v1753_v56, %v1752_v25  ;;  %v2425_v11 = vand.u32 2147483648, %v15537_v9 }
 0x1fe   : > { %v2402_v46 = vmul.f32 %v14208_v42, %v2401_v41  ;;  %v11841_v12 = vmul.f32 -1.442695, %v15557_v13  ;;  %v2852_v40 = vadd.f32 %v15421_v55, %v2816_v35  ;;  %vm2424_vm7 = vcmp.eq.f32.partialorder %v2423_v22, 8.507059e+37 }
 0x1ff   : > { %v14210_v7 = vpop.eup %14209  ;;  %v2041_v37 = vpop.f32.mrf.mxu2 }
 0x200   : > { %v2403_v10 = vadd.f32 %v14208_v42, %v2402_v46  ;;  %v2415_v63 = vmul.f32 %v14210_v7, %v15537_v9  ;;  %v2042_v1 = vadd.f32 %v2041_v37, %v15500_v53  ;;  %v14212_v27 = vpop.eup %14211  ;;  %14213 = vpow2.f32 %v11841_v12 }
 0x201   : > { %v2271_v41 = vadd.f32 1.0, %v14212_v27  ;;  %v2884_v46 = vmax.f32 %v2852_v40, 0.0  ;;  %vm2420_vm4 = vweird.f32 %v14210_v7  ;;  %v2426_v37 = vor.u32 1.1754944e-38, %v2425_v11 }
 0x202   : > { %v2407_v2 = vsel %vm2406_vm2, %v14208_v42, %v2403_v10  ;;  %v2416_v15 = vsub.f32 1.0, %v2415_v63  ;;  %v2109_v8 = vmul.f32 %v15303_v23, %v2042_v1  ;;  %v15572_v42 = vpop.f32.mrf.mxu3  ;;  %vm2421_vm6 = vmor %vm2419_vm5, %vm2420_vm4 }
 0x203   : > { %v2412_v35 = vsel %vm2409_vm3, %v2411_v3, %v2407_v2  ;;  %14215 = vrcp.f32 %v2271_v41  ;;  %v1563_v3 = vpack.c.bf16 %v15369_v18, %v15369_v18  ;;  %v2438_v22 = vand.u32 2147483647, %v2271_v41 }
 0x204   : > { %v2781_v34 = vmul.f32 %v2412_v35, %v15490_v52  ;;  %v2417_v53 = vmul.f32 %v14210_v7, %v2416_v15  ;;  %2083 = vmatmul.bf16.gmra.mxu2 %v1770_v47  ;;  %v15570_v28 = vadd.f32 %v15313_v59, %v2109_v8  ;;  %vm2434_vm10 = vweird.f32 %v2271_v41 }
 0x205   : > { %11869 = vmatmul.msk.f32.gmra.mxu0 %vm2918_vm9, %v2884_v46  ;;  %v1755_v11 = vunpack.c.l.b16 %v1563_v3  ;;  %vm2439_vm12 = vcmp.eq.f32.partialorder %v2438_v22, 8.507059e+37 }
 0x206   : > { %v2817_v56 = vmul.f32 %v15409_v30, %v2781_v34  ;;  %v2418_v29 = vadd.f32 %v14210_v7, %v2417_v53  ;;  %v14214_v12 = vpop.eup %14213  ;;  %v11842_v52 = vmul.f32 -1.442695, %v15570_v28 }
 0x207   : > { %v2044_v40 = vpop.f32.mrf.mxu2  ;;  %v15578_v10 = vadd.f32 1.0, %v14214_v12 }
 0x208   : > { %v2422_v25 = vsel %vm2421_vm6, %v14210_v7, %v2418_v29  ;;  %v2045_v63 = vadd.f32 %v2044_v40, %v15524_v24  ;;  %v2853_v1 = vadd.f32 %v15421_v55, %v2817_v56  ;;  %14217 = vpow2.f32 %v11842_v52 }
 0x209   : > { %v2427_v34 = vsel %vm2424_vm7, %v2426_v37, %v2422_v25  ;;  %v14216_v27 = vpop.eup %14215  ;;  %14219 = vrcp.f32 %v15578_v10  ;;  %v1562_v24 = vpack.c.bf16 %v15352_v48, %v15352_v48  ;;  %vm2449_vm14 = vweird.f32 %v15578_v10 }
 0x20a   : > { %v2782_v9 = vmul.f32 %v2427_v34, %v15511_v4  ;;  %v2430_v47 = vmul.f32 %v14216_v27, %v2271_v41  ;;  %v2110_v2 = vmul.f32 %v15303_v23, %v2045_v63  ;;  %v2885_v15 = vmax.f32 %v2853_v1, 0.0  ;;  %v15596_v37 = vpop.f32.mrf.mxu3 }
 0x20b   : > { %v2440_v4 = vand.u32 2147483648, %v2271_v41  ;;  %vm2435_vm8 = vweird.f32 %v14216_v27  ;;  %v1754_v63 = vunpack.c.l.b16 %v1562_v24  ;;  %v2455_v24 = vand.u32 2147483648, %v15578_v10 }
 0x20c   : > { %v2818_v7 = vmul.f32 %v15409_v30, %v2782_v9  ;;  %v2431_v8 = vsub.f32 1.0, %v2430_v47  ;;  %v15591_v35 = vadd.f32 %v15313_v59, %v2110_v2  ;;  %vm2436_vm11 = vmor %vm2434_vm10, %vm2435_vm8 }
 0x20d   : > { %11870 = vmatmul.msk.f32.gmra.mxu0 %vm2918_vm9, %v2885_v15  ;;  %v2441_v9 = vor.u32 1.1754944e-38, %v2440_v4  ;;  %v1771_v3 = vpack.c.b16 %v1755_v11, %v1754_v63 }
 0x20e   : > { %v14218_v46 = vpop.eup %14217  ;;  %v2432_v53 = vmul.f32 %v14216_v27, %v2431_v8  ;;  %v11843_v56 = vmul.f32 -1.442695, %v15591_v35  ;;  %v2854_v12 = vadd.f32 %v15421_v55, %v2818_v7 }
 0x20f   : > { %v2046_v29 = vpop.f32.mrf.mxu2  ;;  %v14220_v52 = vpop.eup %14219  ;;  %v15598_v40 = vadd.f32 1.0, %v14218_v46 }
 0x210   : > { %v2047_v25 = vadd.f32 %v2046_v29, %v15551_v60  ;;  %v2433_v1 = vadd.f32 %v14216_v27, %v2432_v53  ;;  %v2445_v34 = vmul.f32 %v14220_v52, %v15578_v10  ;;  %14221 = vpow2.f32 %v11843_v56 }
 0x211   : > { %14223 = vrcp.f32 %v15598_v40  ;;  %v2886_v15 = vmax.f32 %v2854_v12, 0.0  ;;  %v2453_v60 = vand.u32 2147483647, %v15578_v10  ;;  %vm2450_vm13 = vweird.f32 %v14220_v52 }
 0x212   : > { %v2437_v47 = vsel %vm2436_vm11, %v14216_v27, %v2433_v1  ;;  %v2446_v2 = vsub.f32 1.0, %v2445_v34  ;;  %v2111_v7 = vmul.f32 %v15303_v23, %v2047_v25  ;;  %vm2451_vm15 = vmor %vm2449_vm14, %vm2450_vm13  ;;  %v2456_v12 = vor.u32 1.1754944e-38, %v2455_v24  ;;  %v1965_v10 = vpop.f32.mrf.mxu3 }
 0x213   : > { %v2442_v8 = vsel %vm2439_vm12, %v2441_v9, %v2437_v47  ;;  %vm2454_vm0 = vcmp.eq.f32.partialorder %v2453_v60, 8.507059e+37  ;;  %vm2464_vm2 = vweird.f32 %v15598_v40 }
 0x214   : > { %2088 = vmatmul.bf16.gmra.mxu2 %v1771_v3  ;;  %v2783_v41 = vmul.f32 %v2442_v8, %v15534_v57  ;;  %v2447_v46 = vmul.f32 %v14220_v52, %v2446_v2  ;;  %v15608_v22 = vadd.f32 %v15313_v59, %v2111_v7  ;;  %v2468_v2 = vand.u32 2147483647, %v15598_v40 }
 0x215   : > { %11871 = vmatmul.msk.f32.gmra.mxu0 %vm2918_vm9, %v2886_v15  ;;  %v2470_v7 = vand.u32 2147483648, %v15598_v40 }
 0x216   : > { %v14222_v4 = vpop.eup %14221  ;;  %v2448_v11 = vadd.f32 %v14220_v52, %v2447_v46  ;;  %v11844_v27 = vmul.f32 -1.442695, %v15608_v22  ;;  %v2819_v29 = vmul.f32 %v15409_v30, %v2783_v41  ;;  %vm2469_vm4 = vcmp.eq.f32.partialorder %v2468_v2, 8.507059e+37 }
 0x217   : > { %v2049_v53 = vpop.f32.mrf.mxu2  ;;  %v14224_v56 = vpop.eup %14223  ;;  %v15614_v57 = vadd.f32 1.0, %v14222_v4 }
 0x218   : > { %v2050_v25 = vadd.f32 %v2049_v53, %v15572_v42  ;;  %v2452_v63 = vsel %vm2451_vm15, %v14220_v52, %v2448_v11  ;;  %v2460_v1 = vmul.f32 %v14224_v56, %v15598_v40  ;;  %14225 = vpow2.f32 %v11844_v27 }
 0x219   : > { %v2457_v34 = vsel %vm2454_vm0, %v2456_v12, %v2452_v63  ;;  %14227 = vrcp.f32 %v15614_v57  ;;  %v2855_v42 = vadd.f32 %v15421_v55, %v2819_v29  ;;  %vm2465_vm1 = vweird.f32 %v14224_v56 }
 0x21a   : > { %v2784_v9 = vmul.f32 %v2457_v34, %v15557_v13  ;;  %v2461_v3 = vsub.f32 1.0, %v2460_v1  ;;  %v2112_v47 = vmul.f32 %v15303_v23, %v2050_v25  ;;  %vm2466_vm3 = vmor %vm2464_vm2, %vm2465_vm1  ;;  %v2471_v11 = vor.u32 1.1754944e-38, %v2470_v7 }
 0x21b   : > { %v2887_v60 = vmax.f32 %v2855_v42, 0.0  ;;  %vm2479_vm6 = vweird.f32 %v15614_v57 }
 0x21c   : > { %v2820_v52 = vmul.f32 %v15409_v30, %v2784_v9  ;;  %v2462_v15 = vmul.f32 %v14224_v56, %v2461_v3  ;;  %v15626_v8 = vadd.f32 %v15313_v59, %v2112_v47  ;;  %v1967_v9 = vpop.f32.mrf.mxu3  ;;  %v2483_v3 = vand.u32 2147483647, %v15614_v57 }
 0x21d   : > { %11872 = vmatmul.msk.f32.gmra.mxu0 %vm2918_vm9, %v2887_v60 }
 0x21e   : > { %v14226_v24 = vpop.eup %14225  ;;  %v2463_v41 = vadd.f32 %v14224_v56, %v2462_v15  ;;  %v11845_v13 = vmul.f32 -1.442695, %v15626_v8  ;;  %v2856_v29 = vadd.f32 %v15421_v55, %v2820_v52  ;;  %vm2484_vm8 = vcmp.eq.f32.partialorder %v2483_v3, 8.507059e+37 }
 0x21f   : > { %v2051_v46 = vpop.f32.mrf.mxu2  ;;  %v14228_v4 = vpop.eup %14227  ;;  %v15630_v27 = vadd.f32 1.0, %v14226_v24 }
 0x220   : > { %v2052_v53 = vadd.f32 %v2051_v46, %v15596_v37  ;;  %v2467_v12 = vsel %vm2466_vm3, %v14224_v56, %v2463_v41  ;;  %v2475_v25 = vmul.f32 %v14228_v4, %v15614_v57  ;;  %14229 = vpow2.f32 %v11845_v13 }
 0x221   : > { %v2472_v40 = vsel %vm2469_vm4, %v2471_v11, %v2467_v12  ;;  %14231 = vrcp.f32 %v15630_v27  ;;  %v2485_v37 = vand.u32 2147483648, %v15614_v57  ;;  %v2888_v47 = vmax.f32 %v2856_v29, 0.0  ;;  %v15657_v29 = vld [vmem:[%s20978_s30] ss:$0 sm:$0xff] }
 0x222   : > { %v2785_v63 = vmul.f32 %v2472_v40, %v15570_v28  ;;  %v2476_v1 = vsub.f32 1.0, %v2475_v25  ;;  %v2113_v34 = vmul.f32 %v15303_v23, %v2052_v53  ;;  %vm2480_vm5 = vweird.f32 %v14228_v4 }
 0x223   : > { %vm2481_vm7 = vmor %vm2479_vm6, %vm2480_vm5  ;;  %v2486_v60 = vor.u32 1.1754944e-38, %v2485_v37  ;;  %v2498_v12 = vand.u32 2147483647, %v15630_v27  ;;  %vm2494_vm11 = vweird.f32 %v15630_v27 }
 0x224   : > { %v2821_v56 = vmul.f32 %v15409_v30, %v2785_v63  ;;  %v2477_v2 = vmul.f32 %v14228_v4, %v2476_v1  ;;  %v15643_v7 = vadd.f32 %v15313_v59, %v2113_v34  ;;  %v1970_v34 = vpop.f32.mrf.mxu3 }
 0x225   : > { %11873 = vmatmul.msk.f32.gmra.mxu0 %vm2918_vm9, %v2888_v47  ;;  %vm2499_vm13 = vcmp.eq.f32.partialorder %v2498_v12, 8.507059e+37 }
 0x226   : > { %v14230_v42 = vpop.eup %14229  ;;  %v2478_v52 = vadd.f32 %v14228_v4, %v2477_v2  ;;  %v11846_v28 = vmul.f32 -1.442695, %v15643_v7  ;;  %v2857_v13 = vadd.f32 %v15421_v55, %v2821_v56 }
 0x227   : > { %v2054_v23 = vpop.f32.mrf.mxu2  ;;  %v14232_v15 = vpop.eup %14231  ;;  %v15647_v24 = vadd.f32 1.0, %v14230_v42 }
 0x228   : > { %v2055_v41 = vadd.f32 %v2054_v23, %v1965_v10  ;;  %v2482_v46 = vsel %vm2481_vm7, %v14228_v4, %v2478_v52  ;;  %v2490_v59 = vmul.f32 %v14232_v15, %v15630_v27  ;;  %14233 = vpow2.f32 %v11846_v28 }
 0x229   : > { %v2487_v11 = vsel %vm2484_vm8, %v2486_v60, %v2482_v46  ;;  %14235 = vrcp.f32 %v15647_v24  ;;  %v2500_v4 = vand.u32 2147483648, %v15630_v27  ;;  %v2889_v25 = vmax.f32 %v2857_v13, 0.0 }
 0x22a   : > { %v2786_v57 = vmul.f32 %v2487_v11, %v15591_v35  ;;  %v2491_v53 = vsub.f32 1.0, %v2490_v59  ;;  %v2114_v10 = vmul.f32 %v15657_v29, %v2055_v41  ;;  %vm2495_vm10 = vweird.f32 %v14232_v15  ;;  %v15666_v35 = vld [vmem:[%s20979_s23] ss:$0 sm:$0xff] }
 0x22b   : > { %vm2496_vm12 = vmor %vm2494_vm11, %vm2495_vm10  ;;  %v2501_v42 = vor.u32 1.1754944e-38, %v2500_v4  ;;  %v2513_v11 = vand.u32 2147483647, %v15647_v24  ;;  %vm2509_vm15 = vweird.f32 %v15647_v24 }
 0x22c   : > { %v2822_v40 = vmul.f32 %v15409_v30, %v2786_v57  ;;  %v2492_v63 = vmul.f32 %v14232_v15, %v2491_v53  ;;  %v15669_v1 = vadd.f32 %v15666_v35, %v2114_v10  ;;  %v2515_v57 = vand.u32 2147483648, %v15647_v24 }
 0x22d   : > { %11874 = vmatmul.msk.f32.gmra.mxu0 %vm2918_vm9, %v2889_v25  ;;  %v1972_v25 = vpop.f32.mrf.mxu3  ;;  %vm2514_vm1 = vcmp.eq.f32.partialorder %v2513_v11, 8.507059e+37 }
 0x22e   : > { %v14234_v3 = vpop.eup %14233  ;;  %v2493_v37 = vadd.f32 %v14232_v15, %v2492_v63  ;;  %v11847_v47 = vmul.f32 -1.442695, %v15669_v1  ;;  %v2858_v23 = vadd.f32 %v15421_v55, %v2822_v40 }
 0x22f   : > { %v2056_v56 = vpop.f32.mrf.mxu2  ;;  %v14236_v2 = vpop.eup %14235  ;;  %v15673_v52 = vadd.f32 1.0, %v14234_v3  ;;  %v2516_v3 = vor.u32 1.1754944e-38, %v2515_v57 }
 0x230   : > { %v2057_v28 = vadd.f32 %v2056_v56, %v1967_v9  ;;  %v2497_v60 = vsel %vm2496_vm12, %v14232_v15, %v2493_v37  ;;  %v2505_v41 = vmul.f32 %v14236_v2, %v15647_v24  ;;  %14237 = vpow2.f32 %v11847_v47 }
 0x231   : > { %v2502_v13 = vsel %vm2499_vm13, %v2501_v42, %v2497_v60  ;;  %14239 = vrcp.f32 %v15673_v52  ;;  %v2890_v9 = vmax.f32 %v2858_v23, 0.0  ;;  %vm2510_vm14 = vweird.f32 %v14236_v2 }
 0x232   : > { %v2787_v27 = vmul.f32 %v2502_v13, %v15608_v22  ;;  %v2506_v46 = vsub.f32 1.0, %v2505_v41  ;;  %v2115_v59 = vmul.f32 %v15657_v29, %v2057_v28  ;;  %vm2511_vm0 = vmor %vm2509_vm15, %vm2510_vm14  ;;  %v2528_v13 = vand.u32 2147483647, %v15673_v52 }
 0x233   : > { %vm2524_vm3 = vweird.f32 %v15673_v52 }
 0x234   : > { %v2823_v53 = vmul.f32 %v15409_v30, %v2787_v27  ;;  %v2507_v15 = vmul.f32 %v14236_v2, %v2506_v46  ;;  %v15685_v10 = vadd.f32 %v15666_v35, %v2115_v59  ;;  %v2530_v27 = vand.u32 2147483648, %v15673_v52 }
 0x235   : > { %11875 = vmatmul.msk.f32.gmra.mxu0 %vm2918_vm9, %v2890_v9  ;;  %vm2529_vm5 = vcmp.eq.f32.partialorder %v2528_v13, 8.507059e+37 }
 0x236   : > { %v14238_v12 = vpop.eup %14237  ;;  %v2508_v4 = vadd.f32 %v14236_v2, %v2507_v15  ;;  %v11848_v22 = vmul.f32 -1.442695, %v15685_v10  ;;  %v2859_v56 = vadd.f32 %v15421_v55, %v2823_v53  ;;  %v2531_v15 = vor.u32 1.1754944e-38, %v2530_v27 }
 0x237   : > { %v2059_v40 = vpop.f32.mrf.mxu2  ;;  %v14240_v63 = vpop.eup %14239  ;;  %v15689_v37 = vadd.f32 1.0, %v14238_v12 }
 0x238   : > { %v2060_v47 = vadd.f32 %v2059_v40, %v1970_v34  ;;  %v2512_v42 = vsel %vm2511_vm0, %v14236_v2, %v2508_v4  ;;  %v2520_v28 = vmul.f32 %v14240_v63, %v15673_v52  ;;  %14241 = vpow2.f32 %v11848_v22 }
 0x239   : > { %v2517_v24 = vsel %vm2514_vm1, %v2516_v3, %v2512_v42  ;;  %14243 = vrcp.f32 %v15689_v37  ;;  %v2891_v34 = vmax.f32 %v2859_v56, 0.0  ;;  %vm2525_vm2 = vweird.f32 %v14240_v63 }
 0x23a   : > { %v2788_v23 = vmul.f32 %v2517_v24, %v15626_v8  ;;  %v2521_v60 = vsub.f32 1.0, %v2520_v28  ;;  %v2116_v41 = vmul.f32 %v15657_v29, %v2060_v47  ;;  %vm2526_vm4 = vmor %vm2524_vm3, %vm2525_vm2  ;;  %v1975_v47 = vpop.f32.mrf.mxu3  ;;  %v2543_v24 = vand.u32 2147483647, %v15689_v37 }
 0x23b   : > { %vm2539_vm7 = vweird.f32 %v15689_v37 }
 0x23c   : > { %v2824_v46 = vmul.f32 %v15409_v30, %v2788_v23  ;;  %v2522_v2 = vmul.f32 %v14240_v63, %v2521_v60  ;;  %v15701_v59 = vadd.f32 %v15666_v35, %v2116_v41  ;;  %vm2544_vm10 = vcmp.eq.f32.partialorder %v2543_v24, 8.507059e+37 }
 0x23d   : > { %11876 = vmatmul.msk.f32.gmra.mxu0 %vm2918_vm9, %v2891_v34 }
 0x23e   : > { %v14242_v11 = vpop.eup %14241  ;;  %v2523_v57 = vadd.f32 %v14240_v63, %v2522_v2  ;;  %v11849_v8 = vmul.f32 -1.442695, %v15701_v59  ;;  %v2860_v22 = vadd.f32 %v15421_v55, %v2824_v46 }
 0x23f   : > { %v2061_v9 = vpop.f32.mrf.mxu2  ;;  %v14244_v53 = vpop.eup %14243  ;;  %v15705_v12 = vadd.f32 1.0, %v14242_v11 }
 0x240   : > { %v2062_v4 = vadd.f32 %v2061_v9, %v1972_v25  ;;  %v2527_v40 = vsel %vm2526_vm4, %v14240_v63, %v2523_v57  ;;  %v2535_v3 = vmul.f32 %v14244_v53, %v15689_v37  ;;  %14245 = vpow2.f32 %v11849_v8 }
 0x241   : > { %v2532_v52 = vsel %vm2529_vm5, %v2531_v15, %v2527_v40  ;;  %14247 = vrcp.f32 %v15705_v12  ;;  %v2545_v25 = vand.u32 2147483648, %v15689_v37  ;;  %v2892_v23 = vmax.f32 %v2860_v22, 0.0 }
 0x242   : > { %v2789_v56 = vmul.f32 %v2532_v52, %v15643_v7  ;;  %v2536_v42 = vsub.f32 1.0, %v2535_v3  ;;  %v2117_v28 = vmul.f32 %v15657_v29, %v2062_v4  ;;  %vm2540_vm6 = vweird.f32 %v14244_v53  ;;  %v1977_v40 = vpop.f32.mrf.mxu3 }
 0x243   : > { %vm2541_vm8 = vmor %vm2539_vm7, %vm2540_vm6  ;;  %v2546_v2 = vor.u32 1.1754944e-38, %v2545_v25  ;;  %v2560_v22 = vand.u32 2147483648, %v15705_v12  ;;  %vm2554_vm12 = vweird.f32 %v15705_v12 }
 0x244   : > { %v2825_v63 = vmul.f32 %v15409_v30, %v2789_v56  ;;  %v2537_v60 = vmul.f32 %v14244_v53, %v2536_v42  ;;  %v15717_v41 = vadd.f32 %v15666_v35, %v2117_v28 }
 0x245   : > { %11877 = vmatmul.msk.f32.gmra.mxu0 %vm2918_vm9, %v2892_v23  ;;  %v2561_v25 = vor.u32 1.1754944e-38, %v2560_v22 }
 0x246   : > { %v14246_v13 = vpop.eup %14245  ;;  %v2538_v27 = vadd.f32 %v14244_v53, %v2537_v60  ;;  %v11850_v7 = vmul.f32 -1.442695, %v15717_v41  ;;  %v2861_v57 = vadd.f32 %v15421_v55, %v2825_v63  ;;  %v15734_v55 = vld [vmem:[%s20855_s9] ss:$0 sm:$0xff] }
 0x247   : > { %v2064_v34 = vpop.f32.mrf.mxu2  ;;  %v14248_v46 = vpop.eup %14247  ;;  %v15721_v11 = vadd.f32 1.0, %v14246_v13 }
 0x248   : > { %v2065_v30 = vadd.f32 %v2064_v34, %v1975_v47  ;;  %v2542_v8 = vsel %vm2541_vm8, %v14244_v53, %v2538_v27  ;;  %v2550_v9 = vmul.f32 %v14248_v46, %v15705_v12  ;;  %14249 = vpow2.f32 %v11850_v7  ;;  %v15739_v53 = vld [vmem:[%s20852_s6] ss:$0 sm:$0xff] }
 0x249   : > { %v2547_v15 = vsel %vm2544_vm10, %v2546_v2, %v2542_v8  ;;  %14251 = vrcp.f32 %v15721_v11  ;;  %v2558_v47 = vand.u32 2147483647, %v15705_v12  ;;  %v2893_v52 = vmax.f32 %v2861_v57, 0.0  ;;  %v15754_v2 = vld [vmem:[%s20856_s10] ss:$0 sm:$0xff] }
 0x24a   : > { %v2790_v37 = vmul.f32 %v2547_v15, %v15669_v1  ;;  %v2551_v4 = vsub.f32 1.0, %v2550_v9  ;;  %v2118_v3 = vmul.f32 %v15657_v29, %v2065_v30  ;;  %vm2555_vm11 = vweird.f32 %v14248_v46  ;;  %v15759_v12 = vld [vmem:[%s20853_s7] ss:$0 sm:$0xff] }
 0x24b   : > { %vm2556_vm13 = vmor %vm2554_vm12, %vm2555_vm11  ;;  %vm2559_vm14 = vcmp.eq.f32.partialorder %v2558_v47, 8.507059e+37  ;;  %vm2569_vm0 = vweird.f32 %v15721_v11 }
 0x24c   : > { %v2826_v1 = vmul.f32 %v15739_v53, %v2790_v37  ;;  %v2552_v56 = vmul.f32 %v14248_v46, %v2551_v4  ;;  %v15743_v42 = vadd.f32 %v15666_v35, %v2118_v3  ;;  %v2575_v4 = vand.u32 2147483648, %v15721_v11 }
 0x24d   : > { %11878 = vmatmul.msk.f32.gmra.mxu0 %vm2918_vm9, %v2893_v52 }
 0x24e   : > { %v14250_v28 = vpop.eup %14249  ;;  %v2553_v24 = vadd.f32 %v14248_v46, %v2552_v56  ;;  %v11851_v23 = vmul.f32 -1.442695, %v15743_v42  ;;  %v2862_v30 = vadd.f32 %v15759_v12, %v2826_v1  ;;  %v1980_v1 = vpop.f32.mrf.mxu3 }
 0x24f   : > { %v2066_v63 = vpop.f32.mrf.mxu2  ;;  %v3032_v60 = vpop.f32.mrf.mxu0  ;;  %v15747_v27 = vadd.f32 1.0, %v14250_v28 }
 0x250   : > { %v14252_v13 = vpop.eup %14251  ;;  %v2067_v7 = vadd.f32 %v2066_v63, %v1977_v40  ;;  %v3132_v34 = vmul.f32 %v15734_v55, %v3032_v60  ;;  %v2557_v57 = vsel %vm2556_vm13, %v14248_v46, %v2553_v24  ;;  %14253 = vpow2.f32 %v11851_v23 }
 0x251   : > { %v2565_v8 = vmul.f32 %v14252_v13, %v15721_v11  ;;  %v2562_v9 = vsel %vm2559_vm14, %v2561_v25, %v2557_v57  ;;  %14255 = vrcp.f32 %v15747_v27  ;;  %v2573_v40 = vand.u32 2147483647, %v15721_v11 }
 0x252   : > { %v2791_v15 = vmul.f32 %v2562_v9, %v15685_v10  ;;  %v2119_v22 = vmul.f32 %v15657_v29, %v2067_v7  ;;  %v15769_v3 = vadd.f32 %v15754_v2, %v3132_v34  ;;  %v2894_v46 = vmax.f32 %v2862_v30, 0.0 }
 0x253   : > { %v2566_v37 = vsub.f32 1.0, %v2565_v8  ;;  %vm2570_vm15 = vweird.f32 %v14252_v13  ;;  %v2576_v25 = vor.u32 1.1754944e-38, %v2575_v4  ;;  %vm2574_vm2 = vcmp.eq.f32.partialorder %v2573_v40, 8.507059e+37 }
 0x254   : > { %v2827_v47 = vmul.f32 %v15739_v53, %v2791_v15  ;;  %v15773_v56 = vadd.f32 %v15666_v35, %v2119_v22  ;;  %v11895_v10 = vmul.f32 -1.442695, %v15769_v3  ;;  %vm2571_vm1 = vmor %vm2569_vm0, %vm2570_vm15  ;;  %vm2584_vm4 = vweird.f32 %v15747_v27 }
 0x255   : > { %v2567_v52 = vmul.f32 %v14252_v13, %v2566_v37  ;;  %11879 = vmatmul.msk.f32.gmra.mxu0 %vm2918_vm9, %v2894_v46  ;;  %v2590_v40 = vand.u32 2147483648, %v15747_v27 }
 0x256   : > { %v14254_v28 = vpop.eup %14253  ;;  %v11852_v23 = vmul.f32 -1.442695, %v15773_v56  ;;  %14257 = vpow2.f32 %v11895_v10  ;;  %v2863_v57 = vadd.f32 %v15759_v12, %v2827_v47 }
 0x257   : > { %v2568_v24 = vadd.f32 %v14252_v13, %v2567_v52  ;;  %v2069_v63 = vpop.f32.mrf.mxu2  ;;  %v14256_v60 = vpop.eup %14255  ;;  %v15778_v7 = vadd.f32 1.0, %v14254_v28 }
 0x258   : > { %v2070_v34 = vadd.f32 %v2069_v63, %v1980_v1  ;;  %v3035_v30 = vpop.f32.mrf.mxu0  ;;  %v2580_v9 = vmul.f32 %v14256_v60, %v15747_v27  ;;  %14259 = vpow2.f32 %v11852_v23  ;;  %v2895_v46 = vmax.f32 %v2863_v57, 0.0  ;;  %v1982_v23 = vpop.f32.mrf.mxu3 }
 0x259   : > { %v2572_v8 = vsel %vm2571_vm1, %v14252_v13, %v2568_v24  ;;  %14261 = vrcp.f32 %v15778_v7  ;;  %v3133_v22 = vmul.f32 %v15734_v55, %v3035_v30  ;;  %vm2585_vm3 = vweird.f32 %v14256_v60 }
 0x25a   : > { %v2577_v11 = vsel %vm2574_vm2, %v2576_v25, %v2572_v8  ;;  %v2581_v37 = vsub.f32 1.0, %v2580_v9  ;;  %v2120_v4 = vmul.f32 %v15657_v29, %v2070_v34  ;;  %v2588_v24 = vand.u32 2147483647, %v15747_v27  ;;  %vm15799_vm5 = vmor %vm2584_vm4, %vm2585_vm3 }
 0x25b   : > { %v2792_v15 = vmul.f32 %v2577_v11, %v15701_v59  ;;  %v15793_v1 = vadd.f32 %v15754_v2, %v3133_v22  ;;  %vm2599_vm8 = vweird.f32 %v15778_v7  ;;  %vm3840_vm3 = vcmask 15360  }
 0x25c   : > { %v2582_v52 = vmul.f32 %v14256_v60, %v2581_v37  ;;  %v15788_v47 = vadd.f32 %v15666_v35, %v2120_v4  ;;  %v14258_v13 = vpop.eup %14257  ;;  %v2591_v37 = vor.u32 1.1754944e-38, %v2590_v40  ;;  %vm2589_vm6 = vcmp.eq.f32.partialorder %v2588_v24, 8.507059e+37 }
 0x25d   : > { %v2828_v10 = vmul.f32 %v15739_v53, %v2792_v15  ;;  %v15797_v25 = vadd.f32 1.0, %v14258_v13  ;;  %11880 = vmatmul.msk.f32.gmra.mxu0 %vm2918_vm9, %v2895_v46  ;;  %v11896_v15 = vmul.f32 -1.442695, %v15793_v1 }
 0x25e   : > { %v14260_v59 = vpop.eup %14259  ;;  %v2583_v28 = vadd.f32 %v14256_v60, %v2582_v52  ;;  %v11853_v8 = vmul.f32 -1.442695, %v15788_v47  ;;  %v2603_v52 = vand.u32 2147483647, %v15778_v7 }
 0x25f   : > { %v2071_v63 = vpop.f32.mrf.mxu2  ;;  %v14262_v34 = vpop.eup %14261  ;;  %v15803_v57 = vadd.f32 1.0, %v14260_v59  ;;  %14263 = vrcp.f32 %v15797_v25  ;;  %v2864_v46 = vadd.f32 %v15759_v12, %v2828_v10  ;;  %v2605_v59 = vand.u32 2147483648, %v15778_v7 }
 0x260   : > { %v3038_v9 = vpop.f32.mrf.mxu0  ;;  %v2587_v11 = vsel %vm15799_vm5, %v14256_v60, %v2583_v28  ;;  %v2595_v27 = vmul.f32 %v14262_v34, %v15778_v7  ;;  %v2072_v4 = vadd.f32 %v2071_v63, %v1982_v23  ;;  %vm2600_vm7 = vweird.f32 %v14262_v34 }
 0x261   : > { %14265 = vrcp.f32 %v15803_v57  ;;  %v2592_v13 = vsel %vm2589_vm6, %v2591_v37, %v2587_v11  ;;  %v3134_v28 = vmul.f32 %v15734_v55, %v3038_v9  ;;  %vm15822_vm10 = vcmp.eq.f32.partialorder %v2603_v52, 8.507059e+37  ;;  %vm2601_vm11 = vmor %vm2599_vm8, %vm2600_vm7  ;;  %v1985_v52 = vpop.f32.mrf.mxu3 }
 0x262   : > { %v2596_v22 = vsub.f32 1.0, %v2595_v27  ;;  %14267 = vpow2.f32 %v11853_v8  ;;  %v2121_v40 = vmul.f32 %v15657_v29, %v2072_v4  ;;  %v2793_v24 = vmul.f32 %v2592_v13, %v15717_v41 }
 0x263   : > { %14269 = vpow2.f32 %v11896_v15  ;;  %v2896_v30 = vmax.f32 %v2864_v46, 0.0  ;;  %v2606_v27 = vor.u32 1.1754944e-38, %v2605_v59  ;;  %v15834_v15 = vadd.f32 %v15754_v2, %v3134_v28 }
 0x264   : > { %v2597_v60 = vmul.f32 %v14262_v34, %v2596_v22  ;;  %v15831_v9 = vadd.f32 %v15666_v35, %v2121_v40  ;;  %v2618_v4 = vand.u32 2147483647, %v15803_v57  ;;  %v2620_v22 = vand.u32 2147483648, %v15803_v57 }
 0x265   : > { %v15819_v23 = vpop.eup %14263  ;;  %11881 = vmatmul.msk.f32.gmra.mxu0 %vm2918_vm9, %v2896_v30  ;;  %v3337_v49 = vand.u32 2147483647, %v15797_v25  ;;  %v11897_v10 = vmul.f32 -1.442695, %v15834_v15  ;;  %vm2614_vm14 = vweird.f32 %v15803_v57  ;;  %vm3333_vm0 = vweird.f32 %v15797_v25 }
 0x266   : > { %v2598_v63 = vadd.f32 %v14262_v34, %v2597_v60  ;;  %v3329_v7 = vmul.f32 %v15819_v23, %v15797_v25  ;;  %v11854_v60 = vmul.f32 -1.442695, %v15831_v9  ;;  %vm3334_vm12 = vweird.f32 %v15819_v23 }
 0x267   : > { %v2074_v8 = vpop.f32.mrf.mxu2  ;;  %v15826_v11 = vpop.eup %14265  ;;  %vm15865_vm15 = vcmp.eq.f32.partialorder %v2618_v4, 8.507059e+37  ;;  %vm15871_vm1 = vmor %vm3333_vm0, %vm3334_vm12  ;;  %vm15875_vm2 = vcmp.eq.f32.partialorder %v3337_v49, 8.507059e+37 }
 0x268   : > { %v2602_v41 = vsel %vm2601_vm11, %v14262_v34, %v2598_v63  ;;  %v2610_v37 = vmul.f32 %v15826_v11, %v15803_v57  ;;  %v14268_v46 = vpop.eup %14267  ;;  %v3330_v59 = vsub.f32 1.0, %v3329_v7  ;;  %v2075_v40 = vadd.f32 %v2074_v8, %v1985_v52  ;;  %v3041_v28 = vpop.f32.mrf.mxu0 }
 0x269   : > { %v2607_v13 = vsel %vm15822_vm10, %v2606_v27, %v2602_v41  ;;  %v14270_v34 = vpop.eup %14269  ;;  %v2829_v63 = vmul.f32 %v15739_v53, %v2793_v24  ;;  %v15846_v45 = vadd.f32 1.0, %v14268_v46  ;;  %14271 = vpow2.f32 %v11854_v60 }
 0x26a   : > { %v2611_v21 = vsub.f32 1.0, %v2610_v37  ;;  %v3331_v17 = vmul.f32 %v15819_v23, %v3330_v59  ;;  %v15849_v30 = vadd.f32 1.0, %v14270_v34  ;;  %v2794_v27 = vmul.f32 %v2607_v13, %v15743_v42 }
 0x26b   : > { %v3339_v7 = vand.u32 2147483648, %v15797_v25  ;;  %14273 = vrcp.f32 %v15846_v45  ;;  %v2122_v41 = vmul.f32 %v15657_v29, %v2075_v40  ;;  %vm2615_vm13 = vweird.f32 %v15826_v11 }
 0x26c   : > { %v2612_v8 = vmul.f32 %v15826_v11, %v2611_v21  ;;  %v3332_v24 = vadd.f32 %v15819_v23, %v3331_v17  ;;  %14275 = vrcp.f32 %v15849_v30  ;;  %v3135_v42 = vmul.f32 %v15734_v55, %v3041_v28  ;;  %vm15881_vm4 = vmor %vm2614_vm14, %vm2615_vm13 }
 0x26d   : > { %v2865_v21 = vadd.f32 %v15759_v12, %v2829_v63  ;;  %14277 = vpow2.f32 %v11897_v10  ;;  %v2830_v17 = vmul.f32 %v15739_v53, %v2794_v27  ;;  %v2621_v46 = vor.u32 1.1754944e-38, %v2620_v22  ;;  %v1987_v27 = vpop.f32.mrf.mxu3 }
 0x26e   : > { %v2613_v37 = vadd.f32 %v15826_v11, %v2612_v8  ;;  %v3340_v60 = vor.u32 1.1754944e-38, %v3339_v7  ;;  %v3336_v22 = vsel %vm15871_vm1, %v15819_v23, %v3332_v24  ;;  %vm2629_vm5 = vweird.f32 %v15846_v45 }
 0x26f   : > { %v2076_v57 = vpop.f32.mrf.mxu2  ;;  %v14272_v4 = vpop.eup %14271  ;;  %v2633_v49 = vand.u32 2147483647, %v15846_v45  ;;  %v2635_v40 = vand.u32 2147483648, %v15846_v45  ;;  %v15892_v28 = vadd.f32 %v15666_v35, %v2122_v41  ;;  %v15902_v23 = vadd.f32 %v15754_v2, %v3135_v42 }
 0x270   : > { %v2617_v63 = vsel %vm15881_vm4, %v15826_v11, %v2613_v37  ;;  %v15899_v10 = vadd.f32 1.0, %v14272_v4  ;;  %v2897_v8 = vmax.f32 %v2865_v21, 0.0  ;;  %vm3348_vm6 = vweird.f32 %v15849_v30 }
 0x271   : > { %v15894_v34 = vpop.eup %14273  ;;  %v11855_v41 = vmul.f32 -1.442695, %v15892_v28  ;;  %v2077_v13 = vadd.f32 %v2076_v57, %v1987_v27  ;;  %v3341_v11 = vsel %vm15875_vm2, %v3340_v60, %v3336_v22  ;;  %v3352_v4 = vand.u32 2147483647, %v15849_v30 }
 0x272   : > { %v14276_v7 = vpop.eup %14275  ;;  %v2625_v24 = vmul.f32 %v15894_v34, %v15846_v45  ;;  %v3044_v31 = vpop.f32.mrf.mxu0  ;;  %14279 = vrcp.f32 %v15899_v10  ;;  %11882 = vmatmul.msk.f32.gmra.mxu0 %vm2918_vm9, %v2897_v8  ;;  %v2622_v21 = vsel %vm15865_vm15, %v2621_v46, %v2617_v63  ;;  %v2636_v33 = vor.u32 1.1754944e-38, %v2635_v40 }
 0x273   : > { %v3344_v37 = vmul.f32 %v14276_v7, %v15849_v30  ;;  %v14278_v42 = vpop.eup %14277  ;;  %v3354_v57 = vand.u32 2147483648, %v15849_v30  ;;  %vm15917_vm7 = vcmp.eq.f32.partialorder %v2633_v49, 8.507059e+37  ;;  %14281 = vpow2.f32 %v11855_v41 }
 0x274   : > { %v2626_v25 = vsub.f32 1.0, %v2625_v24  ;;  %v15921_v60 = vadd.f32 1.0, %v14278_v42  ;;  %v11898_v22 = vmul.f32 -1.442695, %v15902_v23  ;;  %v3808_v8 = vmul.f32 %v3341_v11, %v15769_v3 }
 0x275   : > { %v3345_v59 = vsub.f32 1.0, %v3344_v37  ;;  %vm2630_vm8 = vweird.f32 %v15894_v34  ;;  %v2123_v52 = vmul.f32 %v15657_v29, %v2077_v13  ;;  %vm3349_vm10 = vweird.f32 %v14276_v7 }
 0x276   : > { %v2627_v54 = vmul.f32 %v15894_v34, %v2626_v25  ;;  %vm15928_vm11 = vcmp.eq.f32.partialorder %v3352_v4, 8.507059e+37  ;;  %14283 = vrcp.f32 %v15921_v60  ;;  %v2795_v40 = vmul.f32 %v2622_v21, %v15773_v56  ;;  %vm15942_vm12 = vmor %vm2629_vm5, %vm2630_vm8 }
 0x277   : > { %v3346_v46 = vmul.f32 %v14276_v7, %v3345_v59  ;;  %14285 = vpow2.f32 %v11898_v22  ;;  %v15936_v3 = vadd.f32 %v15666_v35, %v2123_v52  ;;  %v3355_v11 = vor.u32 1.1754944e-38, %v3354_v57  ;;  %vm15953_vm13 = vmor %vm3348_vm6, %vm3349_vm10  ;;  %v2079_v22 = vpop.f32.mrf.mxu2 }
 0x278   : > { %v2628_v63 = vadd.f32 %v15894_v34, %v2627_v54  ;;  %v15938_v24 = vpop.eup %14279  ;;  %v3136_v37 = vmul.f32 %v15734_v55, %v3044_v31  ;;  %v2866_v56 = vadd.f32 %v15759_v12, %v2830_v17  ;;  %v15949_v54 = vsel %vm3840_vm3, %v3808_v8, 0.0 }
 0x279   : > { %v3347_v13 = vadd.f32 %v14276_v7, %v3346_v46  ;;  %v2640_v45 = vmul.f32 %v15938_v24, %v15899_v10  ;;  %v2648_v42 = vand.u32 2147483647, %v15899_v10  ;;  %v2650_v21 = vand.u32 2147483648, %v15899_v10  ;;  %v14282_v31 = vpop.eup %14281 }
 0x27a   : > { %v3047_v25 = vpop.f32.mrf.mxu0  ;;  %v2632_v17 = vsel %vm15942_vm12, %v15894_v34, %v2628_v63  ;;  %v11856_v57 = vmul.f32 -1.442695, %v15936_v3  ;;  %v15968_v59 = vadd.f32 %v15754_v2, %v3136_v37  ;;  %v2831_v8 = vmul.f32 %v15739_v53, %v2795_v40  ;;  %v1990_v63 = vpop.f32.mrf.mxu3 }
 0x27b   : > { %v3351_v30 = vsel %vm15953_vm13, %v14276_v7, %v3347_v13  ;;  %v2641_v52 = vsub.f32 1.0, %v2640_v45  ;;  %vm2644_vm14 = vweird.f32 %v15899_v10  ;;  %v15972_v46 = vadd.f32 1.0, %v14282_v31 }
 0x27c   : > { %v14284_v5 = vpop.eup %14283  ;;  %v3356_v34 = vsel %vm15928_vm11, %v3355_v11, %v3351_v30  ;;  %14287 = vpow2.f32 %v11856_v57  ;;  %v11899_v7 = vmul.f32 -1.442695, %v15968_v59  ;;  %v2898_v41 = vmax.f32 %v2866_v56, 0.0 }
 0x27d   : > { %v14286_v13 = vpop.eup %14285  ;;  %v2637_v37 = vsel %vm15917_vm7, %v2636_v33, %v2632_v17  ;;  %v2642_v40 = vmul.f32 %v15938_v24, %v2641_v52  ;;  %vm15980_vm15 = vcmp.eq.f32.partialorder %v2648_v42, 8.507059e+37  ;;  %v3359_v45 = vmul.f32 %v14284_v5, %v15921_v60 }
 0x27e   : > { %v2651_v31 = vor.u32 1.1754944e-38, %v2650_v21  ;;  %v3367_v49 = vand.u32 2147483647, %v15921_v60  ;;  %v3369_v11 = vand.u32 2147483648, %v15921_v60  ;;  %14289 = vrcp.f32 %v15972_v46  ;;  %11883 = vmatmul.msk.f32.gmra.mxu0 %vm2918_vm9, %v2898_v41 }
 0x27f   : > { %v3809_v27 = vmul.f32 %v3356_v34, %v15793_v1  ;;  %v2643_v33 = vadd.f32 %v15938_v24, %v2642_v40  ;;  %vm2645_vm0 = vweird.f32 %v15938_v24  ;;  %v3360_v56 = vsub.f32 1.0, %v3359_v45 }
 0x280   : > { %v2796_v42 = vmul.f32 %v2637_v37, %v15788_v47  ;;  %v15993_v17 = vadd.f32 1.0, %v14286_v13  ;;  %14291 = vpow2.f32 %v11899_v7  ;;  %v2080_v21 = vadd.f32 %v2079_v22, %v1990_v63  ;;  %vm16001_vm4 = vmor %vm2644_vm14, %vm2645_vm0 }
 0x281   : > { %v3361_v30 = vmul.f32 %v14284_v5, %v3360_v56  ;;  %vm3363_vm1 = vweird.f32 %v15921_v60  ;;  %vm3364_vm2 = vweird.f32 %v14284_v5  ;;  %v3137_v57 = vmul.f32 %v15734_v55, %v3047_v25 }
 0x282   : > { %v15997_v52 = vpop.f32.mrf.mxu0  ;;  %v14288_v1 = vpop.eup %14287  ;;  %vm16005_vm5 = vcmp.eq.f32.partialorder %v3367_v49, 8.507059e+37  ;;  %v3370_v22 = vor.u32 1.1754944e-38, %v3369_v11  ;;  %v2665_v63 = vand.u32 2147483648, %v15972_v46  ;;  %14293 = vrcp.f32 %v15993_v17  ;;  %vm16025_vm6 = vmor %vm3363_vm1, %vm3364_vm2 }
 0x283   : > { %v3842_v25 = vsel %vm3840_vm3, %v3809_v27, 0.0  ;;  %v2647_v7 = vsel %vm16001_vm4, %v15938_v24, %v2643_v33  ;;  %v3362_v10 = vadd.f32 %v14284_v5, %v3361_v30  ;;  %v16015_v41 = vadd.f32 1.0, %v14288_v1  ;;  %v2081_v11 = vpop.f32.mrf.mxu2 }
 0x284   : > { %v16017_v13 = vpop.eup %14289  ;;  %v16020_v37 = vmul.f32 %v15739_v53, %v2796_v42  ;;  %v2124_v45 = vmul.f32 %v15657_v29, %v2080_v21  ;;  %v16031_v49 = vadd.f32 %v15754_v2, %v3137_v57  ;;  %v2867_v24 = vadd.f32 %v15759_v12, %v2831_v8  ;;  %v1992_v8 = vpop.f32.mrf.mxu3 }
 0x285   : > { %v3366_v27 = vsel %vm16025_vm6, %v14284_v5, %v3362_v10  ;;  %v2655_v33 = vmul.f32 %v16017_v13, %v15972_v46  ;;  %vm2659_vm7 = vweird.f32 %v15972_v46  ;;  %v2663_v60 = vand.u32 2147483647, %v15972_v46 }
 0x286   : > { %v14292_v56 = vpop.eup %14291  ;;  %v16041_v42 = vadd.f32 %v3842_v25, %v15949_v54  ;;  %v2652_v21 = vsel %vm15980_vm15, %v2651_v31, %v2647_v7  ;;  %v2666_v30 = vor.u32 1.1754944e-38, %v2665_v63  ;;  %14295 = vrcp.f32 %v16015_v41 }
 0x287   : > { %v3371_v5 = vsel %vm16005_vm5, %v3370_v22, %v3366_v27  ;;  %v2656_v57 = vsub.f32 1.0, %v2655_v33  ;;  %v3382_v1 = vand.u32 2147483647, %v15993_v17  ;;  %v3384_v34 = vand.u32 2147483648, %v15993_v17 }
 0x288   : > { %v14294_v10 = vpop.eup %14293  ;;  %v16050_v40 = vadd.f32 1.0, %v14292_v56  ;;  %v16053_v54 = vadd.f32 %v15666_v35, %v2124_v45  ;;  %v11900_v4 = vmul.f32 -1.442695, %v16031_v49  ;;  %v2899_v31 = vmax.f32 %v2867_v24, 0.0 }
 0x289   : > { %v16057_v63 = vmul.f32 %v2652_v21, %v15831_v9  ;;  %v2657_v47 = vmul.f32 %v16017_v13, %v2656_v57  ;;  %vm16060_vm8 = vcmp.eq.f32.partialorder %v2663_v60, 8.507059e+37  ;;  %v3374_v25 = vmul.f32 %v14294_v10, %v15993_v17 }
 0x28a   : > { %vm3378_vm10 = vweird.f32 %v15993_v17  ;;  %v16066_v7 = vpop.f32.mrf.mxu0  ;;  %v3810_v45 = vmul.f32 %v3371_v5, %v15834_v15  ;;  %v2678_v27 = vand.u32 2147483647, %v16015_v41  ;;  %v2680_v24 = vand.u32 2147483648, %v16015_v41  ;;  %11884 = vmatmul.msk.f32.gmra.mxu0 %vm2918_vm9, %v2899_v31 }
 0x28b   : > { %14297 = vrcp.f32 %v16050_v40  ;;  %v2658_v9 = vadd.f32 %v16017_v13, %v2657_v47  ;;  %vm2660_vm11 = vweird.f32 %v16017_v13  ;;  %v3375_v33 = vsub.f32 1.0, %v3374_v25 }
 0x28c   : > { %vm16075_vm12 = vcmp.eq.f32.partialorder %v3382_v1, 8.507059e+37  ;;  %v14296_v56 = vpop.eup %14295  ;;  %v3385_v21 = vor.u32 1.1754944e-38, %v3384_v34  ;;  %v11857_v15 = vmul.f32 -1.442695, %v16053_v54  ;;  %14299 = vpow2.f32 %v11900_v4  ;;  %vm16085_vm15 = vmor %vm2659_vm7, %vm2660_vm11 }
 0x28d   : > { %v2082_v5 = vadd.f32 %v2081_v11, %v1992_v8  ;;  %v3376_v57 = vmul.f32 %v14294_v10, %v3375_v33  ;;  %vm3379_vm13 = vweird.f32 %v14294_v10  ;;  %v2670_v0 = vmul.f32 %v14296_v56, %v16015_v41  ;;  %v2084_v11 = vpop.f32.mrf.mxu2 }
 0x28e   : > { %vm2674_vm14 = vweird.f32 %v16015_v41  ;;  %v3844_v31 = vsel %vm3840_vm3, %v3810_v45, 0.0  ;;  %vm16089_vm0 = vcmp.eq.f32.partialorder %v2678_v27, 8.507059e+37  ;;  %v2681_v4 = vor.u32 1.1754944e-38, %v2680_v24  ;;  %vm3380_vm1 = vmor %vm3378_vm10, %vm3379_vm13  ;;  %v1995_v27 = vpop.f32.mrf.mxu3 }
 0x28f   : > { %14301 = vpow2.f32 %v11857_v15  ;;  %v2662_v8 = vsel %vm16085_vm15, %v16017_v13, %v2658_v9  ;;  %v3377_v47 = vadd.f32 %v14294_v10, %v3376_v57  ;;  %v2671_v25 = vsub.f32 1.0, %v2670_v0 }
 0x290   : > { %v2125_v45 = vmul.f32 %v15657_v29, %v2082_v5  ;;  %vm2675_vm2 = vweird.f32 %v14296_v56  ;;  %vm3393_vm4 = vweird.f32 %v16050_v40  ;;  %v3138_v24 = vmul.f32 %v15734_v55, %v15997_v52 }
 0x291   : > { %v14298_v46 = vpop.eup %14297  ;;  %v2868_v33 = vadd.f32 %v15759_v12, %v16020_v37  ;;  %v3381_v15 = vsel %vm3380_vm1, %v14294_v10, %v3377_v47  ;;  %v2672_v13 = vmul.f32 %v14296_v56, %v2671_v25  ;;  %v2085_v9 = vadd.f32 %v2084_v11, %v1995_v27  ;;  %vm16121_vm5 = vmor %vm2674_vm14, %vm2675_vm2 }
 0x292   : > { %v3389_v0 = vmul.f32 %v14298_v46, %v16050_v40  ;;  %v3056_v5 = vpop.f32.mrf.mxu0  ;;  %v14300_v57 = vpop.eup %14299  ;;  %v2667_v17 = vsel %vm16060_vm8, %v2666_v30, %v2662_v8  ;;  %v3386_v1 = vsel %vm16075_vm12, %v3385_v21, %v3381_v15  ;;  %v16110_v16 = vadd.f32 %v15666_v35, %v2125_v45 }
 0x293   : > { %v16113_v52 = vadd.f32 %v15754_v2, %v3138_v24  ;;  %v3811_v37 = vmul.f32 %v3386_v1, %v15902_v23  ;;  %v2673_v10 = vadd.f32 %v14296_v56, %v2672_v13  ;;  %v16116_v25 = vadd.f32 1.0, %v14300_v57 }
 0x294   : > { %v3390_v47 = vsub.f32 1.0, %v3389_v0  ;;  %vm3394_vm6 = vweird.f32 %v14298_v46  ;;  %v3399_v22 = vand.u32 2147483648, %v16050_v40  ;;  %v11858_v60 = vmul.f32 -1.442695, %v16110_v16 }
 0x295   : > { %v14302_v11 = vpop.eup %14301  ;;  %v2900_v21 = vmax.f32 %v2868_v33, 0.0  ;;  %v2677_v23 = vsel %vm16121_vm5, %v14296_v56, %v2673_v10  ;;  %v2126_v27 = vmul.f32 %v15657_v29, %v2085_v9  ;;  %v2798_v41 = vmul.f32 %v2667_v17, %v15892_v28  ;;  %vm3395_vm7 = vmor %vm3393_vm4, %vm3394_vm6 }
 0x296   : > { %v3391_v8 = vmul.f32 %v14298_v46, %v3390_v47  ;;  %v16129_v45 = vadd.f32 1.0, %v14302_v11  ;;  %v3397_v24 = vand.u32 2147483647, %v16050_v40  ;;  %14303 = vrcp.f32 %v16116_v25 }
 0x297   : > { %v11901_v15 = vmul.f32 -1.442695, %v16113_v52  ;;  %11885 = vmatmul.msk.f32.gmra.mxu0 %vm2918_vm9, %v2900_v21  ;;  %v3846_v33 = vsel %vm3840_vm3, %v3811_v37, 0.0  ;;  %v2682_v56 = vsel %vm16089_vm0, %v2681_v4, %v2677_v23  ;;  %v2833_v29 = vmul.f32 %v15739_v53, %v16057_v63  ;;  %v2086_v4 = vpop.f32.mrf.mxu2 }
 0x298   : > { %v3392_v13 = vadd.f32 %v14298_v46, %v3391_v8  ;;  %14305 = vrcp.f32 %v16129_v45  ;;  %v3845_v28 = vadd.f32 %v3844_v31, %v16041_v42  ;;  %v3139_v0 = vmul.f32 %v15734_v55, %v16066_v7 }
 0x299   : > { %v3400_v57 = vor.u32 1.1754944e-38, %v3399_v22  ;;  %14307 = vpow2.f32 %v11858_v60  ;;  %v16150_v34 = vadd.f32 %v15666_v35, %v2126_v27  ;;  %v16153_v17 = vmul.f32 %v15739_v53, %v2798_v41 }
 0x29a   : > { %v3396_v9 = vsel %vm3395_vm7, %v14298_v46, %v3392_v13  ;;  %v16155_v63 = vadd.f32 %v3846_v33, %v3845_v28  ;;  %v2799_v42 = vmul.f32 %v2682_v56, %v15936_v3  ;;  %vm3398_vm8 = vcmp.eq.f32.partialorder %v3397_v24, 8.507059e+37  ;;  %v16158_v40 = vpop.f32.mrf.mxu0  ;;  %v1997_v46 = vpop.f32.mrf.mxu3 }
 0x29b   : > { %v3401_v31 = vsel %vm3398_vm8, %v3400_v57, %v3396_v9  ;;  %v2695_v7 = vand.u32 2147483648, %v16129_v45  ;;  %vm3408_vm10 = vweird.f32 %v16116_v25  ;;  %14309 = vpow2.f32 %v11901_v15 }
 0x29c   : > { %v11859_v35 = vmul.f32 -1.442695, %v16150_v34  ;;  %v14304_v1 = vpop.eup %14303  ;;  %vm2689_vm11 = vweird.f32 %v16129_v45  ;;  %v16165_v37 = vadd.f32 %v15754_v2, %v3139_v0  ;;  %v2869_v3 = vadd.f32 %v15759_v12, %v2833_v29 }
 0x29d   : > { %v2087_v10 = vadd.f32 %v2086_v4, %v1997_v46  ;;  %v3140_v47 = vmul.f32 %v15734_v55, %v3056_v5  ;;  %v2693_v30 = vand.u32 2147483647, %v16129_v45  ;;  %v3404_v22 = vmul.f32 %v14304_v1, %v16116_v25  ;;  %v16179_v55 = vld [vmem:[%s20978_s30] ss:$0 sm:$0xff] }
 0x29e   : > { %v14306_v11 = vpop.eup %14305  ;;  %v3412_v60 = vand.u32 2147483647, %v16116_v25  ;;  %14311 = vpow2.f32 %v11859_v35  ;;  %v3812_v21 = vmul.f32 %v3401_v31, %v15968_v59  ;;  %v3414_v8 = vand.u32 2147483648, %v16116_v25  ;;  %v16203_v46 = vld [vmem:[%s20979_s23] ss:$0 sm:$0xff] }
 0x29f   : > { %v2685_v23 = vmul.f32 %v14306_v11, %v16129_v45  ;;  %v11902_v27 = vmul.f32 -1.442695, %v16165_v37  ;;  %v14308_v41 = vpop.eup %14307  ;;  %v3405_v24 = vsub.f32 1.0, %v3404_v22  ;;  %v2901_v15 = vmax.f32 %v2869_v3, 0.0 }
 0x2a0   : > { %v2127_v5 = vmul.f32 %v16179_v55, %v2087_v10  ;;  %v16183_v33 = vadd.f32 %v15754_v2, %v3140_v47  ;;  %v16186_v59 = vmul.f32 %v15739_v53, %v2799_v42  ;;  %v2696_v13 = vor.u32 1.1754944e-38, %v2695_v7 }
 0x2a1   : > { %v2686_v56 = vsub.f32 1.0, %v2685_v23  ;;  %v16188_v29 = vadd.f32 1.0, %v14308_v41  ;;  %v14310_v28 = vpop.eup %14309  ;;  %v3406_v0 = vmul.f32 %v14304_v1, %v3405_v24  ;;  %vm3409_vm12 = vweird.f32 %v14304_v1  ;;  %11886 = vmatmul.msk.f32.gmra.mxu0 %vm2918_vm9, %v2901_v15 }
 0x2a2   : > { %14313 = vpow2.f32 %v11902_v27  ;;  %v11903_v9 = vmul.f32 -1.442695, %v16183_v33  ;;  %vm2690_vm13 = vweird.f32 %v14306_v11  ;;  %vm16192_vm14 = vcmp.eq.f32.partialorder %v3412_v60, 8.507059e+37  ;;  %v16208_v3 = vpop.f32.mrf.mxu0  ;;  %vm3410_vm15 = vmor %vm3408_vm10, %vm3409_vm12  ;;  %v2089_v27 = vpop.f32.mrf.mxu2 }
 0x2a3   : > { %v2687_v57 = vmul.f32 %v14306_v11, %v2686_v56  ;;  %14315 = vrcp.f32 %v16188_v29  ;;  %v3848_v42 = vsel %vm3840_vm3, %v3812_v21, 0.0  ;;  %v3407_v31 = vadd.f32 %v14304_v1, %v3406_v0  ;;  %vm2691_vm0 = vmor %vm2689_vm11, %vm2690_vm13 }
 0x2a4   : > { %v14312_v4 = vpop.eup %14311  ;;  %v16198_v7 = vadd.f32 1.0, %v14310_v28  ;;  %v16206_v35 = vadd.f32 %v16203_v46, %v2127_v5  ;;  %v3415_v47 = vor.u32 1.1754944e-38, %v3414_v8  ;;  %14317 = vpow2.f32 %v11903_v9 }
 0x2a5   : > { %v2688_v10 = vadd.f32 %v14306_v11, %v2687_v57  ;;  %v16213_v22 = vadd.f32 1.0, %v14312_v4  ;;  %v3411_v60 = vsel %vm3410_vm15, %v14304_v1, %v3407_v31  ;;  %v2708_v21 = vand.u32 2147483647, %v16188_v29  ;;  %v2000_v1 = vpop.f32.mrf.mxu3 }
 0x2a6   : > { %v2710_v23 = vand.u32 2147483648, %v16188_v29  ;;  %14319 = vrcp.f32 %v16198_v7  ;;  %v3849_v41 = vadd.f32 %v3848_v42, %v16155_v63  ;;  %vm2694_vm1 = vcmp.eq.f32.partialorder %v2693_v30, 8.507059e+37 }
 0x2a7   : > { %v2692_v25 = vsel %vm2691_vm0, %v14306_v11, %v2688_v10  ;;  %v3416_v8 = vsel %vm16192_vm14, %v3415_v47, %v3411_v60  ;;  %14321 = vrcp.f32 %v16213_v22  ;;  %v11860_v5 = vmul.f32 -1.442695, %v16206_v35 }
 0x2a8   : > { %v14314_v24 = vpop.eup %14313  ;;  %v2697_v15 = vsel %vm2694_vm1, %v2696_v13, %v2692_v25  ;;  %v3813_v45 = vmul.f32 %v3416_v8, %v16031_v49  ;;  %vm2704_vm2 = vweird.f32 %v16188_v29  ;;  %v3427_v28 = vand.u32 2147483647, %v16198_v7 }
 0x2a9   : > { %v14316_v56 = vpop.eup %14315  ;;  %v2870_v63 = vadd.f32 %v15759_v12, %v16153_v17  ;;  %v2090_v11 = vadd.f32 %v2089_v27, %v2000_v1  ;;  %vm16233_vm4 = vcmp.eq.f32.partialorder %v2708_v21, 8.507059e+37  ;;  %v2711_v0 = vor.u32 1.1754944e-38, %v2710_v23 }
 0x2aa   : > { %v3850_v30 = vsel %vm3840_vm3, %v3813_v45, 0.0  ;;  %v2700_v13 = vmul.f32 %v14316_v56, %v16188_v29  ;;  %v3429_v9 = vand.u32 2147483648, %v16198_v7  ;;  %v14318_v57 = vpop.eup %14317  ;;  %v2800_v2 = vmul.f32 %v2697_v15, %v16053_v54  ;;  %v16248_v60 = vpop.f32.mrf.mxu0 }
 0x2ab   : > { %v16239_v4 = vadd.f32 %v3850_v30, %v3849_v41  ;;  %vm3423_vm5 = vweird.f32 %v16198_v7  ;;  %v2723_v12 = vand.u32 2147483647, %v16213_v22  ;;  %v16243_v17 = vadd.f32 1.0, %v14314_v24 }
 0x2ac   : > { %v14320_v42 = vpop.eup %14319  ;;  %v2701_v31 = vsub.f32 1.0, %v2700_v13  ;;  %v2725_v10 = vand.u32 2147483648, %v16213_v22  ;;  %14323 = vpow2.f32 %v11860_v5  ;;  %v16246_v47 = vadd.f32 1.0, %v14318_v57 }
 0x2ad   : > { %v3419_v21 = vmul.f32 %v14320_v42, %v16198_v7  ;;  %vm16251_vm6 = vcmp.eq.f32.partialorder %v3427_v28, 8.507059e+37  ;;  %vm2719_vm7 = vweird.f32 %v16213_v22  ;;  %14325 = vrcp.f32 %v16243_v17  ;;  %v14322_v23 = vpop.eup %14321 }
 0x2ae   : > { %v2702_v27 = vmul.f32 %v14316_v56, %v2701_v31  ;;  %vm2705_vm8 = vweird.f32 %v14316_v56  ;;  %v3430_v41 = vor.u32 1.1754944e-38, %v3429_v9  ;;  %14327 = vrcp.f32 %v16246_v47 }
 0x2af   : > { %v16259_v25 = vmul.f32 %v15739_v53, %v2800_v2  ;;  %v3420_v8 = vsub.f32 1.0, %v3419_v21  ;;  %v2715_v24 = vmul.f32 %v14322_v23, %v16213_v22  ;;  %vm16262_vm10 = vcmp.eq.f32.partialorder %v2723_v12, 8.507059e+37  ;;  %vm2706_vm11 = vmor %vm2704_vm2, %vm2705_vm8 }
 0x2b0   : > { %v2703_v45 = vadd.f32 %v14316_v56, %v2702_v27  ;;  %v2726_v1 = vor.u32 1.1754944e-38, %v2725_v10  ;;  %v3442_v5 = vand.u32 2147483647, %v16243_v17  ;;  %v3444_v28 = vand.u32 2147483648, %v16243_v17 }
 0x2b1   : > { %v3421_v30 = vmul.f32 %v14320_v42, %v3420_v8  ;;  %vm3424_vm12 = vweird.f32 %v14320_v42  ;;  %v2716_v53 = vsub.f32 1.0, %v2715_v24  ;;  %v2902_v13 = vmax.f32 %v2870_v63, 0.0 }
 0x2b2   : > { %v14324_v9 = vpop.eup %14323  ;;  %v2707_v57 = vsel %vm2706_vm11, %v14316_v56, %v2703_v45  ;;  %vm2720_vm13 = vweird.f32 %v14322_v23  ;;  %vm3438_vm14 = vweird.f32 %v16243_v17  ;;  %v3457_v2 = vand.u32 2147483647, %v16246_v47  ;;  %vm3425_vm15 = vmor %vm3423_vm5, %vm3424_vm12  ;;  %v16290_v45 = vpop.f32.mrf.mxu0 }
 0x2b3   : > { %v3459_v12 = vand.u32 2147483648, %v16246_v47  ;;  %v14326_v31 = vpop.eup %14325  ;;  %v2712_v10 = vsel %vm16233_vm4, %v2711_v0, %v2707_v57  ;;  %v3422_v21 = vadd.f32 %v14320_v42, %v3421_v30  ;;  %v2717_v29 = vmul.f32 %v14322_v23, %v2716_v53  ;;  %11887 = vmatmul.msk.f32.gmra.mxu0 %vm2918_vm9, %v2902_v13  ;;  %vm2721_vm2 = vmor %vm2719_vm7, %vm2720_vm13 }
 0x2b4   : > { %v16275_v27 = vadd.f32 1.0, %v14324_v9  ;;  %v16278_v63 = vpop.eup %14327  ;;  %v2801_v56 = vmul.f32 %v2712_v10, %v16110_v16  ;;  %v3434_v8 = vmul.f32 %v14326_v31, %v16243_v17  ;;  %vm16285_vm0 = vcmp.eq.f32.partialorder %v3442_v5, 8.507059e+37  ;;  %v16297_v16 = vld [vmem:[%s20855_s9] ss:$0 sm:$0xff] }
 0x2b5   : > { %v3445_v49 = vor.u32 1.1754944e-38, %v3444_v28  ;;  %v2128_v0 = vmul.f32 %v16179_v55, %v2090_v11  ;;  %v3426_v30 = vsel %vm3425_vm15, %v14320_v42, %v3422_v21  ;;  %v2718_v53 = vadd.f32 %v14322_v23, %v2717_v29  ;;  %v16304_v11 = vld [vmem:[%s20852_s6] ss:$0 sm:$0xff] }
 0x2b6   : > { %14329 = vrcp.f32 %v16275_v27  ;;  %vm3453_vm1 = vweird.f32 %v16246_v47  ;;  %v3141_v7 = vmul.f32 %v16297_v16, %v16158_v40  ;;  %v2837_v42 = vmul.f32 %v16304_v11, %v2801_v56 }
 0x2b7   : > { %v3431_v5 = vsel %vm16251_vm6, %v3430_v41, %v3426_v30  ;;  %v3435_v28 = vsub.f32 1.0, %v3434_v8  ;;  %vm3439_vm4 = vweird.f32 %v14326_v31  ;;  %v2722_v9 = vsel %vm2721_vm2, %v14322_v23, %v2718_v53 }
 0x2b8   : > { %v3814_v13 = vmul.f32 %v3431_v5, %v16113_v52  ;;  %v3449_v40 = vmul.f32 %v16278_v63, %v16246_v47  ;;  %vm16315_vm5 = vcmp.eq.f32.partialorder %v3457_v2, 8.507059e+37  ;;  %v3460_v10 = vor.u32 1.1754944e-38, %v3459_v12  ;;  %v16326_v52 = vld [vmem:[%s20853_s7] ss:$0 sm:$0xff]  ;;  %vm3440_vm8 = vmor %vm3438_vm14, %vm3439_vm4 }
 0x2b9   : > { %v2727_v54 = vsel %vm16262_vm10, %v2726_v1, %v2722_v9  ;;  %v3436_v41 = vmul.f32 %v14326_v31, %v3435_v28  ;;  %v2738_v22 = vand.u32 2147483647, %v16275_v27  ;;  %v2740_v21 = vand.u32 2147483648, %v16275_v27 }
 0x2ba   : > { %v2873_v23 = vadd.f32 %v16326_v52, %v2837_v42  ;;  %v3852_v2 = vsel %vm3840_vm3, %v3814_v13, 0.0  ;;  %v2802_v29 = vmul.f32 %v2727_v54, %v16150_v34  ;;  %v3450_v12 = vsub.f32 1.0, %v3449_v40  ;;  %v2091_v42 = vpop.f32.mrf.mxu2  ;;  %v3071_v13 = vpop.f32.mrf.mxu0 }
 0x2bb   : > { %v3853_v15 = vadd.f32 %v3852_v2, %v16239_v4  ;;  %v3437_v1 = vadd.f32 %v14326_v31, %v3436_v41  ;;  %vm2734_vm6 = vweird.f32 %v16275_v27  ;;  %vm3454_vm7 = vweird.f32 %v16278_v63  ;;  %v16345_v4 = vld [vmem:[%s20856_s10] ss:$0 sm:$0xff]  ;;  %v2002_v54 = vpop.f32.mrf.mxu3 }
 0x2bc   : > { %v16335_v56 = vadd.f32 %v16203_v46, %v2128_v0  ;;  %v14330_v8 = vpop.eup %14329  ;;  %v2838_v30 = vmul.f32 %v16304_v11, %v2802_v29  ;;  %v3451_v34 = vmul.f32 %v16278_v63, %v3450_v12  ;;  %v16348_v53 = vadd.f32 %v16345_v4, %v3141_v7  ;;  %vm3455_vm11 = vmor %vm3453_vm1, %vm3454_vm7 }
 0x2bd   : > { %v2871_v0 = vadd.f32 %v16326_v52, %v16186_v59  ;;  %v3441_v5 = vsel %vm3440_vm8, %v14326_v31, %v3437_v1  ;;  %v2730_v28 = vmul.f32 %v14330_v8, %v16275_v27  ;;  %vm2735_vm10 = vweird.f32 %v14330_v8 }
 0x2be   : > { %v11861_v17 = vmul.f32 -1.442695, %v16335_v56  ;;  %v3446_v9 = vsel %vm16285_vm0, %v3445_v49, %v3441_v5  ;;  %v3452_v40 = vadd.f32 %v16278_v63, %v3451_v34  ;;  %v11904_v7 = vmul.f32 -1.442695, %v16348_v53  ;;  %vm2736_vm13 = vmor %vm2734_vm6, %vm2735_vm10 }
 0x2bf   : > { %v2903_v41 = vmax.f32 %v2871_v0, 0.0  ;;  %v3815_v2 = vmul.f32 %v3446_v9, %v16165_v37  ;;  %v2731_v59 = vsub.f32 1.0, %v2730_v28  ;;  %v2092_v31 = vadd.f32 %v2091_v42, %v2002_v54 }
 0x2c0   : > { %14331 = vpow2.f32 %v11861_v17  ;;  %v3456_v29 = vsel %vm3455_vm11, %v16278_v63, %v3452_v40  ;;  %v3142_v24 = vmul.f32 %v16297_v16, %v16208_v3  ;;  %v2872_v49 = vadd.f32 %v16326_v52, %v16259_v25 }
 0x2c1   : > { %14333 = vpow2.f32 %v11904_v7  ;;  %11888 = vmatmul.msk.f32.gmra.mxu0 %vm2918_vm9, %v2903_v41  ;;  %v3854_v37 = vsel %vm3840_vm3, %v3815_v2, 0.0  ;;  %v2732_v12 = vmul.f32 %v14330_v8, %v2731_v59  ;;  %v3461_v47 = vsel %vm16315_vm5, %v3460_v10, %v3456_v29 }
 0x2c2   : > { %v2129_v1 = vmul.f32 %v16179_v55, %v2092_v31  ;;  %v3855_v34 = vadd.f32 %v3854_v37, %v3853_v15  ;;  %vm16373_vm12 = vcmp.eq.f32.partialorder %v2738_v22, 8.507059e+37  ;;  %v2741_v0 = vor.u32 1.1754944e-38, %v2740_v21 }
 0x2c3   : > { %v16378_v42 = vadd.f32 %v16345_v4, %v3142_v24  ;;  %v2733_v3 = vadd.f32 %v14330_v8, %v2732_v12  ;;  %v3143_v5 = vmul.f32 %v16297_v16, %v16248_v60  ;;  %v2905_v57 = vmax.f32 %v2873_v23, 0.0 }
 0x2c4   : > { %v16381_v25 = vadd.f32 %v16203_v46, %v2129_v1  ;;  %v3816_v55 = vmul.f32 %v3461_v47, %v16183_v33  ;;  %v2904_v22 = vmax.f32 %v2872_v49, 0.0  ;;  %v3144_v21 = vmul.f32 %v16297_v16, %v16290_v45 }
 0x2c5   : > { %v11905_v10 = vmul.f32 -1.442695, %v16378_v42  ;;  %v2737_v28 = vsel %vm2736_vm13, %v14330_v8, %v2733_v3  ;;  %v16394_v17 = vadd.f32 %v16345_v4, %v3143_v5  ;;  %11890 = vmatmul.msk.f32.vlgmr.msrb.gmra.mxu3 %vm2918_vm9, %v2905_v57  ;;  %v2874_v60 = vadd.f32 %v16326_v52, %v2838_v30  ;;  %v3074_v8 = vpop.f32.mrf.mxu0  ;;  %v3995_v30 = vld [vmem:[%s20859_s13] sm:$0xff] }
 0x2c6   : > { %v14332_v15 = vpop.eup %14331  ;;  %v11862_v46 = vmul.f32 -1.442695, %v16381_v25  ;;  %v2742_v33 = vsel %vm16373_vm12, %v2741_v0, %v2737_v28  ;;  %v16403_v45 = vadd.f32 %v16345_v4, %v3144_v21  ;;  %4016 = vmatpush.msra.mxu3 %v3995_v30  ;;  %v3145_v59 = vmul.f32 %v16297_v16, %v3071_v13 }
 0x2c7   : > { %v14334_v27 = vpop.eup %14333  ;;  %v16400_v23 = vadd.f32 1.0, %v14332_v15  ;;  %14335 = vpow2.f32 %v11905_v10  ;;  %v2803_v9 = vmul.f32 %v2742_v33, %v16206_v35  ;;  %v11906_v54 = vmul.f32 -1.442695, %v16394_v17 }
 0x2c8   : > { %v16406_v40 = vadd.f32 1.0, %v14334_v27  ;;  %14337 = vpow2.f32 %v11862_v46  ;;  %v3856_v35 = vsel %vm3840_vm3, %v3816_v55, 0.0  ;;  %v11907_v41 = vmul.f32 -1.442695, %v16403_v45 }
 0x2c9   : > { %14339 = vrcp.f32 %v16400_v23  ;;  %11889 = vmatmul.msk.f32.gmra.mxu0 %vm2918_vm9, %v2904_v22  ;;  %v2839_v7 = vmul.f32 %v16304_v11, %v2803_v9  ;;  %v2906_v2 = vmax.f32 %v2874_v60, 0.0  ;;  %v2753_v29 = vand.u32 2147483647, %v16400_v23 }
 0x2ca   : > { %14341 = vrcp.f32 %v16406_v40  ;;  %v2755_v24 = vand.u32 2147483648, %v16400_v23  ;;  %v3472_v49 = vand.u32 2147483647, %v16406_v40  ;;  %v3474_v12 = vand.u32 2147483648, %v16406_v40 }
 0x2cb   : > { %14343 = vpow2.f32 %v11906_v54  ;;  %v2875_v1 = vadd.f32 %v16326_v52, %v2839_v7  ;;  %v16427_v0 = vadd.f32 %v3856_v35, %v3855_v34  ;;  %v16432_v3 = vadd.f32 %v16345_v4, %v3145_v59 }
 0x2cc   : > { %14345 = vpow2.f32 %v11907_v41  ;;  %v3146_v5 = vmul.f32 %v16297_v16, %v3074_v8  ;;  %vm2749_vm14 = vweird.f32 %v16400_v23  ;;  %vm3468_vm15 = vweird.f32 %v16406_v40 }
 0x2cd   : > { %v14336_v31 = vpop.eup %14335  ;;  %11891 = vmatmul.msk.f32.gmra.mxu3 %vm2918_vm9, %v2906_v2  ;;  %vm16439_vm0 = vcmp.eq.f32.partialorder %v2753_v29, 8.507059e+37  ;;  %v2756_v22 = vor.u32 1.1754944e-38, %v2755_v24  ;;  %v3077_v15 = vpop.f32.mrf.mxu0  ;;  %vm16445_vm1 = vcmp.eq.f32.partialorder %v3472_v49, 8.507059e+37  ;;  %v3475_v60 = vor.u32 1.1754944e-38, %v3474_v12 }
 0x2ce   : > { %v14338_v37 = vpop.eup %14337  ;;  %v16423_v47 = vadd.f32 1.0, %v14336_v31  ;;  %v2907_v27 = vmax.f32 %v2875_v1, 0.0  ;;  %v11908_v9 = vmul.f32 -1.442695, %v16432_v3  ;;  %v16453_v54 = vadd.f32 %v16345_v4, %v3146_v5 }
 0x2cf   : > { %v14340_v63 = vpop.eup %14339  ;;  %v16429_v13 = vadd.f32 1.0, %v14338_v37  ;;  %v16457_v41 = vmul.f32 %v16297_v16, %v3077_v15 }
 0x2d0   : > { %v14342_v57 = vpop.eup %14341  ;;  %v2745_v55 = vmul.f32 %v14340_v63, %v16400_v23  ;;  %14347 = vrcp.f32 %v16423_v47  ;;  %vm2750_vm2 = vweird.f32 %v14340_v63  ;;  %vm3483_vm6 = vweird.f32 %v16423_v47 }
 0x2d1   : > { %v14344_v10 = vpop.eup %14343  ;;  %v3464_v21 = vmul.f32 %v14342_v57, %v16406_v40  ;;  %14349 = vrcp.f32 %v16429_v13  ;;  %v2768_v35 = vand.u32 2147483647, %v16429_v13  ;;  %vm3469_vm4 = vweird.f32 %v14342_v57  ;;  %vm2751_vm7 = vmor %vm2749_vm14, %vm2750_vm2 }
 0x2d2   : > { %v2746_v28 = vsub.f32 1.0, %v2745_v55  ;;  %v16449_v8 = vadd.f32 1.0, %v14344_v10  ;;  %v14346_v30 = vpop.eup %14345  ;;  %v2770_v59 = vand.u32 2147483648, %v16429_v13  ;;  %vm2764_vm5 = vweird.f32 %v16429_v13  ;;  %vm3470_vm8 = vmor %vm3468_vm15, %vm3469_vm4 }
 0x2d3   : > { %v3465_v33 = vsub.f32 1.0, %v3464_v21  ;;  %v16463_v24 = vadd.f32 1.0, %v14346_v30  ;;  %v3487_v1 = vand.u32 2147483647, %v16423_v47  ;;  %vm16474_vm10 = vcmp.eq.f32.partialorder %v2768_v35, 8.507059e+37 }
 0x2d4   : > { %v2747_v7 = vmul.f32 %v14340_v63, %v2746_v28  ;;  %14351 = vrcp.f32 %v16449_v8  ;;  %v3489_v23 = vand.u32 2147483648, %v16423_v47  ;;  %v2771_v28 = vor.u32 1.1754944e-38, %v2770_v59 }
 0x2d5   : > { %v3466_v2 = vmul.f32 %v14342_v57, %v3465_v33  ;;  %11892 = vmatmul.msk.f32.gmra.mxu3 %vm2918_vm9, %v2907_v27  ;;  %14353 = vpow2.f32 %v11908_v9  ;;  %vm16486_vm12 = vcmp.eq.f32.partialorder %v3487_v1, 8.507059e+37  ;;  %v3502_v59 = vand.u32 2147483647, %v16449_v8  ;;  %v16518_v35 = vpop.f32.mrf.mxu0 }
 0x2d6   : > { %v14348_v31 = vpop.eup %14347  ;;  %v2748_v29 = vadd.f32 %v14340_v63, %v2747_v7  ;;  %14355 = vrcp.f32 %v16463_v24  ;;  %v3490_v34 = vor.u32 1.1754944e-38, %v3489_v23 }
 0x2d7   : > { %v14350_v49 = vpop.eup %14349  ;;  %v3467_v37 = vadd.f32 %v14342_v57, %v3466_v2  ;;  %v3479_v12 = vmul.f32 %v14348_v31, %v16423_v47  ;;  %vm3484_vm11 = vweird.f32 %v14348_v31  ;;  %vm3503_vm2 = vcmp.eq.f32.partialorder %v3502_v59, 8.507059e+37 }
 0x2d8   : > { %v2752_v5 = vsel %vm2751_vm7, %v14340_v63, %v2748_v29  ;;  %v2760_v55 = vmul.f32 %v14350_v49, %v16429_v13  ;;  %vm2765_vm13 = vweird.f32 %v14350_v49  ;;  %vm3485_vm14 = vmor %vm3483_vm6, %vm3484_vm11  ;;  %vm3513_vm6 = vweird.f32 %v16463_v24 }
 0x2d9   : > { %v2757_v21 = vsel %vm16439_vm0, %v2756_v22, %v2752_v5  ;;  %v3471_v15 = vsel %vm3470_vm8, %v14342_v57, %v3467_v37  ;;  %v3480_v27 = vsub.f32 1.0, %v3479_v12  ;;  %vm2766_vm15 = vmor %vm2764_vm5, %vm2765_vm13  ;;  %v3504_v5 = vand.u32 2147483648, %v16449_v8 }
 0x2da   : > { %v2804_v63 = vmul.f32 %v2757_v21, %v16335_v56  ;;  %v3476_v40 = vsel %vm16445_vm1, %v3475_v60, %v3471_v15  ;;  %v2761_v33 = vsub.f32 1.0, %v2760_v55  ;;  %v14352_v9 = vpop.eup %14351  ;;  %v11909_v55 = vmul.f32 -1.442695, %v16453_v54 }
 0x2db   : > { %v3817_v30 = vmul.f32 %v3476_v40, %v16348_v53  ;;  %v3481_v7 = vmul.f32 %v14348_v31, %v3480_v27  ;;  %v3494_v56 = vmul.f32 %v14352_v9, %v16449_v8  ;;  %v14354_v22 = vpop.eup %14353  ;;  %vm3499_vm0 = vweird.f32 %v14352_v9 }
 0x2dc   : > { %v2762_v57 = vmul.f32 %v14350_v49, %v2761_v33  ;;  %v2840_v46 = vmul.f32 %v16304_v11, %v2804_v63  ;;  %v16497_v12 = vadd.f32 1.0, %v14354_v22  ;;  %v14356_v23 = vpop.eup %14355  ;;  %vm3498_vm1 = vweird.f32 %v16449_v8 }
 0x2dd   : > { %v3858_v60 = vsel %vm3840_vm3, %v3817_v30, 0.0  ;;  %v3482_v2 = vadd.f32 %v14348_v31, %v3481_v7  ;;  %v3495_v37 = vsub.f32 1.0, %v3494_v56  ;;  %vm3500_vm4 = vmor %vm3498_vm1, %vm3499_vm0  ;;  %v3517_v30 = vand.u32 2147483647, %v16463_v24 }
 0x2de   : > { %v3859_v53 = vadd.f32 %v3858_v60, %v16427_v0  ;;  %v2763_v29 = vadd.f32 %v14350_v49, %v2762_v57  ;;  %14357 = vrcp.f32 %v16497_v12  ;;  %v2876_v27 = vadd.f32 %v16326_v52, %v2840_v46 }
 0x2df   : > { %v3486_v1 = vsel %vm3485_vm14, %v14348_v31, %v3482_v2  ;;  %v3496_v15 = vmul.f32 %v14352_v9, %v3495_v37  ;;  %v3509_v31 = vmul.f32 %v14356_v23, %v16463_v24  ;;  %14359 = vpow2.f32 %v11909_v55 }
 0x2e0   : > { %v2767_v21 = vsel %vm2766_vm15, %v14350_v49, %v2763_v29  ;;  %v3491_v0 = vsel %vm16486_vm12, %v3490_v34, %v3486_v1  ;;  %v3505_v49 = vor.u32 1.1754944e-38, %v3504_v5  ;;  %v3519_v7 = vand.u32 2147483648, %v16463_v24 }
 0x2e1   : > { %v2772_v47 = vsel %vm16474_vm10, %v2771_v28, %v2767_v21  ;;  %v3818_v13 = vmul.f32 %v3491_v0, %v16378_v42  ;;  %v3497_v40 = vadd.f32 %v14352_v9, %v3496_v15  ;;  %v3510_v33 = vsub.f32 1.0, %v3509_v31  ;;  %v3083_v31 = vpop.f32.mrf.mxu0 }
 0x2e2   : > { %v2805_v63 = vmul.f32 %v2772_v47, %v16381_v25  ;;  %vm3514_vm5 = vweird.f32 %v14356_v23  ;;  %v2908_v8 = vmax.f32 %v2876_v27, 0.0  ;;  %v16524_v22 = vadd.f32 %v16345_v4, %v16457_v41  ;;  %v3991_v47 = vpop.f32.mrf.mxu1 }
 0x2e3   : > { %v3860_v42 = vsel %vm3840_vm3, %v3818_v13, 0.0  ;;  %v3501_v28 = vsel %vm3500_vm4, %v14352_v9, %v3497_v40  ;;  %v3511_v57 = vmul.f32 %v14356_v23, %v3510_v33  ;;  %vm3515_vm7 = vmor %vm3513_vm6, %vm3514_vm5  ;;  %vm3518_vm8 = vcmp.eq.f32.partialorder %v3517_v30, 8.507059e+37 }
 0x2e4   : > { %v2841_v10 = vmul.f32 %v16304_v11, %v2805_v63  ;;  %v3506_v25 = vsel %vm3503_vm2, %v3505_v49, %v3501_v28  ;;  %v14358_v34 = vpop.eup %14357  ;;  %v3861_v11 = vadd.f32 %v3860_v42, %v3859_v53  ;;  %11893 = vmatmul.msk.f32.gmra.mxu3 %vm2918_vm9, %v2908_v8  ;;  %v3520_v59 = vor.u32 1.1754944e-38, %v3519_v7 }
 0x2e5   : > { %v3819_v56 = vmul.f32 %v3506_v25, %v16394_v17  ;;  %v3512_v46 = vadd.f32 %v14356_v23, %v3511_v57  ;;  %v3524_v9 = vmul.f32 %v14358_v34, %v16497_v12  ;;  %v11910_v17 = vmul.f32 -1.442695, %v16524_v22  ;;  %v14360_v24 = vpop.eup %14359 }
 0x2e6   : > { %v2877_v60 = vadd.f32 %v16326_v52, %v2841_v10  ;;  %v3532_v53 = vand.u32 2147483647, %v16497_v12  ;;  %v3534_v5 = vand.u32 2147483648, %v16497_v12  ;;  %v3310_v55 = vadd.f32 1.0, %v14360_v24 }
 0x2e7   : > { %v3862_v2 = vsel %vm3840_vm3, %v3819_v56, 0.0  ;;  %v3516_v37 = vsel %vm3515_vm7, %v14356_v23, %v3512_v46  ;;  %v3525_v41 = vsub.f32 1.0, %v3524_v9  ;;  %14361 = vpow2.f32 %v11910_v17  ;;  %v3973_v23 = vld [vmem:[%s20858_s12] sm:$0x1] }
 0x2e8   : > { %v3863_v29 = vadd.f32 %v3862_v2, %v3861_v11  ;;  %v3521_v1 = vsel %vm3518_vm8, %v3520_v59, %v3516_v37  ;;  %vm3529_vm10 = vweird.f32 %v14358_v34  ;;  %v2909_v0 = vmax.f32 %v2877_v60, 0.0 }
 0x2e9   : > { %v3820_v52 = vmul.f32 %v3521_v1, %v16403_v45  ;;  %v3526_v21 = vmul.f32 %v14358_v34, %v3525_v41  ;;  %14363 = vrcp.f32 %v3310_v55  ;;  %vm3528_vm11 = vweird.f32 %v16497_v12  ;;  %v3086_v11 = vpop.f32.mrf.mxu0 }
 0x2ea   : > { %vm3530_vm12 = vmor %vm3528_vm11, %vm3529_vm10  ;;  %v3535_v13 = vor.u32 1.1754944e-38, %v3534_v5  ;;  %vm3533_vm13 = vcmp.eq.f32.partialorder %v3532_v53, 8.507059e+37  ;;  %v3992_v49 = vadd.f32 %v3991_v47, %v3973_v23  ;;  %vm3997_vm14 = vcmask 64512  }
 0x2eb   : > { %v3527_v15 = vadd.f32 %v14358_v34, %v3526_v21  ;;  %v3864_v27 = vsel %vm3840_vm3, %v3820_v52, 0.0  ;;  %v3549_v8 = vand.u32 2147483648, %v3310_v55  ;;  %v3547_v56 = vand.u32 2147483647, %v3310_v55 }
 0x2ec   : > { %11894 = vmatmul.msk.f32.gmra.mxu3 %vm2918_vm9, %v2909_v0  ;;  %v3865_v10 = vadd.f32 %v3864_v27, %v3863_v29  ;;  %v3994_v25 = vmax.f32 %v3992_v49, 0.0  ;;  %vm3543_vm9 = vweird.f32 %v3310_v55  ;;  %v3148_v27 = vmul.f32 %v16297_v16, %v16518_v35 }
 0x2ed   : > { %v3531_v63 = vsel %vm3530_vm12, %v14358_v34, %v3527_v15  ;;  %v14362_v45 = vpop.eup %14361  ;;  %vm3548_vm1 = vcmp.eq.f32.partialorder %v3547_v56, 8.507059e+37 }
 0x2ee   : > { %v3536_v40 = vsel %vm3533_vm13, %v3535_v13, %v3531_v63  ;;  %v3311_v12 = vadd.f32 1.0, %v14362_v45  ;;  %v3149_v63 = vmul.f32 %v16297_v16, %v3083_v31  ;;  %v16552_v45 = vadd.f32 %v16345_v4, %v3148_v27 }
 0x2ef   : > { %v3821_v33 = vmul.f32 %v3536_v40, %v16432_v3  ;;  %v14364_v30 = vpop.eup %14363  ;;  %v3550_v3 = vor.u32 1.1754944e-38, %v3549_v8 }
 0x2f0   : > { %v3539_v28 = vmul.f32 %v14364_v30, %v3310_v55  ;;  %14365 = vrcp.f32 %v3311_v12  ;;  %vm3544_vm15 = vweird.f32 %v14364_v30  ;;  %v3564_v24 = vand.u32 2147483648, %v3311_v12 }
 0x2f1   : > { %v3866_v42 = vsel %vm3840_vm3, %v3821_v33, 0.0  ;;  %vm3545_vm0 = vmor %vm3543_vm9, %vm3544_vm15  ;;  %v3562_v41 = vand.u32 2147483647, %v3311_v12  ;;  %vm3558_vm4 = vweird.f32 %v3311_v12  ;;  %v3089_v52 = vpop.f32.mrf.mxu0  ;;  %v16555_v40 = vadd.f32 %v16345_v4, %v3149_v63 }
 0x2f2   : > { %v3867_v7 = vadd.f32 %v3866_v42, %v3865_v10  ;;  %v3540_v57 = vsub.f32 1.0, %v3539_v28  ;;  %v3565_v1 = vor.u32 1.1754944e-38, %v3564_v24  ;;  %v11911_v49 = vmul.f32 -1.442695, %v16552_v45 }
 0x2f3   : > { %vm3563_vm6 = vcmp.eq.f32.partialorder %v3562_v41, 8.507059e+37  ;;  %v11912_v33 = vmul.f32 -1.442695, %v16555_v40 }
 0x2f4   : > { %v3541_v34 = vmul.f32 %v14364_v30, %v3540_v57  ;;  %11927 = vmatmul.msk.f32.vlgmr.msra.gmra.mxu3 %vm3997_vm14, %v3994_v25  ;;  %14367 = vpow2.f32 %v11911_v49 }
 0x2f5   : > { %14369 = vpow2.f32 %v11912_v33 }
 0x2f6   : > { %v14366_v46 = vpop.eup %14365  ;;  %v3542_v9 = vadd.f32 %v14364_v30, %v3541_v34 }
 0x2f7   : > { %v3554_v60 = vmul.f32 %v14366_v46, %v3311_v12  ;;  %vm3559_vm2 = vweird.f32 %v14366_v46 }
 0x2f8   : > { %v3546_v2 = vsel %vm3545_vm0, %v14364_v30, %v3542_v9  ;;  %vm3560_vm5 = vmor %vm3558_vm4, %vm3559_vm2 }
 0x2f9   : > { %v3551_v59 = vsel %vm3548_vm1, %v3550_v3, %v3546_v2  ;;  %v3555_v17 = vsub.f32 1.0, %v3554_v60 }
 0x2fa   : > { %v3822_v29 = vmul.f32 %v3551_v59, %v16453_v54  ;;  %v14368_v31 = vpop.eup %14367 }
 0x2fb   : > { %v3556_v37 = vmul.f32 %v14366_v46, %v3555_v17  ;;  %v3092_v54 = vpop.f32.mrf.mxu0  ;;  %v14370_v10 = vpop.eup %14369  ;;  %v16564_v28 = vadd.f32 1.0, %v14368_v31 }
 0x2fc   : > { %v3868_v5 = vsel %vm3840_vm3, %v3822_v29, 0.0  ;;  %v16567_v25 = vadd.f32 1.0, %v14370_v10  ;;  %v3152_v34 = vmul.f32 %v16297_v16, %v3092_v54 }
 0x2fd   : > { %v3557_v53 = vadd.f32 %v14366_v46, %v3556_v37  ;;  %v3869_v15 = vadd.f32 %v3868_v5, %v3867_v7  ;;  %v3151_v7 = vmul.f32 %v16297_v16, %v3089_v52  ;;  %v3577_v31 = vand.u32 2147483647, %v16564_v28 }
 0x2fe   : > { %v16580_v9 = vadd.f32 %v16345_v4, %v3152_v34  ;;  %v3579_v10 = vand.u32 2147483648, %v16564_v28  ;;  %vm3573_vm10 = vweird.f32 %v16564_v28  ;;  %vm3588_vm11 = vweird.f32 %v16567_v25 }
 0x2ff   : > { %v3561_v55 = vsel %vm3560_vm5, %v14366_v46, %v3557_v53  ;;  %v16571_v8 = vadd.f32 %v16345_v4, %v3151_v7  ;;  %vm16637_vm13 = vcmp.eq.f32.partialorder %v3577_v31, 8.507059e+37 }
 0x300   : > { %v3566_v21 = vsel %vm3563_vm6, %v3565_v1, %v3561_v55  ;;  %v11915_v29 = vmul.f32 -1.442695, %v16580_v9 }
 0x301   : > { %v3823_v0 = vmul.f32 %v3566_v21, %v16524_v22  ;;  %v3150_v22 = vmul.f32 %v16297_v16, %v3086_v11  ;;  %v11914_v46 = vmul.f32 -1.442695, %v16571_v8 }
 0x303   : > { %v3870_v23 = vsel %vm3840_vm3, %v3823_v0, 0.0  ;;  %v16561_v12 = vadd.f32 %v16345_v4, %v3150_v22 }
 0x304   : > { %v16546_v47 = vadd.f32 %v3870_v23, %v3869_v15 }
 0x305   : > { %v11913_v35 = vmul.f32 -1.442695, %v16561_v12 }
 0x307   : > { %v3095_v13 = vpop.f32.mrf.mxu0  ;;  %14371 = vpow2.f32 %v11913_v35 }
 0x308   : > { %14373 = vrcp.f32 %v16564_v28  ;;  %v3153_v11 = vmul.f32 %v16297_v16, %v3095_v13 }
 0x309   : > { %14375 = vrcp.f32 %v16567_v25 }
 0x30a   : > { %v16590_v24 = vadd.f32 %v16345_v4, %v3153_v11 }
 0x30c   : > { %v11916_v55 = vmul.f32 -1.442695, %v16590_v24 }
 0x30d   : > { %v14372_v57 = vpop.eup %14371 }
 0x30e   : > { %v16575_v56 = vadd.f32 1.0, %v14372_v57  ;;  %v16584_v2 = vpop.eup %14373 }
 0x30f   : > { %v16587_v17 = vpop.eup %14375  ;;  %v3569_v37 = vmul.f32 %v16584_v2, %v16564_v28  ;;  %vm3574_vm7 = vweird.f32 %v16584_v2 }
 0x310   : > { %14377 = vrcp.f32 %v16575_v56  ;;  %v3584_v53 = vmul.f32 %v16587_v17, %v16567_v25  ;;  %vm3589_vm8 = vweird.f32 %v16587_v17  ;;  %vm16633_vm12 = vmor %vm3573_vm10, %vm3574_vm7  ;;  %vm3603_vm0 = vweird.f32 %v16575_v56 }
 0x311   : > { %14379 = vpow2.f32 %v11914_v46  ;;  %v3570_v52 = vsub.f32 1.0, %v3569_v37  ;;  %vm16649_vm14 = vmor %vm3588_vm11, %vm3589_vm8 }
 0x312   : > { %14381 = vpow2.f32 %v11915_v29  ;;  %v3585_v15 = vsub.f32 1.0, %v3584_v53  ;;  %v3594_v29 = vand.u32 2147483648, %v16567_v25 }
 0x313   : > { %14383 = vpow2.f32 %v11916_v55  ;;  %v3571_v63 = vmul.f32 %v16584_v2, %v3570_v52  ;;  %v3580_v52 = vor.u32 1.1754944e-38, %v3579_v10 }
 0x314   : > { %v3098_v30 = vpop.f32.mrf.mxu0  ;;  %v3586_v33 = vmul.f32 %v16587_v17, %v3585_v15 }
 0x315   : > { %v3154_v60 = vmul.f32 %v16297_v16, %v3098_v30  ;;  %v3572_v7 = vadd.f32 %v16584_v2, %v3571_v63  ;;  %v3595_v63 = vor.u32 1.1754944e-38, %v3594_v29 }
 0x316   : > { %v16603_v5 = vpop.eup %14377  ;;  %v3587_v34 = vadd.f32 %v16587_v17, %v3586_v33 }
 0x317   : > { %v16596_v41 = vadd.f32 %v16345_v4, %v3154_v60  ;;  %v14380_v0 = vpop.eup %14379  ;;  %v3599_v23 = vmul.f32 %v16603_v5, %v16575_v56  ;;  %vm3604_vm15 = vweird.f32 %v16603_v5 }
 0x318   : > { %v16612_v22 = vadd.f32 1.0, %v14380_v0  ;;  %v14382_v49 = vpop.eup %14381  ;;  %v3576_v0 = vsel %vm16633_vm12, %v16584_v2, %v3572_v7  ;;  %vm3605_vm1 = vmor %vm3603_vm0, %vm3604_vm15 }
 0x319   : > { %v11917_v21 = vmul.f32 -1.442695, %v16596_v41  ;;  %v3600_v30 = vsub.f32 1.0, %v3599_v23  ;;  %v16623_v57 = vadd.f32 1.0, %v14382_v49  ;;  %v3609_v49 = vand.u32 2147483648, %v16575_v56 }
 0x31a   : > { %v3581_v31 = vsel %vm16637_vm13, %v3580_v52, %v3576_v0  ;;  %vm3618_vm4 = vweird.f32 %v16612_v22 }
 0x31b   : > { %14385 = vpow2.f32 %v11917_v21  ;;  %v3601_v11 = vmul.f32 %v16603_v5, %v3600_v30  ;;  %v3607_v30 = vand.u32 2147483647, %v16575_v56  ;;  %vm3633_vm7 = vweird.f32 %v16623_v57 }
 0x31d   : > { %vm3608_vm2 = vcmp.eq.f32.partialorder %v3607_v30, 8.507059e+37 }
 0x31e   : > { %v3101_v42 = vpop.f32.mrf.mxu0 }
 0x31f   : > { %v3155_v59 = vmul.f32 %v16297_v16, %v3101_v42  ;;  %v14384_v42 = vpop.eup %14383 }
 0x320   : > { %v16641_v21 = vadd.f32 1.0, %v14384_v42 }
 0x321   : > { %v16601_v1 = vadd.f32 %v16345_v4, %v3155_v59  ;;  %v14386_v60 = vpop.eup %14385  ;;  %v3592_v59 = vand.u32 2147483647, %v16567_v25 }
 0x322   : > { %v16660_v2 = vadd.f32 1.0, %v14386_v60  ;;  %v3824_v60 = vmul.f32 %v3581_v31, %v16552_v45  ;;  %vm3648_vm12 = vweird.f32 %v16641_v21 }
 0x323   : > { %v11918_v54 = vmul.f32 -1.442695, %v16601_v1  ;;  %vm3593_vm9 = vcmp.eq.f32.partialorder %v3592_v59, 8.507059e+37 }
 0x325   : > { %14387 = vpow2.f32 %v11918_v54  ;;  %v3591_v54 = vsel %vm16649_vm14, %v16587_v17, %v3587_v34 }
 0x326   : > { %14389 = vrcp.f32 %v16612_v22  ;;  %v3596_v10 = vsel %vm3593_vm9, %v3595_v63, %v3591_v54 }
 0x327   : > { %14391 = vrcp.f32 %v16623_v57 }
 0x32b   : > { %v14388_v37 = vpop.eup %14387 }
 0x32c   : > { %v16665_v33 = vadd.f32 1.0, %v14388_v37 }
 0x330   : > { %v3104_v3 = vpop.f32.mrf.mxu0 }
 0x331   : > { %v3156_v13 = vmul.f32 %v16297_v16, %v3104_v3 }
 0x333   : > { %v16616_v35 = vadd.f32 %v16345_v4, %v3156_v13  ;;  %v3602_v13 = vadd.f32 %v16603_v5, %v3601_v11 }
 0x335   : > { %v11919_v46 = vmul.f32 -1.442695, %v16616_v35  ;;  %v3606_v7 = vsel %vm3605_vm1, %v16603_v5, %v3602_v13  ;;  %v3825_v5 = vmul.f32 %v3596_v10, %v16555_v40  ;;  %v3872_v40 = vsel %vm3840_vm3, %v3824_v60, 0.0 }
 0x336   : > { %vm3663_vm1 = vweird.f32 %v16660_v2 }
 0x337   : > { %14393 = vpow2.f32 %v11919_v46  ;;  %v3610_v46 = vor.u32 1.1754944e-38, %v3609_v49  ;;  %v3874_v49 = vsel %vm3840_vm3, %v3825_v5, 0.0 }
 0x338   : > { %14395 = vrcp.f32 %v16641_v21 }
 0x339   : > { %14397 = vrcp.f32 %v16660_v2  ;;  %v3611_v29 = vsel %vm3608_vm2, %v3610_v46, %v3606_v7  ;;  %v3873_v7 = vadd.f32 %v3872_v40, %v16546_v47  ;;  %v3624_v46 = vand.u32 2147483648, %v16612_v22 }
 0x33a   : > { %14399 = vrcp.f32 %v16665_v33  ;;  %v3826_v13 = vmul.f32 %v3611_v29, %v16561_v12 }
 0x33b   : > { %v16726_v60 = vadd.f32 %v3874_v49, %v3873_v7 }
 0x33c   : > { %v16729_v47 = vsel %vm3840_vm3, %v3826_v13, 0.0 }
 0x33e   : > { %v3107_v27 = vpop.f32.mrf.mxu0 }
 0x33f   : > { %v3157_v28 = vmul.f32 %v16297_v16, %v3107_v27  ;;  %v16662_v27 = vpop.eup %14389 }
 0x340   : > { %v3614_v56 = vmul.f32 %v16662_v27, %v16612_v22  ;;  %v16685_v11 = vpop.eup %14391  ;;  %vm3619_vm5 = vweird.f32 %v16662_v27 }
 0x341   : > { %v16671_v17 = vadd.f32 %v16345_v4, %v3157_v28  ;;  %v3629_v28 = vmul.f32 %v16685_v11, %v16623_v57  ;;  %vm16746_vm8 = vmor %vm3618_vm4, %vm3619_vm5  ;;  %vm3634_vm10 = vweird.f32 %v16685_v11  ;;  %vm3678_vm4 = vweird.f32 %v16665_v33 }
 0x342   : > { %v3615_v52 = vsub.f32 1.0, %v3614_v56  ;;  %vm16781_vm13 = vmor %vm3633_vm7, %vm3634_vm10 }
 0x343   : > { %v11920_v59 = vmul.f32 -1.442695, %v16671_v17  ;;  %v3630_v31 = vsub.f32 1.0, %v3629_v28 }
 0x344   : > { %v3616_v30 = vmul.f32 %v16662_v27, %v3615_v52 }
 0x345   : > { %14401 = vpow2.f32 %v11920_v59  ;;  %v3637_v59 = vand.u32 2147483647, %v16623_v57  ;;  %v3631_v52 = vmul.f32 %v16685_v11, %v3630_v31 }
 0x346   : > { %v3110_v3 = vpop.f32.mrf.mxu0 }
 0x347   : > { %v3158_v15 = vmul.f32 %v16297_v16, %v3110_v3  ;;  %v14394_v3 = vpop.eup %14393  ;;  %vm16764_vm11 = vcmp.eq.f32.partialorder %v3637_v59, 8.507059e+37 }
 0x348   : > { %v3113_v23 = vpop.f32.mrf.mxu3  ;;  %v16692_v55 = vpop.eup %14395  ;;  %v16700_v25 = vadd.f32 1.0, %v14394_v3 }
 0x349   : > { %v16678_v42 = vadd.f32 %v16345_v4, %v3158_v15  ;;  %v3159_v34 = vmul.f32 %v16297_v16, %v3113_v23  ;;  %v16702_v15 = vpop.eup %14397  ;;  %v3644_v63 = vmul.f32 %v16692_v55, %v16641_v21  ;;  %vm3649_vm14 = vweird.f32 %v16692_v55 }
 0x34a   : > { %v16708_v54 = vpop.eup %14399  ;;  %v3659_v56 = vmul.f32 %v16702_v15, %v16660_v2  ;;  %vm3664_vm15 = vweird.f32 %v16702_v15  ;;  %vm16799_vm9 = vmor %vm3648_vm12, %vm3649_vm14 }
 0x34b   : > { %v11921_v37 = vmul.f32 -1.442695, %v16678_v42  ;;  %v16697_v0 = vadd.f32 %v16345_v4, %v3159_v34  ;;  %v3622_v34 = vand.u32 2147483647, %v16612_v22  ;;  %v3674_v3 = vmul.f32 %v16708_v54, %v16665_v33  ;;  %vm16816_vm2 = vmor %vm3663_vm1, %vm3664_vm15 }
 0x34c   : > { %v3645_v5 = vsub.f32 1.0, %v3644_v63  ;;  %v3660_v40 = vsub.f32 1.0, %v3659_v56  ;;  %v3625_v63 = vor.u32 1.1754944e-38, %v3624_v46  ;;  %v3654_v22 = vand.u32 2147483648, %v16641_v21 }
 0x34d   : > { %14403 = vpow2.f32 %v11921_v37  ;;  %v11922_v10 = vmul.f32 -1.442695, %v16697_v0  ;;  %v14402_v37 = vpop.eup %14401  ;;  %vm16737_vm6 = vcmp.eq.f32.partialorder %v3622_v34, 8.507059e+37  ;;  %v3632_v34 = vadd.f32 %v16685_v11, %v3631_v52 }
 0x34e   : > { %14405 = vrcp.f32 %v16700_v25  ;;  %v3655_v49 = vor.u32 1.1754944e-38, %v3654_v22  ;;  %vm3679_vm0 = vweird.f32 %v16708_v54  ;;  %v3667_v22 = vand.u32 2147483647, %v16660_v2 }
 0x34f   : > { %14407 = vpow2.f32 %v11922_v10  ;;  %v16752_v10 = vadd.f32 1.0, %v14402_v37 }
 0x350   : > { %v3116_v53 = vpop.f32.mrf.mxu3  ;;  %vm3668_vm7 = vcmp.eq.f32.partialorder %v3667_v22, 8.507059e+37  ;;  %v3699_v22 = vand.u32 2147483648, %v16700_v25 }
 0x351   : > { %v3160_v45 = vmul.f32 %v16297_v16, %v3116_v53  ;;  %v3617_v53 = vadd.f32 %v16662_v27, %v3616_v30  ;;  %v3675_v30 = vsub.f32 1.0, %v3674_v3  ;;  %vm3708_vm14 = vweird.f32 %v16752_v10 }
 0x353   : > { %v16706_v23 = vadd.f32 %v16345_v4, %v3160_v45  ;;  %v14404_v28 = vpop.eup %14403  ;;  %v3639_v45 = vand.u32 2147483648, %v16623_v57 }
 0x354   : > { %v16742_v7 = vpop.eup %14405  ;;  %v16762_v46 = vadd.f32 1.0, %v14404_v28 }
 0x355   : > { %v11923_v12 = vmul.f32 -1.442695, %v16706_v23  ;;  %v14408_v37 = vpop.eup %14407  ;;  %v3689_v52 = vmul.f32 %v16742_v7, %v16700_v25  ;;  %vm3694_vm10 = vweird.f32 %v16742_v7 }
 0x357   : > { %14409 = vpow2.f32 %v11923_v12  ;;  %v3621_v12 = vsel %vm16746_vm8, %v16662_v27, %v3617_v53  ;;  %v3652_v27 = vand.u32 2147483647, %v16641_v21  ;;  %v3676_v53 = vmul.f32 %v16708_v54, %v3675_v30 }
 0x358   : > { %v3119_v29 = vpop.f32.mrf.mxu3  ;;  %v3626_v59 = vsel %vm16737_vm6, %v3625_v63, %v3621_v12  ;;  %14411 = vrcp.f32 %v16752_v10  ;;  %v3669_v63 = vand.u32 2147483648, %v16660_v2  ;;  %v16795_v30 = vadd.f32 1.0, %v14408_v37  ;;  %vm16829_vm6 = vmor %vm3678_vm4, %vm3679_vm0 }
 0x359   : > { %v3161_v13 = vmul.f32 %v16297_v16, %v3119_v29  ;;  %v3646_v16 = vmul.f32 %v16692_v55, %v3645_v5  ;;  %v3640_v5 = vor.u32 1.1754944e-38, %v3639_v45  ;;  %v3661_v29 = vmul.f32 %v16702_v15, %v3660_v40 }
 0x35a   : > { %14413 = vrcp.f32 %v16762_v46  ;;  %v3684_v21 = vand.u32 2147483648, %v16665_v33  ;;  %vm3653_vm5 = vcmp.eq.f32.partialorder %v3652_v27, 8.507059e+37 }
 0x35b   : > { %v16755_v56 = vadd.f32 %v16345_v4, %v3161_v13  ;;  %v3647_v40 = vadd.f32 %v16692_v55, %v3646_v16  ;;  %v3636_v13 = vsel %vm16781_vm13, %v16685_v11, %v3632_v34  ;;  %v3662_v57 = vadd.f32 %v16702_v15, %v3661_v29 }
 0x35c   : > { %v3677_v11 = vadd.f32 %v16708_v54, %v3676_v53  ;;  %v3690_v16 = vsub.f32 1.0, %v3689_v52  ;;  %v3827_v29 = vmul.f32 %v3626_v59, %v16571_v8  ;;  %v3682_v53 = vand.u32 2147483647, %v16665_v33 }
 0x35d   : > { %v11924_v4 = vmul.f32 -1.442695, %v16755_v56  ;;  %v14410_v28 = vpop.eup %14409  ;;  %v3651_v34 = vsel %vm16799_vm9, %v16692_v55, %v3647_v40  ;;  %v3666_v2 = vsel %vm16816_vm2, %v16702_v15, %v3662_v57  ;;  %v3670_v52 = vor.u32 1.1754944e-38, %v3669_v63 }
 0x35e   : > { %v16805_v12 = vadd.f32 1.0, %v14410_v28  ;;  %v16822_v55 = vpop.eup %14411  ;;  %v3681_v33 = vsel %vm16829_vm6, %v16708_v54, %v3677_v11  ;;  %v3691_v27 = vmul.f32 %v16742_v7, %v3690_v16  ;;  %v3877_v28 = vadd.f32 %v16729_v47, %v16726_v60  ;;  %v14607_v60 = vld [vmem:[%s20855_s9] ss:$0 sm:$0xff] }
 0x35f   : > { %14415 = vpow2.f32 %v11924_v4  ;;  %v3641_v4 = vsel %vm16764_vm11, %v3640_v5, %v3636_v13  ;;  %v3656_v5 = vsel %vm3653_vm5, %v3655_v49, %v3651_v34  ;;  %v3685_v45 = vor.u32 1.1754944e-38, %v3684_v21  ;;  %v14608_v21 = vld [vmem:[%s20856_s10] ss:$0 sm:$0xff] }
 0x360   : > { %14417 = vrcp.f32 %v16795_v30  ;;  %v16834_v3 = vpop.eup %14413  ;;  %v3828_v59 = vmul.f32 %v3641_v4, %v16580_v9  ;;  %v3878_v40 = vsel %vm3840_vm3, %v3827_v29, 0.0  ;;  %v3671_v13 = vsel %vm3668_vm7, %v3670_v52, %v3666_v2 }
 0x361   : > { %14419 = vrcp.f32 %v16805_v12  ;;  %vm3683_vm8 = vcmp.eq.f32.partialorder %v3682_v53, 8.507059e+37  ;;  %v3829_v54 = vmul.f32 %v3656_v5, %v16590_v24  ;;  %v3704_v31 = vmul.f32 %v16822_v55, %v16752_v10 }
 0x362   : > { %v3686_v57 = vsel %vm3683_vm8, %v3685_v45, %v3681_v33  ;;  %v3692_v47 = vadd.f32 %v16742_v7, %v3691_v27  ;;  %v3719_v11 = vmul.f32 %v16834_v3, %v16762_v46  ;;  %v3880_v24 = vsel %vm3840_vm3, %v3828_v59, 0.0 }
 0x363   : > { %v3830_v34 = vmul.f32 %v3671_v13, %v16596_v41  ;;  %v3879_v37 = vadd.f32 %v3878_v40, %v3877_v28  ;;  %vm3693_vm11 = vweird.f32 %v16700_v25  ;;  %v3697_v53 = vand.u32 2147483647, %v16700_v25 }
 0x364   : > { %v3882_v2 = vsel %vm3840_vm3, %v3829_v54, 0.0  ;;  %v3831_v52 = vmul.f32 %v3686_v57, %v16601_v1  ;;  %vm16876_vm12 = vmor %vm3693_vm11, %vm3694_vm10  ;;  %v3705_v8 = vsub.f32 1.0, %v3704_v31  ;;  %v3700_v28 = vor.u32 1.1754944e-38, %v3699_v22 }
 0x365   : > { %v14416_v15 = vpop.eup %14415  ;;  %v3881_v33 = vadd.f32 %v3880_v24, %v3879_v37  ;;  %v3696_v27 = vsel %vm16876_vm12, %v16742_v7, %v3692_v47  ;;  %v3884_v1 = vsel %vm3840_vm3, %v3830_v34, 0.0  ;;  %vm3698_vm13 = vcmp.eq.f32.partialorder %v3697_v53, 8.507059e+37 }
 0x366   : > { %v16845_v49 = vadd.f32 1.0, %v14416_v15  ;;  %v16858_v16 = vpop.eup %14417  ;;  %v3720_v15 = vsub.f32 1.0, %v3719_v11  ;;  %v3712_v13 = vand.u32 2147483647, %v16752_v10  ;;  %v3886_v7 = vsel %vm3840_vm3, %v3831_v52, 0.0 }
 0x367   : > { %v3122_v63 = vpop.f32.mrf.mxu3  ;;  %v16868_v4 = vpop.eup %14419  ;;  %v3734_v25 = vmul.f32 %v16858_v16, %v16795_v30  ;;  %v3883_v40 = vadd.f32 %v3882_v2, %v3881_v33  ;;  %v3701_v54 = vsel %vm3698_vm13, %v3700_v28, %v3696_v27  ;;  %v3706_v57 = vmul.f32 %v16822_v55, %v3705_v8  ;;  %v3996_v27 = vld [vmem:[%s20860_s14] sm:$0x1] }
 0x368   : > { %v3162_v9 = vmul.f32 %v14607_v60, %v3122_v63  ;;  %14421 = vrcp.f32 %v16845_v49  ;;  %v3749_v59 = vmul.f32 %v16868_v4, %v16805_v12  ;;  %v3721_v47 = vmul.f32 %v16834_v3, %v3720_v15 }
 0x369   : > { %v3735_v11 = vsub.f32 1.0, %v3734_v25  ;;  %v3714_v24 = vand.u32 2147483648, %v16752_v10  ;;  %v3832_v2 = vmul.f32 %v3701_v54, %v16616_v35  ;;  %vm16904_vm15 = vcmp.eq.f32.partialorder %v3712_v13, 8.507059e+37 }
 0x36a   : > { %v16866_v29 = vadd.f32 %v14608_v21, %v3162_v9  ;;  %v3885_v9 = vadd.f32 %v3884_v1, %v3883_v40  ;;  %v3750_v34 = vsub.f32 1.0, %v3749_v59  ;;  %v3707_v41 = vadd.f32 %v16822_v55, %v3706_v57 }
 0x36b   : > { %vm3709_vm9 = vweird.f32 %v16822_v55  ;;  %v3727_v8 = vand.u32 2147483647, %v16762_v46  ;;  %vm3724_vm0 = vweird.f32 %v16834_v3  ;;  %v3736_v35 = vmul.f32 %v16858_v16, %v3735_v11 }
 0x36c   : > { %v11925_v5 = vmul.f32 -1.442695, %v16866_v29  ;;  %v16900_v53 = vadd.f32 %v3886_v7, %v3885_v9  ;;  %v3715_v15 = vor.u32 1.1754944e-38, %v3714_v24  ;;  %v3751_v25 = vmul.f32 %v16868_v4, %v3750_v34  ;;  %vm16923_vm1 = vmor %vm3708_vm14, %vm3709_vm9 }
 0x36d   : > { %vm3723_vm2 = vweird.f32 %v16762_v46  ;;  %v3729_v59 = vand.u32 2147483648, %v16762_v46  ;;  %v3742_v40 = vand.u32 2147483647, %v16795_v30  ;;  %vm16938_vm5 = vcmp.eq.f32.partialorder %v3727_v8, 8.507059e+37 }
 0x36e   : > { %14423 = vpow2.f32 %v11925_v5  ;;  %v16889_v45 = vpop.eup %14421  ;;  %v3722_v5 = vadd.f32 %v16834_v3, %v3721_v47  ;;  %vm16934_vm4 = vmor %vm3723_vm2, %vm3724_vm0  ;;  %v3744_v54 = vand.u32 2147483648, %v16795_v30  ;;  %v3711_v57 = vsel %vm16923_vm1, %v16822_v55, %v3707_v41 }
 0x36f   : > { %v3125_v63 = vpop.f32.mrf.mxu3  ;;  %v3764_v22 = vmul.f32 %v16889_v45, %v16845_v49  ;;  %v3737_v9 = vadd.f32 %v16858_v16, %v3736_v35  ;;  %vm3739_vm6 = vweird.f32 %v16858_v16  ;;  %v3752_v47 = vadd.f32 %v16868_v4, %v3751_v25 }
 0x370   : > { %v3163_v31 = vmul.f32 %v14607_v60, %v3125_v63  ;;  %v3888_v63 = vsel %vm3840_vm3, %v3832_v2, 0.0  ;;  %vm3754_vm7 = vweird.f32 %v16868_v4  ;;  %v3730_v34 = vor.u32 1.1754944e-38, %v3729_v59 }
 0x371   : > { %v3765_v1 = vsub.f32 1.0, %v3764_v22  ;;  %vm3738_vm8 = vweird.f32 %v16795_v30  ;;  %vm16955_vm10 = vcmp.eq.f32.partialorder %v3742_v40, 8.507059e+37  ;;  %v3716_v2 = vsel %vm16904_vm15, %v3715_v15, %v3711_v57 }
 0x372   : > { %v16898_v37 = vadd.f32 %v14608_v21, %v3163_v31  ;;  %v3726_v31 = vsel %vm16934_vm4, %v16834_v3, %v3722_v5  ;;  %v3759_v3 = vand.u32 2147483648, %v16805_v12  ;;  %vm16962_vm11 = vmor %vm3738_vm8, %vm3739_vm6  ;;  %vm3753_vm12 = vweird.f32 %v16805_v12 }
 0x373   : > { %v3766_v11 = vmul.f32 %v16889_v45, %v3765_v1  ;;  %v3757_v41 = vand.u32 2147483647, %v16805_v12  ;;  %v3731_v8 = vsel %vm16938_vm5, %v3730_v34, %v3726_v31  ;;  %v3745_v5 = vor.u32 1.1754944e-38, %v3744_v54  ;;  %vm16975_vm13 = vmor %vm3753_vm12, %vm3754_vm7 }
 0x374   : > { %v14424_v52 = vpop.eup %14423  ;;  %v11926_v21 = vmul.f32 -1.442695, %v16898_v37  ;;  %v3756_v12 = vsel %vm16975_vm13, %v16868_v4, %v3752_v47  ;;  %vm3769_vm14 = vweird.f32 %v16889_v45  ;;  %v3760_v25 = vor.u32 1.1754944e-38, %v3759_v3 }
 0x375   : > { %v16915_v33 = vadd.f32 1.0, %v14424_v52  ;;  %v3774_v1 = vand.u32 2147483648, %v16845_v49  ;;  %vm3758_vm15 = vcmp.eq.f32.partialorder %v3757_v41, 8.507059e+37  ;;  %vm3768_vm9 = vweird.f32 %v16845_v49 }
 0x376   : > { %14425 = vpow2.f32 %v11926_v21  ;;  %v3741_v21 = vsel %vm16962_vm11, %v16858_v16, %v3737_v9  ;;  %v3833_v16 = vmul.f32 %v3716_v2, %v16671_v17  ;;  %v3772_v28 = vand.u32 2147483647, %v16845_v49  ;;  %vm16995_vm0 = vmor %vm3768_vm9, %vm3769_vm14 }
 0x377   : > { %14427 = vrcp.f32 %v16915_v33  ;;  %v4018_v13 = vpop.f32.mrf.mxu3  ;;  %v3834_v4 = vmul.f32 %v3731_v8, %v16678_v42  ;;  %v3746_v40 = vsel %vm16955_vm10, %v3745_v5, %v3741_v21  ;;  %v3789_v17 = vand.u32 2147483648, %v16915_v33 }
 0x378   : > { %v4019_v46 = vadd.f32 %v4018_v13, %v3996_v27  ;;  %v3767_v27 = vadd.f32 %v16889_v45, %v3766_v11  ;;  %v3761_v13 = vsel %vm3758_vm15, %v3760_v25, %v3756_v12  ;;  %v3787_v49 = vand.u32 2147483647, %v16915_v33 }
 0x379   : > { %v3889_v42 = vadd.f32 %v3888_v63, %v16900_v53  ;;  %v3890_v57 = vsel %vm3840_vm3, %v3833_v16, 0.0  ;;  %v3775_v31 = vor.u32 1.1754944e-38, %v3774_v1  ;;  %v3835_v47 = vmul.f32 %v3746_v40, %v16697_v0 }
 0x37a   : > { %v11928_v24 = vmul.f32 -1.442695, %v4019_v46  ;;  %v3771_v54 = vsel %vm16995_vm0, %v16889_v45, %v3767_v27  ;;  %vm3773_vm2 = vcmp.eq.f32.partialorder %v3772_v28, 8.507059e+37  ;;  %vm3783_vm4 = vweird.f32 %v16915_v33 }
 0x37b   : > { %v3836_v34 = vmul.f32 %v3761_v13, %v16706_v23  ;;  %v3776_v45 = vsel %vm3773_vm2, %v3775_v31, %v3771_v54  ;;  %v3790_v55 = vor.u32 1.1754944e-38, %v3789_v17  ;;  %v3892_v3 = vsel %vm3840_vm3, %v3834_v4, 0.0 }
 0x37c   : > { %v14426_v22 = vpop.eup %14425  ;;  %14429 = vpow2.f32 %v11928_v24  ;;  %vm3788_vm6 = vcmp.eq.f32.partialorder %v3787_v49, 8.507059e+37  ;;  %v3894_v0 = vsel %vm3840_vm3, %v3835_v47, 0.0  ;;  %v3837_v52 = vmul.f32 %v3776_v45, %v16755_v56 }
 0x37d   : > { %v14428_v30 = vpop.eup %14427  ;;  %v16979_v35 = vadd.f32 1.0, %v14426_v22  ;;  %v3891_v22 = vadd.f32 %v3890_v57, %v3889_v42  ;;  %v3896_v23 = vsel %vm3840_vm3, %v3836_v34, 0.0  ;;  %vm763_vm9 = vcmask 355328  }
 0x37e   : > { %v3779_v15 = vmul.f32 %v14428_v30, %v16915_v33  ;;  %vm3784_vm1 = vweird.f32 %v14428_v30  ;;  %v3898_v27 = vsel %vm3840_vm3, %v3837_v52, 0.0  ;;  %v21088_v52 = vld [vmem:[#allocation13_spill] sm:$0xff]  ;;  %vm4325_vm2 = vcmask 1044484  }
 0x37f   : > { %14431 = vrcp.f32 %v16979_v35  ;;  %vm3785_vm5 = vmor %vm3783_vm4, %vm3784_vm1  ;;  %v3893_v41 = vadd.f32 %v3892_v3, %v3891_v22  ;;  %v3804_v8 = vand.u32 2147483648, %v16979_v35  ;;  %vm3798_vm8 = vweird.f32 %v16979_v35 }
 0x380   : > { %v3780_v59 = vsub.f32 1.0, %v3779_v15  ;;  %vm4278_vm1 = vcmask 154712   ;;  %vm4327_vm4 = vcmask 1045509  }
 0x381   : > { %v3895_v12 = vadd.f32 %v3894_v0, %v3893_v41  ;;  %v3805_v25 = vor.u32 1.1754944e-38, %v3804_v8  ;;  %v21089_v41 = vld [vmem:[#allocation8_spill] sm:$0xff]  ;;  %v21090_v8 = vld [vmem:[#allocation10_spill] sm:$0xff] }
 0x382   : > { %v14430_v10 = vpop.eup %14429  ;;  %v3781_v46 = vmul.f32 %v14428_v30, %v3780_v59 }
 0x383   : > { %v4024_v9 = vadd.f32 1.0, %v14430_v10  ;;  %v3897_v16 = vadd.f32 %v3896_v23, %v3895_v12 }
 0x384   : > { %v3782_v11 = vadd.f32 %v14428_v30, %v3781_v46 }
 0x385   : > { %v14432_v24 = vpop.eup %14431  ;;  %14433 = vrcp.f32 %v4024_v9  ;;  %v3899_v59 = vadd.f32 %v3898_v27, %v3897_v16  ;;  %v4036_v40 = vand.u32 2147483648, %v4024_v9  ;;  %v4034_v17 = vand.u32 2147483647, %v4024_v9  ;;  %v21094_v27 = vld [vmem:[#allocation15_spill] sm:$0xff] }
 0x386   : > { %v3786_v53 = vsel %vm3785_vm5, %v14428_v30, %v3782_v11  ;;  %v3794_v63 = vmul.f32 %v14432_v24, %v16979_v35  ;;  %vm3799_vm7 = vweird.f32 %v14432_v24  ;;  %v3802_v30 = vand.u32 2147483647, %v16979_v35 }
 0x387   : > { %v3791_v2 = vsel %vm3788_vm6, %v3790_v55, %v3786_v53  ;;  %vm3800_vm10 = vmor %vm3798_vm8, %vm3799_vm7  ;;  %vm4030_vm13 = vweird.f32 %v4024_v9  ;;  %v4037_v49 = vor.u32 1.1754944e-38, %v4036_v40  ;;  %vm4035_vm15 = vcmp.eq.f32.partialorder %v4034_v17, 8.507059e+37  ;;  %v21100_v40 = vld [vmem:[#allocation19_spill] sm:$0xff] }
 0x388   : > { %v3795_v33 = vsub.f32 1.0, %v3794_v63  ;;  %v3838_v21 = vmul.f32 %v3791_v2, %v16866_v29  ;;  %vm3803_vm11 = vcmp.eq.f32.partialorder %v3802_v30, 8.507059e+37  ;;  %vm4329_vm5 = vcmask 1046534  }
 0x389   : > { %vm4331_vm6 = vcmask 1047559   ;;  %vm4351_vm7 = vcmask 150553   ;;  %vm4352_vm8 = vsmask.f32 7942 }
 0x38a   : > { %v3796_v5 = vmul.f32 %v14432_v24, %v3795_v33  ;;  %v3900_v1 = vsel %vm3840_vm3, %v3838_v21, 0.0 }
 0x38b   : > { %v14434_v60 = vpop.eup %14433  ;;  %v3901_v10 = vadd.f32 %v3900_v1, %v3899_v59 }
 0x38c   : > { %v3797_v15 = vadd.f32 %v14432_v24, %v3796_v5  ;;  %v4026_v56 = vmul.f32 %v14434_v60, %v4024_v9  ;;  %vm4031_vm12 = vweird.f32 %v14434_v60  ;;  %v21091_v5 = vld [vmem:[#allocation14_spill] sm:$0xff] }
 0x38d   : > { %vm4032_vm14 = vmor %vm4030_vm13, %vm4031_vm12  ;;  %vm766_vm12 = vcmask 354304   ;;  %vm4335_vm13 = vcmask 1042434  }
 0x38e   : > { %v3801_v28 = vsel %vm3800_vm10, %v14432_v24, %v3797_v15  ;;  %v4027_v29 = vsub.f32 1.0, %v4026_v56  ;;  %v21095_v56 = vld [vmem:[#allocation18_spill] sm:$0xff]  ;;  %vm4353_vm10 = vmand %vm4351_vm7, %vm4352_vm8  ;;  %vm4357_vm7 = vcmask 150552  }
 0x38f   : > { %v3806_v4 = vsel %vm3803_vm11, %v3805_v25, %v3801_v28  ;;  %v21097_v25 = vld [vmem:[#allocation17_spill] sm:$0xff]  ;;  %v14658_v28 = vmov 128.0   ;;  %vm4333_vm11 = vcmask 1041409  }
 0x390   : > { %v3839_v13 = vmul.f32 %v3806_v4, %v16898_v37  ;;  %v4028_v7 = vmul.f32 %v14434_v60, %v4027_v29  ;;  %14435 = vrcp.f32 %v14658_v28  ;;  %v21098_v29 = vld [vmem:[#allocation20_spill] sm:$0xff] }
 0x392   : > { %v3902_v35 = vsel %vm3840_vm3, %v3839_v13, 0.0  ;;  %v4029_v54 = vadd.f32 %v14434_v60, %v4028_v7  ;;  %vm3910_vm3 = vcmask 8192  }
 0x393   : > { %v3903_v46 = vadd.f32 %v3902_v35, %v3901_v10 }
 0x394   : > { %v4033_v42 = vsel %vm4032_vm14, %v14434_v60, %v4029_v54  ;;  %v21092_v60 = vld [vmem:[#allocation16_spill] sm:$0xff]  ;;  %vm4359_vm14 = vcmask 148504  }
 0x395   : > { %v3904_v57 = vrot.slane %v3903_v46, 4  ;;  %v4038_v31 = vsel %vm4035_vm15, %v4037_v49, %v4033_v42  ;;  %vm4360_vm15 = vsmask.f32 1280 }
 0x396   : > { %v17022_v47 = vperm.slane %v4038_v31, 0  ;;  %v14436_v4 = vpop.eup %14435 }
 0x397   : > { %v3905_v11 = vadd.f32 %v3904_v57, %v3903_v46  ;;  %v4138_v7 = vmul.f32 128.0, %v14436_v4  ;;  %v14659_v57 = vmov 0   ;;  %vm4142_vm0 = vweird.f32 %v14436_v4 }
 0x398   : > { %v17026_v37 = vmul.f32 %v17022_v47, %v14927_v26  ;;  %v17030_v24 = vmul.f32 %v17022_v47, %v14913_v6  ;;  %v17034_v9 = vmul.f32 %v17022_v47, %v14899_v50  ;;  %v17045_v26 = vmul.f32 %v17022_v47, %v14937_v36  ;;  %764 = vst.msk [vmem:[#allocation3] sm:$0xf] %vm763_vm9, %v14659_v57 }
 0x399   : > { %v3906_v34 = vrot.slane %v3905_v11, 2  ;;  %v17049_v50 = vmul.f32 %v17022_v47, %v14917_v14  ;;  %v17053_v3 = vmul.f32 %v17022_v47, %v14903_v58  ;;  %v17060_v53 = vmul.f32 %v17022_v47, %v15307_v44  ;;  %721 = vst [vmem:[#allocation2] sm:$0xf] %v14659_v57 }
 0x39a   : > { %4081 = vadd.xlane.f32.xlu2 %v17026_v37  ;;  %4077 = vadd.xlane.f32.xlu1 %v17030_v24  ;;  %v17064_v36 = vmul.f32 %v17022_v47, %v14965_v62  ;;  %v17068_v14 = vmul.f32 %v17022_v47, %v14955_v51  ;;  %v17075_v58 = vmul.f32 %v17022_v47, %v15341_v38  ;;  %v4139_v54 = vsub.f32 1.0, %v4138_v7 }
 0x39b   : > { %v3907_v45 = vadd.f32 %v3906_v34, %v3905_v11  ;;  %4073 = vadd.xlane.f32.xlu0 %v17034_v9  ;;  %21078 = vst [vmem:[#allocation21_spill] sm:$0xff] %v17060_v53  ;;  %v17079_v44 = vmul.f32 %v17022_v47, %v15331_v61  ;;  %v17083_v62 = vmul.f32 %v17022_v47, %v15319_v32 }
 0x39c   : > { %21079 = vst [vmem:[#allocation22_spill] sm:$0xff] %v17075_v58  ;;  %v17090_v51 = vmul.f32 %v17022_v47, %v15352_v48  ;;  %v17094_v38 = vmul.f32 %v17022_v47, %v14990_v19  ;;  %v17098_v61 = vmul.f32 %v17022_v47, %v15085_v20  ;;  %v17105_v32 = vmul.f32 %v17022_v47, %v15006_v39  ;;  %v21084_v20 = vld [vmem:[#allocation12_spill] sm:$0xff]  ;;  %v21085_v39 = vld [vmem:[#allocation7_spill] sm:$0xff] }
 0x39d   : > { %v3908_v55 = vrot.slane %v3907_v45, 1  ;;  %21080 = vst [vmem:[#allocation23_spill] sm:$0xff] %v17079_v44  ;;  %v17109_v48 = vmul.f32 %v17022_v47, %v15110_v43  ;;  %v17113_v19 = vmul.f32 %v17022_v47, %v15369_v18  ;;  %v17120_v63 = vmul.f32 %v17022_v47, %v21084_v20  ;;  %v21086_v43 = vld [vmem:[#allocation11_spill] sm:$0xff]  ;;  %v21087_v18 = vld [vmem:[#allocation9_spill] sm:$0xff] }
 0x39e   : > { %21081 = vst [vmem:[#allocation24_spill] sm:$0xff] %v17083_v62  ;;  %v17124_v22 = vmul.f32 %v17022_v47, %v21085_v39  ;;  %v17128_v2 = vmul.f32 %v17022_v47, %v21086_v43  ;;  %v17135_v0 = vmul.f32 %v17022_v47, %v21087_v18  ;;  %v17139_v33 = vmul.f32 %v17022_v47, %v21088_v52 }
 0x39f   : > { %v3909_v6 = vadd.f32 %v3908_v55, %v3907_v45  ;;  %21082 = vst [vmem:[#allocation25_spill] sm:$0xff] %v17090_v51  ;;  %v17143_v23 = vmul.f32 %v17022_v47, %v21089_v41  ;;  %v17150_v21 = vmul.f32 %v17022_v47, %v21090_v8  ;;  %v17154_v30 = vmul.f32 %v17022_v47, %v21091_v5 }
 0x3a0   : > { %21083 = vst [vmem:[#allocation26_spill] sm:$0xff] %v17113_v19  ;;  %v17164_v12 = vmul.f32 %v17022_v47, %v21092_v60  ;;  %v17168_v15 = vmul.f32 %v17022_v47, %v21094_v27  ;;  %v17175_v16 = vmul.f32 %v17022_v47, %v21095_v56  ;;  %v17179_v1 = vmul.f32 %v17022_v47, %v21097_v25 }
 0x3a1   : > { %3911 = vst.msk [vmem:[%s719_s22] sm:$0x1] %vm3910_vm3, %v3909_v6  ;;  %v17192_v59 = vmul.f32 %v17022_v47, %v21098_v29  ;;  %v17196_v13 = vmul.f32 %v17022_v47, %v21100_v40  ;;  %v4140_v46 = vmul.f32 %v14436_v4, %v4139_v54  ;;  %v20885_v39 = vlaneseq  ;;  %vm4361_vm3 = vmand %vm4359_vm14, %vm4360_vm15 }
 0x3a2   : > { %4083 = vadd.xlane.f32.xlu2 %v17045_v26  ;;  %4079 = vadd.xlane.f32.xlu1 %v17049_v50  ;;  %21093 = vst [vmem:[#allocation12_spill] sm:$0xff] %v17164_v12  ;;  %vm4602_vm14 = vcmask 328904  }
 0x3a3   : > { %4075 = vadd.xlane.f32.xlu0 %v17053_v3  ;;  %21096 = vst [vmem:[#allocation7_spill] sm:$0xff] %v17175_v16  ;;  %v4141_v47 = vadd.f32 %v14436_v4, %v4140_v46  ;;  %v17236_v27 = vand.u32 127, %v20885_v39 }
 0x3a4   : > { %21099 = vst [vmem:[#allocation11_spill] sm:$0xff] %v17192_v59 }
 0x3a5   : > { %722 = vst [vmem:[#allocation2 + $0x4] sm:$0xf] %v14659_v57  ;;  %v17215_v11 = vsel %vm4142_vm0, %v14436_v4, %v4141_v47  ;;  %v17243_v4 = vadd.s32 4294967285, %v17236_v27  ;;  %vm4337_vm0 = vcmask 1043459  }
 0x3a6   : > { %723 = vst [vmem:[#allocation2 + $0x8] sm:$0xf] %v14659_v57 }
 0x3a7   : > { %724 = vst [vmem:[#allocation2 + $0xc] sm:$0xf] %v14659_v57 }
 0x3a8   : > { %725 = vst [vmem:[#allocation2 + $0x10] sm:$0xf] %v14659_v57 }
 0x3a9   : > { %726 = vst [vmem:[#allocation2 + $0x14] sm:$0xf] %v14659_v57 }
 0x3aa   : > { %4125 = vadd.xlane.f32.xlu2 %v17060_v53  ;;  %4087 = vadd.xlane.f32.xlu1 %v17064_v36  ;;  %727 = vst [vmem:[#allocation2 + $0x18] sm:$0xf] %v14659_v57 }
 0x3ab   : > { %4085 = vadd.xlane.f32.xlu0 %v17068_v14  ;;  %728 = vst [vmem:[#allocation2 + $0x1c] sm:$0xf] %v14659_v57 }
 0x3ac   : > { %729 = vst [vmem:[#allocation2 + $0x20] sm:$0xf] %v14659_v57 }
 0x3ad   : > { %730 = vst [vmem:[#allocation2 + $0x24] sm:$0xf] %v14659_v57 }
 0x3ae   : > { %731 = vst [vmem:[#allocation2 + $0x28] sm:$0xf] %v14659_v57 }
 0x3af   : > { %732 = vst [vmem:[#allocation2 + $0x2c] sm:$0xf] %v14659_v57 }
 0x3b0   : > { %733 = vst [vmem:[#allocation2 + $0x30] sm:$0xf] %v14659_v57 }
 0x3b1   : > { %734 = vst [vmem:[#allocation2 + $0x34] sm:$0xf] %v14659_v57 }
 0x3b2   : > { %4131 = vadd.xlane.f32.xlu2 %v17075_v58  ;;  %4129 = vadd.xlane.f32.xlu1 %v17079_v44  ;;  %735 = vst [vmem:[#allocation2 + $0x38] sm:$0xf] %v14659_v57 }
 0x3b3   : > { %4127 = vadd.xlane.f32.xlu0 %v17083_v62  ;;  %736 = vst [vmem:[#allocation2 + $0x3c] sm:$0xf] %v14659_v57 }
 0x3b4   : > { %737 = vst [vmem:[#allocation2 + $0x40] sm:$0xf] %v14659_v57 }
 0x3b5   : > { %738 = vst [vmem:[#allocation2 + $0x44] sm:$0xf] %v14659_v57 }
 0x3b6   : > { %739 = vst [vmem:[#allocation2 + $0x48] sm:$0xf] %v14659_v57 }
 0x3b7   : > { %740 = vst [vmem:[#allocation2 + $0x4c] sm:$0xf] %v14659_v57 }
 0x3b8   : > { %741 = vst [vmem:[#allocation2 + $0x50] sm:$0xf] %v14659_v57 }
 0x3b9   : > { %742 = vst [vmem:[#allocation2 + $0x54] sm:$0xf] %v14659_v57 }
 0x3ba   : > { %4133 = vadd.xlane.f32.xlu2 %v17090_v51  ;;  %4091 = vadd.xlane.f32.xlu1 %v17094_v38  ;;  %743 = vst [vmem:[#allocation2 + $0x58] sm:$0xf] %v14659_v57 }
 0x3bb   : > { %4089 = vadd.xlane.f32.xlu0 %v17098_v61  ;;  %744 = vst [vmem:[#allocation2 + $0x5c] sm:$0xf] %v14659_v57 }
 0x3bc   : > { %745 = vst [vmem:[#allocation2 + $0x60] sm:$0xf] %v14659_v57 }
 0x3bd   : > { %746 = vst [vmem:[#allocation2 + $0x64] sm:$0xf] %v14659_v57 }
 0x3be   : > { %747 = vst [vmem:[#allocation2 + $0x68] sm:$0xf] %v14659_v57 }
 0x3bf   : > { %748 = vst [vmem:[#allocation2 + $0x6c] sm:$0xf] %v14659_v57 }
 0x3c0   : > { %749 = vst [vmem:[#allocation2 + $0x70] sm:$0xf] %v14659_v57 }
 0x3c1   : > { %750 = vst [vmem:[#allocation2 + $0x74] sm:$0xf] %v14659_v57 }
 0x3c2   : > { %4095 = vadd.xlane.f32.xlu2 %v17105_v32  ;;  %4093 = vadd.xlane.f32.xlu1 %v17109_v48  ;;  %751 = vst [vmem:[#allocation2 + $0x78] sm:$0xf] %v14659_v57 }
 0x3c3   : > { %4135 = vadd.xlane.f32.xlu0 %v17113_v19  ;;  %752 = vst [vmem:[#allocation2 + $0x7c] sm:$0xf] %v14659_v57 }
 0x3c4   : > { %753 = vst [vmem:[#allocation2 + $0x80] sm:$0xf] %v14659_v57 }
 0x3c5   : > { %754 = vst [vmem:[#allocation2 + $0x84] sm:$0xf] %v14659_v57 }
 0x3c6   : > { %755 = vst [vmem:[#allocation2 + $0x88] sm:$0xf] %v14659_v57 }
 0x3c7   : > { %756 = vst [vmem:[#allocation2 + $0x8c] sm:$0xf] %v14659_v57 }
 0x3c8   : > { %757 = vst [vmem:[#allocation2 + $0x90] sm:$0xf] %v14659_v57 }
 0x3c9   : > { %758 = vst [vmem:[#allocation2 + $0x94] sm:$0xf] %v14659_v57 }
 0x3ca   : > { %4101 = vadd.xlane.f32.xlu2 %v17120_v63  ;;  %4099 = vadd.xlane.f32.xlu1 %v17124_v22  ;;  %759 = vst [vmem:[#allocation2 + $0x98] sm:$0xf] %v14659_v57 }
 0x3cb   : > { %4097 = vadd.xlane.f32.xlu0 %v17128_v2  ;;  %760 = vst [vmem:[#allocation2 + $0x9c] sm:$0xf] %v14659_v57 }
 0x3cc   : > { %761 = vst [vmem:[#allocation2 + $0xa0] sm:$0xf] %v14659_v57 }
 0x3cd   : > { %765 = vst.msk [vmem:[#allocation3 + $0x4] sm:$0xf] %vm763_vm9, %v14659_v57  ;;  %vm4529_vm9 = vcmask 335112  }
 0x3ce   : > { %767 = vst.msk [vmem:[#allocation3 + $0x8] sm:$0x7] %vm766_vm12, %v14659_v57 }
 0x3d2   : > { %4107 = vadd.xlane.f32.xlu2 %v17135_v0  ;;  %4105 = vadd.xlane.f32.xlu1 %v17139_v33 }
 0x3d3   : > { %4103 = vadd.xlane.f32.xlu0 %v17143_v23 }
 0x3da   : > { %4385 = vmax.xlane.f32.xlu2 %v17109_v48  ;;  %4111 = vadd.xlane.f32.xlu1 %v17150_v21 }
 0x3db   : > { %4109 = vadd.xlane.f32.xlu0 %v17154_v30 }
 0x3e2   : > { %4391 = vmax.xlane.f32.xlu2 %v17124_v22  ;;  %4389 = vmax.xlane.f32.xlu1 %v17128_v2 }
 0x3e3   : > { %4387 = vmax.xlane.f32.xlu0 %v17105_v32 }
 0x3ea   : > { %4393 = vmax.xlane.f32.xlu2 %v17120_v63  ;;  %4115 = vadd.xlane.f32.xlu1 %v17164_v12 }
 0x3eb   : > { %4113 = vadd.xlane.f32.xlu0 %v17168_v15 }
 0x3f2   : > { %4119 = vadd.xlane.f32.xlu2 %v17175_v16  ;;  %4117 = vadd.xlane.f32.xlu1 %v17179_v1 }
 0x3f3   : > { %4395 = vmax.xlane.f32.xlu0 %v17143_v23 }
 0x3fa   : > { %4369 = vmax.xlane.f32.xlu2 %v17030_v24  ;;  %4367 = vmax.xlane.f32.xlu1 %v17053_v3 }
 0x3fb   : > { %4365 = vmax.xlane.f32.xlu0 %v17034_v9 }
 0x402   : > { %4399 = vmax.xlane.f32.xlu2 %v17135_v0  ;;  %4397 = vmax.xlane.f32.xlu1 %v17139_v33 }
 0x403   : > { %4371 = vmax.xlane.f32.xlu0 %v17049_v50 }
 0x40a   : > { %4373 = vmax.xlane.f32.xlu2 %v17026_v37  ;;  %4123 = vadd.xlane.f32.xlu1 %v17192_v59 }
 0x40b   : > { %4121 = vadd.xlane.f32.xlu0 %v17196_v13 }
 0x40d   : > { %v4082_v17 = vpop.xlane.xlu2 %4081  ;;  %v4078_v10 = vpop.xlane.xlu1 %4077 }
 0x40e   : > { %v4074_v35 = vpop.xlane.xlu0 %4073  ;;  %v4146_v43 = vmul.f32 %v17215_v11, %v4078_v10  ;;  %v4148_v52 = vmul.f32 %v17215_v11, %v4082_v17 }
 0x40f   : > { %v4144_v18 = vmul.f32 %v17215_v11, %v4074_v35 }
 0x410   : > { %v4178_v56 = vpack.c.bf16 %v4146_v43, %v4146_v43  ;;  %v4180_v29 = vpack.c.bf16 %v4148_v52, %v4148_v52 }
 0x411   : > { %v4176_v28 = vpack.c.bf16 %v4144_v18, %v4144_v18 }
 0x412   : > { %4403 = vmax.xlane.f32.xlu2 %v17150_v21  ;;  %4401 = vmax.xlane.f32.xlu1 %v17154_v30 }
 0x413   : > { %4375 = vmax.xlane.f32.xlu0 %v17045_v26  ;;  %v4240_v47 = vunpack.c.l.b16 %v4176_v28 }
 0x415   : > { %v4084_v49 = vpop.xlane.xlu2 %4083  ;;  %v4080_v42 = vpop.xlane.xlu1 %4079 }
 0x416   : > { %v4076_v31 = vpop.xlane.xlu0 %4075  ;;  %v4147_v34 = vmul.f32 %v17215_v11, %v4080_v42  ;;  %v4149_v41 = vmul.f32 %v17215_v11, %v4084_v49  ;;  %v17248_v49 = vadd.s32 4294967293, %v17236_v27  ;;  %v4242_v42 = vunpack.c.l.b16 %v4178_v56 }
 0x417   : > { %v4145_v6 = vmul.f32 %v17215_v11, %v4076_v31 }
 0x418   : > { %v4179_v8 = vpack.c.bf16 %v4147_v34, %v4147_v34  ;;  %v4181_v40 = vpack.c.bf16 %v4149_v41, %v4149_v41  ;;  %v4244_v34 = vunpack.c.l.b16 %v4180_v29  ;;  %v4280_v18 = vperm.slane %v4242_v42, %v17248_v49 }
 0x419   : > { %v4177_v5 = vpack.c.bf16 %v4145_v6, %v4145_v6  ;;  %v4275_v41 = vperm.slane %v4240_v47, %v17248_v49 }
 0x41a   : > { %4405 = vmax.xlane.f32.xlu2 %v17168_v15  ;;  %4379 = vmax.xlane.f32.xlu1 %v17064_v36  ;;  %v4243_v7 = vunpack.c.l.b16 %v4179_v8  ;;  %v4283_v8 = vperm.slane %v4244_v34, %v17248_v49 }
 0x41b   : > { %4377 = vmax.xlane.f32.xlu0 %v17068_v14  ;;  %v4241_v35 = vunpack.c.l.b16 %v4177_v5 }
 0x41c   : > { %v4281_v6 = vperm.slane %v4243_v7, %v17243_v4 }
 0x41d   : > { %v17219_v45 = vpop.xlane.xlu2 %4125  ;;  %v4088_v55 = vpop.xlane.xlu1 %4087 }
 0x41e   : > { %v4086_v20 = vpop.xlane.xlu0 %4085  ;;  %v4151_v60 = vmul.f32 %v17215_v11, %v4088_v55  ;;  %v4245_v55 = vunpack.c.l.b16 %v4181_v40 }
 0x41f   : > { %v4150_v25 = vmul.f32 %v17215_v11, %v4086_v20  ;;  %v4277_v20 = vperm.slane %v4241_v35, %v17243_v4 }
 0x420   : > { %v4183_v54 = vpack.c.bf16 %v4151_v60, %v4151_v60  ;;  %v4284_v5 = vperm.slane %v4245_v55, %v17243_v4  ;;  %v4282_v60 = vsel %vm4278_vm1, %v4281_v6, %v4280_v18  ;;  %v4170_v6 = vmul.f32 %v17215_v11, %v17219_v45 }
 0x421   : > { %v4182_v31 = vpack.c.bf16 %v4150_v25, %v4150_v25  ;;  %v4279_v28 = vsel %vm4278_vm1, %v4277_v20, %v4275_v41 }
 0x422   : > { %4419 = vmax.xlane.f32.xlu2 %v17083_v62  ;;  %4417 = vmax.xlane.f32.xlu1 %v17060_v53  ;;  %v4247_v43 = vunpack.c.l.b16 %v4183_v54  ;;  %v4326_v55 = vsel %vm4325_vm2, %v4282_v60, %v4279_v28 }
 0x423   : > { %4407 = vmax.xlane.f32.xlu0 %v17164_v12  ;;  %v4246_v52 = vunpack.c.l.b16 %v4182_v31 }
 0x424   : > { %v4287_v29 = vperm.slane %v4247_v43, %v17243_v4 }
 0x425   : > { %v4132_v17 = vpop.xlane.xlu2 %4131  ;;  %v4130_v10 = vpop.xlane.xlu1 %4129  ;;  %v4286_v54 = vperm.slane %v4246_v52, %v17248_v49 }
 0x426   : > { %v4128_v46 = vpop.xlane.xlu0 %4127  ;;  %v4173_v40 = vmul.f32 %v17215_v11, %v4132_v17  ;;  %v4172_v42 = vmul.f32 %v17215_v11, %v4130_v10  ;;  %v4285_v17 = vsel %vm4278_vm1, %v4284_v5, %v4283_v8  ;;  %v4202_v5 = vpack.c.bf16 %v4170_v6, %v4170_v6 }
 0x427   : > { %v4171_v31 = vmul.f32 %v17215_v11, %v4128_v46  ;;  %v4288_v18 = vsel %vm4278_vm1, %v4287_v29, %v4286_v54  ;;  %v4328_v60 = vsel %vm4327_vm4, %v4285_v17, %v4326_v55 }
 0x428   : > { %v4205_v10 = vpack.c.bf16 %v4173_v40, %v4173_v40  ;;  %v4204_v52 = vpack.c.bf16 %v4172_v42, %v4172_v42  ;;  %v4330_v29 = vsel %vm4329_vm5, %v4288_v18, %v4328_v60  ;;  %v4266_v55 = vunpack.c.l.b16 %v4202_v5 }
 0x429   : > { %v4203_v41 = vpack.c.bf16 %v4171_v31, %v4171_v31 }
 0x42a   : > { %4381 = vmax.xlane.f32.xlu2 %v17098_v61  ;;  %4423 = vmax.xlane.f32.xlu1 %v17075_v58  ;;  %v4269_v40 = vunpack.c.l.b16 %v4205_v10  ;;  %v4268_v54 = vunpack.c.l.b16 %v4204_v52 }
 0x42b   : > { %4421 = vmax.xlane.f32.xlu0 %v17079_v44  ;;  %v4267_v42 = vunpack.c.l.b16 %v4203_v41 }
 0x42c   : > { %v4320_v10 = vperm.slane %v4269_v40, %v17243_v4 }
 0x42d   : > { %v4134_v56 = vpop.xlane.xlu2 %4133  ;;  %v4092_v25 = vpop.xlane.xlu1 %4091  ;;  %v4317_v18 = vperm.slane %v4267_v42, %v17243_v4 }
 0x42e   : > { %v4153_v7 = vmul.f32 %v17215_v11, %v4092_v25  ;;  %v4090_v35 = vpop.xlane.xlu0 %4089  ;;  %v4174_v46 = vmul.f32 %v17215_v11, %v4134_v56 }
 0x42f   : > { %v4152_v47 = vmul.f32 %v17215_v11, %v4090_v35 }
 0x430   : > { %v4185_v34 = vpack.c.bf16 %v4153_v7, %v4153_v7  ;;  %v4206_v7 = vpack.c.bf16 %v4174_v46, %v4174_v46 }
 0x431   : > { %v4184_v20 = vpack.c.bf16 %v4152_v47, %v4152_v47 }
 0x432   : > { %v4249_v43 = vunpack.c.l.b16 %v4185_v34  ;;  %4411 = vmax.xlane.f32.xlu2 %v17175_v16  ;;  %4409 = vmax.xlane.f32.xlu1 %v17179_v1  ;;  %v4354_v34 = vld [vmem:[#allocation3] sm:$0xe]  ;;  %v4270_v46 = vunpack.c.l.b16 %v4206_v7 }
 0x433   : > { %v4248_v8 = vunpack.c.l.b16 %v4184_v20  ;;  %4383 = vmax.xlane.f32.xlu0 %v17094_v38 }
 0x434   : > { %v4290_v45 = vperm.slane %v4249_v43, %v17243_v4  ;;  %v4319_v43 = vperm.slane %v4268_v54, %v17248_v49 }
 0x435   : > { %v4289_v56 = vperm.slane %v4248_v8, %v17248_v49  ;;  %v17295_v25 = vpop.xlane.xlu2 %4095  ;;  %v17297_v28 = vpop.xlane.xlu1 %4093  ;;  %v4316_v8 = vperm.slane %v4266_v55, %v17248_v49  ;;  %v4362_v55 = vld [vmem:[#allocation3 + $0x8] sm:$0x3] }
 0x436   : > { %v4136_v35 = vpop.xlane.xlu0 %4135  ;;  %v4321_v40 = vsel %vm4278_vm1, %v4320_v10, %v4319_v43 }
 0x437   : > { %v4291_v31 = vsel %vm4278_vm1, %v4290_v45, %v4289_v56  ;;  %v4175_v47 = vmul.f32 %v17215_v11, %v4136_v35  ;;  %v4322_v56 = vperm.slane %v4270_v46, %v17248_v49  ;;  %v4318_v7 = vsel %vm4278_vm1, %v4317_v18, %v4316_v8 }
 0x438   : > { %v4332_v17 = vsel %vm4331_vm6, %v4291_v31, %v4330_v29  ;;  %v4343_v54 = vsel %vm4333_vm11, %v4321_v40, %v4318_v7 }
 0x439   : > { %v4345_v6 = vpack.c.b16 %v4332_v17, %v4332_v17  ;;  %v4207_v20 = vpack.c.bf16 %v4175_v47, %v4175_v47 }
 0x43a   : > { %4413 = vmax.xlane.f32.xlu2 %v17196_v13  ;;  %4427 = vmax.xlane.f32.xlu1 %v17113_v19 }
 0x43b   : > { %v4355_v52 = vsel %vm4353_vm10, %v4345_v6, %v4354_v34  ;;  %v4271_v41 = vunpack.c.l.b16 %v4207_v20  ;;  %4425 = vmax.xlane.f32.xlu0 %v17090_v51  ;;  %vm4595_vm10 = vcmask 330953  }
 0x43c   : > { %4356 = vst [vmem:[#allocation3] sm:$0xe] %v4355_v52  ;;  %v17336_v52 = vadd.s32 4294967263, %v17236_v27  ;;  %vm17525_vm12 = vmand %vm4595_vm10, %vm4352_vm8 }
 0x43d   : > { %v4323_v45 = vperm.slane %v4271_v41, %v17243_v4  ;;  %v17320_v5 = vpop.xlane.xlu2 %4101  ;;  %v4100_v60 = vpop.xlane.xlu1 %4099 }
 0x43e   : > { %v4098_v29 = vpop.xlane.xlu0 %4097 }
 0x43f   : > { %v4324_v35 = vsel %vm4278_vm1, %v4323_v45, %v4322_v56  ;;  %v17339_v56 = vadd.s32 4294967271, %v17236_v27 }
 0x440   : > { %v4344_v42 = vsel %vm4335_vm13, %v4324_v35, %v4343_v54 }
 0x441   : > { %v4347_v34 = vpack.c.b16 %v4344_v42, %v4344_v42 }
 0x443   : > { %4415 = vmax.xlane.f32.xlu0 %v17192_v59  ;;  %v4363_v6 = vsel %vm4361_vm3, %v4347_v34, %v4362_v55  ;;  %vm4882_vm3 = vsmask.f32 5376 }
 0x444   : > { %4364 = vst [vmem:[#allocation3 + $0x8] sm:$0x3] %v4363_v6 }
 0x445   : > { %v4108_v31 = vpop.xlane.xlu2 %4107  ;;  %v4106_v47 = vpop.xlane.xlu1 %4105 }
 0x446   : > { %v4104_v17 = vpop.xlane.xlu0 %4103 }
 0x44d   : > { %v4386_v20 = vpop.xlane.xlu2 %4385  ;;  %v4112_v10 = vpop.xlane.xlu1 %4111 }
 0x44e   : > { %v4110_v46 = vpop.xlane.xlu0 %4109  ;;  %v4439_v43 = vpack.c.bf16 %v4386_v20, %v4386_v20 }
 0x450   : > { %v4503_v40 = vunpack.c.l.b16 %v4439_v43 }
 0x452   : > { %v4543_v6 = vperm.slane %v4503_v40, %v17339_v56 }
 0x455   : > { %v4392_v57 = vpop.xlane.xlu2 %4391  ;;  %v4390_v18 = vpop.xlane.xlu1 %4389 }
 0x456   : > { %v4442_v41 = vpack.c.bf16 %v4392_v57, %v4392_v57  ;;  %v4441_v8 = vpack.c.bf16 %v4390_v18, %v4390_v18  ;;  %v4388_v45 = vpop.xlane.xlu0 %4387 }
 0x457   : > { %v4440_v7 = vpack.c.bf16 %v4388_v45, %v4388_v45 }
 0x458   : > { %v4506_v35 = vunpack.c.l.b16 %v4442_v41  ;;  %v4505_v54 = vunpack.c.l.b16 %v4441_v8 }
 0x459   : > { %v4504_v42 = vunpack.c.l.b16 %v4440_v7 }
 0x45a   : > { %v4547_v34 = vperm.slane %v4506_v35, %v17336_v52  ;;  %v4546_v55 = vperm.slane %v4505_v54, %v17339_v56 }
 0x45b   : > { %v4544_v20 = vperm.slane %v4504_v42, %v17336_v52 }
 0x45c   : > { %v4548_v57 = vsel %vm4529_vm9, %v4547_v34, %v4546_v55  ;;  %v4157_v34 = vmul.f32 %v17215_v11, %v4100_v60  ;;  %v4156_v55 = vmul.f32 %v17215_v11, %v4098_v29  ;;  %v4154_v60 = vmul.f32 %v17215_v11, %v17297_v28 }
 0x45d   : > { %v4545_v18 = vsel %vm4529_vm9, %v4544_v20, %v4543_v6  ;;  %v4394_v27 = vpop.xlane.xlu2 %4393  ;;  %v4116_v39 = vpop.xlane.xlu1 %4115  ;;  %v4158_v29 = vmul.f32 %v17215_v11, %v17320_v5 }
 0x45e   : > { %v4580_v43 = vsel %vm4333_vm11, %v4548_v57, %v4545_v18  ;;  %v4114_v41 = vpop.xlane.xlu0 %4113  ;;  %v4443_v8 = vpack.c.bf16 %v4394_v27, %v4394_v27  ;;  %v4159_v18 = vmul.f32 %v17215_v11, %v4104_v17  ;;  %v4160_v17 = vmul.f32 %v17215_v11, %v4106_v47 }
 0x45f   : > { %v4186_v53 = vpack.c.bf16 %v4154_v60, %v4154_v60  ;;  %v4164_v28 = vmul.f32 %v17215_v11, %v4114_v41  ;;  %v4190_v51 = vpack.c.bf16 %v4158_v29, %v4158_v29 }
 0x460   : > { %v4507_v35 = vunpack.c.l.b16 %v4443_v8  ;;  %v4189_v8 = vpack.c.bf16 %v4157_v34, %v4157_v34  ;;  %v4192_v47 = vpack.c.bf16 %v4160_v17, %v4160_v17 }
 0x461   : > { %v4250_v41 = vunpack.c.l.b16 %v4186_v53  ;;  %v4196_v12 = vpack.c.bf16 %v4164_v28, %v4164_v28 }
 0x462   : > { %v4549_v40 = vperm.slane %v4507_v35, %v17339_v56  ;;  %v4188_v35 = vpack.c.bf16 %v4156_v55, %v4156_v55  ;;  %v4253_v55 = vunpack.c.l.b16 %v4189_v8  ;;  %v4256_v17 = vunpack.c.l.b16 %v4192_v47 }
 0x464   : > { %v4296_v8 = vperm.slane %v4253_v55, %v17243_v4 }
 0x465   : > { %v4120_v45 = vpop.xlane.xlu2 %4119  ;;  %v4118_v7 = vpop.xlane.xlu1 %4117 }
 0x466   : > { %v4396_v19 = vpop.xlane.xlu0 %4395  ;;  %v4167_v5 = vmul.f32 %v17215_v11, %v4120_v45  ;;  %v4166_v34 = vmul.f32 %v17215_v11, %v4118_v7  ;;  %v4254_v45 = vunpack.c.l.b16 %v4190_v51 }
 0x467   : > { %v4444_v44 = vpack.c.bf16 %v4396_v19, %v4396_v19  ;;  %v4155_v19 = vmul.f32 %v17215_v11, %v17295_v25  ;;  %v4165_v25 = vmul.f32 %v17215_v11, %v4116_v39 }
 0x468   : > { %v4199_v59 = vpack.c.bf16 %v4167_v5, %v4167_v5  ;;  %v4198_v7 = vpack.c.bf16 %v4166_v34, %v4166_v34  ;;  %v4298_v51 = vperm.slane %v4254_v45, %v17248_v49 }
 0x469   : > { %v4508_v54 = vunpack.c.l.b16 %v4444_v44  ;;  %v4197_v29 = vpack.c.bf16 %v4165_v25, %v4165_v25  ;;  %v4260_v25 = vunpack.c.l.b16 %v4196_v12 }
 0x46a   : > { %v4263_v28 = vunpack.c.l.b16 %v4199_v59  ;;  %v4262_v5 = vunpack.c.l.b16 %v4198_v7 }
 0x46b   : > { %v4550_v42 = vperm.slane %v4508_v54, %v17336_v52  ;;  %v4161_v54 = vmul.f32 %v17215_v11, %v4108_v31  ;;  %v4252_v31 = vunpack.c.l.b16 %v4188_v35  ;;  %v4261_v53 = vunpack.c.l.b16 %v4197_v29 }
 0x46c   : > { %v4307_v29 = vperm.slane %v4260_v25, %v17248_v49 }
 0x46d   : > { %v4551_v6 = vsel %vm4529_vm9, %v4550_v42, %v4549_v40  ;;  %v17353_v20 = vpop.xlane.xlu2 %4369  ;;  %v17355_v57 = vpop.xlane.xlu1 %4367  ;;  %v4191_v40 = vpack.c.bf16 %v4159_v18, %v4159_v18  ;;  %v4162_v42 = vmul.f32 %v17215_v11, %v4110_v46  ;;  %v4193_v16 = vpack.c.bf16 %v4161_v54, %v4161_v54 }
 0x46e   : > { %v17359_v27 = vsel %vm4335_vm13, %v4551_v6, %v4580_v43  ;;  %v17361_v44 = vpop.xlane.xlu0 %4365  ;;  %v4163_v43 = vmul.f32 %v17215_v11, %v4112_v10  ;;  %v4187_v6 = vpack.c.bf16 %v4155_v19, %v4155_v19  ;;  %v4295_v35 = vperm.slane %v4252_v31, %v17248_v49 }
 0x46f   : > { %v4255_v46 = vunpack.c.l.b16 %v4191_v40  ;;  %v4194_v60 = vpack.c.bf16 %v4162_v42, %v4162_v42  ;;  %v4257_v54 = vunpack.c.l.b16 %v4193_v16  ;;  %v4301_v16 = vperm.slane %v4256_v17, %v17248_v49 }
 0x470   : > { %v4195_v19 = vpack.c.bf16 %v4163_v43, %v4163_v43  ;;  %v4251_v39 = vunpack.c.l.b16 %v4187_v6  ;;  %v4292_v6 = vperm.slane %v4250_v41, %v17248_v49  ;;  %v4297_v34 = vsel %vm4278_vm1, %v4296_v8, %v4295_v35 }
 0x471   : > { %v4299_v58 = vperm.slane %v4255_v46, %v17243_v4  ;;  %v4258_v43 = vunpack.c.l.b16 %v4194_v60  ;;  %v4302_v55 = vperm.slane %v4257_v54, %v17243_v4  ;;  %v4308_v41 = vperm.slane %v4261_v53, %v17243_v4 }
 0x472   : > { %v4259_v40 = vunpack.c.l.b16 %v4195_v19  ;;  %v4293_v42 = vperm.slane %v4251_v39, %v17243_v4  ;;  %v4311_v8 = vperm.slane %v4263_v28, %v17243_v4 }
 0x473   : > { %v4300_v46 = vsel %vm4278_vm1, %v4299_v58, %v4298_v51  ;;  %v4304_v60 = vperm.slane %v4258_v43, %v17248_v49  ;;  %v4310_v58 = vperm.slane %v4262_v5, %v17248_v49  ;;  %v4303_v54 = vsel %vm4278_vm1, %v4302_v55, %v4301_v16 }
 0x474   : > { %v4305_v19 = vperm.slane %v4259_v40, %v17243_v4  ;;  %v4294_v59 = vsel %vm4278_vm1, %v4293_v42, %v4292_v6  ;;  %v4309_v6 = vsel %vm4278_vm1, %v4308_v41, %v4307_v29 }
 0x475   : > { %v17377_v18 = vpop.xlane.xlu2 %4399  ;;  %v17379_v10 = vpop.xlane.xlu1 %4397  ;;  %v4334_v7 = vsel %vm4333_vm11, %v4297_v34, %v4294_v59  ;;  %v4312_v25 = vsel %vm4278_vm1, %v4311_v8, %v4310_v58  ;;  %v4429_v8 = vpack.c.bf16 %v17361_v44, %v17361_v44 }
 0x476   : > { %v17381_v62 = vpop.xlane.xlu0 %4371  ;;  %v4336_v17 = vsel %vm4335_vm13, %v4300_v46, %v4334_v7  ;;  %v4306_v43 = vsel %vm4278_vm1, %v4305_v19, %v4304_v60  ;;  %v4430_v7 = vpack.c.bf16 %v17355_v57, %v17355_v57  ;;  %v4446_v57 = vpack.c.bf16 %v17377_v18, %v17377_v18 }
 0x477   : > { %v4432_v58 = vpack.c.bf16 %v17381_v62, %v17381_v62 }
 0x47d   : > { %v17392_v31 = vpop.xlane.xlu2 %4373  ;;  %v4124_v47 = vpop.xlane.xlu1 %4123 }
 0x47e   : > { %v4169_v12 = vmul.f32 %v17215_v11, %v4124_v47  ;;  %v4122_v39 = vpop.xlane.xlu0 %4121 }
 0x47f   : > { %v4168_v45 = vmul.f32 %v17215_v11, %v4122_v39  ;;  %v4338_v11 = vsel %vm4337_vm0, %v4303_v54, %v4336_v17 }
 0x480   : > { %v4201_v35 = vpack.c.bf16 %v4169_v12, %v4169_v12  ;;  %v4339_v28 = vsel %vm4325_vm2, %v4306_v43, %v4338_v11  ;;  %v4433_v43 = vpack.c.bf16 %v17392_v31, %v17392_v31  ;;  %v4496_v11 = vunpack.c.l.b16 %v4432_v58  ;;  %v11962_v31 = vld [vmem:[%s20861_s15 + $0x10] sm:$0xf] }
 0x481   : > { %v4200_v40 = vpack.c.bf16 %v4168_v45, %v4168_v45  ;;  %v4340_v16 = vsel %vm4327_vm4, %v4309_v6, %v4339_v28  ;;  %v4431_v45 = vpack.c.bf16 %v17353_v20, %v17353_v20  ;;  %v4493_v20 = vunpack.c.l.b16 %v4429_v8 }
 0x482   : > { %v4265_v42 = vunpack.c.l.b16 %v4201_v35  ;;  %v4341_v46 = vsel %vm4329_vm5, %v4312_v25, %v4340_v16  ;;  %v4497_v16 = vunpack.c.l.b16 %v4433_v43 }
 0x483   : > { %v4264_v53 = vunpack.c.l.b16 %v4200_v40  ;;  %v4495_v40 = vunpack.c.l.b16 %v4431_v45 }
 0x484   : > { %v4314_v51 = vperm.slane %v4265_v42, %v17243_v4 }
 0x485   : > { %v4313_v5 = vperm.slane %v4264_v53, %v17248_v49  ;;  %v17414_v34 = vpop.xlane.xlu2 %4403  ;;  %v17416_v55 = vpop.xlane.xlu1 %4401  ;;  %v4494_v53 = vunpack.c.l.b16 %v4430_v7  ;;  %v4531_v62 = vperm.slane %v4495_v40, %v17339_v56  ;;  %v4534_v40 = vperm.slane %v4497_v16, %v17339_v56 }
 0x486   : > { %v4376_v47 = vpop.xlane.xlu0 %4375 }
 0x487   : > { %v4315_v19 = vsel %vm4278_vm1, %v4314_v51, %v4313_v5  ;;  %v4434_v35 = vpack.c.bf16 %v4376_v47, %v4376_v47  ;;  %v4445_v5 = vpack.c.bf16 %v17379_v10, %v17379_v10  ;;  %v13669_v47 = vld [vmem:[%s20861_s15 + $0x10] sm:$0x30]  ;;  %vm20896_vm1 = vcmask 1045504   ;;  %v11949_v10 = vld [vmem:[%s20861_s15 + $0x28] sm:$0xf] }
 0x488   : > { %v4342_v60 = vsel %vm4331_vm6, %v4315_v19, %v4341_v46  ;;  %v4528_v18 = vperm.slane %v4494_v53, %v17336_v52  ;;  %v4526_v46 = vperm.slane %v4493_v20, %v17339_v56  ;;  %v4532_v19 = vperm.slane %v4496_v11, %v17336_v52 }
 0x489   : > { %v4346_v12 = vpack.c.b16 %v4342_v60, %v4342_v60  ;;  %v4498_v44 = vunpack.c.l.b16 %v4434_v35  ;;  %v11963_v60 = vor.u32 %v13669_v47, %v11962_v31 }
 0x48a   : > { %v4530_v11 = vsel %vm4529_vm9, %v4528_v18, %v4526_v46 }
 0x48b   : > { %4358 = vst.msk [vmem:[#allocation3 + $0x4] sm:$0xf] %vm4357_vm7, %v4346_v12  ;;  %v13672_v12 = vld [vmem:[%s20861_s15 + $0x28] sm:$0x30] }
 0x48c   : > { %v11950_v7 = vor.u32 %v13672_v12, %v11949_v10  ;;  %v13667_v12 = vld [vmem:[%s20861_s15] sm:$0xff] }
 0x48d   : > { %v17422_v4 = vpop.xlane.xlu2 %4405  ;;  %v4380_v39 = vpop.xlane.xlu1 %4379 }
 0x48e   : > { %v4378_v49 = vpop.xlane.xlu0 %4377  ;;  %v4436_v54 = vpack.c.bf16 %v4380_v39, %v4380_v39  ;;  %v17460_v39 = vunpack.c.l.b16 %v4446_v57  ;;  %v4667_v20 = vsel %vm20896_vm1, %v11950_v7, 0  ;;  %v12000_v7 = vld [vmem:[%s20861_s15 + $0x58] sm:$0xf] }
 0x48f   : > { %v4435_v17 = vpack.c.bf16 %v4378_v49, %v4378_v49  ;;  %v4535_v49 = vperm.slane %v4498_v44, %v17336_v52  ;;  %4674 = vmatpush.bf16.msra.mxu1 %v4667_v20 }
 0x490   : > { %v4500_v51 = vunpack.c.l.b16 %v4436_v54  ;;  %v4703_v54 = vsel %vm20896_vm1, %v11963_v60, 0 }
 0x491   : > { %v4499_v28 = vunpack.c.l.b16 %v4435_v17  ;;  %v17466_v17 = vunpack.c.l.b16 %v4445_v5  ;;  %4710 = vmatpush.bf16.msrb.mxu3 %v4703_v54 }
 0x492   : > { %v4538_v8 = vperm.slane %v4500_v51, %v17336_v52  ;;  %v4553_v51 = vperm.slane %v17460_v39, %v17336_v52 }
 0x493   : > { %v4537_v58 = vperm.slane %v4499_v28, %v17339_v56  ;;  %v4536_v28 = vsel %vm4529_vm9, %v4535_v49, %v4534_v40  ;;  %v4552_v46 = vperm.slane %v17466_v17, %v17339_v56  ;;  %v4448_v49 = vpack.c.bf16 %v17414_v34, %v17414_v34 }
 0x495   : > { %v17424_v59 = vpop.xlane.xlu2 %4419  ;;  %v17426_v41 = vpop.xlane.xlu1 %4417  ;;  %v4539_v31 = vsel %vm4529_vm9, %v4538_v8, %v4537_v58  ;;  %v13678_v8 = vld [vmem:[%s20861_s15 + $0x58] sm:$0x30] }
 0x496   : > { %v17428_v29 = vpop.xlane.xlu0 %4407  ;;  %v4455_v47 = vpack.c.bf16 %v17426_v41, %v17426_v41 }
 0x498   : > { %v4519_v40 = vunpack.c.l.b16 %v4455_v47 }
 0x49d   : > { %v4382_v42 = vpop.xlane.xlu2 %4381  ;;  %v4424_v6 = vpop.xlane.xlu1 %4423 }
 0x49e   : > { %v4422_v25 = vpop.xlane.xlu0 %4421  ;;  %v4437_v45 = vpack.c.bf16 %v4382_v42, %v4382_v42  ;;  %v4458_v35 = vpack.c.bf16 %v4424_v6, %v4424_v6  ;;  %v13668_v42 = vld [vmem:[%s20861_s15 + $0x8] sm:$0xff]  ;;  %v4533_v6 = vsel %vm4529_vm9, %v4532_v19, %v4531_v62  ;;  %v4456_v62 = vpack.c.bf16 %v17424_v59, %v17424_v59 }
 0x49f   : > { %v4457_v43 = vpack.c.bf16 %v4422_v25, %v4422_v25  ;;  %v13671_v25 = vld [vmem:[%s20861_s15 + $0x20] sm:$0xff]  ;;  %v4576_v19 = vsel %vm4325_vm2, %v4533_v6, %v4530_v11  ;;  %4711 = vmatpush.bf16.msrb.mxu3 %v13668_v42  ;;  %v4447_v59 = vpack.c.bf16 %v17416_v55, %v17416_v55 }
 0x4a0   : > { %v4501_v5 = vunpack.c.l.b16 %v4437_v45  ;;  %v4522_v18 = vunpack.c.l.b16 %v4458_v35  ;;  %v4577_v41 = vsel %vm4327_vm4, %v4536_v28, %v4576_v19  ;;  %4675 = vmatpush.bf16.msra.mxu1 %v13671_v25  ;;  %v13670_v45 = vld [vmem:[%s20861_s15 + $0x18] sm:$0xff]  ;;  %v12001_v35 = vor.u32 %v13678_v8, %v12000_v7 }
 0x4a1   : > { %v4521_v60 = vunpack.c.l.b16 %v4457_v43  ;;  %v4578_v34 = vsel %vm4329_vm5, %v4539_v31, %v4577_v41  ;;  %v4520_v54 = vunpack.c.l.b16 %v4456_v62  ;;  %v4450_v43 = vpack.c.bf16 %v17428_v29, %v17428_v29 }
 0x4a2   : > { %v4540_v55 = vperm.slane %v4501_v5, %v17339_v56  ;;  %v4571_v42 = vperm.slane %v4522_v18, %v17336_v52  ;;  %v4807_v25 = vsel %vm20896_vm1, %v12001_v35, 0  ;;  %v4449_v62 = vpack.c.bf16 %v17422_v4, %v17422_v4  ;;  %v11981_v4 = vld [vmem:[%s20861_s15 + $0x40] sm:$0xf] }
 0x4a3   : > { %v4570_v20 = vperm.slane %v4521_v60, %v17339_v56  ;;  %4712 = vmatpush.bf16.msrb.mxu3 %v13667_v12  ;;  %v4511_v19 = vunpack.c.l.b16 %v4447_v59  ;;  %v4567_v60 = vperm.slane %v4519_v40, %v17339_v56  ;;  %v4514_v7 = vunpack.c.l.b16 %v4450_v43  ;;  %v13675_v59 = vld [vmem:[%s20861_s15 + $0x40] sm:$0x30] }
 0x4a4   : > { %4676 = vmatpush.bf16.msra.mxu1 %v13670_v45  ;;  %v4513_v40 = vunpack.c.l.b16 %v4449_v62 }
 0x4a5   : > { %v17469_v53 = vpop.xlane.xlu1 %4409  ;;  %v17477_v57 = vpop.xlane.xlu2 %4411  ;;  %v4572_v8 = vsel %vm4529_vm9, %v4571_v42, %v4570_v20  ;;  %v13676_v20 = vld [vmem:[%s20861_s15 + $0x48] sm:$0xff] }
 0x4a6   : > { %v4384_v44 = vpop.xlane.xlu0 %4383  ;;  %v4452_v11 = vpack.c.bf16 %v17477_v57, %v17477_v57  ;;  %v4451_v28 = vpack.c.bf16 %v17469_v53, %v17469_v53  ;;  %v4512_v57 = vunpack.c.l.b16 %v4448_v49  ;;  %v4568_v53 = vperm.slane %v4520_v54, %v17336_v52 }
 0x4a7   : > { %v4438_v16 = vpack.c.bf16 %v4384_v44, %v4384_v44  ;;  %4814 = vmatpush.bf16.msra.mxu3 %v4807_v25  ;;  %v11982_v54 = vor.u32 %v13675_v59, %v11981_v4 }
 0x4a9   : > { %v4502_v10 = vunpack.c.l.b16 %v4438_v16  ;;  %v4751_v25 = vsel %vm20896_vm1, %v11982_v54, 0 }
 0x4aa   : > { %4758 = vmatpush.bf16.msrb.mxu1 %v4751_v25 }
 0x4ab   : > { %v4541_v58 = vperm.slane %v4502_v10, %v17336_v52  ;;  %v4597_v10 = vld [vmem:[#allocation3] sm:$0xe] }
 0x4ad   : > { %v4542_v6 = vsel %vm4529_vm9, %v4541_v58, %v4540_v55  ;;  %v4428_v44 = vpop.xlane.xlu1 %4427  ;;  %v4414_v12 = vpop.xlane.xlu2 %4413  ;;  %v4516_v55 = vunpack.c.l.b16 %v4452_v11  ;;  %v4515_v58 = vunpack.c.l.b16 %v4451_v28  ;;  %v4569_v11 = vsel %vm4529_vm9, %v4568_v53, %v4567_v60 }
 0x4ae   : > { %v4579_v5 = vsel %vm4331_vm6, %v4542_v6, %v4578_v34  ;;  %v4460_v16 = vpack.c.bf16 %v4428_v44, %v4428_v44  ;;  %v4426_v31 = vpop.xlane.xlu0 %4425  ;;  %v13677_v34 = vld [vmem:[%s20861_s15 + $0x50] sm:$0xff]  ;;  %v4453_v43 = vpack.c.bf16 %v4414_v12, %v4414_v12  ;;  %v4556_v6 = vperm.slane %v4512_v57, %v17336_v52 }
 0x4af   : > { %v4589_v47 = vpack.c.b16 %v4579_v5, %v4579_v5  ;;  %v4459_v18 = vpack.c.bf16 %v4426_v31, %v4426_v31  ;;  %4815 = vmatpush.bf16.msra.mxu3 %v13677_v34  ;;  %v4555_v44 = vperm.slane %v4511_v19, %v17339_v56  ;;  %v4559_v28 = vperm.slane %v4514_v7, %v17336_v52 }
 0x4b0   : > { %v4524_v41 = vunpack.c.l.b16 %v4460_v16  ;;  %v4587_v29 = vsel %vm4333_vm11, %v4572_v8, %v4569_v11  ;;  %v13674_v16 = vld [vmem:[%s20861_s15 + $0x38] sm:$0xff]  ;;  %v4554_v31 = vsel %vm4529_vm9, %v4553_v51, %v4552_v46  ;;  %v4562_v57 = vperm.slane %v4516_v55, %v17336_v52  ;;  %vm4603_vm11 = vmand %vm4602_vm14, %vm4360_vm15  ;;  %v13673_v8 = vld [vmem:[%s20861_s15 + $0x30] sm:$0xff] }
 0x4b1   : > { %v4598_v45 = vsel %vm17525_vm12, %v4589_v47, %v4597_v10  ;;  %v4523_v49 = vunpack.c.l.b16 %v4459_v18  ;;  %v4561_v62 = vperm.slane %v4515_v58, %v17339_v56  ;;  %v4558_v19 = vperm.slane %v4513_v40, %v17339_v56  ;;  %v4604_v10 = vld [vmem:[#allocation3 + $0x8] sm:$0x3]  ;;  %4759 = vmatpush.bf16.msrb.mxu1 %v13674_v16 }
 0x4b2   : > { %4599 = vst [vmem:[#allocation3] sm:$0xe] %v4598_v45  ;;  %v4574_v35 = vperm.slane %v4524_v41, %v17336_v52  ;;  %v4517_v53 = vunpack.c.l.b16 %v4453_v43  ;;  %v4557_v39 = vsel %vm4529_vm9, %v4556_v6, %v4555_v44  ;;  %v4582_v41 = vsel %vm4337_vm0, %v4554_v31, %v17359_v27  ;;  %v12019_v6 = vld [vmem:[%s20861_s15 + $0x70] sm:$0xf]  ;;  %v13681_v44 = vld [vmem:[%s20861_s15 + $0x70] sm:$0x30] }
 0x4b3   : > { %v4573_v42 = vperm.slane %v4523_v49, %v17339_v56  ;;  %4816 = vmatpush.bf16.msra.mxu3 %v13676_v20  ;;  %v4560_v51 = vsel %vm4529_vm9, %v4559_v28, %v4558_v19  ;;  %v4563_v7 = vsel %vm4529_vm9, %v4562_v57, %v4561_v62  ;;  %v4583_v45 = vsel %vm4325_vm2, %v4557_v39, %v4582_v41  ;;  %v12057_v41 = vld [vmem:[%s20861_s15 + $0xa0] sm:$0xf] }
 0x4b4   : > { %v4564_v49 = vperm.slane %v4517_v53, %v17339_v56  ;;  %v4584_v59 = vsel %vm4327_vm4, %v4560_v51, %v4583_v45  ;;  %vm4661_vm2 = vcmask 359424   ;;  %v12020_v28 = vor.u32 %v13681_v44, %v12019_v6 }
 0x4b5   : > { %v4575_v5 = vsel %vm4529_vm9, %v4574_v35, %v4573_v42  ;;  %v4585_v34 = vsel %vm4329_vm5, %v4563_v7, %v4584_v59  ;;  %4760 = vmatpush.bf16.msrb.mxu1 %v13673_v8  ;;  %v12038_v35 = vld [vmem:[%s20861_s15 + $0x88] sm:$0xf]  ;;  %vm20897_vm4 = vsmask.f32 7424  ;;  %vm20898_vm5 = vsmask.f32 6400 }
 0x4b6   : > { %v4588_v47 = vsel %vm4335_vm13, %v4575_v5, %v4587_v29  ;;  %v4416_v18 = vpop.xlane.xlu0 %4415  ;;  %vm4600_vm13 = vcmask 330952   ;;  %v13683_v29 = vld [vmem:[%s20861_s15 + $0x80] sm:$0xff] }
 0x4b7   : > { %v4591_v60 = vpack.c.b16 %v4588_v47, %v4588_v47  ;;  %v4454_v17 = vpack.c.bf16 %v4416_v18, %v4416_v18  ;;  %v4857_v47 = vsel %vm20896_vm1, %v12020_v28, 0  ;;  %v13682_v18 = vld [vmem:[%s20861_s15 + $0x78] sm:$0xff]  ;;  %v13687_v7 = vld [vmem:[%s20861_s15 + $0xa0] sm:$0x30] }
 0x4b8   : > { %v12058_v45 = vor.u32 %v13687_v7, %v12057_v41  ;;  %v4980_v7 = vstv %s4979_s27 }
 0x4b9   : > { %v4605_v46 = vsel %vm4603_vm11, %v4591_v60, %v4604_v10  ;;  %v4518_v12 = vunpack.c.l.b16 %v4454_v17  ;;  %v13680_v17 = vld [vmem:[%s20861_s15 + $0x68] sm:$0xff] }
 0x4ba   : > { %4606 = vst [vmem:[#allocation3 + $0x8] sm:$0x3] %v4605_v46  ;;  %v13679_v46 = vld [vmem:[%s20861_s15 + $0x60] sm:$0xff]  ;;  %v4961_v59 = vsel %vm20896_vm1, %v12058_v45, 0 }
 0x4bb   : > { %v4565_v4 = vperm.slane %v4518_v12, %v17336_v52  ;;  %v13684_v52 = vld [vmem:[%s20861_s15 + $0x88] sm:$0x30] }
 0x4bc   : > { %v12039_v40 = vor.u32 %v13684_v52, %v12038_v35 }
 0x4bd   : > { %v4566_v55 = vsel %vm4529_vm9, %v4565_v4, %v4564_v49  ;;  %vm20895_vm9 = vcmask 1044480  }
 0x4be   : > { %v4586_v27 = vsel %vm4331_vm6, %v4566_v55, %v4585_v34  ;;  %v4911_v20 = vsel %vm20896_vm1, %v12039_v40, 0  ;;  %vm20899_vm6 = vcmask 1046528  }
 0x4bf   : > { %v4590_v58 = vpack.c.b16 %v4586_v27, %v4586_v27 }
 0x4c1   : > { %4601 = vst.msk [vmem:[#allocation3 + $0x4] sm:$0xf] %vm4600_vm13, %v4590_v58  ;;  %v4609_v54 = vld [vmem:[#allocation3 + $0x8] sm:$0x7]  ;;  %v13686_v58 = vld [vmem:[%s20861_s15 + $0x98] sm:$0xff] }
 0x4c2   : > { %v4628_v56 = vunpack.c.l.b16 %v4609_v54 }
 0x4c4   : > { %v17595_v43 = vpack.c.b16 %v4628_v56, %v4628_v56  ;;  %v13685_v56 = vld [vmem:[%s20861_s15 + $0x90] sm:$0xff] }
 0x4c6   : > { %v4640_v25 = vshll.u32 %v17595_v43, 16  ;;  %v4780_v62 = vshrl.u32 %v17595_v43, 16  ;;  %v4728_v4 = vrot.slane %v17595_v43, 1  ;;  %v4834_v44 = vrot.slane %v17595_v43, 2 }
 0x4c7   : > { %v4938_v28 = vrot.slane %v17595_v43, 3 }
 0x4c8   : > { %v17597_v42 = vld [vmem:[#allocation3] sm:$0xff]  ;;  %v4642_v57 = vrot.slane %v4640_v25, 1  ;;  %v4782_v39 = vrot.slane %v4780_v62, 1  ;;  %v4783_v10 = vrot.slane %v4640_v25, 2  ;;  %v4886_v35 = vrot.slane %v4780_v62, 2 }
 0x4c9   : > { %11964 = vmatmul.msk.bf16.vlgmr.msrb.gmra.mxu3 %vm4661_vm2, %v17597_v42  ;;  %v4635_v11 = vshll.u32 %v17597_v42, 16  ;;  %v4633_v5 = vshrl.u32 %v17597_v42, 16  ;;  %v4727_v49 = vrot.slane %v17597_v42, 1  ;;  %v4887_v54 = vrot.slane %v4640_v25, 3 }
 0x4ca   : > { %4918 = vmatpush.bf16.msrb.mxu3 %v4911_v20  ;;  %v4784_v12 = vor.u32 %v4783_v10, %v4782_v39  ;;  %v4833_v6 = vrot.slane %v17597_v42, 2  ;;  %v4937_v25 = vrot.slane %v17597_v42, 3 }
 0x4cb   : > { %v4637_v16 = vrot.slane %v4635_v11, 1  ;;  %v4777_v53 = vrot.slane %v4633_v5, 1  ;;  %v4778_v60 = vrot.slane %v4635_v11, 2  ;;  %v4729_v34 = vsel %vm20899_vm6, %v4727_v49, %v4728_v4 }
 0x4cc   : > { %v4883_v55 = vrot.slane %v4633_v5, 2  ;;  %v4884_v27 = vrot.slane %v4635_v11, 3  ;;  %v4888_v40 = vor.u32 %v4887_v54, %v4886_v35  ;;  %v4835_v11 = vsel %vm20896_vm1, %v4833_v6, %v4834_v44 }
 0x4cd   : > { %v4638_v31 = vor.u32 %v4637_v16, %v4633_v5  ;;  %v4779_v51 = vor.u32 %v4778_v60, %v4777_v53  ;;  %v4984_v49 = vstv %s12060_s3  ;;  %vm5446_vm1 = vsmask.f32 256 }
 0x4ce   : > { %4919 = vmatpush.bf16.msrb.mxu3 %v13683_v29  ;;  %v4885_v52 = vor.u32 %v4884_v27, %v4883_v55  ;;  %v4939_v29 = vsel %vm20895_vm9, %v4937_v25, %v4938_v28  ;;  %vm5398_vm9 = vsmask.f32 7946 }
 0x4cf   : > { %v4643_v19 = vsel %vm20897_vm4, %v4638_v31, %v4642_v57  ;;  %v4785_v8 = vsel %vm20898_vm5, %v4779_v51, %v4784_v12  ;;  %vm5475_vm4 = vcmask 1040384   ;;  %vm5361_vm5 = vcmask 1043457  }
 0x4d0   : > { %11951 = vmatmul.msk.bf16.vlgmr.msra.gmra.mxu1 %vm4661_vm2, %v4643_v19  ;;  %v4889_v20 = vsel %vm4882_vm3, %v4885_v52, %v4888_v40 }
 0x4d1   : > { %4864 = vmatpush.bf16.msra.mxu1 %v4857_v47 }
 0x4d2   : > { %4920 = vmatpush.bf16.msrb.mxu3 %v13682_v18 }
 0x4d5   : > { %4865 = vmatpush.bf16.msra.mxu1 %v13680_v17 }
 0x4d9   : > { %12002 = vmatmul.msk.bf16.vlgmr.msra.gmra.mxu3 %vm4661_vm2, %v4785_v8  ;;  %4866 = vmatpush.bf16.msra.mxu1 %v13679_v46 }
 0x4e0   : > { %11983 = vmatmul.msk.bf16.vlgmr.msrb.gmra.mxu1 %vm4661_vm2, %v4729_v34 }
 0x4e1   : > { %4968 = vmatpush.bf16.msrb.mxu1 %v4961_v59 }
 0x4e5   : > { %4969 = vmatpush.bf16.msrb.mxu1 %v13686_v58 }
 0x4e9   : > { %12040 = vmatmul.msk.bf16.vlgmr.msrb.gmra.mxu3 %vm4661_vm2, %v4889_v20  ;;  %4970 = vmatpush.bf16.msrb.mxu1 %v13685_v56 }
 0x4f0   : > { %12021 = vmatmul.msk.bf16.vlgmr.msra.gmra.mxu1 %vm4661_vm2, %v4835_v11 }
 0x500   : > { %12059 = vmatmul.msk.bf16.vlgmr.msrb.gmra.mxu1 %vm4661_vm2, %v4939_v29 }
 0x54c   : > { %v4714_v16 = vpop.f32.mrf.mxu3 }
 0x54d   : > { %v4678_v5 = vpop.f32.mrf.mxu1 }
 0x54e   : > { %v4715_v60 = vadd.f32 %v4714_v16, %v4678_v5 }
 0x554   : > { %v4716_v57 = vpop.f32.mrf.mxu3 }
 0x555   : > { %v4680_v31 = vpop.f32.mrf.mxu1 }
 0x556   : > { %v4717_v43 = vadd.f32 %v4716_v57, %v4680_v31 }
 0x55c   : > { %v4818_v47 = vpop.f32.mrf.mxu3 }
 0x55d   : > { %v4762_v62 = vpop.f32.mrf.mxu1 }
 0x55e   : > { %v4767_v17 = vadd.f32 %v4762_v62, %v4715_v60  ;;  %v21103_v62 = vlaneseq }
 0x560   : > { %v4823_v42 = vadd.f32 %v4818_v47, %v4767_v17  ;;  %v17656_v47 = vshrl.u32 %v21103_v62, 7 }
 0x562   : > { %14145 = vset.pattern.permute.xlu0 %v17656_v47  ;;  %14143 = vset.pattern.permute.xlu1 %v17656_v47 }
 0x564   : > { %v4820_v53 = vpop.f32.mrf.mxu3 }
 0x565   : > { %v4764_v18 = vpop.f32.mrf.mxu1 }
 0x566   : > { %v4768_v46 = vadd.f32 %v4764_v18, %v4717_v43 }
 0x568   : > { %v4824_v8 = vadd.f32 %v4820_v53, %v4768_v46  ;;  %v17661_v53 = vadd.s32 8, %v17656_v47 }
 0x56a   : > { %14144 = vset.pattern.permute.xlu2 %v17661_v53 }
 0x56c   : > { %v4922_v51 = vpop.f32.mrf.mxu3 }
 0x56d   : > { %v4868_v19 = vpop.f32.mrf.mxu1 }
 0x56e   : > { %v4873_v10 = vadd.f32 %v4868_v19, %v4823_v42 }
 0x570   : > { %v4927_v12 = vadd.f32 %v4922_v51, %v4873_v10  ;;  %v13732_v51 = vld [vmem:[%s20863_s17 + $0x138] sm:$0xff] }
 0x571   : > { %6659 = vmatpush.bf16.msra.mxu2 %v13732_v51 }
 0x574   : > { %v4924_v55 = vpop.f32.mrf.mxu3 }
 0x575   : > { %v4870_v39 = vpop.f32.mrf.mxu1 }
 0x576   : > { %v4874_v4 = vadd.f32 %v4870_v39, %v4824_v8 }
 0x578   : > { %v4928_v58 = vadd.f32 %v4924_v55, %v4874_v4 }
 0x57d   : > { %v4972_v41 = vpop.f32.mrf.mxu1 }
 0x57e   : > { %v4977_v45 = vadd.f32 %v4972_v41, %v4927_v12 }
 0x580   : > { %v4981_v59 = vmul.f32 %v4980_v7, %v4977_v45 }
 0x582   : > { %v4985_v34 = vadd.f32 %v4984_v49, %v4981_v59 }
 0x584   : > { %v12061_v27 = vmul.f32 -1.442695, %v4985_v34 }
 0x585   : > { %v4974_v35 = vpop.f32.mrf.mxu1 }
 0x586   : > { %14437 = vpow2.f32 %v12061_v27  ;;  %v4978_v54 = vadd.f32 %v4974_v35, %v4928_v58 }
 0x588   : > { %v4982_v52 = vmul.f32 %v4980_v7, %v4978_v54 }
 0x58a   : > { %v4986_v56 = vadd.f32 %v4984_v49, %v4982_v52 }
 0x58c   : > { %v14438_v40 = vpop.eup %14437  ;;  %v12062_v20 = vmul.f32 -1.442695, %v4986_v56 }
 0x58d   : > { %v4993_v6 = vadd.f32 1.0, %v14438_v40 }
 0x58e   : > { %14439 = vpow2.f32 %v12062_v20 }
 0x58f   : > { %14441 = vrcp.f32 %v4993_v6  ;;  %v5006_v5 = vand.u32 2147483648, %v4993_v6  ;;  %v5004_v31 = vand.u32 2147483647, %v4993_v6  ;;  %vm5000_vm10 = vweird.f32 %v4993_v6 }
 0x591   : > { %v5007_v18 = vor.u32 1.1754944e-38, %v5006_v5  ;;  %vm5005_vm14 = vcmp.eq.f32.partialorder %v5004_v31, 8.507059e+37 }
 0x594   : > { %v14440_v44 = vpop.eup %14439 }
 0x595   : > { %v14442_v11 = vpop.eup %14441  ;;  %v4994_v28 = vadd.f32 1.0, %v14440_v44 }
 0x596   : > { %v4996_v25 = vmul.f32 %v14442_v11, %v4993_v6  ;;  %vm5001_vm7 = vweird.f32 %v14442_v11 }
 0x597   : > { %14443 = vrcp.f32 %v4994_v28  ;;  %vm5002_vm12 = vmor %vm5000_vm10, %vm5001_vm7  ;;  %v5021_v8 = vand.u32 2147483648, %v4994_v28  ;;  %vm5015_vm13 = vweird.f32 %v4994_v28  ;;  %v5019_v45 = vand.u32 2147483647, %v4994_v28 }
 0x598   : > { %v4997_v29 = vsub.f32 1.0, %v4996_v25 }
 0x599   : > { %vm5020_vm3 = vcmp.eq.f32.partialorder %v5019_v45, 8.507059e+37 }
 0x59a   : > { %v4998_v16 = vmul.f32 %v14442_v11, %v4997_v29  ;;  %v13740_v29 = vld [vmem:[%s20863_s17 + $0x178] sm:$0xff] }
 0x59b   : > { %6698 = vmatpush.bf16.msra.mxu0 %v13740_v29  ;;  %v13722_v29 = vld [vmem:[%s20863_s17 + $0xe8] sm:$0xff] }
 0x59c   : > { %v4999_v57 = vadd.f32 %v14442_v11, %v4998_v16  ;;  %v13731_v16 = vld [vmem:[%s20863_s17 + $0x130] sm:$0xff] }
 0x59d   : > { %v14444_v39 = vpop.eup %14443  ;;  %6660 = vmatpush.bf16.msra.mxu2 %v13731_v16 }
 0x59e   : > { %v5003_v19 = vsel %vm5002_vm12, %v14442_v11, %v4999_v57  ;;  %v5011_v43 = vmul.f32 %v14444_v39, %v4994_v28  ;;  %vm5016_vm11 = vweird.f32 %v14444_v39 }
 0x59f   : > { %v5008_v60 = vsel %vm5005_vm14, %v5007_v18, %v5003_v19  ;;  %vm5017_vm2 = vmor %vm5015_vm13, %vm5016_vm11 }
 0x5a0   : > { %v5025_v17 = vmul.f32 %v5008_v60, %v4985_v34  ;;  %v5012_v10 = vsub.f32 1.0, %v5011_v43  ;;  %v5022_v34 = vor.u32 1.1754944e-38, %v5021_v8 }
 0x5a2   : > { %v12063_v42 = vmul.f32 -1.442695, %v5025_v17  ;;  %v5013_v41 = vmul.f32 %v14444_v39, %v5012_v10 }
 0x5a4   : > { %14445 = vpow2.f32 %v12063_v42  ;;  %v5014_v7 = vadd.f32 %v14444_v39, %v5013_v41  ;;  %v13739_v42 = vld [vmem:[%s20863_s17 + $0x170] sm:$0xff] }
 0x5a5   : > { %6699 = vmatpush.bf16.msra.mxu0 %v13739_v42 }
 0x5a6   : > { %v5018_v59 = vsel %vm5017_vm2, %v14444_v39, %v5014_v7  ;;  %v13730_v7 = vld [vmem:[%s20863_s17 + $0x128] sm:$0xff] }
 0x5a7   : > { %v5023_v58 = vsel %vm5020_vm3, %v5022_v34, %v5018_v59  ;;  %6661 = vmatpush.bf16.msra.mxu2 %v13730_v7  ;;  %v13738_v34 = vld [vmem:[%s20863_s17 + $0x168] sm:$0xff] }
 0x5a8   : > { %v5026_v40 = vmul.f32 %v5023_v58, %v4986_v56  ;;  %v13716_v58 = vld [vmem:[%s20863_s17 + $0xb8] sm:$0xff] }
 0x5a9   : > { %6700 = vmatpush.bf16.msra.mxu0 %v13738_v34  ;;  %6140 = vmatpush.bf16.msra.mxu3 %v13716_v58  ;;  %v13728_v34 = vld [vmem:[%s20863_s17 + $0x118] sm:$0xff] }
 0x5aa   : > { %v14446_v46 = vpop.eup %14445  ;;  %v12064_v11 = vmul.f32 -1.442695, %v5026_v40 }
 0x5ab   : > { %v5033_v12 = vadd.f32 1.0, %v14446_v46 }
 0x5ad   : > { %14447 = vrcp.f32 %v5033_v12  ;;  %v5046_v27 = vand.u32 2147483648, %v5033_v12  ;;  %v5044_v54 = vand.u32 2147483647, %v5033_v12  ;;  %vm5040_vm10 = vweird.f32 %v5033_v12 }
 0x5ae   : > { %14449 = vpow2.f32 %v12064_v11 }
 0x5af   : > { %v5047_v20 = vor.u32 1.1754944e-38, %v5046_v27  ;;  %vm5045_vm14 = vcmp.eq.f32.partialorder %v5044_v54, 8.507059e+37  ;;  %v13729_v27 = vld [vmem:[%s20863_s17 + $0x120] sm:$0xff]  ;;  %v13715_v54 = vld [vmem:[%s20863_s17 + $0xb0] sm:$0xff] }
 0x5b0   : > { %6662 = vmatpush.bf16.msra.mxu2 %v13729_v27  ;;  %6141 = vmatpush.bf16.msra.mxu3 %v13715_v54  ;;  %v5406_v54 = vld [vmem:[#allocation2 + $0x18] sm:$0x7] }
 0x5b3   : > { %v14448_v49 = vpop.eup %14447 }
 0x5b4   : > { %v5036_v4 = vmul.f32 %v14448_v49, %v5033_v12  ;;  %vm5041_vm7 = vweird.f32 %v14448_v49  ;;  %v14450_v5 = vpop.eup %14449  ;;  %6663 = vmatpush.bf16.msra.mxu2 %v13728_v34 }
 0x5b5   : > { %vm5042_vm12 = vmor %vm5040_vm10, %vm5041_vm7  ;;  %v5034_v31 = vadd.f32 1.0, %v14450_v5  ;;  %vm5367_vm7 = vcmask 1041408  }
 0x5b6   : > { %v5037_v55 = vsub.f32 1.0, %v5036_v4  ;;  %vm17753_vm10 = vmand %vm5367_vm7, %vm4360_vm15  ;;  %vm5373_vm7 = vsmask.f32 6416 }
 0x5b7   : > { %14451 = vrcp.f32 %v5034_v31  ;;  %v5061_v10 = vand.u32 2147483648, %v5034_v31  ;;  %vm5055_vm13 = vweird.f32 %v5034_v31  ;;  %v5059_v46 = vand.u32 2147483647, %v5034_v31 }
 0x5b8   : > { %v5038_v35 = vmul.f32 %v14448_v49, %v5037_v55 }
 0x5b9   : > { %v5062_v41 = vor.u32 1.1754944e-38, %v5061_v10  ;;  %vm5060_vm3 = vcmp.eq.f32.partialorder %v5059_v46, 8.507059e+37  ;;  %v13720_v10 = vld [vmem:[%s20863_s17 + $0xd8] sm:$0xff] }
 0x5ba   : > { %v5039_v52 = vadd.f32 %v14448_v49, %v5038_v35 }
 0x5bc   : > { %v5043_v6 = vsel %vm5042_vm12, %v14448_v49, %v5039_v52  ;;  %v13724_v52 = vld [vmem:[%s20863_s17 + $0xf8] sm:$0xff]  ;;  %vm5372_vm12 = vsmask.f32 2304 }
 0x5bd   : > { %v17667_v44 = vsel %vm5045_vm14, %v5047_v20, %v5043_v6  ;;  %v14452_v18 = vpop.eup %14451  ;;  %6179 = vmatpush.bf16.msra.mxu1 %v13724_v52  ;;  %v13714_v20 = vld [vmem:[%s20863_s17 + $0xa8] sm:$0xff]  ;;  %v13723_v6 = vld [vmem:[%s20863_s17 + $0xf0] sm:$0xff]  ;;  %vm5404_vm14 = vcmask 1042432  }
 0x5be   : > { %v5078_v25 = vperm.slane %v17667_v44, 1  ;;  %v5065_v28 = vperm.slane %v17667_v44, 0  ;;  %v5091_v56 = vperm.slane %v17667_v44, 2  ;;  %v5117_v57 = vperm.slane %v17667_v44, 4  ;;  %6142 = vmatpush.bf16.msra.mxu3 %v13714_v20  ;;  %v13709_v20 = vld [vmem:[%s20863_s17 + $0x80] sm:$0xff] }
 0x5bf   : > { %v5104_v62 = vperm.slane %v17667_v44, 3  ;;  %v5051_v19 = vmul.f32 %v14452_v18, %v5034_v31  ;;  %v5156_v17 = vperm.slane %v17667_v44, 7  ;;  %vm5056_vm11 = vweird.f32 %v14452_v18 }
 0x5c0   : > { %5083 = vperm.xlu0 %14145, %v5078_v25   ;;  %5076 = vperm.xlu2 %14144, %v5065_v28   ;;  %v5130_v51 = vperm.slane %v17667_v44, 5  ;;  %vm5057_vm2 = vmor %vm5055_vm13, %vm5056_vm11  ;;  %v5143_v45 = vperm.slane %v17667_v44, 6  ;;  %vm5409_vm13 = vsmask.f32 3328 }
 0x5c1   : > { %5070 = vperm.xlu1 %14143, %v5065_v28   ;;  %v5052_v60 = vsub.f32 1.0, %v5051_v19  ;;  %6180 = vmatpush.bf16.msra.mxu1 %v13723_v6  ;;  %v13713_v28 = vld [vmem:[%s20863_s17 + $0xa0] sm:$0xff]  ;;  %vm17781_vm11 = vmand %vm5404_vm14, %vm5372_vm12  ;;  %v13727_v6 = vld [vmem:[%s20863_s17 + $0x110] sm:$0xff]  ;;  %vm5397_vm14 = vcmask 1043458  }
 0x5c2   : > { %6143 = vmatpush.bf16.msra.mxu3 %v13713_v28  ;;  %6664 = vmatpush.bf16.msra.mxu2 %v13727_v6  ;;  %vm17831_vm6 = vmand %vm5397_vm14, %vm5398_vm9  ;;  %vm5337_vm9 = vsmask.f32 5392 }
 0x5c3   : > { %v5053_v39 = vmul.f32 %v14452_v18, %v5052_v60  ;;  %v13721_v60 = vld [vmem:[%s20863_s17 + $0xe0] sm:$0xff]  ;;  %vm17854_vm14 = vmand %vm5361_vm5, %vm4352_vm8  ;;  %vm5435_vm5 = vsmask.f32 7950 }
 0x5c4   : > { %vm17871_vm8 = vmor %vm4360_vm15, %vm5337_vm9  ;;  %vm5469_vm9 = vsmask.f32 7938 }
 0x5c5   : > { %v5054_v43 = vadd.f32 %v14452_v18, %v5053_v39  ;;  %6181 = vmatpush.bf16.msra.mxu1 %v13722_v29  ;;  %v5369_v39 = vld [vmem:[#allocation2 + $0x10] sm:$0x3]  ;;  %vm17892_vm15 = vmand %vm4337_vm0, %vm5435_vm5  ;;  %vm21126_vm5 = vcmask 1043456  }
 0x5c7   : > { %v5058_v12 = vsel %vm5057_vm2, %v14452_v18, %v5054_v43  ;;  %vm20900_vm2 = vcmask 1043456  }
 0x5c8   : > { %14146 = vset.pattern.permute.xlu0 %v17661_v53  ;;  %5089 = vperm.xlu2 %14144, %v5078_v25   ;;  %v17693_v8 = vsel %vm5060_vm3, %v5062_v41, %v5058_v12  ;;  %vm17813_vm3 = vmand %vm20900_vm2, %vm5409_vm13 }
 0x5c9   : > { %5096 = vperm.xlu1 %14143, %v5091_v56   ;;  %v5182_v49 = vperm.slane %v17693_v8, 1  ;;  %v5221_v4 = vperm.slane %v17693_v8, 4  ;;  %v5169_v59 = vperm.slane %v17693_v8, 0  ;;  %v5247_v55 = vperm.slane %v17693_v8, 6  ;;  %6182 = vmatpush.bf16.msra.mxu1 %v13721_v60  ;;  %vm17844_vm2 = vmand %vm5475_vm4, %vm5446_vm1  ;;  %v13763_v60 = vld [vmem:[%s20863_s17 + $0x208] sm:$0xff] }
 0x5ca   : > { %v5195_v35 = vperm.slane %v17693_v8, 2  ;;  %v5208_v25 = vperm.slane %v17693_v8, 3  ;;  %v5234_v28 = vperm.slane %v17693_v8, 5  ;;  %vm17860_vm4 = vmor %vm5372_vm12, %vm5373_vm7  ;;  %vm5410_vm12 = vsmask.f32 7440 }
 0x5cb   : > { %vm17906_vm0 = vmor %vm5409_vm13, %vm5410_vm12  ;;  %vm5447_vm7 = vsmask.f32 4368  ;;  %vm21129_vm12 = vcmask 1046528  }
 0x5cc   : > { %vm17920_vm13 = vmor %vm5446_vm1, %vm5447_vm7 }
 0x5cd   : > { %6183 = vmatpush.bf16.msra.mxu1 %v13720_v10  ;;  %vm17935_vm1 = vmand %vm21126_vm5, %vm5469_vm9  ;;  %vm21132_vm5 = vsmask.f32 6400 }
 0x5ce   : > { %vm21130_vm7 = vmmov %vm21129_vm12 }
 0x5cf   : > { %vm21131_vm9 = vmmov %vm21130_vm7 }
 0x5d0   : > { %5128 = vperm.xlu0 %14146, %v5117_v57   ;;  %5102 = vperm.xlu2 %14144, %v5091_v56  }
 0x5d1   : > { %5109 = vperm.xlu1 %14143, %v5104_v62  }
 0x5d8   : > { %14149 = vset.pattern.permute.xlu0 %v17656_v47  ;;  %5115 = vperm.xlu2 %14144, %v5104_v62   ;;  %v13712_v62 = vld [vmem:[%s20863_s17 + $0x98] sm:$0xff] }
 0x5d9   : > { %5122 = vperm.xlu1 %14143, %v5117_v57   ;;  %v13737_v57 = vld [vmem:[%s20863_s17 + $0x160] sm:$0xff]  ;;  %6144 = vmatpush.bf16.msra.mxu3 %v13712_v62 }
 0x5da   : > { %6701 = vmatpush.bf16.msra.mxu0 %v13737_v57 }
 0x5e0   : > { %5161 = vperm.xlu0 %14149, %v5156_v17   ;;  %14147 = vset.pattern.permute.xlu2 %v17656_v47 }
 0x5e1   : > { %14148 = vset.pattern.permute.xlu1 %v17661_v53 }
 0x5e8   : > { %14152 = vset.pattern.permute.xlu0 %v17661_v53  ;;  %5135 = vperm.xlu2 %14147, %v5130_v51  }
 0x5e9   : > { %5141 = vperm.xlu1 %14148, %v5130_v51  }
 0x5f0   : > { %5148 = vperm.xlu2 %14147, %v5143_v45   ;;  %5193 = vperm.xlu0 %14152, %v5182_v49  }
 0x5f1   : > { %5154 = vperm.xlu1 %14148, %v5143_v45  }
 0x5f8   : > { %14150 = vset.pattern.permute.xlu2 %v17661_v53  ;;  %14155 = vset.pattern.permute.xlu0 %v17656_v47 }
 0x5f9   : > { %14151 = vset.pattern.permute.xlu1 %v17656_v47 }
 0x600   : > { %5167 = vperm.xlu2 %14150, %v5156_v17   ;;  %5226 = vperm.xlu0 %14155, %v5221_v4  }
 0x601   : > { %5174 = vperm.xlu1 %14151, %v5169_v59  }
 0x608   : > { %14158 = vset.pattern.permute.xlu0 %v17661_v53  ;;  %5180 = vperm.xlu2 %14150, %v5169_v59   ;;  %v13719_v59 = vld [vmem:[%s20863_s17 + $0xd0] sm:$0xff] }
 0x609   : > { %5187 = vperm.xlu1 %14151, %v5182_v49   ;;  %v13710_v49 = vld [vmem:[%s20863_s17 + $0x88] sm:$0xff]  ;;  %6184 = vmatpush.bf16.msra.mxu1 %v13719_v59 }
 0x610   : > { %5258 = vperm.xlu0 %14158, %v5247_v55   ;;  %14153 = vset.pattern.permute.xlu2 %v17656_v47 }
 0x611   : > { %14154 = vset.pattern.permute.xlu1 %v17661_v53 }
 0x618   : > { %5200 = vperm.xlu2 %14153, %v5195_v35  }
 0x619   : > { %5206 = vperm.xlu1 %14154, %v5195_v35  }
 0x61a   : > { %v5077_v40 = vpop.permute.xlu2 %5076 }
 0x61b   : > { %v5274_v44 = vmul.f32 %v5077_v40, %v17053_v3 }
 0x61d   : > { %v5306_v11 = vpack.c.bf16 %v5274_v44, %v5274_v44 }
 0x61f   : > { %v5349_v56 = vshrl.u32 %v5306_v11, 16  ;;  %v5352_v5 = vshll.u32 %v5306_v11, 16 }
 0x620   : > { %5213 = vperm.xlu2 %14153, %v5208_v25  }
 0x621   : > { %v5351_v16 = vrot.slane %v5349_v56, 6  ;;  %v5354_v3 = vrot.slane %v5352_v5, 7  ;;  %5219 = vperm.xlu1 %14154, %v5208_v25  }
 0x622   : > { %v5090_v31 = vpop.permute.xlu2 %5089 }
 0x623   : > { %v17746_v18 = vor.u32 %v5354_v3, %v5351_v16  ;;  %v5276_v19 = vmul.f32 %v5090_v31, %v17049_v50  ;;  %v13711_v50 = vld [vmem:[%s20863_s17 + $0x90] sm:$0xff]  ;;  %v13717_v3 = vld [vmem:[%s20863_s17 + $0xc0] sm:$0xff] }
 0x624   : > { %6145 = vmatpush.bf16.msra.mxu3 %v13711_v50 }
 0x625   : > { %v5357_v42 = vrot.slane %v17746_v18, 4  ;;  %v5308_v43 = vpack.c.bf16 %v5276_v19, %v5276_v19  ;;  %v13726_v19 = vld [vmem:[%s20863_s17 + $0x108] sm:$0xff] }
 0x626   : > { %6665 = vmatpush.bf16.msra.mxu2 %v13726_v19 }
 0x627   : > { %v5370_v51 = vsel %vm17753_vm10, %v5357_v42, %v5369_v39  ;;  %v5385_v46 = vshrl.u32 %v5308_v43, 16  ;;  %v5388_v12 = vshll.u32 %v5308_v43, 16  ;;  %v5443_v39 = vld [vmem:[#allocation2 + $0x20] sm:$0xf] }
 0x628   : > { %5371 = vst [vmem:[#allocation2 + $0x10] sm:$0x3] %v5370_v51  ;;  %14156 = vset.pattern.permute.xlu2 %v17661_v53  ;;  %6146 = vmatpush.bf16.msra.mxu3 %v13710_v49 }
 0x629   : > { %v5387_v41 = vrot.slane %v5385_v46, 5  ;;  %v5390_v7 = vrot.slane %v5388_v12, 6  ;;  %14157 = vset.pattern.permute.xlu1 %v17656_v47 }
 0x62a   : > { %v5103_v45 = vpop.permute.xlu2 %5102 }
 0x62b   : > { %v17777_v27 = vor.u32 %v5390_v7, %v5387_v41  ;;  %v5278_v58 = vmul.f32 %v5103_v45, %v17045_v26  ;;  %v13718_v26 = vld [vmem:[%s20863_s17 + $0xc8] sm:$0xff]  ;;  %v5400_v7 = vld [vmem:[#allocation2 + $0x10] sm:$0xc] }
 0x62c   : > { %6147 = vmatpush.bf16.msra.mxu3 %v13709_v20  ;;  %6185 = vmatpush.bf16.msra.mxu1 %v13718_v26 }
 0x62d   : > { %v5393_v52 = vrot.slane %v17777_v27, 4  ;;  %v5310_v40 = vpack.c.bf16 %v5278_v58, %v5278_v58 }
 0x62f   : > { %v5407_v44 = vsel %vm17781_vm11, %v5393_v52, %v5406_v54  ;;  %v5422_v11 = vshll.u32 %v5310_v40, 16  ;;  %v5426_v25 = vshrl.u32 %v5310_v40, 16  ;;  %v5477_v54 = vld [vmem:[#allocation2 + $0x2c] sm:$0x1]  ;;  %v13707_v40 = vld [vmem:[%s20863_s17 + $0x78] sm:$0xff] }
 0x630   : > { %5408 = vst [vmem:[#allocation2 + $0x18] sm:$0x7] %v5407_v44  ;;  %5232 = vperm.xlu2 %14156, %v5221_v4   ;;  %6186 = vmatpush.bf16.msra.mxu1 %v13717_v3  ;;  %v13735_v44 = vld [vmem:[%s20863_s17 + $0x150] sm:$0xff] }
 0x631   : > { %v17800_v29 = vrot.slane %v5422_v11, 5  ;;  %v5428_v56 = vrot.slane %v5426_v25, 4  ;;  %5239 = vperm.xlu1 %14157, %v5234_v28  }
 0x632   : > { %v5084_v5 = vpop.permute.xlu0 %5083  ;;  %v5116_v16 = vpop.permute.xlu2 %5115 }
 0x633   : > { %v5429_v31 = vor.u32 %v5428_v56, %v17800_v29  ;;  %v5275_v57 = vmul.f32 %v5084_v5, %v17030_v24  ;;  %v5280_v4 = vmul.f32 %v5116_v16, %v17064_v36  ;;  %v5071_v62 = vpop.permute.xlu1 %5070  ;;  %v13736_v24 = vld [vmem:[%s20863_s17 + $0x158] sm:$0xff] }
 0x634   : > { %v5273_v42 = vmul.f32 %v5071_v62, %v17034_v9  ;;  %6702 = vmatpush.bf16.msra.mxu0 %v13736_v24  ;;  %v13725_v9 = vld [vmem:[%s20863_s17 + $0x100] sm:$0xff]  ;;  %6353 = vmatpush.bf16.msrb.mxu1 %v13707_v40  ;;  %v13734_v24 = vld [vmem:[%s20863_s17 + $0x148] sm:$0xff] }
 0x635   : > { %v5430_v36 = vrot.slane %v5429_v31, 4  ;;  %v5307_v43 = vpack.c.bf16 %v5275_v57, %v5275_v57  ;;  %v17821_v50 = vpack.c.bf16 %v5280_v4, %v5280_v4  ;;  %6666 = vmatpush.bf16.msra.mxu2 %v13725_v9 }
 0x636   : > { %v5305_v10 = vpack.c.bf16 %v5273_v42, %v5273_v42  ;;  %v13699_v42 = vld [vmem:[%s20863_s17 + $0x38] sm:$0xff] }
 0x637   : > { %v5444_v51 = vsel %vm17813_vm3, %v5430_v36, %v5443_v39  ;;  %v5376_v46 = vshrl.u32 %v5307_v43, 16  ;;  %v5379_v12 = vshll.u32 %v5307_v43, 16  ;;  %v5458_v41 = vshrl.u32 %v17821_v50, 16  ;;  %6314 = vmatpush.bf16.msrb.mxu3 %v13699_v42 }
 0x638   : > { %5445 = vst [vmem:[#allocation2 + $0x20] sm:$0xf] %v5444_v51  ;;  %v5340_v45 = vshrl.u32 %v5305_v10, 16  ;;  %v5343_v49 = vshll.u32 %v5305_v10, 16  ;;  %5245 = vperm.xlu2 %14156, %v5234_v28   ;;  %v5363_v28 = vld [vmem:[#allocation2 + $0x8] sm:$0xe]  ;;  %6703 = vmatpush.bf16.msra.mxu0 %v13735_v44 }
 0x639   : > { %v5378_v34 = vrot.slane %v5376_v46, 5  ;;  %v5381_v58 = vrot.slane %v5379_v12, 6  ;;  %v17835_v52 = vrot.slane %v5458_v41, 7  ;;  %5252 = vperm.xlu1 %14157, %v5247_v55   ;;  %v5437_v10 = vld [vmem:[#allocation2 + $0x18] sm:$0x8]  ;;  %v5260_v44 = vperm.slane %v17693_v8, 7 }
 0x63a   : > { %v5342_v26 = vrot.slane %v5340_v45, 6  ;;  %v5345_v6 = vrot.slane %v5343_v49, 7  ;;  %v14074_v12 = vld [vmem:[#allocation2] sm:$0xe]  ;;  %v13751_v46 = vld [vmem:[%s20863_s17 + $0x1a8] sm:$0xff] }
 0x63b   : > { %v5382_v11 = vor.u32 %v5381_v58, %v5378_v34  ;;  %v5465_v55 = vrot.slane %v17835_v52, 4  ;;  %v5097_v56 = vpop.permute.xlu1 %5096  ;;  %v13733_v58 = vld [vmem:[%s20863_s17 + $0x140] sm:$0xff] }
 0x63c   : > { %v5346_v16 = vor.u32 %v5345_v6, %v5342_v26  ;;  %v5277_v3 = vmul.f32 %v5097_v56, %v17026_v37  ;;  %6704 = vmatpush.bf16.msra.mxu0 %v13734_v24 }
 0x63d   : > { %v5383_v31 = vrot.slane %v5382_v11, 4  ;;  %v5401_v57 = vsel %vm17831_vm6, %v5382_v11, %v5400_v7  ;;  %v5478_v4 = vsel %vm17844_vm2, %v5465_v55, %v5477_v54 }
 0x63e   : > { %5402 = vst [vmem:[#allocation2 + $0x10] sm:$0xc] %v5401_v57  ;;  %v5347_v19 = vrot.slane %v5346_v16, 4  ;;  %v5364_v37 = vsel %vm17854_vm14, %v5346_v16, %v5363_v28  ;;  %v5309_v39 = vpack.c.bf16 %v5277_v3, %v5277_v3  ;;  %v5461_v3 = vshll.u32 %v17821_v50, 16  ;;  %v5531_v57 = vld [vmem:[#allocation2 + $0x34] sm:$0xc] }
 0x63f   : > { %v5392_v36 = vsel %vm17860_vm4, %v5383_v31, %v17777_v27  ;;  %5479 = vst [vmem:[#allocation2 + $0x2c] sm:$0x1] %v5478_v4  ;;  %v14073_v27 = vld [vmem:[#allocation2] sm:$0xf0] }
 0x640   : > { %5403 = vst [vmem:[#allocation2 + $0x14] sm:$0xf] %v5392_v36  ;;  %v5356_v43 = vsel %vm17871_vm8, %v5347_v19, %v17746_v18  ;;  %v5413_v9 = vshll.u32 %v5309_v39, 16  ;;  %v5416_v51 = vshrl.u32 %v5309_v39, 16  ;;  %14159 = vset.pattern.permute.xlu2 %v17656_v47  ;;  %v14075_v26 = vor.u32 %v14074_v12, %v14073_v27  ;;  %6705 = vmatpush.bf16.msra.mxu0 %v13733_v58  ;;  %v13706_v12 = vld [vmem:[%s20863_s17 + $0x70] sm:$0xff] }
 0x641   : > { %5365 = vst [vmem:[#allocation2 + $0x8] sm:$0xe] %v5364_v37  ;;  %14160 = vset.pattern.permute.xlu1 %v17661_v53  ;;  %6354 = vmatpush.bf16.msrb.mxu1 %v13706_v12 }
 0x642   : > { %5366 = vst [vmem:[#allocation2 + $0xc] sm:$0xf] %v5356_v43  ;;  %v5415_v18 = vrot.slane %v5413_v9, 5  ;;  %v5418_v41 = vrot.slane %v5416_v51, 4  ;;  %v5129_v7 = vpop.permute.xlu0 %5128  ;;  %v5136_v45 = vpop.permute.xlu2 %5135  ;;  %v6016_v19 = vrot.slane %v14075_v26, 1  ;;  %v5463_v43 = vor.u32 %v5461_v3, %v17835_v52 }
 0x643   : > { %v5282_v47 = vmul.f32 %v5129_v7, %v17094_v38  ;;  %v5283_v49 = vmul.f32 %v5136_v45, %v17109_v48  ;;  %v5110_v34 = vpop.permute.xlu1 %5109  ;;  %v5471_v7 = vld [vmem:[#allocation2 + $0x24] sm:$0xf] }
 0x644   : > { %v5419_v54 = vor.u32 %v5418_v41, %v5415_v18  ;;  %v5438_v53 = vsel %vm17892_vm15, %v5415_v18, %v5437_v10  ;;  %v5279_v40 = vmul.f32 %v5110_v34, %v17068_v14  ;;  %v5506_v34 = vld [vmem:[#allocation2 + $0x34] sm:$0x3] }
 0x645   : > { %5439 = vst [vmem:[#allocation2 + $0x18] sm:$0x8] %v5438_v53  ;;  %v5314_v38 = vpack.c.bf16 %v5282_v47, %v5282_v47  ;;  %v5315_v48 = vpack.c.bf16 %v5283_v49, %v5283_v49  ;;  %v6749_v62 = vld [vmem:[#allocation2 + $0x10] sm:$0xc] }
 0x646   : > { %v5420_v11 = vrot.slane %v5419_v54, 4  ;;  %v5311_v55 = vpack.c.bf16 %v5279_v40, %v5279_v40 }
 0x647   : > { %v5490_v28 = vshrl.u32 %v5314_v38, 16  ;;  %v5493_v56 = vshll.u32 %v5314_v38, 16  ;;  %v5510_v16 = vshrl.u32 %v5315_v48, 16  ;;  %v5513_v14 = vshll.u32 %v5315_v48, 16  ;;  %v17915_v8 = vld [vmem:[#allocation2 + $0x10] sm:$0xff] }
 0x648   : > { %v5425_v31 = vsel %vm17906_vm0, %v5420_v11, %v17800_v29  ;;  %v5450_v4 = vshrl.u32 %v5311_v55, 16  ;;  %5265 = vperm.xlu2 %14159, %v5260_v44   ;;  %v5965_v37 = vld [vmem:[#allocation2 + $0x8] sm:$0xe]  ;;  %v5453_v10 = vshll.u32 %v5311_v55, 16 }
 0x649   : > { %5440 = vst [vmem:[#allocation2 + $0x1c] sm:$0xf] %v5425_v31  ;;  %v5492_v39 = vrot.slane %v5490_v28, 6  ;;  %v5495_v42 = vrot.slane %v5493_v56, 7  ;;  %v5512_v24 = vrot.slane %v5510_v16, 5  ;;  %v5515_v36 = vrot.slane %v5513_v14, 6  ;;  %5271 = vperm.xlu1 %14160, %v5260_v44  }
 0x64a   : > { %v5452_v29 = vrot.slane %v5450_v4, 7  ;;  %v5149_v9 = vpop.permute.xlu2 %5148  ;;  %v17924_v51 = vld [vmem:[#allocation2 + $0x8] sm:$0xff]   ;;  %v5976_v27 = vunpack.c.l.b16 %v5965_v37  ;;  %v5560_v16 = vld [vmem:[#allocation2 + $0x3c] sm:$0x8] }
 0x64b   : > { %v17929_v18 = vor.u32 %v5495_v42, %v5492_v39  ;;  %v17931_v41 = vor.u32 %v5515_v36, %v5512_v24  ;;  %v5285_v45 = vmul.f32 %v5149_v9, %v17128_v2  ;;  %v5123_v47 = vpop.permute.xlu1 %5122  ;;  %v6017_v49 = vrot.slane %v17924_v51, 1  ;;  %v6393_v44 = vld [vmem:[#allocation2 + $0x8] sm:$0xc] }
 0x64c   : > { %v5455_v58 = vor.u32 %v5453_v10, %v5452_v29  ;;  %v5456_v54 = vrot.slane %v5452_v29, 4  ;;  %v5281_v53 = vmul.f32 %v5123_v47, %v17098_v61  ;;  %v13965_v40 = vunpack.c.h.b16 %v17924_v51 }
 0x64d   : > { %v5498_v26 = vrot.slane %v17929_v18, 4  ;;  %v5532_v38 = vsel %vm17831_vm6, %v17931_v41, %v5531_v57  ;;  %v5317_v48 = vpack.c.bf16 %v5285_v45, %v5285_v45  ;;  %v17948_v2 = vrot.slane %v17915_v8, 1 }
 0x64e   : > { %5533 = vst [vmem:[#allocation2 + $0x34] sm:$0xc] %v5532_v38  ;;  %v5464_v11 = vsel %vm17920_vm13, %v5456_v54, %v5463_v43  ;;  %v5472_v61 = vsel %vm17935_vm1, %v5455_v58, %v5471_v7  ;;  %v5313_v55 = vpack.c.bf16 %v5281_v53, %v5281_v53  ;;  %v6018_v28 = vsel %vm21129_vm12, %v6016_v19, %v6017_v49  ;;  %v5502_v43 = vld [vmem:[#allocation2 + $0x2c] sm:$0xe] }
 0x64f   : > { %v5507_v56 = vsel %vm17753_vm10, %v5498_v26, %v5506_v34  ;;  %5473 = vst [vmem:[#allocation2 + $0x24] sm:$0xf] %v5472_v61  ;;  %v5539_v14 = vshll.u32 %v5317_v48, 16  ;;  %v5542_v3 = vshrl.u32 %v5317_v48, 16  ;;  %6148 = vmatmul.bf16.vlgmr.msra.gmra.mxu3 %v6018_v28  ;;  %v5980_v31 = vpack.c.b16 %v13965_v40, %v5976_v27  ;;  %v13705_v54 = vld [vmem:[%s20863_s17 + $0x68] sm:$0xff] }
 0x650   : > { %5508 = vst [vmem:[#allocation2 + $0x34] sm:$0x3] %v5507_v56  ;;  %v5481_v57 = vshrl.u32 %v5313_v55, 16  ;;  %v5484_v4 = vshll.u32 %v5313_v55, 16  ;;  %v6398_v37 = vunpack.c.l.b16 %v6393_v44  ;;  %v5890_v39 = vshll.u32 %v17915_v8, 16  ;;  %v17968_v58 = vld [vmem:[#allocation2 + $0x18] sm:$0xff]  ;;  %6355 = vmatpush.bf16.msrb.mxu1 %v13705_v54 }
 0x651   : > { %5474 = vst [vmem:[#allocation2 + $0x28] sm:$0xf] %v5464_v11  ;;  %v5541_v42 = vrot.slane %v5539_v14, 5  ;;  %v5544_v24 = vrot.slane %v5542_v3, 4  ;;  %v6019_v36 = vrot.slane %v5980_v31, 1  ;;  %v5894_v19 = vshrl.u32 %v17915_v8, 16 }
 0x652   : > { %v5483_v29 = vrot.slane %v5481_v57, 6  ;;  %v5486_v10 = vrot.slane %v5484_v4, 7  ;;  %v5162_v9 = vpop.permute.xlu0 %5161  ;;  %v17961_v12 = vrot.slane %v5890_v39, 1  ;;  %v6458_v7 = vshrl.u32 %v5980_v31, 16  ;;  %v13698_v8 = vld [vmem:[%s20863_s17 + $0x30] sm:$0xff] }
 0x653   : > { %v5545_v27 = vor.u32 %v5544_v24, %v5541_v42  ;;  %v5561_v45 = vsel %vm17892_vm15, %v5541_v42, %v5560_v16  ;;  %v6021_v47 = vsel %vm21130_vm7, %v6019_v36, %v17948_v2  ;;  %v5287_v34 = vmul.f32 %v5162_v9, %v17120_v63  ;;  %6315 = vmatpush.bf16.msrb.mxu3 %v13698_v8 }
 0x654   : > { %5562 = vst [vmem:[#allocation2 + $0x3c] sm:$0x8] %v5561_v45  ;;  %v5487_v53 = vor.u32 %v5486_v10, %v5483_v29  ;;  %6187 = vmatmul.bf16.vlgmr.msra.gmra.mxu1 %v6021_v47  ;;  %v6399_v26 = vpack.c.b16 %v13965_v40, %v6398_v37  ;;  %v6460_v38 = vrot.slane %v6458_v7, 1  ;;  %v6461_v48 = vshll.u32 %v5980_v31, 16  ;;  %v13697_v40 = vld [vmem:[%s20863_s17 + $0x28] sm:$0xff] }
 0x655   : > { %v5517_v44 = vrot.slane %v17931_v41, 4  ;;  %v5319_v11 = vpack.c.bf16 %v5287_v34, %v5287_v34  ;;  %v6465_v63 = vrot.slane %v5894_v19, 1  ;;  %v6466_v61 = vrot.slane %v5890_v39, 2 }
 0x656   : > { %v5488_v55 = vrot.slane %v5487_v53, 4  ;;  %v5503_v28 = vsel %vm17854_vm14, %v5487_v53, %v5502_v43  ;;  %v5896_v56 = vor.u32 %v5894_v19, %v17961_v12  ;;  %v6463_v16 = vrot.slane %v6461_v48, 2  ;;  %v17995_v24 = vld [vmem:[#allocation2 + $0x20] sm:$0xff] }
 0x657   : > { %v17983_v14 = vrot.slane %v5545_v27, 4  ;;  %5504 = vst [vmem:[#allocation2 + $0x2c] sm:$0xe] %v5503_v28  ;;  %v5568_v3 = vshrl.u32 %v5319_v11, 16  ;;  %v6022_v31 = vsel %vm21131_vm9, %v6017_v49, %v17948_v2  ;;  %v5898_v57 = vshll.u32 %v17968_v58, 16  ;;  %6316 = vmatpush.bf16.msrb.mxu3 %v13697_v40 }
 0x658   : > { %v5497_v4 = vsel %vm17871_vm8, %v5488_v55, %v17929_v18  ;;  %v6464_v37 = vor.u32 %v6463_v16, %v6460_v38  ;;  %v17993_v39 = vor.u32 %v6466_v61, %v6465_v63  ;;  %v6403_v42 = vshll.u32 %v6399_v26, 16  ;;  %v5587_v49 = vld [vmem:[#allocation2 + $0x48] sm:$0xf] }
 0x659   : > { %5505 = vst [vmem:[#allocation2 + $0x30] sm:$0xf] %v5497_v4  ;;  %v17997_v36 = vrot.slane %v5568_v3, 7  ;;  %v5571_v19 = vshll.u32 %v5319_v11, 16  ;;  %v5900_v43 = vrot.slane %v5898_v57, 1  ;;  %v6401_v29 = vshrl.u32 %v6399_v26, 16 }
 0x65a   : > { %v6468_v10 = vsel %vm21132_vm5, %v6464_v37, %v17993_v39  ;;  %v5168_v9 = vpop.permute.xlu2 %5167  ;;  %v6405_v7 = vrot.slane %v6403_v42, 1  ;;  %v6023_v18 = vrot.slane %v17968_v58, 1  ;;  %v5902_v27 = vshrl.u32 %v17968_v58, 16 }
 0x65b   : > { %v5573_v45 = vor.u32 %v5571_v19, %v17997_v36  ;;  %6667 = vmatmul.bf16.vlgmr.msra.gmra.mxu2 %v6468_v10  ;;  %v5288_v47 = vmul.f32 %v5168_v9, %v17143_v23  ;;  %v5142_v34 = vpop.permute.xlu1 %5141  ;;  %vm21133_vm12 = vsmask.f32 7424  ;;  %v6487_v54 = vrot.slane %v5898_v57, 2  ;;  %v5591_v9 = vld [vmem:[#allocation2 + $0x50] sm:$0x1] }
 0x65c   : > { %v18006_v8 = vsel %vm21133_vm12, %v5896_v56, %v5900_v43  ;;  %v5284_v53 = vmul.f32 %v5142_v34, %v17105_v32  ;;  %v6406_v26 = vor.u32 %v6405_v7, %v6401_v29  ;;  %v5574_v11 = vrot.slane %v17997_v36, 4  ;;  %vm21134_vm7 = vmmov %vm21133_vm12 }
 0x65d   : > { %v6478_v38 = vshrl.u32 %v18006_v8, 16  ;;  %v6481_v48 = vshll.u32 %v18006_v8, 16  ;;  %v5588_v63 = vsel %vm17935_vm1, %v5573_v45, %v5587_v49  ;;  %v5320_v61 = vpack.c.bf16 %v5288_v47, %v5288_v47  ;;  %vm21135_vm12 = vmmov %vm21132_vm5 }
 0x65e   : > { %v5906_v23 = vshll.u32 %v17995_v24, 16  ;;  %5589 = vst [vmem:[#allocation2 + $0x48] sm:$0xf] %v5588_v63  ;;  %v5316_v55 = vpack.c.bf16 %v5284_v53, %v5284_v53  ;;  %v6407_v28 = vsel %vm21134_vm7, %v6406_v26, %v17961_v12  ;;  %v18021_v57 = vsel %vm21131_vm9, %v17948_v2, %v6023_v18 }
 0x65f   : > { %v6480_v56 = vrot.slane %v6478_v38, 1  ;;  %v6483_v32 = vrot.slane %v6481_v48, 2  ;;  %v5576_v16 = vshrl.u32 %v5320_v61, 16  ;;  %6153 = vmatmul.bf16.gmra.mxu3 %v6022_v31  ;;  %v6470_v40 = vshrl.u32 %v6407_v28, 16  ;;  %v13704_v31 = vld [vmem:[%s20863_s17 + $0x60] sm:$0xff] }
 0x660   : > { %v6473_v3 = vshll.u32 %v6407_v28, 16  ;;  %v5579_v4 = vshll.u32 %v5320_v61, 16  ;;  %v5519_v37 = vshrl.u32 %v5316_v55, 16  ;;  %v5522_v42 = vshll.u32 %v5316_v55, 16  ;;  %6356 = vmatpush.bf16.msrb.mxu1 %v13704_v31 }
 0x661   : > { %v6486_v36 = vrot.slane %v5902_v27, 1  ;;  %v5578_v19 = vrot.slane %v5576_v16, 7  ;;  %v6472_v29 = vrot.slane %v6470_v40, 1  ;;  %v18023_v10 = vor.u32 %v6483_v32, %v6480_v56  ;;  %v5535_v40 = vld [vmem:[#allocation2 + $0x3c] sm:$0x7] }
 0x662   : > { %v6475_v49 = vrot.slane %v6473_v3, 2  ;;  %v5521_v7 = vrot.slane %v5519_v37, 5  ;;  %v5524_v45 = vrot.slane %v5522_v42, 6  ;;  %v5194_v47 = vpop.permute.xlu0 %5193  ;;  %v5181_v34 = vpop.permute.xlu2 %5180  ;;  %v18032_v53 = vrot.slane %v5906_v23, 1 }
 0x663   : > { %v18028_v2 = vor.u32 %v6487_v54, %v6486_v36  ;;  %v5581_v26 = vor.u32 %v5579_v4, %v5578_v19  ;;  %v5583_v38 = vrot.slane %v5578_v19, 4  ;;  %v5155_v63 = vpop.permute.xlu1 %5154  ;;  %v5292_v61 = vmul.f32 %v5194_v47, %v17150_v21 }
 0x664   : > { %v6476_v48 = vor.u32 %v6475_v49, %v6472_v29  ;;  %v5525_v55 = vor.u32 %v5524_v45, %v5521_v7  ;;  %6192 = vmatmul.bf16.gmra.mxu1 %v18021_v57  ;;  %v5286_v28 = vmul.f32 %v5155_v63, %v17124_v22  ;;  %v5290_v56 = vmul.f32 %v5181_v34, %v17135_v0  ;;  %v18057_v29 = vld [vmem:[#allocation2 + $0x28] sm:$0xff] }
 0x665   : > { %v5904_v54 = vor.u32 %v5902_v27, %v5900_v43  ;;  %v5582_v32 = vsel %vm17920_vm13, %v5574_v11, %v5581_v26  ;;  %v5592_v16 = vsel %vm17844_vm2, %v5583_v38, %v5591_v9  ;;  %v5324_v21 = vpack.c.bf16 %v5292_v61, %v5292_v61  ;;  %v13696_v26 = vld [vmem:[%s20863_s17 + $0x20] sm:$0xff]  ;;  %v13703_v38 = vld [vmem:[%s20863_s17 + $0x58] sm:$0xff] }
 0x666   : > { %v6485_v3 = vsel %vm21132_vm5, %v6476_v48, %v18023_v10  ;;  %5590 = vst [vmem:[#allocation2 + $0x4c] sm:$0xf] %v5582_v32  ;;  %v5526_v22 = vsel %vm17860_vm4, %v5517_v44, %v5525_v55  ;;  %v5527_v4 = vrot.slane %v5525_v55, 4  ;;  %v5318_v0 = vpack.c.bf16 %v5286_v28, %v5286_v28  ;;  %v5564_v61 = vld [vmem:[#allocation2 + $0x44] sm:$0xf]  ;;  %6317 = vmatpush.bf16.msrb.mxu3 %v13696_v26 }
 0x667   : > { %6706 = vmatmul.bf16.vlgmr.msra.gmra.mxu0 %v6485_v3  ;;  %v5322_v43 = vpack.c.bf16 %v5290_v56, %v5290_v56  ;;  %5593 = vst [vmem:[#allocation2 + $0x50] sm:$0x1] %v5592_v16  ;;  %v5633_v27 = vshrl.u32 %v5324_v21, 16  ;;  %v5636_v11 = vshll.u32 %v5324_v21, 16  ;;  %v6489_v37 = vsel %vm21135_vm12, %v17993_v39, %v18028_v2  ;;  %v5649_v56 = vld [vmem:[#allocation2 + $0x60] sm:$0x7]  ;;  %6357 = vmatpush.bf16.msrb.mxu1 %v13703_v38  ;;  %vm21136_vm12 = vmmov %vm21134_vm7 }
 0x668   : > { %v18053_v42 = vsel %vm21134_vm7, %v5904_v54, %v18032_v53  ;;  %5534 = vst [vmem:[#allocation2 + $0x38] sm:$0xf] %v5526_v22  ;;  %v5536_v41 = vsel %vm17781_vm11, %v5527_v4, %v5535_v40  ;;  %v5548_v44 = vshll.u32 %v5318_v0, 16  ;;  %v5552_v36 = vshrl.u32 %v5318_v0, 16  ;;  %v5620_v21 = vld [vmem:[#allocation2 + $0x58] sm:$0x3]  ;;  %vm21137_vm7 = vmmov %vm21132_vm5 }
 0x669   : > { %v5604_v19 = vshrl.u32 %v5322_v43, 16  ;;  %5537 = vst [vmem:[#allocation2 + $0x3c] sm:$0x7] %v5536_v41  ;;  %v5635_v49 = vrot.slane %v5633_v27, 5  ;;  %v5638_v31 = vrot.slane %v5636_v11, 6  ;;  %v5607_v9 = vshll.u32 %v5322_v43, 16 }
 0x66a   : > { %v6491_v7 = vshrl.u32 %v18053_v42, 16  ;;  %v5550_v39 = vrot.slane %v5548_v44, 5  ;;  %v5554_v45 = vrot.slane %v5552_v36, 4  ;;  %v6494_v34 = vshll.u32 %v18053_v42, 16  ;;  %v13695_v11 = vld [vmem:[%s20863_s17 + $0x18] sm:$0xff] }
 0x66b   : > { %v5606_v47 = vrot.slane %v5604_v19, 6  ;;  %v18067_v48 = vor.u32 %v5638_v31, %v5635_v49  ;;  %v5609_v63 = vrot.slane %v5607_v9, 7  ;;  %6672 = vmatmul.bf16.gmra.mxu2 %v6489_v37  ;;  %v5910_v22 = vshrl.u32 %v17995_v24, 16  ;;  %6318 = vmatpush.bf16.msrb.mxu3 %v13695_v11 }
 0x66c   : > { %v5551_v55 = vsel %vm17906_vm0, %v17983_v14, %v5550_v39  ;;  %v5555_v28 = vor.u32 %v5554_v45, %v5550_v39  ;;  %v6493_v16 = vrot.slane %v6491_v7, 1  ;;  %v6496_v40 = vrot.slane %v6494_v34, 2 }
 0x66d   : > { %5563 = vst [vmem:[#allocation2 + $0x40] sm:$0xf] %v5551_v55  ;;  %v5641_v54 = vrot.slane %v18067_v48, 4  ;;  %v18073_v32 = vor.u32 %v5609_v63, %v5606_v47  ;;  %v5914_v4 = vshll.u32 %v18057_v29, 16  ;;  %v6025_v43 = vrot.slane %v17995_v24, 1  ;;  %v13768_v24 = vld [vmem:[%s20863_s17 + $0x230] sm:$0xff] }
 0x66e   : > { %v5556_v3 = vrot.slane %v5555_v28, 4  ;;  %v18089_v41 = vor.u32 %v6496_v40, %v6493_v16  ;;  %v6499_v19 = vrot.slane %v5910_v22, 1  ;;  %v6500_v49 = vrot.slane %v5906_v23, 2  ;;  %v5674_v63 = vld [vmem:[#allocation2 + $0x60] sm:$0x8]  ;;  %v13702_v40 = vld [vmem:[%s20863_s17 + $0x50] sm:$0xff] }
 0x66f   : > { %v5650_v14 = vsel %vm17781_vm11, %v5641_v54, %v5649_v56  ;;  %v5612_v0 = vrot.slane %v18073_v32, 4  ;;  %6158 = vmatmul.bf16.gmra.mxu3 %v18021_v57  ;;  %v18093_v44 = vrot.slane %v5914_v4, 1  ;;  %v6026_v31 = vsel %vm21131_vm9, %v6023_v18, %v6025_v43  ;;  %6358 = vmatpush.bf16.msrb.mxu1 %v13702_v40 }
 0x670   : > { %v5565_v27 = vsel %vm17813_vm3, %v5556_v3, %v5564_v61  ;;  %5651 = vst [vmem:[#allocation2 + $0x60] sm:$0x7] %v5650_v14  ;;  %v5912_v45 = vor.u32 %v5910_v22, %v18032_v53  ;;  %v6498_v23 = vsel %vm21132_vm5, %v18023_v10, %v18089_v41  ;;  %v5730_v3 = vld [vmem:[#allocation2 + $0x74] sm:$0xe] }
 0x671   : > { %5566 = vst [vmem:[#allocation2 + $0x44] sm:$0xf] %v5565_v27  ;;  %v5621_v37 = vsel %vm17753_vm10, %v5612_v0, %v5620_v21  ;;  %v5918_v27 = vshrl.u32 %v18057_v29, 16 }
 0x672   : > { %5622 = vst [vmem:[#allocation2 + $0x58] sm:$0x3] %v5621_v37  ;;  %v5227_v57 = vpop.permute.xlu0 %5226  ;;  %v5201_v36 = vpop.permute.xlu2 %5200  ;;  %v18113_v58 = vsel %vm21136_vm12, %v5912_v45, %v18093_v44 }
 0x673   : > { %v5297_v9 = vmul.f32 %v5227_v57, %v17196_v13  ;;  %v5293_v7 = vmul.f32 %v5201_v36, %v17168_v15  ;;  %v5175_v39 = vpop.permute.xlu1 %5174  ;;  %v18115_v15 = vor.u32 %v6500_v49, %v6499_v19  ;;  %v6504_v55 = vshrl.u32 %v18113_v58, 16  ;;  %v5616_v57 = vld [vmem:[#allocation2 + $0x50] sm:$0xe] }
 0x674   : > { %6197 = vmatmul.bf16.gmra.mxu1 %v6026_v31  ;;  %v5289_v47 = vmul.f32 %v5175_v39, %v17139_v33  ;;  %v18118_v33 = vld [vmem:[#allocation2 + $0x30] sm:$0xff]  ;;  %v6507_v16 = vshll.u32 %v18113_v58, 16 }
 0x675   : > { %v5329_v34 = vpack.c.bf16 %v5297_v9, %v5297_v9  ;;  %v18109_v26 = vpack.c.bf16 %v5293_v7, %v5293_v7  ;;  %v6502_v14 = vsel %vm21137_vm7, %v18028_v2, %v18115_v15  ;;  %v6409_v49 = vshll.u32 %v18118_v33, 16 }
 0x676   : > { %v5321_v13 = vpack.c.bf16 %v5289_v47, %v5289_v47  ;;  %v18140_v7 = vrot.slane %v18057_v29, 1  ;;  %v6506_v47 = vrot.slane %v6504_v55, 1  ;;  %v13694_v29 = vld [vmem:[%s20863_s17 + $0x10] sm:$0xff] }
 0x677   : > { %6711 = vmatmul.bf16.gmra.mxu0 %v6498_v23  ;;  %v5709_v18 = vshrl.u32 %v5329_v34, 16  ;;  %v5712_v53 = vshll.u32 %v5329_v34, 16  ;;  %v5653_v38 = vshll.u32 %v18109_v26, 16  ;;  %v6509_v23 = vrot.slane %v6507_v16, 2  ;;  %6319 = vmatpush.bf16.msrb.mxu3 %v13694_v29 }
 0x678   : > { %v5595_v61 = vshrl.u32 %v5321_v13, 16  ;;  %v5598_v10 = vshll.u32 %v5321_v13, 16 }
 0x679   : > { %v5711_v28 = vrot.slane %v5709_v18, 6  ;;  %v5714_v56 = vrot.slane %v5712_v53, 7  ;;  %v18121_v54 = vrot.slane %v5653_v38, 5  ;;  %v6512_v18 = vrot.slane %v5918_v27, 1 }
 0x67a   : > { %v5597_v21 = vrot.slane %v5595_v61, 6  ;;  %v5600_v22 = vrot.slane %v5598_v10, 7  ;;  %v5214_v0 = vpop.permute.xlu2 %5213  ;;  %v18148_v53 = vor.u32 %v5918_v27, %v18093_v44  ;;  %v6513_v38 = vrot.slane %v5914_v4, 2  ;;  %v13769_v4 = vld [vmem:[%s20863_s17 + $0x238] sm:$0xff]  ;;  %v5701_v44 = vld [vmem:[#allocation2 + $0x6c] sm:$0xf] }
 0x67b   : > { %v18131_v11 = vor.u32 %v5714_v56, %v5711_v28  ;;  %v5675_v37 = vsel %vm17892_vm15, %v18121_v54, %v5674_v63  ;;  %6677 = vmatmul.bf16.gmra.mxu2 %v6502_v14  ;;  %v5295_v36 = vmul.f32 %v5214_v0, %v17179_v1  ;;  %v5188_v19 = vpop.permute.xlu1 %5187  ;;  %v18154_v63 = vrot.slane %v6409_v49, 1  ;;  %v5645_v14 = vld [vmem:[#allocation2 + $0x58] sm:$0xc]  ;;  %v21139_v0 = vld [vmem:[#allocation22_spill] sm:$0xff] }
 0x67c   : > { %5676 = vst [vmem:[#allocation2 + $0x60] sm:$0x8] %v5675_v37  ;;  %v5601_v9 = vor.u32 %v5600_v22, %v5597_v21  ;;  %v5291_v2 = vmul.f32 %v5188_v19, %v17154_v30  ;;  %v6392_v21 = vld [vmem:[#allocation2 + $0x38] sm:$0x3]  ;;  %7263 = vmatpush.bf16.msrb.mxu2 %v13769_v4 }
 0x67d   : > { %v5731_v39 = vsel %vm17854_vm14, %v18131_v11, %v5730_v3  ;;  %v5327_v45 = vpack.c.bf16 %v5295_v36, %v5295_v36  ;;  %v18188_v36 = vor.u32 %v6513_v38, %v6512_v18  ;;  %v6413_v38 = vshrl.u32 %v18118_v33, 16 }
 0x67e   : > { %5732 = vst [vmem:[#allocation2 + $0x74] sm:$0xe] %v5731_v39  ;;  %v5602_v1 = vrot.slane %v5601_v9, 4  ;;  %v5617_v34 = vsel %vm17854_vm14, %v5601_v9, %v5616_v57  ;;  %v5323_v13 = vpack.c.bf16 %v5291_v2, %v5291_v2  ;;  %vm21138_vm14 = vmmov %vm21131_vm9  ;;  %v6395_v39 = vunpack.c.l.b16 %v6392_v21 }
 0x67f   : > { %5618 = vst [vmem:[#allocation2 + $0x50] sm:$0xe] %v5617_v34  ;;  %v5682_v30 = vshrl.u32 %v5327_v45, 16  ;;  %6163 = vmatmul.bf16.gmra.mxu3 %v6026_v31  ;;  %v5685_v61 = vshll.u32 %v5327_v45, 16  ;;  %v18161_v31 = vor.u32 %v6509_v23, %v6506_v47  ;;  %v18176_v40 = vsel %vm21138_vm14, %v6025_v43, %v18140_v7  ;;  %vm21140_vm9 = vmmov %vm21136_vm12 }
 0x680   : > { %v5611_v25 = vsel %vm17871_vm8, %v5602_v1, %v18073_v32  ;;  %v5624_v10 = vshrl.u32 %v5323_v13, 16  ;;  %v5627_v55 = vshll.u32 %v5323_v13, 16  ;;  %v13701_v32 = vld [vmem:[%s20863_s17 + $0x48] sm:$0xff]  ;;  %v6412_v37 = vsel %vm21140_vm9, %v18148_v53, %v18154_v63  ;;  %7264 = vmatpush.bf16.msrb.mxu2 %v13768_v24  ;;  %vm21141_vm12 = vmmov %vm21132_vm5 }
 0x681   : > { %5619 = vst [vmem:[#allocation2 + $0x54] sm:$0xf] %v5611_v25  ;;  %v18159_v28 = vrot.slane %v5682_v30, 7  ;;  %v5656_v43 = vshrl.u32 %v18109_v26, 16  ;;  %v6511_v9 = vsel %vm21132_vm5, %v18089_v41, %v18161_v31  ;;  %6359 = vmatpush.bf16.msrb.mxu1 %v13701_v32  ;;  %v6517_v47 = vshrl.u32 %v6412_v37, 16  ;;  %v13693_v1 = vld [vmem:[%s20863_s17 + $0x8] sm:$0xff]  ;;  %vm21144_vm7 = vmmov %vm21138_vm14 }
 0x682   : > { %v5626_v56 = vrot.slane %v5624_v10, 5  ;;  %v5629_v16 = vrot.slane %v5627_v55, 6  ;;  %v5259_v3 = vpop.permute.xlu0 %5258  ;;  %v6520_v23 = vshll.u32 %v6412_v37, 16  ;;  %v13777_v41 = vld [vmem:[%s20863_s17 + $0x278] sm:$0xff]  ;;  %v13767_v25 = vld [vmem:[%s20863_s17 + $0x228] sm:$0xff]  ;;  %6320 = vmatpush.bf16.msrb.mxu3 %v13693_v1  ;;  %v18212_v55 = vpack.c.b16 %v6395_v39, %v6395_v39  ;;  %vm21145_vm14 = vmmov %vm21132_vm5 }
 0x683   : > { %v5687_v22 = vor.u32 %v5685_v61, %v18159_v28  ;;  %v5302_v27 = vmul.f32 %v5259_v3, %v21139_v0  ;;  %v5658_v18 = vrot.slane %v5656_v43, 4  ;;  %7302 = vmatpush.bf16.msrb.mxu0 %v13777_v41  ;;  %v6515_v29 = vsel %vm21141_vm12, %v18115_v15, %v18188_v36  ;;  %v5792_v0 = vld [vmem:[#allocation2 + $0x8c] sm:$0xf]  ;;  %v5968_v15 = vld [vmem:[#allocation2 + $0x38] sm:$0x1]  ;;  %v13766_v43 = vld [vmem:[%s20863_s17 + $0x220] sm:$0xff] }
 0x684   : > { %v5630_v57 = vor.u32 %v5629_v16, %v5626_v56  ;;  %6202 = vmatmul.bf16.gmra.mxu1 %v18176_v40  ;;  %v6522_v32 = vrot.slane %v6520_v23, 2  ;;  %v21142_v16 = vld [vmem:[#allocation11_spill] sm:$0xff]  ;;  %v6525_v24 = vrot.slane %v6413_v38, 1  ;;  %7265 = vmatpush.bf16.msrb.mxu2 %v13767_v25 }
 0x685   : > { %v5702_v19 = vsel %vm17935_vm1, %v5687_v22, %v5701_v44  ;;  %v5334_v2 = vpack.c.bf16 %v5302_v27, %v5302_v27  ;;  %v6029_v44 = vrot.slane %v18118_v33, 1  ;;  %v5834_v22 = vld [vmem:[#allocation2 + $0x30] sm:$0x1]  ;;  %v21143_v27 = vld [vmem:[#allocation12_spill] sm:$0xff] }
 0x686   : > { %5703 = vst [vmem:[#allocation2 + $0x6c] sm:$0xf] %v5702_v19  ;;  %v5631_v45 = vrot.slane %v5630_v57, 4  ;;  %v5646_v26 = vsel %vm17831_vm6, %v5630_v57, %v5645_v14  ;;  %v5659_v14 = vor.u32 %v5658_v18, %v18121_v54  ;;  %v6415_v18 = vor.u32 %v6413_v38, %v18154_v63  ;;  %v13765_v63 = vld [vmem:[%s20863_s17 + $0x218] sm:$0xff] }
 0x687   : > { %6716 = vmatmul.bf16.gmra.mxu0 %v6511_v9  ;;  %5647 = vst [vmem:[#allocation2 + $0x58] sm:$0xc] %v5646_v26  ;;  %v5776_v34 = vshll.u32 %v5334_v2, 16  ;;  %v5780_v13 = vshrl.u32 %v5334_v2, 16  ;;  %v6526_v9 = vrot.slane %v6409_v49, 2  ;;  %v6417_v2 = vshll.u32 %v18212_v55, 16 }
 0x688   : > { %v5640_v30 = vsel %vm17860_vm4, %v5631_v45, %v18067_v48  ;;  %v6519_v48 = vrot.slane %v6517_v47, 1  ;;  %v6030_v54 = vsel %vm21144_vm7, %v18140_v7, %v6029_v44  ;;  %v5872_v26 = vunpack.c.l.b16 %v5834_v22  ;;  %7266 = vmatpush.bf16.msrb.mxu2 %v13766_v43  ;;  %v5734_v43 = vld [vmem:[#allocation2 + $0x7c] sm:$0x3] }
 0x689   : > { %5648 = vst [vmem:[#allocation2 + $0x5c] sm:$0xf] %v5640_v30  ;;  %v18210_v61 = vrot.slane %v5776_v34, 5  ;;  %v5782_v10 = vrot.slane %v5780_v13, 4  ;;  %v5979_v34 = vunpack.c.l.b16 %v5968_v15  ;;  %v5660_v49 = vrot.slane %v5659_v14, 4  ;;  %v21146_v14 = vld [vmem:[#allocation24_spill] sm:$0xff] }
 0x68a   : > { %v5233_v4 = vpop.permute.xlu2 %5232  ;;  %v18228_v45 = vor.u32 %v6522_v32, %v6519_v48  ;;  %v5688_v15 = vrot.slane %v18159_v28, 4  ;;  %v13772_v28 = vld [vmem:[%s20863_s17 + $0x250] sm:$0xff] }
 0x68b   : > { %v5783_v56 = vor.u32 %v5782_v10, %v18210_v61  ;;  %6682 = vmatmul.bf16.gmra.mxu2 %v6515_v29  ;;  %v5298_v3 = vmul.f32 %v5233_v4, %v21142_v16  ;;  %v5207_v21 = vpop.permute.xlu1 %5206  ;;  %v18238_v10 = vor.u32 %v6526_v9, %v6525_v24  ;;  %v18242_v29 = vrot.slane %v6417_v2, 1  ;;  %v13776_v4 = vld [vmem:[%s20863_s17 + $0x270] sm:$0xff] }
 0x68c   : > { %v5294_v37 = vmul.f32 %v5207_v21, %v21143_v27  ;;  %v6524_v32 = vsel %vm21145_vm14, %v18161_v31, %v18228_v45  ;;  %v18256_v16 = vpack.c.b16 %v5872_v26, %v5872_v26  ;;  %v5716_v21 = vrot.slane %v18131_v11, 4  ;;  %7303 = vmatpush.bf16.msrb.mxu0 %v13776_v4  ;;  %v13775_v31 = vld [vmem:[%s20863_s17 + $0x268] sm:$0xff]  ;;  %v18268_v24 = vld [vmem:[#allocation2 + $0x14] sm:$0xf]  ;;  %7267 = vmatpush.bf16.msrb.mxu2 %v13765_v63 }
 0x68d   : > { %v5784_v57 = vrot.slane %v5783_v56, 4  ;;  %v5330_v19 = vpack.c.bf16 %v5298_v3, %v5298_v3  ;;  %v13692_v3 = vld [vmem:[%s20863_s17] sm:$0xff]  ;;  %v6421_v63 = vshrl.u32 %v18212_v55, 16 }
 0x68e   : > { %v5326_v39 = vpack.c.bf16 %v5294_v37, %v5294_v37  ;;  %v18263_v37 = vpack.c.b16 %v5979_v34, %v5979_v34  ;;  %v6420_v34 = vsel %vm21140_vm9, %v6415_v18, %v18242_v29  ;;  %6321 = vmatpush.bf16.msrb.mxu3 %v13692_v3  ;;  %v21154_v55 = vld [vmem:[#allocation21_spill] sm:$0xff] }
 0x68f   : > { %v5793_v47 = vsel %vm17813_vm3, %v5784_v57, %v5792_v0  ;;  %v5718_v23 = vshrl.u32 %v5330_v19, 16  ;;  %v5721_v1 = vshll.u32 %v5330_v19, 16  ;;  %6168 = vmatmul.bf16.gmra.mxu3 %v18176_v40  ;;  %v13700_v40 = vld [vmem:[%s20863_s17 + $0x40] sm:$0xff]  ;;  %v21147_v19 = vld [vmem:[#allocation7_spill] sm:$0xff] }
 0x690   : > { %5794 = vst [vmem:[#allocation2 + $0x8c] sm:$0xf] %v5793_v47  ;;  %v5662_v13 = vshll.u32 %v5326_v39, 16  ;;  %v5666_v41 = vshrl.u32 %v5326_v39, 16  ;;  %6360 = vmatpush.bf16.msrb.mxu1 %v13700_v40  ;;  %v13764_v39 = vld [vmem:[%s20863_s17 + $0x210] sm:$0xff]  ;;  %7304 = vmatpush.bf16.msrb.mxu0 %v13775_v31  ;;  %v6033_v31 = vrot.slane %v18263_v37, 1 }
 0x691   : > { %v5720_v30 = vrot.slane %v5718_v23, 6  ;;  %v5723_v25 = vrot.slane %v5721_v1, 7  ;;  %v5678_v23 = vld [vmem:[#allocation2 + $0x68] sm:$0xf]  ;;  %7268 = vmatpush.bf16.msrb.mxu2 %v13764_v39  ;;  %v13753_v37 = vld [vmem:[%s20863_s17 + $0x1b8] sm:$0xff]  ;;  %v5922_v39 = vshll.u32 %v18256_v16, 16 }
 0x692   : > { %v5664_v38 = vrot.slane %v5662_v13, 5  ;;  %v5668_v48 = vrot.slane %v5666_v41, 4  ;;  %v5246_v56 = vpop.permute.xlu2 %5245  ;;  %7021 = vmatpush.bf16.msra.mxu3 %v13753_v37 }
 0x693   : > { %v5724_v22 = vor.u32 %v5723_v25, %v5720_v30  ;;  %v5300_v0 = vmul.f32 %v5246_v56, %v21146_v14  ;;  %v5220_v27 = vpop.permute.xlu1 %5219  ;;  %v6777_v30 = vunpack.c.l.b16 %v18268_v24 }
 0x694   : > { %v5665_v11 = vsel %vm17906_vm0, %v5660_v49, %v5664_v38  ;;  %v5669_v57 = vor.u32 %v5668_v48, %v5664_v38  ;;  %6207 = vmatmul.bf16.gmra.mxu1 %v6030_v54  ;;  %v5296_v9 = vmul.f32 %v5220_v27, %v21147_v19  ;;  %v18281_v49 = vld [vmem:[#allocation2] sm:$0xff]   ;;  %v6530_v48 = vshrl.u32 %v6420_v34, 16 }
 0x695   : > { %v5725_v26 = vsel %vm17871_vm8, %v5716_v21, %v5724_v22  ;;  %v5726_v47 = vrot.slane %v5724_v22, 4  ;;  %5677 = vst [vmem:[#allocation2 + $0x64] sm:$0xf] %v5665_v11  ;;  %v5332_v1 = vpack.c.bf16 %v5300_v0, %v5300_v0  ;;  %v5875_v41 = vshrl.u32 %v18281_v49, 16  ;;  %vm21148_vm8 = vmmov %vm21132_vm5  ;;  %v13774_v21 = vld [vmem:[%s20863_s17 + $0x260] sm:$0xff]  ;;  %7269 = vmatpush.bf16.msrb.mxu2 %v13763_v60 }
 0x696   : > { %5733 = vst [vmem:[#allocation2 + $0x78] sm:$0xf] %v5725_v26  ;;  %v5670_v54 = vrot.slane %v5669_v57, 4  ;;  %v5328_v13 = vpack.c.bf16 %v5296_v9, %v5296_v9  ;;  %v6528_v17 = vsel %vm21148_vm8, %v18188_v36, %v18238_v10  ;;  %v6776_v22 = vunpack.c.l.b16 %v6749_v62  ;;  %v18304_v36 = vld [vmem:[#allocation2 + $0x18] sm:$0xff]  ;;  %v5705_v57 = vld [vmem:[#allocation2 + $0x74] sm:$0x1]  ;;  %7305 = vmatpush.bf16.msrb.mxu0 %v13774_v21  ;;  %vm21151_vm5 = vmmov %vm21140_vm9 }
 0x697   : > { %6721 = vmatmul.bf16.gmra.mxu0 %v6524_v32  ;;  %v5735_v25 = vsel %vm17753_vm10, %v5726_v47, %v5734_v43  ;;  %v5747_v40 = vshrl.u32 %v5332_v1, 16  ;;  %v5750_v4 = vshll.u32 %v5332_v1, 16  ;;  %v6533_v32 = vshll.u32 %v6420_v34, 16  ;;  %v13761_v43 = vld [vmem:[%s20863_s17 + $0x1f8] sm:$0xff]  ;;  %v5763_v47 = vld [vmem:[#allocation2 + $0x84] sm:$0x7]  ;;  %vm21149_vm10 = vmmov %vm21144_vm7 }
 0x698   : > { %5736 = vst [vmem:[#allocation2 + $0x7c] sm:$0x3] %v5735_v25  ;;  %v5679_v18 = vsel %vm17813_vm3, %v5670_v54, %v5678_v23  ;;  %v5690_v38 = vshrl.u32 %v5328_v13, 16  ;;  %v5693_v0 = vshll.u32 %v5328_v13, 16  ;;  %v6031_v27 = vrot.slane %v18256_v16, 1  ;;  %v13773_v9 = vld [vmem:[%s20863_s17 + $0x258] sm:$0xff]  ;;  %7060 = vmatpush.bf16.msra.mxu1 %v13761_v43  ;;  %vm21150_vm3 = vmmov %vm21144_vm7 }
 0x699   : > { %5680 = vst [vmem:[#allocation2 + $0x68] sm:$0xf] %v5679_v18  ;;  %v5749_v56 = vrot.slane %v5747_v40, 5  ;;  %v5752_v3 = vrot.slane %v5750_v4, 6  ;;  %v5877_v19 = vshll.u32 %v18281_v49, 16  ;;  %v6789_v26 = vpack.c.b16 %v6777_v30, %v6776_v22  ;;  %v13762_v16 = vld [vmem:[%s20863_s17 + $0x200] sm:$0xff]  ;;  %vm21155_vm12 = vmmov %vm21148_vm8 }
 0x69a   : > { %v5692_v14 = vrot.slane %v5690_v38, 7  ;;  %v18320_v34 = vrot.slane %v6421_v63, 1  ;;  %v18324_v54 = vrot.slane %v6417_v2, 2  ;;  %v6532_v62 = vrot.slane %v6530_v48, 1  ;;  %v18330_v40 = vld [vmem:[#allocation2 + $0x20] sm:$0xff]  ;;  %7306 = vmatpush.bf16.msrb.mxu0 %v13773_v9  ;;  %7270 = vmatpush.bf16.msrb.mxu2 %v13762_v16  ;;  %vm21157_vm14 = vmmov %vm21151_vm5 }
 0x69b   : > { %v18306_v11 = vor.u32 %v5752_v3, %v5749_v56  ;;  %6687 = vmatmul.bf16.gmra.mxu2 %v6528_v17  ;;  %v6535_v25 = vrot.slane %v6533_v32, 2  ;;  %v5924_v4 = vrot.slane %v5922_v39, 1  ;;  %v6032_v38 = vsel %vm21149_vm10, %v18140_v7, %v6031_v27  ;;  %vm21158_vm9 = vmmov %vm21151_vm5 }
 0x69c   : > { %v5695_v23 = vor.u32 %v5693_v0, %v5692_v14  ;;  %v5697_v1 = vrot.slane %v5692_v14, 4  ;;  %v6034_v48 = vsel %vm21150_vm3, %v6029_v44, %v6033_v31  ;;  %v6887_v56 = vrot.slane %v6789_v26, 2  ;;  %v21153_v31 = vld [vmem:[#allocation25_spill] sm:$0xff] }
 0x69d   : > { %v5755_v13 = vrot.slane %v18306_v11, 4  ;;  %v6888_v7 = vrot.slane %v18304_v36, 2  ;;  %v6540_v33 = vor.u32 %v18324_v54, %v18320_v34  ;;  %v5879_v35 = vrot.slane %v5877_v19, 1  ;;  %v13771_v19 = vld [vmem:[%s20863_s17 + $0x248] sm:$0xff] }
 0x69e   : > { %v5696_v2 = vsel %vm17920_vm13, %v5688_v15, %v5695_v23  ;;  %v5706_v18 = vsel %vm17844_vm2, %v5697_v1, %v5705_v57  ;;  %v18350_v15 = vsel %vm21151_vm5, %v18148_v53, %v5924_v4  ;;  %v5882_v44 = vshll.u32 %v17924_v51, 16  ;;  %7307 = vmatpush.bf16.msrb.mxu0 %v13772_v28  ;;  %v18384_v34 = vld [vmem:[#allocation2 + $0x28] sm:$0xff] }
 0x69f   : > { %v5764_v32 = vsel %vm17781_vm11, %v5755_v13, %v5763_v47  ;;  %5704 = vst [vmem:[#allocation2 + $0x70] sm:$0xf] %v5696_v2  ;;  %6173 = vmatmul.bf16.gmra.mxu3 %v6032_v38  ;;  %v6802_v3 = vshll.u32 %v6789_v26, 16  ;;  %v18356_v17 = vor.u32 %v6535_v25, %v6532_v62  ;;  %vm21152_vm11 = vcmask 1045504   ;;  %v7111_v2 = vld [vmem:[#allocation2 + $0x10] sm:$0x8] }
 0x6a0   : > { %5765 = vst [vmem:[#allocation2 + $0x84] sm:$0x7] %v5764_v32  ;;  %v18359_v21 = vsel %vm21152_vm11, %v6887_v56, %v6888_v7  ;;  %v6807_v53 = vshll.u32 %v18304_v36, 16  ;;  %v6815_v60 = vshll.u32 %v18330_v40, 16  ;;  %v18366_v14 = vor.u32 %v6421_v63, %v18242_v29  ;;  %vm21156_vm7 = vmmov %vm21152_vm11  ;;  %v18393_v38 = vld [vmem:[#allocation2 + $0x38] sm:$0xff]  }
 0x6a1   : > { %5707 = vst [vmem:[#allocation2 + $0x74] sm:$0x1] %v5706_v18  ;;  %v6800_v0 = vshrl.u32 %v6789_v26, 16  ;;  %v6804_v51 = vrot.slane %v6802_v3, 1  ;;  %v6811_v27 = vshrl.u32 %v18304_v36, 16  ;;  %v6893_v39 = vrot.slane %v18330_v40, 2  ;;  %vm21159_vm10 = vmmov %vm21156_vm7 }
 0x6a2   : > { %v5266_v22 = vpop.permute.xlu2 %5265  ;;  %v6809_v9 = vrot.slane %v6807_v53, 1  ;;  %v6817_v37 = vrot.slane %v6815_v60, 1  ;;  %v18377_v63 = vor.u32 %v5879_v35, %v5875_v41  ;;  %v18379_v26 = vrot.slane %v5882_v44, 1  ;;  %7308 = vmatpush.bf16.msrb.mxu0 %v13771_v19  ;;  %v13770_v35 = vld [vmem:[%s20863_s17 + $0x240] sm:$0xff]  ;;  %v13752_v44 = vld [vmem:[%s20863_s17 + $0x1b0] sm:$0xff]  ;;  %vm21161_vm3 = vmmov %vm21156_vm7 }
 0x6a3   : > { %v5303_v43 = vmul.f32 %v5266_v22, %v21153_v31  ;;  %v5240_v57 = vpop.permute.xlu1 %5239  ;;  %v6805_v47 = vor.u32 %v6804_v51, %v6800_v0  ;;  %v6537_v23 = vsel %vm21155_vm12, %v18228_v45, %v18356_v17  ;;  %v18387_v16 = vsel %vm21156_vm7, %v6888_v7, %v6893_v39  ;;  %v13760_v7 = vld [vmem:[%s20863_s17 + $0x1f0] sm:$0xff]  ;;  %7022 = vmatpush.bf16.msra.mxu3 %v13752_v44  ;;  %v8219_v31 = vld [vmem:[#allocation2 + $0x38] sm:$0xc]  ;;  %vm21165_vm11 = vmmov %vm21148_vm8 }
 0x6a4   : > { %6212 = vmatmul.bf16.gmra.mxu1 %v6034_v48  ;;  %v5299_v29 = vmul.f32 %v5240_v57, %v21154_v55  ;;  %v6813_v54 = vor.u32 %v6811_v27, %v6809_v9  ;;  %v6543_v62 = vshrl.u32 %v18366_v14, 16  ;;  %v6546_v41 = vshll.u32 %v18366_v14, 16  ;;  %v5759_v57 = vld [vmem:[#allocation2 + $0x7c] sm:$0xc]  ;;  %vm21169_vm7 = vmmov %vm21161_vm3 }
 0x6a5   : > { %v5335_v1 = vpack.c.bf16 %v5303_v43, %v5303_v43  ;;  %v6810_v25 = vsel %vm21157_vm14, %v6805_v47, %v6809_v9  ;;  %v6819_v48 = vshrl.u32 %v18330_v40, 16  ;;  %v6541_v56 = vsel %vm21148_vm8, %v18238_v10, %v6540_v33  ;;  %v5815_v33 = vld [vmem:[#allocation2 + $0x90] sm:$0xf]  ;;  %7061 = vmatpush.bf16.msra.mxu1 %v13760_v7  ;;  %v13759_v9 = vld [vmem:[%s20863_s17 + $0x1e8] sm:$0xff]  ;;  %vm21174_vm8 = vmmov %vm21161_vm3 }
 0x6a6   : > { %v5331_v13 = vpack.c.bf16 %v5299_v29, %v5299_v29  ;;  %v6818_v45 = vsel %vm21158_vm9, %v6813_v54, %v6817_v37  ;;  %v6890_v18 = vrot.slane %v6810_v25, 2  ;;  %v6823_v22 = vshll.u32 %v18384_v34, 16  ;;  %7309 = vmatpush.bf16.msrb.mxu0 %v13770_v35  ;;  %v21160_v54 = vld [vmem:[#allocation23_spill] sm:$0xff]  ;;  %vm21171_vm9 = vmmov %vm21161_vm3 }
 0x6a7   : > { %6726 = vmatmul.bf16.gmra.mxu0 %v6537_v23  ;;  %v5796_v4 = vshrl.u32 %v5335_v1, 16  ;;  %v6891_v3 = vrot.slane %v6818_v45, 2  ;;  %v5799_v60 = vshll.u32 %v5335_v1, 16  ;;  %v6897_v10 = vrot.slane %v18384_v34, 2  ;;  %v18419_v23 = vld [vmem:[#allocation2 + $0x40] sm:$0xff]  ;;  %7023 = vmatpush.bf16.msra.mxu3 %v13751_v46 }
 0x6a8   : > { %v5738_v32 = vshrl.u32 %v5331_v13, 16  ;;  %v5741_v28 = vshll.u32 %v5331_v13, 16  ;;  %v7113_v51 = vunpack.c.l.b16 %v7111_v2  ;;  %v6821_v55 = vor.u32 %v6819_v48, %v6817_v37 }
 0x6a9   : > { %v18407_v53 = vrot.slane %v5796_v4, 7  ;;  %v18412_v27 = vsel %vm21159_vm10, %v6890_v18, %v6891_v3  ;;  %v6825_v29 = vrot.slane %v6823_v22, 1  ;;  %v14003_v47 = vunpack.c.h.b16 %v18393_v38  ;;  %v18429_v18 = vld [vmem:[#allocation2 + $0x30] sm:$0xff]  ;;  %7062 = vmatpush.bf16.msra.mxu1 %v13759_v9  ;;  %v5788_v22 = vld [vmem:[#allocation2 + $0x84] sm:$0x8] }
 0x6aa   : > { %v5740_v14 = vrot.slane %v5738_v32, 5  ;;  %v5743_v0 = vrot.slane %v5741_v28, 6  ;;  %v6545_v25 = vrot.slane %v6543_v62, 1  ;;  %v18425_v4 = vsel %vm21161_vm3, %v6893_v39, %v6897_v10 }
 0x6ab   : > { %v5801_v43 = vor.u32 %v5799_v60, %v18407_v53  ;;  %6692 = vmatmul.bf16.gmra.mxu2 %v6541_v56  ;;  %v5253_v19 = vpop.permute.xlu1 %5252  ;;  %v6548_v45 = vrot.slane %v6546_v41, 2  ;;  %v6826_v37 = vsel %vm21151_vm5, %v6821_v55, %v6825_v29  ;;  %v8224_v48 = vunpack.c.l.b16 %v8219_v31  ;;  %v6762_v56 = vld [vmem:[#allocation2 + $0x40] sm:$0x7] }
 0x6ac   : > { %v5744_v1 = vor.u32 %v5743_v0, %v5740_v14  ;;  %v5301_v13 = vmul.f32 %v5253_v19, %v21160_v54  ;;  %v6895_v7 = vrot.slane %v6826_v37, 2  ;;  %v7114_v39 = vpack.c.b16 %v6777_v30, %v7113_v51  ;;  %v18450_v51 = vld [vmem:[#allocation2 + $0x38] sm:$0xff] }
 0x6ad   : > { %v5816_v2 = vsel %vm17935_vm1, %v5801_v43, %v5815_v33  ;;  %vm21162_vm1 = vmmov %vm21151_vm5  ;;  %v7717_v41 = vshll.u32 %v18419_v23, 16  ;;  %v8225_v59 = vpack.c.b16 %v14003_v47, %v8224_v48  ;;  %v6797_v33 = vunpack.c.l.b16 %v6762_v56 }
 0x6ae   : > { %5817 = vst [vmem:[#allocation2 + $0x90] sm:$0xf] %v5816_v2  ;;  %v5745_v32 = vrot.slane %v5744_v1, 4  ;;  %v5760_v28 = vsel %vm17831_vm6, %v5744_v1, %v5759_v57  ;;  %v5333_v62 = vpack.c.bf16 %v5301_v13, %v5301_v13  ;;  %v5885_v52 = vsel %vm21162_vm1, %v18377_v63, %v18379_v26  ;;  %vm21163_vm6 = vmmov %vm21161_vm3 }
 0x6af   : > { %5761 = vst [vmem:[#allocation2 + $0x7c] sm:$0xc] %v5760_v28  ;;  %6322 = vmatmul.bf16.vlgmr.msrb.gmra.mxu3 %v18281_v49  ;;  %v18447_v49 = vsel %vm21163_vm6, %v6891_v3, %v6895_v7  ;;  %v6549_v63 = vor.u32 %v6548_v45, %v6545_v25  ;;  %v8229_v24 = vshll.u32 %v8225_v59, 16  ;;  %v6827_v30 = vshrl.u32 %v18384_v34, 16  ;;  %vm21167_vm12 = vmmov %vm21162_vm1 }
 0x6b0   : > { %v5754_v35 = vsel %vm17860_vm4, %v5745_v32, %v18306_v11  ;;  %v5767_v44 = vshll.u32 %v5333_v62, 16  ;;  %v5770_v60 = vshrl.u32 %v5333_v62, 16  ;;  %v6831_v31 = vshll.u32 %v18429_v18, 16  ;;  %vm21164_vm4 = vmmov %vm21161_vm3 }
 0x6b1   : > { %5762 = vst [vmem:[#allocation2 + $0x80] sm:$0xf] %v5754_v35  ;;  %v6901_v5 = vrot.slane %v18429_v18, 2  ;;  %v18456_v11 = vrot.slane %v7717_v41, 1  ;;  %v8227_v3 = vshrl.u32 %v8225_v59, 16  ;;  %v8231_v43 = vrot.slane %v8229_v24, 1 }
 0x6b2   : > { %v5769_v14 = vrot.slane %v5767_v44, 5  ;;  %v5772_v0 = vrot.slane %v5770_v60, 4  ;;  %v6829_v57 = vor.u32 %v6827_v30, %v6825_v29  ;;  %v6833_v55 = vrot.slane %v6831_v31, 1  ;;  %v13758_v29 = vld [vmem:[%s20863_s17 + $0x1e0] sm:$0xff]  ;;  %v14609_v24 = vld [vmem:[#allocation2 + $0x8] sm:$0xff]  }
 0x6b3   : > { %v18463_v1 = vsel %vm21164_vm4, %v6897_v10, %v6901_v5  ;;  %v6550_v54 = vsel %vm21165_vm11, %v18356_v17, %v6549_v63  ;;  %v7149_v13 = vrot.slane %v18304_v36, 3  ;;  %v8232_v25 = vor.u32 %v8231_v43, %v8227_v3  ;;  %7063 = vmatpush.bf16.msra.mxu1 %v13758_v29  ;;  %v5819_v29 = vld [vmem:[#allocation2 + $0x98] sm:$0x1] }
 0x6b4   : > { %v5773_v19 = vor.u32 %v5772_v0, %v5769_v14  ;;  %v5789_v9 = vsel %vm17892_vm15, %v5769_v14, %v5788_v22  ;;  %6361 = vmatmul.bf16.vlgmr.msrb.gmra.mxu1 %v5885_v52  ;;  %v18474_v45 = vpack.c.b16 %v6797_v33, %v6797_v33  ;;  %vm21166_vm15 = vmmov %vm21162_vm1  ;;  %v6839_v37 = vshll.u32 %v18450_v51, 16  ;;  %v21173_v22 = vld [vmem:[#allocation26_spill] sm:$0xff] }
 0x6b5   : > { %5790 = vst [vmem:[#allocation2 + $0x84] sm:$0x8] %v5789_v9  ;;  %v6834_v10 = vsel %vm21166_vm15, %v6829_v57, %v6833_v55  ;;  %v18480_v17 = vsel %vm21167_vm12, %v8232_v25, %v18456_v11  ;;  %v6835_v32 = vshrl.u32 %v18429_v18, 16  ;;  %v20902_v28 = vrot.slane %v18450_v51, 2 }
 0x6b6   : > { %v5774_v2 = vrot.slane %v5773_v19, 4  ;;  %21168 = vst [vmem:[#allocation9_spill] sm:$0xff] %v18480_v17  ;;  %v6899_v48 = vrot.slane %v6834_v10, 2  ;;  %v7148_v56 = vrot.slane %v7114_v39, 3  ;;  %v6841_v35 = vrot.slane %v6839_v37, 1 }
 0x6b7   : > { %6731 = vmatmul.bf16.gmra.mxu0 %v6550_v54  ;;  %v6837_v59 = vor.u32 %v6835_v32, %v6833_v55  ;;  %vm21170_vm14 = vcmask 1044480   ;;  %v18496_v60 = vsel %vm21171_vm9, %v6901_v5, %v20902_v28  ;;  %v6843_v39 = vshrl.u32 %v18450_v51, 16 }
 0x6b8   : > { %v5779_v62 = vsel %vm17906_vm0, %v5774_v2, %v18210_v61  ;;  %v18488_v52 = vsel %vm21169_vm7, %v6895_v7, %v6899_v48  ;;  %v7150_v44 = vsel %vm21170_vm14, %v7148_v56, %v7149_v13  ;;  %vm21172_vm0 = vmmov %vm21162_vm1  ;;  %v6847_v7 = vshll.u32 %v18474_v45, 16 }
 0x6b9   : > { %5791 = vst [vmem:[#allocation2 + $0x88] sm:$0xf] %v5779_v62  ;;  %v6842_v61 = vsel %vm21172_vm0, %v6837_v59, %v6841_v35  ;;  %v5886_v30 = vshrl.u32 %v14609_v24, 16  ;;  %v6845_v14 = vor.u32 %v6843_v39, %v6841_v35  ;;  %v6851_v31 = vshrl.u32 %v18474_v45, 16  ;;  %vm21175_vm10 = vmmov %vm21172_vm0  ;;  %v13750_v62 = vld [vmem:[%s20863_s17 + $0x1a0] sm:$0xff]  ;;  %v18528_v35 = vld [vmem:[#allocation2 + $0x48] sm:$0xff] }
 0x6ba   : > { %v6903_v33 = vrot.slane %v6842_v61, 2  ;;  %v6849_v0 = vrot.slane %v6847_v7, 1  ;;  %vm21176_vm5 = vmmov %vm21172_vm0  ;;  %7024 = vmatpush.bf16.msra.mxu3 %v13750_v62  ;;  %v7792_v61 = vld [vmem:[#allocation2 + $0x38] sm:$0xe]  ;;  %v18531_v50 = vrot.slane %v18419_v23, 1  ;;  %v18538_v39 = vld [vmem:[#allocation2 + $0x50] sm:$0xff] }
 0x6bb   : > { %7271 = vmatmul.bf16.vlgmr.msrb.gmra.mxu2 %v7150_v44  ;;  %v5272_v6 = vpop.permute.xlu1 %5271  ;;  %v5888_v43 = vor.u32 %v5886_v30, %v18379_v26  ;;  %vm21177_vm1 = vmmov %vm21161_vm3  ;;  %v5802_v26 = vrot.slane %v18407_v53, 4  ;;  %v13757_v53 = vld [vmem:[%s20863_s17 + $0x1d8] sm:$0xff]  ;;  %v7803_v7 = vunpack.c.l.b16 %v7792_v61  ;;  %vm21188_vm12 = vsmask.f32 6400 }
 0x6bc   : > { %v5304_v63 = vmul.f32 %v5272_v6, %v21173_v22  ;;  %v18504_v5 = vsel %vm21174_vm8, %v6899_v48, %v6903_v33  ;;  %v6850_v57 = vsel %vm21175_vm10, %v6845_v14, %v6849_v0  ;;  %v6853_v19 = vor.u32 %v6851_v31, %v6849_v0  ;;  %v7661_v6 = vld [vmem:[#allocation2 + $0x60] sm:$0x1]  ;;  %7064 = vmatpush.bf16.msra.mxu1 %v13757_v53  ;;  %v14610_v14 = vld [vmem:[#allocation2 + $0x10] sm:$0xff]  ;;  %vm21190_vm7 = vmmov %vm21188_vm12 }
 0x6bd   : > { %v6907_v55 = vrot.slane %v6850_v57, 2  ;;  %v5893_v10 = vsel %vm21176_vm5, %v5888_v43, %v17961_v12  ;;  %v7151_v12 = vrot.slane %v18330_v40, 3  ;;  %v7849_v22 = vrot.slane %v18528_v35, 1  ;;  %vm21194_vm9 = vmmov %vm21190_vm7 }
 0x6be   : > { %v5336_v3 = vpack.c.bf16 %v5304_v63, %v5304_v63  ;;  %v6911_v54 = vrot.slane %v6853_v19, 2  ;;  %v18541_v63 = vld [vmem:[#allocation2 + $0x58] sm:$0xff]  ;;  %v7851_v0 = vrot.slane %v18538_v39, 1 }
 0x6bf   : > { %6327 = vmatmul.bf16.gmra.mxu3 %v14609_v24  ;;  %v18509_v46 = vsel %vm21161_vm3, %v6903_v33, %v6907_v55  ;;  %v20906_v33 = vshrl.u32 %v18419_v23, 16  ;;  %v18546_v24 = vpack.c.b16 %v14003_v47, %v7803_v7  ;;  %v18559_v31 = vrot.slane %v18541_v63, 1  ;;  %vm21204_vm3 = vmmov %vm21190_vm7 }
 0x6c0   : > { %v5804_v9 = vshrl.u32 %v5336_v3, 16  ;;  %v5807_v2 = vshll.u32 %v5336_v3, 16  ;;  %v18514_v37 = vsel %vm21177_vm1, %v6907_v55, %v6911_v54  ;;  %v8291_v3 = vrot.slane %v7717_v41, 2 }
 0x6c1   : > { %21180 = vst [vmem:[#allocation13_spill] sm:$0xff] %v18559_v31  ;;  %v8290_v43 = vrot.slane %v20906_v33, 1  ;;  %v8283_v19 = vshrl.u32 %v18546_v24, 16  ;;  %v20905_v55 = vshll.u32 %v18528_v35, 16  ;;  %v20903_v54 = vshrl.u32 %v18528_v35, 16 }
 0x6c2   : > { %v5806_v25 = vrot.slane %v5804_v9, 7  ;;  %v7745_v62 = vshrl.u32 %v18541_v63, 16 }
 0x6c3   : > { %v8292_v53 = vor.u32 %v8291_v3, %v8290_v43  ;;  %v8312_v61 = vrot.slane %v20905_v55, 2 }
 0x6c4   : > { %v5809_v48 = vor.u32 %v5807_v2, %v5806_v25  ;;  %v5811_v32 = vrot.slane %v5806_v25, 4  ;;  %6366 = vmatmul.bf16.gmra.mxu1 %v5893_v10  ;;  %v20901_v10 = vshrl.u32 %v18538_v39, 16 }
 0x6c6   : > { %v5810_v56 = vsel %vm17920_vm13, %v5802_v26, %v5809_v48  ;;  %v5820_v59 = vsel %vm17844_vm2, %v5811_v32, %v5819_v29  ;;  %vm21178_vm2 = vmmov %vm21170_vm14  ;;  %vm21179_vm13 = vcmask 1046528   ;;  %v20904_v29 = vshll.u32 %v18538_v39, 16  ;;  %v13756_v26 = vld [vmem:[%s20863_s17 + $0x1d0] sm:$0xff] }
 0x6c7   : > { %7310 = vmatmul.bf16.vlgmr.msrb.gmra.mxu0 %v7150_v44  ;;  %5818 = vst [vmem:[#allocation2 + $0x94] sm:$0xf] %v5810_v56  ;;  %v7152_v20 = vsel %vm21178_vm2, %v7149_v13, %v7151_v12  ;;  %v7699_v44 = vunpack.c.l.b16 %v7661_v6  ;;  %v18550_v36 = vsel %vm21179_vm13, %v18531_v50, %v7849_v22  ;;  %v13749_v13 = vld [vmem:[%s20863_s17 + $0x198] sm:$0xff]  ;;  %vm21181_vm6 = vmmov %vm21179_vm13  ;;  %v7741_v48 = vshll.u32 %v18541_v63, 16  ;;  %7065 = vmatpush.bf16.msra.mxu1 %v13756_v26  ;;  %v13748_v26 = vld [vmem:[%s20863_s17 + $0x190] sm:$0xff] }
 0x6c8   : > { %5821 = vst [vmem:[#allocation2 + $0x98] sm:$0x1] %v5820_v59  ;;  %7025 = vmatpush.bf16.msra.mxu3 %v13749_v13  ;;  %v18566_v57 = vsel %vm21181_vm6, %v7849_v22, %v7851_v0  ;;  %vm21183_vm4 = vmmov %vm21181_vm6  ;;  %v8285_v56 = vrot.slane %v8283_v19, 1  ;;  %v8286_v59 = vshll.u32 %v18546_v24, 16  ;;  %v7153_v6 = vrot.slane %v18384_v34, 3  ;;  %v13754_v34 = vld [vmem:[%s20863_s17 + $0x1c0] sm:$0xff] }
 0x6c9   : > { %v18555_v30 = vpack.c.b16 %v7699_v44, %v7699_v44  ;;  %21182 = vst [vmem:[#allocation8_spill] sm:$0xff] %v18566_v57  ;;  %v18573_v25 = vsel %vm21183_vm4, %v7851_v0, %v18559_v31  ;;  %vm21185_vm11 = vmmov %vm21183_vm4  ;;  %v8324_v7 = vrot.slane %v20901_v10, 1  ;;  %v8325_v22 = vrot.slane %v20904_v29, 2  ;;  %v18672_v29 = vld [vmem:[#allocation2 + $0x50] sm:$0xff] }
 0x6ca   : > { %21184 = vst [vmem:[#allocation10_spill] sm:$0xff] %v18573_v25  ;;  %v8288_v44 = vrot.slane %v8286_v59, 2  ;;  %v8338_v3 = vrot.slane %v7741_v48, 2  ;;  %vm21187_vm15 = vmmov %vm21178_vm2  ;;  %v18616_v59 = vld [vmem:[#allocation2 + $0x60] sm:$0xff] }
 0x6cb   : > { %7276 = vmatmul.bf16.gmra.mxu2 %v7152_v20  ;;  %v7857_v2 = vrot.slane %v18555_v30, 1  ;;  %v7154_v43 = vsel %vm21187_vm15, %v7151_v12, %v7153_v6  ;;  %vm21192_vm14 = vmmov %vm21190_vm7  ;;  %v8239_v28 = vshrl.u32 %v18616_v59, 16 }
 0x6cc   : > { %v8289_v0 = vor.u32 %v8288_v44, %v8285_v56  ;;  %v13789_v56 = vld [vmem:[%s20863_s17 + $0x38] sm:$0xff]  ;;  %7026 = vmatpush.bf16.msra.mxu3 %v13748_v26  ;;  %v13755_v44 = vld [vmem:[%s20863_s17 + $0x1c8] sm:$0xff]  ;;  %vm21196_vm8 = vmmov %vm21178_vm2 }
 0x6cd   : > { %v18587_v32 = vsel %vm21185_vm11, %v18559_v31, %v7857_v2  ;;  %8140 = vmatpush.bf16.msra.mxu2 %v13789_v56  ;;  %7066 = vmatpush.bf16.msra.mxu1 %v13755_v44  ;;  %vm21202_vm10 = vmmov %vm21178_vm2 }
 0x6ce   : > { %21186 = vst [vmem:[#allocation14_spill] sm:$0xff] %v18587_v32  ;;  %v18608_v2 = vsel %vm21188_vm12, %v8289_v0, %v8292_v53  ;;  %vm21206_vm5 = vmmov %vm21178_vm2  ;;  %vm21226_vm12 = vcmask 1045504  }
 0x6cf   : > { %6332 = vmatmul.bf16.gmra.mxu3 %v14610_v14  ;;  %21189 = vst [vmem:[#allocation16_spill] sm:$0xff] %v18608_v2  ;;  %v18685_v2 = vld [vmem:[#allocation2 + $0x68] sm:$0xff]  ;;  %vm21208_vm1 = vmmov %vm21178_vm2 }
 0x6d0   : > { %21199 = vst [vmem:[#allocation22_spill] sm:$0xff] %v18685_v2  ;;  %v8980_v25 = vrot.slane %v18685_v2, 3  ;;  %vm21211_vm2 = vmmov %vm21208_vm1 }
 0x6d1   : > { %v6188_v47 = vpop.f32.mrf.mxu1  ;;  %7067 = vmatpush.bf16.msra.mxu1 %v13754_v34  ;;  %vm21213_vm13 = vmmov %vm21208_vm1 }
 0x6d2   : > { %v6149_v9 = vpop.f32.mrf.mxu3  ;;  %vm21215_vm6 = vmmov %vm21172_vm0 }
 0x6d3   : > { %v18576_v41 = vadd.f32 %v6188_v47, %v6149_v9  ;;  %v8337_v47 = vrot.slane %v7745_v62, 1  ;;  %vm21220_vm4 = vmmov %vm21208_vm1 }
 0x6d4   : > { %6371 = vmatmul.bf16.gmra.mxu1 %v18006_v8  ;;  %v8311_v8 = vrot.slane %v20903_v54, 1  ;;  %vm21221_vm11 = vmmov %vm21204_vm3 }
 0x6d5   : > { %vm21224_vm15 = vmmov %vm21208_vm1 }
 0x6d6   : > { %v8313_v13 = vor.u32 %v8312_v61, %v8311_v8  ;;  %v18624_v8 = vor.u32 %v8338_v3, %v8337_v47  ;;  %v8935_v3 = vld [vmem:[#allocation2 + $0x40] sm:$0x8] }
 0x6d7   : > { %7315 = vmatmul.bf16.gmra.mxu0 %v7152_v20  ;;  %v8326_v20 = vor.u32 %v8325_v22, %v8324_v7  ;;  %v13788_v7 = vld [vmem:[%s20863_s17 + $0x30] sm:$0xff]  ;;  %v14611_v22 = vld [vmem:[#allocation2 + $0x18] sm:$0xff] }
 0x6d8   : > { %v18619_v40 = vsel %vm21190_vm7, %v8292_v53, %v8313_v13  ;;  %v18632_v53 = vrot.slane %v7741_v48, 1  ;;  %8141 = vmatpush.bf16.msra.mxu2 %v13788_v7  ;;  %v8937_v7 = vunpack.c.l.b16 %v8935_v3  ;;  %v18670_v3 = vld [vmem:[#allocation2 + $0x48] sm:$0xff]  ;;  %vm21228_vm7 = vmmov %vm21208_vm1 }
 0x6d9   : > { %v6190_v14 = vpop.f32.mrf.mxu1  ;;  %21191 = vst [vmem:[#allocation15_spill] sm:$0xff] %v18619_v40  ;;  %v18622_v12 = vsel %vm21192_vm14, %v8313_v13, %v8326_v20  ;;  %v8235_v13 = vshll.u32 %v18616_v59, 16  ;;  %v18639_v0 = vsel %vm21194_vm9, %v8326_v20, %v18624_v8  ;;  %v13787_v20 = vld [vmem:[%s20863_s17 + $0x28] sm:$0xff]  ;;  %vm21232_vm14 = vmmov %vm21172_vm0 }
 0x6da   : > { %v6151_v19 = vpop.f32.mrf.mxu3  ;;  %21193 = vst [vmem:[#allocation18_spill] sm:$0xff] %v18622_v12  ;;  %v18645_v48 = vor.u32 %v7745_v62, %v18632_v53  ;;  %v13747_v62 = vld [vmem:[%s20863_s17 + $0x188] sm:$0xff]  ;;  %v18679_v12 = vld [vmem:[#allocation2 + $0x58] sm:$0xff]  ;;  %vm21236_vm9 = vmmov %vm21172_vm0 }
 0x6db   : > { %7281 = vmatmul.bf16.gmra.mxu2 %v7154_v43  ;;  %v18605_v9 = vadd.f32 %v6190_v14, %v6151_v19  ;;  %v18634_v14 = vld [vmem:[#allocation2 + $0x44] sm:$0xf]  ;;  %21195 = vst [vmem:[#allocation17_spill] sm:$0xff] %v18639_v0  ;;  %v8237_v44 = vrot.slane %v8235_v13, 1  ;;  %7027 = vmatpush.bf16.msra.mxu3 %v13747_v62  ;;  %v8351_v55 = vrot.slane %v8235_v13, 2  ;;  %v8972_v13 = vrot.slane %v18670_v3, 3 }
 0x6dc   : > { %v20907_v26 = vunpack.c.l.b16 %v18634_v14  ;;  %8142 = vmatpush.bf16.msra.mxu2 %v13787_v20  ;;  %21197 = vst [vmem:[#allocation20_spill] sm:$0xff] %v18679_v12 }
 0x6dd   : > { %v18666_v59 = vsel %vm21172_vm0, %v18645_v48, %v8237_v44 }
 0x6de   : > { %v6668_v61 = vpop.f32.mrf.mxu2  ;;  %v8342_v34 = vshrl.u32 %v18666_v59, 16 }
 0x6df   : > { %6337 = vmatmul.bf16.gmra.mxu3 %v14611_v22 }
 0x6e1   : > { %v6193_v47 = vpop.f32.mrf.mxu1 }
 0x6e2   : > { %v6154_v19 = vpop.f32.mrf.mxu3 }
 0x6e3   : > { %v18642_v10 = vadd.f32 %v6193_v47, %v6154_v19  ;;  %v20909_v47 = vrot.slane %v18429_v18, 3  ;;  %v8218_v19 = vld [vmem:[#allocation2 + $0x68] sm:$0x3] }
 0x6e4   : > { %v6707_v56 = vpop.f32.mrf.mxu0  ;;  %6376 = vmatmul.bf16.gmra.mxu1 %v18053_v42  ;;  %v13797_v42 = vld [vmem:[%s20863_s17 + $0x78] sm:$0xff] }
 0x6e5   : > { %v18647_v22 = vadd.f32 %v6707_v56, %v6668_v61  ;;  %v13786_v61 = vld [vmem:[%s20863_s17 + $0x20] sm:$0xff]  ;;  %8179 = vmatpush.bf16.msra.mxu0 %v13797_v42  ;;  %v8350_v56 = vrot.slane %v8239_v28, 1  ;;  %v7156_v33 = vsel %vm21196_vm8, %v7153_v6, %v20909_v47  ;;  %v13796_v6 = vld [vmem:[%s20863_s17 + $0x70] sm:$0xff]  ;;  %vm21238_vm8 = vmmov %vm21226_vm12 }
 0x6e6   : > { %v6670_v54 = vpop.f32.mrf.mxu2  ;;  %8143 = vmatpush.bf16.msra.mxu2 %v13786_v61  ;;  %v18683_v42 = vld [vmem:[#allocation2 + $0x60] sm:$0xff] }
 0x6e7   : > { %7320 = vmatmul.bf16.gmra.mxu0 %v7154_v43  ;;  %v8938_v43 = vpack.c.b16 %v20907_v26, %v8937_v7  ;;  %v8221_v7 = vunpack.c.l.b16 %v8218_v19  ;;  %21198 = vst [vmem:[#allocation19_spill] sm:$0xff] %v18683_v42  ;;  %v18699_v61 = vor.u32 %v8351_v55, %v8350_v56  ;;  %v13746_v47 = vld [vmem:[%s20863_s17 + $0x180] sm:$0xff]  ;;  %v8976_v55 = vrot.slane %v18679_v12, 3 }
 0x6e8   : > { %v14612_v56 = vld [vmem:[#allocation2 + $0x20] sm:$0xff]  ;;  %7028 = vmatpush.bf16.msra.mxu3 %v13746_v47  ;;  %v8978_v31 = vrot.slane %v18683_v42, 3 }
 0x6e9   : > { %v6195_v20 = vpop.f32.mrf.mxu1  ;;  %v8971_v26 = vrot.slane %v8938_v43, 3  ;;  %21200 = vst [vmem:[#allocation11_spill] sm:$0xff] %v18699_v61  ;;  %v18701_v43 = vpack.c.b16 %v8221_v7, %v8221_v7  ;;  %8180 = vmatpush.bf16.msra.mxu0 %v13796_v6  ;;  %v8587_v7 = vld [vmem:[#allocation2 + $0x70] sm:$0x7]  ;;  %v8345_v6 = vshll.u32 %v18666_v59, 16  ;;  %v8241_v59 = vor.u32 %v8239_v28, %v8237_v44 }
 0x6ea   : > { %v6156_v0 = vpop.f32.mrf.mxu3  ;;  %v18738_v47 = vsel %vm21211_vm2, %v8976_v55, %v8978_v31 }
 0x6eb   : > { %7286 = vmatmul.bf16.gmra.mxu2 %v7156_v33  ;;  %v18681_v62 = vadd.f32 %v6195_v20, %v6156_v0  ;;  %v13785_v0 = vld [vmem:[%s20863_s17 + $0x18] sm:$0xff]  ;;  %21201 = vst [vmem:[#allocation12_spill] sm:$0xff] %v18701_v43  ;;  %v18704_v19 = vsel %vm21202_vm10, %v8971_v26, %v8972_v13  ;;  %v13795_v20 = vld [vmem:[%s20863_s17 + $0x68] sm:$0xff]  ;;  %v13784_v26 = vld [vmem:[%s20863_s17 + $0x10] sm:$0xff]  ;;  %v20919_v32 = vshll.u32 %v18701_v43, 16 }
 0x6ec   : > { %v6709_v40 = vpop.f32.mrf.mxu0  ;;  %21203 = vst [vmem:[#allocation24_spill] sm:$0xff] %v18704_v19  ;;  %8144 = vmatpush.bf16.msra.mxu2 %v13785_v0  ;;  %v18722_v19 = vsel %vm21204_vm3, %v18624_v8, %v18699_v61  ;;  %v8622_v61 = vunpack.c.l.b16 %v8587_v7  ;;  %vm21241_vm10 = vmmov %vm21238_vm8 }
 0x6ed   : > { %v18688_v17 = vadd.f32 %v6709_v40, %v6670_v54  ;;  %v8974_v54 = vrot.slane %v18672_v29, 3  ;;  %21205 = vst [vmem:[#allocation7_spill] sm:$0xff] %v18722_v19  ;;  %v18735_v12 = vrot.slane %v20919_v32, 1  ;;  %8181 = vmatpush.bf16.msra.mxu0 %v13795_v20  ;;  %v13794_v20 = vld [vmem:[%s20863_s17 + $0x60] sm:$0xff]  ;;  %vm21243_vm3 = vmmov %vm21238_vm8 }
 0x6ee   : > { %v6673_v40 = vpop.f32.mrf.mxu2  ;;  %21212 = vst [vmem:[#allocation26_spill] sm:$0xff] %v18738_v47  ;;  %vm21247_vm2 = vmmov %vm21243_vm3 }
 0x6ef   : > { %6342 = vmatmul.bf16.gmra.mxu3 %v14612_v56  ;;  %v18726_v56 = vsel %vm21206_vm5, %v8972_v13, %v8974_v54  ;;  %v18729_v0 = vsel %vm21208_vm1, %v8974_v54, %v8976_v55  ;;  %21210 = vst [vmem:[#allocation23_spill] sm:$0xff] %v18735_v12  ;;  %v18741_v13 = vsel %vm21213_vm13, %v8978_v31, %v8980_v25  ;;  %v13783_v31 = vld [vmem:[%s20863_s17 + $0x8] sm:$0xff]  ;;  %v8347_v55 = vrot.slane %v8345_v6, 2  ;;  %v13793_v6 = vld [vmem:[%s20863_s17 + $0x58] sm:$0xff]  ;;  %vm21245_vm5 = vmmov %vm21172_vm0 }
 0x6f0   : > { %21207 = vst [vmem:[#allocation25_spill] sm:$0xff] %v18726_v56  ;;  %8145 = vmatpush.bf16.msra.mxu2 %v13784_v26  ;;  %v8344_v56 = vrot.slane %v8342_v34, 1  ;;  %v8246_v28 = vsel %vm21215_vm6, %v8241_v59, %v18735_v12  ;;  %v7157_v34 = vrot.slane %v18450_v51, 3  ;;  %vm21246_vm1 = vmmov %vm21172_vm0 }
 0x6f1   : > { %21209 = vst [vmem:[#allocation21_spill] sm:$0xff] %v18729_v0  ;;  %v6198_v57 = vpop.f32.mrf.mxu1  ;;  %v8358_v7 = vshll.u32 %v8246_v28, 16  ;;  %8182 = vmatpush.bf16.msra.mxu0 %v13794_v20  ;;  %vm21251_vm13 = vmmov %vm21172_vm0 }
 0x6f2   : > { %v6159_v8 = vpop.f32.mrf.mxu3  ;;  %21214 = vst [vmem:[#allocation27_spill] sm:$0xff] %v18741_v13  ;;  %vm21252_vm6 = vmmov %vm21247_vm2 }
 0x6f3   : > { %v18743_v0 = vadd.f32 %v6198_v57, %v6159_v8  ;;  %v8355_v57 = vshrl.u32 %v8246_v28, 16  ;;  %v8360_v8 = vrot.slane %v8358_v7, 2 }
 0x6f4   : > { %v6712_v54 = vpop.f32.mrf.mxu0  ;;  %6381 = vmatmul.bf16.gmra.mxu1 %v18113_v58  ;;  %v18760_v58 = vpack.c.b16 %v8622_v61, %v8622_v61  ;;  %8146 = vmatpush.bf16.msra.mxu2 %v13783_v31  ;;  %v21219_v61 = vrot.slane %v18429_v18, 3  ;;  %v13792_v18 = vld [vmem:[%s20863_s17 + $0x50] sm:$0xff] }
 0x6f5   : > { %v18747_v44 = vadd.f32 %v6712_v54, %v6673_v40  ;;  %v13814_v40 = vld [vmem:[%s20863_s17 + $0xf8] sm:$0xff]  ;;  %v8357_v59 = vrot.slane %v8355_v57, 1  ;;  %v18768_v54 = vor.u32 %v8347_v55, %v8344_v56  ;;  %8183 = vmatpush.bf16.msra.mxu0 %v13793_v6  ;;  %v18788_v55 = vld [vmem:[#allocation2 + $0x74] sm:$0xf] }
 0x6f6   : > { %v6675_v26 = vpop.f32.mrf.mxu2  ;;  %21216 = vst [vmem:[#allocation28_spill] sm:$0xff] %v18760_v58  ;;  %8005 = vmatpush.bf16.msrb.mxu1 %v13814_v40  ;;  %v7158_v57 = vsel %vm21220_vm4, %v21219_v61, %v7157_v34  ;;  %v8982_v7 = vrot.slane %v18760_v58, 3  ;;  %v20924_v6 = vunpack.c.l.b16 %v18788_v55  ;;  %vm21254_vm4 = vmmov %vm21247_vm2 }
 0x6f7   : > { %7325 = vmatmul.bf16.gmra.mxu0 %v7156_v33  ;;  %v13782_v33 = vld [vmem:[%s20863_s17] sm:$0xff]  ;;  %21217 = vst [vmem:[#allocation29_spill] sm:$0xff] %v18768_v54  ;;  %v18770_v28 = vor.u32 %v8360_v8, %v8357_v59  ;;  %v10397_v8 = vld [vmem:[#allocation2 + $0x70] sm:$0xc] }
 0x6f8   : > { %8147 = vmatpush.bf16.msra.mxu2 %v13782_v33  ;;  %21223 = vst [vmem:[#allocation32_spill] sm:$0xff] %v18788_v55  ;;  %v18791_v59 = vsel %vm21224_vm15, %v8980_v25, %v8982_v7  ;;  %v10424_v33 = vunpack.c.l.b16 %v10397_v8  ;;  %v13790_v8 = vld [vmem:[%s20863_s17 + $0x40] sm:$0xff]  ;;  %vm21258_vm15 = vmmov %vm21172_vm0 }
 0x6f9   : > { %21218 = vst [vmem:[#allocation30_spill] sm:$0xff] %v18770_v28  ;;  %v6200_v32 = vpop.f32.mrf.mxu1  ;;  %v18778_v31 = vsel %vm21221_vm11, %v18768_v54, %v18770_v28  ;;  %8184 = vmatpush.bf16.msra.mxu0 %v13792_v18  ;;  %v13813_v18 = vld [vmem:[%s20863_s17 + $0xf0] sm:$0xff]  ;;  %vm21256_vm11 = vmmov %vm21247_vm2 }
 0x6fa   : > { %v6161_v20 = vpop.f32.mrf.mxu3  ;;  %21222 = vst [vmem:[#allocation31_spill] sm:$0xff] %v18778_v31  ;;  %v10437_v47 = vpack.c.b16 %v20924_v6, %v10424_v33  ;;  %8006 = vmatpush.bf16.msrb.mxu1 %v13813_v18  ;;  %v13805_v54 = vld [vmem:[%s20863_s17 + $0xb0] sm:$0xff] }
 0x6fb   : > { %7291 = vmatmul.bf16.gmra.mxu2 %v7158_v57  ;;  %v18781_v13 = vadd.f32 %v6200_v32, %v6161_v20  ;;  %21225 = vst [vmem:[#allocation33_spill] sm:$0xff] %v18791_v59  ;;  %v13806_v32 = vld [vmem:[%s20863_s17 + $0xb8] sm:$0xff]  ;;  %v14613_v20 = vld [vmem:[#allocation2 + $0x28] sm:$0xff] }
 0x6fc   : > { %v6714_v40 = vpop.f32.mrf.mxu0  ;;  %7966 = vmatpush.bf16.msrb.mxu3 %v13806_v32  ;;  %v18813_v32 = vld [vmem:[#allocation2 + $0x78] sm:$0xff]  ;;  %v10534_v33 = vrot.slane %v10437_v47, 2  ;;  %v10448_v18 = vshrl.u32 %v10437_v47, 16 }
 0x6fd   : > { %v18783_v56 = vadd.f32 %v6714_v40, %v6675_v26  ;;  %v13791_v26 = vld [vmem:[%s20863_s17 + $0x48] sm:$0xff] }
 0x6fe   : > { %v6678_v61 = vpop.f32.mrf.mxu2  ;;  %8185 = vmatpush.bf16.msra.mxu0 %v13791_v26  ;;  %v7159_v26 = vrot.slane %v18474_v45, 3 }
 0x6ff   : > { %6347 = vmatmul.bf16.gmra.mxu3 %v14613_v20  ;;  %v10450_v20 = vshll.u32 %v10437_v47, 16 }
 0x700   : > { %v7160_v31 = vsel %vm21228_vm7, %v7157_v34, %v7159_v26  ;;  %7967 = vmatpush.bf16.msrb.mxu3 %v13805_v54  ;;  %vm21260_vm7 = vmmov %vm21247_vm2 }
 0x701   : > { %v6203_v40 = vpop.f32.mrf.mxu1  ;;  %v10452_v19 = vrot.slane %v10450_v20, 1 }
 0x702   : > { %v6164_v25 = vpop.f32.mrf.mxu3  ;;  %8186 = vmatpush.bf16.msra.mxu0 %v13790_v8 }
 0x703   : > { %v18800_v59 = vadd.f32 %v6203_v40, %v6164_v25  ;;  %v10455_v25 = vshll.u32 %v18813_v32, 16  ;;  %v10453_v20 = vor.u32 %v10452_v19, %v10448_v18 }
 0x704   : > { %v6717_v7 = vpop.f32.mrf.mxu0  ;;  %6386 = vmatmul.bf16.gmra.mxu1 %v18350_v15  ;;  %v10535_v15 = vrot.slane %v18813_v32, 2 }
 0x705   : > { %v18804_v28 = vadd.f32 %v6717_v7, %v6678_v61  ;;  %v9484_v61 = vld [vmem:[#allocation2 + $0x90] sm:$0x1]  ;;  %v10457_v8 = vrot.slane %v10455_v25, 1 }
 0x706   : > { %v6680_v40 = vpop.f32.mrf.mxu2  ;;  %v9522_v6 = vunpack.c.l.b16 %v9484_v61  ;;  %v18819_v55 = vsel %vm21226_vm12, %v10534_v33, %v10535_v15  ;;  %v18829_v61 = vld [vmem:[#allocation2 + $0x88] sm:$0xff]  ;;  %vm21259_vm12 = vmmov %vm21172_vm0 }
 0x707   : > { %7330 = vmatmul.bf16.gmra.mxu0 %v7158_v57  ;;  %21227 = vst [vmem:[#allocation34_spill] sm:$0xff] %v18819_v55  ;;  %v10458_v47 = vsel %vm21232_vm14, %v10453_v20, %v10457_v8  ;;  %v20931_v34 = vshll.u32 %v18829_v61, 16  ;;  %vm21262_vm14 = vmmov %vm21172_vm0 }
 0x708   : > { %21230 = vst [vmem:[#allocation36_spill] sm:$0xff] %v18829_v61  ;;  %v18831_v33 = vpack.c.b16 %v9522_v6, %v9522_v6 }
 0x709   : > { %v6205_v7 = vpop.f32.mrf.mxu1  ;;  %v18842_v19 = vrot.slane %v20931_v34, 1 }
 0x70a   : > { %v6166_v12 = vpop.f32.mrf.mxu3  ;;  %21231 = vst [vmem:[#allocation37_spill] sm:$0xff] %v18831_v33  ;;  %v9572_v25 = vshll.u32 %v18831_v33, 16 }
 0x70b   : > { %7296 = vmatmul.bf16.gmra.mxu2 %v7160_v31  ;;  %v18822_v45 = vadd.f32 %v6205_v7, %v6166_v12  ;;  %v13812_v12 = vld [vmem:[%s20863_s17 + $0xe8] sm:$0xff]  ;;  %21233 = vst [vmem:[#allocation38_spill] sm:$0xff] %v18842_v19 }
 0x70c   : > { %v6719_v57 = vpop.f32.mrf.mxu0  ;;  %8007 = vmatpush.bf16.msrb.mxu1 %v13812_v12  ;;  %v18855_v12 = vld [vmem:[#allocation2 + $0x88] sm:$0xff]  ;;  %v9574_v33 = vrot.slane %v9572_v25, 1 }
 0x70d   : > { %v18824_v43 = vadd.f32 %v6719_v57, %v6680_v40  ;;  %v13922_v40 = vld [vmem:[#allocation2 + $0x80] sm:$0xff]  ;;  %v20932_v57 = vshrl.u32 %v18829_v61, 16  ;;  %v10471_v25 = vshll.u32 %v18855_v12, 16 }
 0x70e   : > { %v6683_v55 = vpop.f32.mrf.mxu2  ;;  %v10463_v18 = vshll.u32 %v13922_v40, 16  ;;  %v10540_v61 = vrot.slane %v13922_v40, 2 }
 0x70f   : > { %21229 = vst [vmem:[#allocation35_spill] sm:$0xff] %v18824_v43  ;;  %7029 = vmatmul.bf16.vlgmr.msra.gmra.mxu3 %v18359_v21  ;;  %v18853_v20 = vor.u32 %v20932_v57, %v18842_v19  ;;  %v10473_v42 = vrot.slane %v10471_v25, 1  ;;  %v13924_v25 = vld [vmem:[#allocation2 + $0x90] sm:$0xff] }
 0x710   : > { %v10465_v57 = vrot.slane %v10463_v18, 1 }
 0x711   : > { %v6208_v26 = vpop.f32.mrf.mxu1  ;;  %21235 = vst [vmem:[#allocation40_spill] sm:$0xff] %v18853_v20 }
 0x712   : > { %v6169_v6 = vpop.f32.mrf.mxu3 }
 0x713   : > { %v18844_v7 = vadd.f32 %v6208_v26, %v6169_v6  ;;  %v13804_v26 = vld [vmem:[%s20863_s17 + $0xa8] sm:$0xff]  ;;  %v14081_v6 = vld [vmem:[#allocation2 + $0x30] sm:$0xff]  }
 0x714   : > { %v6722_v54 = vpop.f32.mrf.mxu0  ;;  %7068 = vmatmul.bf16.vlgmr.msra.gmra.mxu1 %v18412_v27  ;;  %v18863_v27 = vsel %vm21236_vm9, %v18853_v20, %v9574_v33  ;;  %7968 = vmatpush.bf16.msrb.mxu3 %v13804_v26  ;;  %v7704_v33 = vshll.u32 %v14081_v6, 16  ;;  %vm21263_vm9 = vmmov %vm21247_vm2 }
 0x715   : > { %v18847_v21 = vadd.f32 %v6722_v54, %v6683_v55  ;;  %v10459_v55 = vshrl.u32 %v18813_v32, 16  ;;  %21237 = vst [vmem:[#allocation41_spill] sm:$0xff] %v18863_v27  ;;  %v10467_v32 = vshrl.u32 %v13922_v40, 16 }
 0x716   : > { %v6685_v34 = vpop.f32.mrf.mxu2 }
 0x717   : > { %21234 = vst [vmem:[#allocation39_spill] sm:$0xff] %v18847_v21  ;;  %7335 = vmatmul.bf16.gmra.mxu0 %v7160_v31  ;;  %v10461_v54 = vor.u32 %v10459_v55, %v10457_v8  ;;  %v10544_v31 = vrot.slane %v18855_v12, 2  ;;  %v18869_v21 = vsel %vm21238_vm8, %v10535_v15, %v10540_v61  ;;  %v10537_v8 = vrot.slane %v10458_v47, 2  ;;  %v13811_v55 = vld [vmem:[%s20863_s17 + $0xe0] sm:$0xff]  ;;  %vm21269_vm8 = vmmov %vm21246_vm1 }
 0x718   : > { %21239 = vst [vmem:[#allocation42_spill] sm:$0xff] %v18869_v21  ;;  %v10469_v20 = vor.u32 %v10467_v32, %v10465_v57  ;;  %v7709_v15 = vshll.u32 %v18393_v38, 16  ;;  %8008 = vmatpush.bf16.msrb.mxu1 %v13811_v55  ;;  %v7702_v47 = vshrl.u32 %v14081_v6, 16 }
 0x719   : > { %v6210_v19 = vpop.f32.mrf.mxu1  ;;  %v10466_v2 = vsel %vm21172_vm0, %v10461_v54, %v10465_v57  ;;  %v18879_v54 = vsel %vm21241_vm10, %v10540_v61, %v10544_v31  ;;  %vm21265_vm0 = vmmov %vm21247_vm2 }
 0x71a   : > { %v6171_v58 = vpop.f32.mrf.mxu3  ;;  %v10538_v18 = vrot.slane %v10466_v2, 2  ;;  %21242 = vst [vmem:[#allocation44_spill] sm:$0xff] %v18879_v54  ;;  %v10474_v2 = vsel %vm21245_vm5, %v10469_v20, %v10473_v42  ;;  %v13803_v20 = vld [vmem:[%s20863_s17 + $0xa0] sm:$0xff]  ;;  %vm21272_vm10 = vmmov %vm21246_vm1 }
 0x71b   : > { %8148 = vmatmul.bf16.vlgmr.msra.gmra.mxu2 %v14081_v6  ;;  %v18871_v27 = vadd.f32 %v6210_v19, %v6171_v58  ;;  %v7711_v19 = vrot.slane %v7709_v15, 1  ;;  %v10542_v32 = vrot.slane %v10474_v2, 2  ;;  %7969 = vmatpush.bf16.msrb.mxu3 %v13803_v20  ;;  %vm21276_vm5 = vmmov %vm21246_vm1 }
 0x71c   : > { %v6724_v43 = vpop.f32.mrf.mxu0  ;;  %v18883_v40 = vsel %vm21243_vm3, %v10537_v8, %v10538_v18  ;;  %vm21274_vm3 = vmmov %vm21265_vm0 }
 0x71d   : > { %v18873_v26 = vadd.f32 %v6724_v43, %v6685_v34  ;;  %21244 = vst [vmem:[#allocation45_spill] sm:$0xff] %v18883_v40  ;;  %v7706_v43 = vrot.slane %v7704_v33, 1  ;;  %v13810_v33 = vld [vmem:[%s20863_s17 + $0xd8] sm:$0xff]  ;;  %v18900_v15 = vsel %vm21247_vm2, %v10538_v18, %v10542_v32 }
 0x71e   : > { %v6688_v58 = vpop.f32.mrf.mxu2  ;;  %21248 = vst [vmem:[#allocation46_spill] sm:$0xff] %v18900_v15  ;;  %8009 = vmatpush.bf16.msrb.mxu1 %v13810_v33  ;;  %v10483_v33 = vshrl.u32 %v13924_v25, 16 }
 0x71f   : > { %21240 = vst [vmem:[#allocation43_spill] sm:$0xff] %v18873_v26  ;;  %7034 = vmatmul.bf16.gmra.mxu3 %v18387_v16  ;;  %v7707_v61 = vor.u32 %v7706_v43, %v7702_v47  ;;  %v10410_v26 = vld [vmem:[#allocation2 + $0xa0] sm:$0x7]  ;;  %v10548_v47 = vrot.slane %v13924_v25, 2 }
 0x720   : > { %v10445_v55 = vunpack.c.l.b16 %v10410_v26 }
 0x721   : > { %v6213_v34 = vpop.f32.mrf.mxu1  ;;  %v7712_v16 = vsel %vm21246_vm1, %v7707_v61, %v7711_v19  ;;  %v18909_v26 = vsel %vm21252_vm6, %v10544_v31, %v10548_v47  ;;  %v13802_v31 = vld [vmem:[%s20863_s17 + $0x98] sm:$0xff]  ;;  %vm21277_vm1 = vcmask 1046528   ;;  %vm21281_vm6 = vmmov %vm21265_vm0 }
 0x722   : > { %v6174_v57 = vpop.f32.mrf.mxu3  ;;  %v18905_v61 = vpack.c.b16 %v10445_v55, %v10445_v55  ;;  %21253 = vst [vmem:[#allocation49_spill] sm:$0xff] %v18909_v26  ;;  %7970 = vmatpush.bf16.msrb.mxu3 %v13802_v31  ;;  %vm21279_vm2 = vmmov %vm21277_vm1 }
 0x723   : > { %v18887_v21 = vadd.f32 %v6213_v34, %v6174_v57 }
 0x724   : > { %v6727_v54 = vpop.f32.mrf.mxu0  ;;  %7073 = vmatmul.bf16.gmra.mxu1 %v18447_v49  ;;  %v10479_v49 = vshll.u32 %v13924_v25, 16  ;;  %21250 = vst [vmem:[#allocation48_spill] sm:$0xff] %v18905_v61 }
 0x725   : > { %v18889_v8 = vadd.f32 %v6727_v54, %v6688_v58  ;;  %v10475_v54 = vshrl.u32 %v18855_v12, 16  ;;  %v18903_v58 = vld [vmem:[#allocation2 + $0x98] sm:$0xff] }
 0x726   : > { %v6690_v6 = vpop.f32.mrf.mxu2  ;;  %21249 = vst [vmem:[#allocation47_spill] sm:$0xff] %v18903_v58  ;;  %v10481_v43 = vrot.slane %v10479_v49, 1 }
 0x727   : > { %8187 = vmatmul.bf16.vlgmr.msra.gmra.mxu0 %v7712_v16  ;;  %v10477_v2 = vor.u32 %v10475_v54, %v10473_v42  ;;  %v10487_v42 = vshll.u32 %v18903_v58, 16  ;;  %v20942_v54 = vrot.slane %v18903_v58, 2 }
 0x728   : > { %v10485_v49 = vor.u32 %v10483_v33, %v10481_v43  ;;  %v7713_v33 = vshrl.u32 %v18393_v38, 16 }
 0x729   : > { %v6215_v34 = vpop.f32.mrf.mxu1  ;;  %v10482_v20 = vsel %vm21251_vm13, %v10477_v2, %v10481_v43  ;;  %v10489_v26 = vrot.slane %v10487_v42, 1  ;;  %v18927_v25 = vsel %vm21256_vm11, %v10548_v47, %v20942_v54  ;;  %vm21280_vm13 = vmmov %vm21276_vm5 }
 0x72a   : > { %v6176_v57 = vpop.f32.mrf.mxu3  ;;  %v10546_v16 = vrot.slane %v10482_v20, 2  ;;  %21257 = vst [vmem:[#allocation51_spill] sm:$0xff] %v18927_v25  ;;  %v7715_v40 = vor.u32 %v7713_v33, %v7711_v19  ;;  %vm21283_vm11 = vmmov %vm21276_vm5 }
 0x72b   : > { %8153 = vmatmul.bf16.gmra.mxu2 %v18393_v38  ;;  %v18912_v12 = vadd.f32 %v6215_v34, %v6176_v57  ;;  %v10495_v34 = vshll.u32 %v18905_v61, 16  ;;  %v10490_v43 = vsel %vm21258_vm15, %v10485_v49, %v10489_v26  ;;  %v13809_v38 = vld [vmem:[%s20863_s17 + $0xd0] sm:$0xff]  ;;  %vm21284_vm15 = vmmov %vm21276_vm5 }
 0x72c   : > { %v6729_v18 = vpop.f32.mrf.mxu0  ;;  %v18919_v55 = vsel %vm21254_vm4, %v10542_v32, %v10546_v16  ;;  %v10499_v32 = vshrl.u32 %v18905_v61, 16  ;;  %v10550_v42 = vrot.slane %v10490_v43, 2  ;;  %8010 = vmatpush.bf16.msrb.mxu1 %v13809_v38  ;;  %v13842_v43 = vld [vmem:[%s20863_s17 + $0x1b0] sm:$0xff]  ;;  %vm21282_vm4 = vmmov %vm21277_vm1 }
 0x72d   : > { %v18914_v15 = vadd.f32 %v6729_v18, %v6690_v6  ;;  %21255 = vst [vmem:[#allocation50_spill] sm:$0xff] %v18919_v55  ;;  %v10491_v6 = vshrl.u32 %v18903_v58, 16  ;;  %v10497_v20 = vrot.slane %v10495_v34, 1 }
 0x72e   : > { %v6693_v2 = vpop.f32.mrf.mxu2 }
 0x72f   : > { %7039 = vmatmul.bf16.gmra.mxu3 %v18425_v4  ;;  %v10493_v57 = vor.u32 %v10491_v6, %v10489_v26  ;;  %v10501_v54 = vor.u32 %v10499_v32, %v10497_v20  ;;  %v18938_v4 = vsel %vm21260_vm7, %v10546_v16, %v10550_v42  ;;  %v7720_v6 = vsel %vm21262_vm14, %v7715_v40, %v18456_v11  ;;  %v13801_v40 = vld [vmem:[%s20863_s17 + $0x90] sm:$0xff]  ;;  %vm21287_vm7 = vmmov %vm21265_vm0 }
 0x730   : > { %21261 = vst [vmem:[#allocation52_spill] sm:$0xff] %v18938_v4  ;;  %7971 = vmatpush.bf16.msrb.mxu3 %v13801_v40  ;;  %v13850_v40 = vld [vmem:[%s20863_s17 + $0x1f0] sm:$0xff]  ;;  %vm21288_vm14 = vmmov %vm21276_vm5  ;;  %v21305_v4 = vld [vmem:[#allocation13_spill] sm:$0xff] }
 0x731   : > { %v6362_v18 = vpop.f32.mrf.mxu1  ;;  %v10498_v47 = vsel %vm21259_vm12, %v10493_v57, %v10497_v20  ;;  %v10558_v26 = vrot.slane %v10501_v54, 2  ;;  %v21267_v20 = vshrl.u32 %v18419_v23, 16  ;;  %vm21285_vm12 = vmmov %vm21265_vm0 }
 0x732   : > { %v6323_v55 = vpop.f32.mrf.mxu3  ;;  %v10554_v31 = vrot.slane %v10498_v47, 2 }
 0x733   : > { %v6324_v25 = vadd.f32 %v6323_v55, %v18576_v41 }
 0x734   : > { %v6732_v58 = vpop.f32.mrf.mxu0  ;;  %7078 = vmatmul.bf16.gmra.mxu1 %v18488_v52  ;;  %v18951_v41 = vsel %vm21263_vm9, %v10550_v42, %v10554_v31  ;;  %vm21290_vm9 = vmmov %vm21265_vm0 }
 0x735   : > { %v18940_v61 = vadd.f32 %v6732_v58, %v6693_v2  ;;  %v18946_v49 = vadd.f32 %v6362_v18, %v6324_v25  ;;  %21264 = vst [vmem:[#allocation53_spill] sm:$0xff] %v18951_v41  ;;  %v18954_v58 = vsel %vm21265_vm0, %v10554_v31, %v10558_v26  ;;  %v13843_v25 = vld [vmem:[%s20863_s17 + $0x1b8] sm:$0xff]  ;;  %v7723_v18 = vor.u32 %v21267_v20, %v18456_v11  ;;  %v6761_v20 = vld [vmem:[#allocation2 + $0x40] sm:$0x3] }
 0x736   : > { %v6695_v19 = vpop.f32.mrf.mxu2  ;;  %21266 = vst [vmem:[#allocation54_spill] sm:$0xff] %v18954_v58  ;;  %8845 = vmatpush.bf16.msrb.mxu2 %v13843_v25  ;;  %v21268_v31 = vshll.u32 %v18528_v35, 16  ;;  %v13839_v25 = vld [vmem:[%s20863_s17 + $0x198] sm:$0xff] }
 0x737   : > { %8192 = vmatmul.bf16.gmra.mxu0 %v7720_v6  ;;  %v13840_v6 = vld [vmem:[%s20863_s17 + $0x1a0] sm:$0xff] }
 0x738   : > { %v7727_v38 = vrot.slane %v21268_v31, 1 }
 0x739   : > { %v6364_v52 = vpop.f32.mrf.mxu1 }
 0x73a   : > { %v6325_v16 = vpop.f32.mrf.mxu3  ;;  %8846 = vmatpush.bf16.msrb.mxu2 %v13842_v43 }
 0x73b   : > { %8158 = vmatmul.bf16.gmra.mxu2 %v18419_v23  ;;  %v6326_v54 = vadd.f32 %v6325_v16, %v18605_v9  ;;  %v13808_v9 = vld [vmem:[%s20863_s17 + $0xc8] sm:$0xff]  ;;  %v18992_v23 = vsel %vm21269_vm8, %v7723_v18, %v7727_v38  ;;  %v13838_v18 = vld [vmem:[%s20863_s17 + $0x190] sm:$0xff]  ;;  %vm21293_vm8 = vmmov %vm21276_vm5 }
 0x73c   : > { %v6734_v55 = vpop.f32.mrf.mxu0  ;;  %8011 = vmatpush.bf16.msrb.mxu1 %v13808_v9 }
 0x73d   : > { %v18958_v2 = vadd.f32 %v6734_v55, %v6695_v19  ;;  %v18966_v34 = vadd.f32 %v6364_v52, %v6326_v54  ;;  %v13807_v54 = vld [vmem:[%s20863_s17 + $0xc0] sm:$0xff] }
 0x73e   : > { %v18968_v32 = vpop.f32.mrf.mxu2 }
 0x73f   : > { %7044 = vmatmul.bf16.gmra.mxu3 %v18463_v1  ;;  %v13841_v1 = vld [vmem:[%s20863_s17 + $0x1a8] sm:$0xff] }
 0x740   : > { %8847 = vmatpush.bf16.msrb.mxu2 %v13841_v1  ;;  %8012 = vmatpush.bf16.msrb.mxu1 %v13807_v54 }
 0x741   : > { %v6367_v57 = vpop.f32.mrf.mxu1 }
 0x742   : > { %v6328_v33 = vpop.f32.mrf.mxu3 }
 0x743   : > { %v6329_v47 = vadd.f32 %v6328_v33, %v18642_v10  ;;  %v13800_v10 = vld [vmem:[%s20863_s17 + $0x88] sm:$0xff] }
 0x744   : > { %v18980_v42 = vpop.f32.mrf.mxu0  ;;  %7083 = vmatmul.bf16.gmra.mxu1 %v18504_v5  ;;  %v13851_v5 = vld [vmem:[%s20863_s17 + $0x1f8] sm:$0xff]  ;;  %7972 = vmatpush.bf16.msrb.mxu3 %v13800_v10  ;;  %v6788_v10 = vunpack.c.l.b16 %v6761_v20 }
 0x745   : > { %v18989_v26 = vadd.f32 %v6367_v57, %v6329_v47  ;;  %8884 = vmatpush.bf16.msrb.mxu0 %v13851_v5  ;;  %8848 = vmatpush.bf16.msrb.mxu2 %v13840_v6  ;;  %v13799_v57 = vld [vmem:[%s20863_s17 + $0x80] sm:$0xff]  ;;  %v21270_v47 = vshll.u32 %v18538_v39, 16 }
 0x746   : > { %v18994_v11 = vpop.f32.mrf.mxu2 }
 0x747   : > { %8197 = vmatmul.bf16.gmra.mxu0 %v18992_v23  ;;  %v7735_v31 = vrot.slane %v21270_v47, 1  ;;  %v13846_v47 = vld [vmem:[%s20863_s17 + $0x1d0] sm:$0xff] }
 0x748   : > { %7973 = vmatpush.bf16.msrb.mxu3 %v13799_v57 }
 0x749   : > { %v6369_v19 = vpop.f32.mrf.mxu1  ;;  %8885 = vmatpush.bf16.msrb.mxu0 %v13850_v40  ;;  %8849 = vmatpush.bf16.msrb.mxu2 %v13839_v25  ;;  %v13836_v25 = vld [vmem:[%s20863_s17 + $0x180] sm:$0xff] }
 0x74a   : > { %v6330_v52 = vpop.f32.mrf.mxu3 }
 0x74b   : > { %8163 = vmatmul.bf16.gmra.mxu2 %v18528_v35  ;;  %v6331_v55 = vadd.f32 %v6330_v52, %v18681_v62  ;;  %v13849_v62 = vld [vmem:[%s20863_s17 + $0x1e8] sm:$0xff]  ;;  %v13848_v52 = vld [vmem:[%s20863_s17 + $0x1e0] sm:$0xff] }
 0x74c   : > { %v19006_v16 = vpop.f32.mrf.mxu0 }
 0x74d   : > { %v19019_v9 = vadd.f32 %v6369_v19, %v6331_v55  ;;  %8886 = vmatpush.bf16.msrb.mxu0 %v13849_v62  ;;  %8850 = vmatpush.bf16.msrb.mxu2 %v13838_v18  ;;  %v13837_v55 = vld [vmem:[%s20863_s17 + $0x188] sm:$0xff] }
 0x74e   : > { %v19021_v43 = vpop.f32.mrf.mxu2 }
 0x74f   : > { %7049 = vmatmul.bf16.gmra.mxu3 %v18496_v60  ;;  %v21271_v60 = vshrl.u32 %v18528_v35, 16  ;;  %v6795_v35 = vpack.c.b16 %v6788_v10, %v6788_v10 }
 0x751   : > { %v6372_v33 = vpop.f32.mrf.mxu1  ;;  %v7731_v19 = vor.u32 %v21271_v60, %v7727_v38  ;;  %8887 = vmatpush.bf16.msrb.mxu0 %v13848_v52  ;;  %8851 = vmatpush.bf16.msrb.mxu2 %v13837_v55  ;;  %v13847_v38 = vld [vmem:[%s20863_s17 + $0x1d8] sm:$0xff]  ;;  %v6909_v20 = vrot.slane %v6795_v35, 2 }
 0x752   : > { %v6333_v1 = vpop.f32.mrf.mxu3 }
 0x753   : > { %v6334_v6 = vadd.f32 %v6333_v1, %v18743_v0  ;;  %v19050_v40 = vsel %vm21272_vm10, %v7731_v19, %v7735_v31  ;;  %v13822_v19 = vld [vmem:[%s20863_s17 + $0x138] sm:$0xff]  ;;  %vm21298_vm10 = vmmov %vm21265_vm0 }
 0x754   : > { %v19035_v5 = vpop.f32.mrf.mxu0  ;;  %7088 = vmatmul.bf16.gmra.mxu1 %v18509_v46  ;;  %v13830_v46 = vld [vmem:[%s20863_s17 + $0x178] sm:$0xff]  ;;  %8484 = vmatpush.bf16.msra.mxu3 %v13822_v19 }
 0x755   : > { %v19047_v54 = vadd.f32 %v6372_v33, %v6334_v6  ;;  %8523 = vmatpush.bf16.msra.mxu1 %v13830_v46  ;;  %8888 = vmatpush.bf16.msrb.mxu0 %v13847_v38  ;;  %v21273_v6 = vrot.slane %v18450_v51, 2  ;;  %v21275_v51 = vshrl.u32 %v18538_v39, 16 }
 0x756   : > { %v19052_v0 = vpop.f32.mrf.mxu2  ;;  %8852 = vmatpush.bf16.msrb.mxu2 %v13836_v25  ;;  %v13829_v25 = vld [vmem:[%s20863_s17 + $0x170] sm:$0xff] }
 0x757   : > { %8202 = vmatmul.bf16.gmra.mxu0 %v19050_v40  ;;  %v6910_v60 = vsel %vm21274_vm3, %v21273_v6, %v6909_v20  ;;  %v7739_v38 = vor.u32 %v21275_v51, %v7735_v31  ;;  %v14614_v6 = vld [vmem:[#allocation2 + $0x38] sm:$0xff]   ;;  %vm21303_vm3 = vmmov %vm21265_vm0 }
 0x759   : > { %v6374_v62 = vpop.f32.mrf.mxu1  ;;  %8889 = vmatpush.bf16.msrb.mxu0 %v13846_v47  ;;  %v19100_v20 = vsel %vm21276_vm5, %v7739_v38, %v18632_v53  ;;  %8524 = vmatpush.bf16.msra.mxu1 %v13829_v25 }
 0x75a   : > { %v6335_v57 = vpop.f32.mrf.mxu3 }
 0x75b   : > { %8168 = vmatmul.bf16.gmra.mxu2 %v18538_v39  ;;  %v6336_v33 = vadd.f32 %v6335_v57, %v18781_v13  ;;  %v13845_v13 = vld [vmem:[%s20863_s17 + $0x1c8] sm:$0xff] }
 0x75c   : > { %v19064_v18 = vpop.f32.mrf.mxu0 }
 0x75d   : > { %v19071_v1 = vadd.f32 %v6374_v62, %v6336_v33  ;;  %8890 = vmatpush.bf16.msrb.mxu0 %v13845_v13  ;;  %v13844_v62 = vld [vmem:[%s20863_s17 + $0x1c0] sm:$0xff] }
 0x75e   : > { %v19073_v10 = vpop.f32.mrf.mxu2  ;;  %v8574_v13 = vld [vmem:[#allocation2 + $0x40] sm:$0xc] }
 0x75f   : > { %7054 = vmatmul.bf16.gmra.mxu3 %v6910_v60  ;;  %v7843_v60 = vrot.slane %v14614_v6, 1  ;;  %v8601_v25 = vunpack.c.l.b16 %v8574_v13 }
 0x761   : > { %v6377_v52 = vpop.f32.mrf.mxu1  ;;  %8891 = vmatpush.bf16.msrb.mxu0 %v13844_v62  ;;  %v21278_v62 = vunpack.c.l.b16 %v18634_v14 }
 0x762   : > { %v6338_v55 = vpop.f32.mrf.mxu3 }
 0x763   : > { %v6339_v46 = vadd.f32 %v6338_v55, %v18800_v59  ;;  %v14084_v59 = vld [vmem:[#allocation2 + $0x30] sm:$0xe] }
 0x764   : > { %v19084_v35 = vpop.f32.mrf.mxu0  ;;  %7093 = vmatmul.bf16.gmra.mxu1 %v18514_v37  ;;  %v14083_v37 = vld [vmem:[#allocation2 + $0x30] sm:$0xf0] }
 0x765   : > { %v19096_v57 = vadd.f32 %v6377_v52, %v6339_v46  ;;  %v14085_v31 = vor.u32 %v14084_v59, %v14083_v37  ;;  %v13821_v55 = vld [vmem:[%s20863_s17 + $0x130] sm:$0xff]  ;;  %v8614_v59 = vpack.c.b16 %v21278_v62, %v8601_v25  ;;  %v19125_v37 = vadd.f32 %v18647_v22, %v18946_v49 }
 0x766   : > { %v19102_v39 = vpop.f32.mrf.mxu2  ;;  %8485 = vmatpush.bf16.msra.mxu3 %v13821_v55  ;;  %v8640_v49 = vshll.u32 %v18672_v29, 16 }
 0x767   : > { %8207 = vmatmul.bf16.gmra.mxu0 %v19100_v20  ;;  %v7842_v52 = vrot.slane %v14085_v31, 1  ;;  %v8627_v14 = vshll.u32 %v8614_v59, 16 }
 0x769   : > { %v6379_v33 = vpop.f32.mrf.mxu1  ;;  %v7844_v38 = vsel %vm21277_vm1, %v7842_v52, %v7843_v60  ;;  %v8632_v52 = vshll.u32 %v18670_v3, 16  ;;  %v8629_v25 = vrot.slane %v8627_v14, 1 }
 0x76a   : > { %v6340_v47 = vpop.f32.mrf.mxu3 }
 0x76b   : > { %8173 = vmatmul.bf16.gmra.mxu2 %v18541_v63  ;;  %v6341_v53 = vadd.f32 %v6340_v47, %v18822_v45  ;;  %v13828_v63 = vld [vmem:[%s20863_s17 + $0x168] sm:$0xff]  ;;  %v7749_v45 = vshll.u32 %v18555_v30, 16 }
 0x76c   : > { %v19105_v19 = vpop.f32.mrf.mxu0  ;;  %8525 = vmatpush.bf16.msra.mxu1 %v13828_v63  ;;  %v8634_v63 = vrot.slane %v8632_v52, 1 }
 0x76d   : > { %v19112_v46 = vadd.f32 %v6379_v33, %v6341_v53  ;;  %v7845_v33 = vrot.slane %v18546_v24, 1  ;;  %v7751_v13 = vrot.slane %v7749_v45, 1  ;;  %v8711_v24 = vrot.slane %v8614_v59, 2 }
 0x76e   : > { %v19114_v51 = vpop.f32.mrf.mxu2  ;;  %v19144_v45 = vadd.f32 %v18688_v17, %v18966_v34  ;;  %v7848_v17 = vsel %vm21282_vm4, %v7843_v60, %v18531_v50 }
 0x76f   : > { %7974 = vmatmul.bf16.vlgmr.msrb.gmra.mxu3 %v7844_v38  ;;  %v7847_v30 = vsel %vm21279_vm2, %v7845_v33, %v18531_v50  ;;  %v7752_v22 = vsel %vm21280_vm13, %v18645_v48, %v7751_v13  ;;  %v8636_v48 = vshrl.u32 %v18670_v3, 16  ;;  %vm21310_vm2 = vmmov %vm21265_vm0 }
 0x771   : > { %v6382_v31 = vpop.f32.mrf.mxu1  ;;  %v8638_v14 = vor.u32 %v8636_v48, %v8634_v63 }
 0x772   : > { %v6343_v47 = vpop.f32.mrf.mxu3 }
 0x773   : > { %v6344_v53 = vadd.f32 %v6343_v47, %v18844_v7  ;;  %v8712_v7 = vrot.slane %v18670_v3, 2  ;;  %v8625_v47 = vshrl.u32 %v8614_v59, 16  ;;  %v19159_v3 = vadd.f32 %v18747_v44, %v18989_v26  ;;  %v21286_v26 = vld [vmem:[#allocation20_spill] sm:$0xff] }
 0x774   : > { %v19128_v6 = vpop.f32.mrf.mxu0  ;;  %8013 = vmatmul.bf16.vlgmr.msrb.gmra.mxu1 %v7847_v30  ;;  %v8717_v44 = vrot.slane %v18672_v29, 2 }
 0x775   : > { %v19134_v55 = vadd.f32 %v6382_v31, %v6344_v53  ;;  %v8713_v31 = vsel %vm21281_vm6, %v8711_v24, %v8712_v7  ;;  %v8642_v53 = vrot.slane %v8640_v49, 1  ;;  %vm21312_vm6 = vmmov %vm21265_vm0 }
 0x776   : > { %v19139_v38 = vpop.f32.mrf.mxu2 }
 0x777   : > { %8212 = vmatmul.bf16.gmra.mxu0 %v7752_v22  ;;  %v8630_v22 = vor.u32 %v8629_v25, %v8625_v47  ;;  %v8643_v34 = vsel %vm21283_vm11, %v8638_v14, %v8642_v53  ;;  %v19174_v47 = vadd.f32 %v18783_v56, %v19019_v9  ;;  %v19189_v9 = vadd.f32 %v18804_v28, %v19047_v54  ;;  %v21291_v54 = vld [vmem:[#allocation19_spill] sm:$0xff] }
 0x779   : > { %v6384_v62 = vpop.f32.mrf.mxu1  ;;  %v8635_v59 = vsel %vm21284_vm15, %v8630_v22, %v8634_v63  ;;  %v8648_v63 = vshll.u32 %v21286_v26, 16  ;;  %v8644_v22 = vshrl.u32 %v18672_v29, 16 }
 0x77a   : > { %v6345_v33 = vpop.f32.mrf.mxu3 }
 0x77b   : > { %8853 = vmatmul.bf16.vlgmr.msrb.gmra.mxu2 %v8713_v31  ;;  %v6346_v30 = vadd.f32 %v6345_v33, %v18871_v27  ;;  %v8715_v27 = vrot.slane %v8643_v34, 2  ;;  %v8714_v33 = vrot.slane %v8635_v59, 2  ;;  %v8650_v14 = vrot.slane %v8648_v63, 1 }
 0x77c   : > { %v19148_v13 = vpop.f32.mrf.mxu0 }
 0x77d   : > { %v19151_v52 = vadd.f32 %v6384_v62, %v6346_v30  ;;  %v8716_v60 = vsel %vm21285_vm12, %v8714_v33, %v8715_v27  ;;  %v8718_v30 = vsel %vm21287_vm7, %v8712_v7, %v8717_v44 }
 0x77e   : > { %v19161_v24 = vpop.f32.mrf.mxu2 }
 0x77f   : > { %7979 = vmatmul.bf16.gmra.mxu3 %v7848_v17 }
 0x781   : > { %v6387_v49 = vpop.f32.mrf.mxu1 }
 0x782   : > { %v6348_v25 = vpop.f32.mrf.mxu3 }
 0x783   : > { %v6349_v62 = vadd.f32 %v6348_v25, %v18887_v21 }
 0x784   : > { %v19163_v31 = vpop.f32.mrf.mxu0  ;;  %8018 = vmatmul.bf16.gmra.mxu1 %v18550_v36 }
 0x785   : > { %v19167_v50 = vadd.f32 %v6387_v49, %v6349_v62  ;;  %v8646_v49 = vor.u32 %v8644_v22, %v8642_v53 }
 0x786   : > { %v19178_v17 = vpop.f32.mrf.mxu2 }
 0x787   : > { %8892 = vmatmul.bf16.vlgmr.msrb.gmra.mxu0 %v8716_v60  ;;  %v8651_v56 = vsel %vm21288_vm14, %v8646_v49, %v8650_v14  ;;  %v21289_v60 = vld [vmem:[#allocation8_spill] sm:$0xff] }
 0x788   : > { %v8719_v7 = vrot.slane %v8651_v56, 2  ;;  %v13827_v49 = vld [vmem:[%s20863_s17 + $0x160] sm:$0xff] }
 0x789   : > { %v6389_v48 = vpop.f32.mrf.mxu1  ;;  %8526 = vmatpush.bf16.msra.mxu1 %v13827_v49  ;;  %v21297_v49 = vld [vmem:[#allocation10_spill] sm:$0xff] }
 0x78a   : > { %v6350_v21 = vpop.f32.mrf.mxu3  ;;  %v8720_v28 = vsel %vm21290_vm9, %v8715_v27, %v8719_v7  ;;  %v13820_v27 = vld [vmem:[%s20863_s17 + $0x128] sm:$0xff]  ;;  %vm21315_vm9 = vmmov %vm21276_vm5 }
 0x78b   : > { %8858 = vmatmul.bf16.gmra.mxu2 %v8718_v30  ;;  %v6351_v59 = vadd.f32 %v6350_v21, %v18912_v12  ;;  %v7312_v12 = vadd.f32 %v18980_v42, %v18968_v32  ;;  %v8656_v30 = vshll.u32 %v21291_v54, 16  ;;  %v19209_v32 = vld [vmem:[%s20865_s19] ss:$0 sm:$0xff]  ;;  %v8721_v42 = vrot.slane %v21286_v26, 2  ;;  %8486 = vmatpush.bf16.msra.mxu3 %v13820_v27 }
 0x78c   : > { %v19180_v34 = vpop.f32.mrf.mxu0 }
 0x78d   : > { %v19183_v25 = vadd.f32 %v6389_v48, %v6351_v59 }
 0x78e   : > { %v19194_v53 = vpop.f32.mrf.mxu2 }
 0x78f   : > { %7984 = vmatmul.bf16.gmra.mxu3 %v18550_v36  ;;  %v19202_v36 = vld [vmem:[%s20864_s18] ss:$0 sm:$0xff] }
 0x791   : > { %v7069_v29 = vpop.f32.mrf.mxu1 }
 0x792   : > { %v7030_v62 = vpop.f32.mrf.mxu3 }
 0x793   : > { %v7070_v33 = vadd.f32 %v7069_v29, %v7030_v62  ;;  %v8652_v62 = vshrl.u32 %v21286_v26, 16 }
 0x794   : > { %8023 = vmatmul.bf16.gmra.mxu1 %v21289_v60  ;;  %v19196_v63 = vpop.f32.mrf.mxu0 }
 0x795   : > { %v7099_v48 = vadd.f32 %v7070_v33, %v19125_v37  ;;  %v21292_v37 = vld [vmem:[#allocation35_spill] sm:$0xff]  ;;  %v8658_v33 = vrot.slane %v8656_v30, 1 }
 0x796   : > { %v19214_v22 = vadd.f32 %v21292_v37, %v19071_v1  ;;  %v8722_v1 = vsel %vm21265_vm0, %v8717_v44, %v8721_v42  ;;  %v19235_v30 = vpop.f32.mrf.mxu2  ;;  %v21296_v44 = vld [vmem:[#allocation39_spill] sm:$0xff] }
 0x797   : > { %8897 = vmatmul.bf16.gmra.mxu0 %v8720_v28  ;;  %v7341_v21 = vadd.f32 %v7312_v12, %v7099_v48  ;;  %v8654_v28 = vor.u32 %v8652_v62, %v8650_v14  ;;  %21294 = vst [vmem:[#allocation20_spill] sm:$0xff] %v19235_v30  ;;  %v19242_v14 = vadd.f32 %v21296_v44, %v19096_v57 }
 0x799   : > { %v7357_v59 = vmul.f32 %v19202_v36, %v7341_v21  ;;  %v7071_v56 = vpop.f32.mrf.mxu1  ;;  %v7314_v21 = vadd.f32 %v19006_v16, %v18994_v11  ;;  %v19233_v26 = vsel %vm21293_vm8, %v8654_v28, %v8658_v33  ;;  %vm21318_vm8 = vmmov %vm21277_vm1 }
 0x79a   : > { %v7032_v29 = vpop.f32.mrf.mxu3  ;;  %v20945_v16 = vrot.slane %v19233_v26, 2 }
 0x79b   : > { %v19225_v12 = vadd.f32 %v19209_v32, %v7357_v59  ;;  %v7072_v48 = vadd.f32 %v7071_v56, %v7032_v29  ;;  %8863 = vmatmul.bf16.gmra.mxu2 %v8722_v1 }
 0x79c   : > { %v19237_v59 = vpop.f32.mrf.mxu0  ;;  %v8724_v57 = vsel %vm21298_vm10, %v8719_v7, %v20945_v16  ;;  %vm21320_vm10 = vmmov %vm21310_vm2 }
 0x79d   : > { %v12553_v37 = vmul.f32 -1.442695, %v19225_v12  ;;  %v7100_v58 = vadd.f32 %v7072_v48, %v19144_v45  ;;  %21295 = vst [vmem:[#allocation8_spill] sm:$0xff] %v19237_v59 }
 0x79e   : > { %v19264_v7 = vpop.f32.mrf.mxu2 }
 0x79f   : > { %14453 = vpow2.f32 %v12553_v37  ;;  %v7342_v27 = vadd.f32 %v7314_v21, %v7100_v58  ;;  %7989 = vmatmul.bf16.gmra.mxu3 %v21289_v60  ;;  %v13819_v58 = vld [vmem:[%s20863_s17 + $0x120] sm:$0xff]  ;;  %v21299_v60 = vld [vmem:[#allocation22_spill] sm:$0xff]  ;;  %v8725_v37 = vrot.slane %v21291_v54, 2  ;;  %21300 = vst [vmem:[#allocation19_spill] sm:$0xff] %v19264_v7 }
 0x7a0   : > { %v8664_v62 = vshll.u32 %v21299_v60, 16  ;;  %8487 = vmatpush.bf16.msra.mxu3 %v13819_v58 }
 0x7a1   : > { %v7358_v11 = vmul.f32 %v19202_v36, %v7342_v27  ;;  %v7074_v48 = vpop.f32.mrf.mxu1  ;;  %v14615_v27 = vld [vmem:[#allocation2 + $0x60] sm:$0xff]  ;;  %v8726_v54 = vsel %vm21303_vm3, %v8721_v42, %v8725_v37  ;;  %vm21322_vm3 = vmmov %vm21310_vm2 }
 0x7a2   : > { %v7035_v28 = vpop.f32.mrf.mxu3  ;;  %v8660_v44 = vshrl.u32 %v14615_v27, 16  ;;  %v8666_v16 = vrot.slane %v8664_v62, 1  ;;  %v19285_v42 = vld [vmem:[#allocation2 + $0x60] sm:$0xff] }
 0x7a3   : > { %v19247_v45 = vadd.f32 %v19209_v32, %v7358_v11  ;;  %v7075_v21 = vadd.f32 %v7074_v48, %v7035_v28  ;;  %v7317_v11 = vadd.f32 %v19035_v5, %v19021_v43  ;;  %v13826_v43 = vld [vmem:[%s20863_s17 + $0x158] sm:$0xff] }
 0x7a4   : > { %8028 = vmatmul.bf16.gmra.mxu1 %v21297_v49  ;;  %v19266_v60 = vpop.f32.mrf.mxu0  ;;  %v8662_v48 = vor.u32 %v8660_v44, %v8658_v33 }
 0x7a5   : > { %v14454_v56 = vpop.eup %14453  ;;  %v12554_v29 = vmul.f32 -1.442695, %v19247_v45  ;;  %21301 = vst [vmem:[#allocation35_spill] sm:$0xff] %v19266_v60  ;;  %8527 = vmatpush.bf16.msra.mxu1 %v13826_v43 }
 0x7a6   : > { %v19258_v1 = vadd.f32 1.0, %v14454_v56  ;;  %v7101_v56 = vadd.f32 %v7075_v21, %v19159_v3  ;;  %v19279_v5 = vsel %vm21276_vm5, %v8662_v48, %v8666_v16  ;;  %v7795_v3 = vld [vmem:[#allocation2 + $0x68] sm:$0x1]  ;;  %v7319_v48 = vadd.f32 %v19064_v18, %v19052_v0 }
 0x7a7   : > { %8902 = vmatmul.bf16.gmra.mxu0 %v8724_v57  ;;  %14455 = vpow2.f32 %v12554_v29  ;;  %v21302_v29 = vld [vmem:[#allocation43_spill] sm:$0xff] }
 0x7a8   : > { %14457 = vrcp.f32 %v19258_v1  ;;  %v19271_v58 = vadd.f32 %v21302_v29, %v19112_v46  ;;  %v7343_v57 = vadd.f32 %v7317_v11, %v7101_v56  ;;  %vm7438_vm4 = vweird.f32 %v19258_v1 }
 0x7a9   : > { %v7076_v21 = vpop.f32.mrf.mxu1 }
 0x7aa   : > { %v7359_v27 = vmul.f32 %v19202_v36, %v7343_v57  ;;  %v7037_v11 = vpop.f32.mrf.mxu3  ;;  %v19309_v57 = vld [vmem:[#allocation2 + $0x68] sm:$0xff] }
 0x7ab   : > { %8868 = vmatmul.bf16.gmra.mxu2 %v8726_v54  ;;  %v7077_v29 = vadd.f32 %v7076_v21, %v7037_v11  ;;  %v7806_v54 = vunpack.c.l.b16 %v7795_v3  ;;  %v19305_v21 = vpop.f32.mrf.mxu2  ;;  %v20946_v0 = vrot.slane %v19309_v57, 2 }
 0x7ac   : > { %v19291_v56 = vadd.f32 %v19209_v32, %v7359_v27  ;;  %v21304_v27 = vrot.slane %v19285_v42, 1  ;;  %21306 = vst [vmem:[#allocation39_spill] sm:$0xff] %v19305_v21  ;;  %v19307_v11 = vpop.f32.mrf.mxu0 }
 0x7ad   : > { %v14456_v28 = vpop.eup %14455  ;;  %v7102_v41 = vadd.f32 %v7077_v29, %v19174_v47  ;;  %21307 = vst [vmem:[#allocation10_spill] sm:$0xff] %v19307_v11  ;;  %v19312_v18 = vpack.c.b16 %v7806_v54, %v7806_v54  ;;  %v19316_v47 = vadd.f32 %v18889_v8, %v19134_v55  ;;  %v8730_v55 = vsel %vm21312_vm6, %v8725_v37, %v20946_v0  ;;  %v13818_v37 = vld [vmem:[%s20863_s17 + $0x118] sm:$0xff]  ;;  %v13825_v0 = vld [vmem:[%s20863_s17 + $0x150] sm:$0xff] }
 0x7ae   : > { %v19281_v62 = vpop.eup %14457  ;;  %v19283_v46 = vadd.f32 1.0, %v14456_v28  ;;  %v12555_v33 = vmul.f32 -1.442695, %v19291_v56  ;;  %v7856_v43 = vsel %vm21277_vm1, %v21305_v4, %v21304_v27  ;;  %8488 = vmatpush.bf16.msra.mxu3 %v13818_v37  ;;  %8528 = vmatpush.bf16.msra.mxu1 %v13825_v0  ;;  %v21317_v37 = vrot.slane %v19285_v42, 1 }
 0x7af   : > { %v7434_v44 = vmul.f32 %v19281_v62, %v19258_v1  ;;  %7994 = vmatmul.bf16.gmra.mxu3 %v21297_v49  ;;  %v7344_v3 = vadd.f32 %v7319_v48, %v7102_v41  ;;  %v21311_v41 = vld [vmem:[#allocation28_spill] sm:$0xff]  ;;  %vm7439_vm13 = vweird.f32 %v19281_v62 }
 0x7b0   : > { %14459 = vrcp.f32 %v19283_v46  ;;  %v8672_v48 = vshll.u32 %v21311_v41, 16  ;;  %vm19339_vm11 = vmor %vm7438_vm4, %vm7439_vm13  ;;  %v7457_v21 = vand.u32 2147483647, %v19283_v46  ;;  %vm7453_vm7 = vweird.f32 %v19283_v46 }
 0x7b1   : > { %v7435_v28 = vsub.f32 1.0, %v7434_v44  ;;  %14461 = vpow2.f32 %v12555_v33  ;;  %v7360_v4 = vmul.f32 %v19202_v36, %v7344_v3  ;;  %v21308_v33 = vrot.slane %v19279_v5, 2  ;;  %v7079_v7 = vpop.f32.mrf.mxu1 }
 0x7b2   : > { %v21309_v44 = vrot.slane %v19233_v26, 2  ;;  %v8668_v26 = vshrl.u32 %v19309_v57, 16  ;;  %v7859_v3 = vrot.slane %v19312_v18, 1  ;;  %v7040_v59 = vpop.f32.mrf.mxu3  ;;  %vm7458_vm0 = vcmp.eq.f32.partialorder %v7457_v21, 8.507059e+37 }
 0x7b3   : > { %v7436_v49 = vmul.f32 %v19281_v62, %v7435_v28  ;;  %v19329_v8 = vadd.f32 %v19209_v32, %v7360_v4 }
 0x7b4   : > { %8033 = vmatmul.bf16.gmra.mxu1 %v7856_v43  ;;  %v8728_v29 = vsel %vm21310_vm2, %v21309_v44, %v21308_v33  ;;  %v7442_v43 = vand.u32 2147483647, %v19258_v1  ;;  %v8670_v11 = vor.u32 %v8668_v26, %v8666_v16  ;;  %v7080_v16 = vadd.f32 %v7079_v7, %v7040_v59  ;;  %v19365_v44 = vpop.f32.mrf.mxu0 }
 0x7b5   : > { %v7437_v27 = vadd.f32 %v19281_v62, %v7436_v49  ;;  %v7444_v49 = vand.u32 2147483648, %v19258_v1  ;;  %v19350_v1 = vrot.slane %v8672_v48, 1  ;;  %v8586_v48 = vld [vmem:[#allocation2 + $0x70] sm:$0x3]  ;;  %v7322_v26 = vadd.f32 %v19084_v35, %v19073_v10 }
 0x7b6   : > { %v14460_v28 = vpop.eup %14459  ;;  %vm7443_vm12 = vcmp.eq.f32.partialorder %v7442_v43, 8.507059e+37  ;;  %v19370_v59 = vadd.f32 %v18914_v15, %v19151_v52 }
 0x7b7   : > { %8907 = vmatmul.bf16.gmra.mxu0 %v8728_v29  ;;  %v7449_v54 = vmul.f32 %v14460_v28, %v19283_v46  ;;  %v14462_v33 = vpop.eup %14461  ;;  %v12556_v29 = vmul.f32 -1.442695, %v19329_v8  ;;  %v7441_v18 = vsel %vm19339_vm11, %v19281_v62, %v7437_v27  ;;  %vm7454_vm15 = vweird.f32 %v14460_v28 }
 0x7b8   : > { %v19357_v60 = vadd.f32 1.0, %v14462_v33  ;;  %v7445_v62 = vor.u32 1.1754944e-38, %v7444_v49  ;;  %v19363_v33 = vpop.f32.mrf.mxu2  ;;  %vm7455_vm14 = vmor %vm7453_vm7, %vm7454_vm15  ;;  %v19375_v35 = vsel %vm21315_vm9, %v8670_v11, %v19350_v1  ;;  %v13896_v11 = vld [vmem:[%s20863_s17 + $0xb8] sm:$0xff]  ;;  %vm21329_vm7 = vsmask.f32 6400 }
 0x7b9   : > { %v7450_v4 = vsub.f32 1.0, %v7449_v54  ;;  %v7459_v54 = vand.u32 2147483648, %v19283_v46  ;;  %14463 = vpow2.f32 %v12556_v29  ;;  %v13817_v29 = vld [vmem:[%s20863_s17 + $0x110] sm:$0xff]  ;;  %v8731_v21 = vrot.slane %v19375_v35, 2  ;;  %9789 = vmatpush.bf16.msra.mxu2 %v13896_v11  ;;  %v13904_v35 = vld [vmem:[%s20863_s17 + $0xf8] sm:$0xff] }
 0x7ba   : > { %14465 = vrcp.f32 %v19357_v60  ;;  %v7446_v7 = vsel %vm7443_vm12, %v7445_v62, %v7441_v18  ;;  %v7860_v18 = vsel %vm21318_vm8, %v21317_v37, %v7859_v3  ;;  %8489 = vmatpush.bf16.msra.mxu3 %v13817_v29  ;;  %v7081_v62 = vpop.f32.mrf.mxu1  ;;  %v21319_v3 = vrot.slane %v19279_v5, 2  ;;  %vm21328_vm12 = vmmov %vm21322_vm3  ;;  %9828 = vmatpush.bf16.msra.mxu0 %v13904_v35 }
 0x7bb   : > { %v7451_v30 = vmul.f32 %v14460_v28, %v7450_v4  ;;  %8873 = vmatmul.bf16.gmra.mxu2 %v8730_v55  ;;  %v7103_v4 = vadd.f32 %v7080_v16, %v19189_v9  ;;  %v7460_v10 = vor.u32 1.1754944e-38, %v7459_v54  ;;  %v21316_v55 = vld [vmem:[#allocation14_spill] sm:$0xff]  ;;  %v7613_v15 = vmul.f32 %v7446_v7, %v19225_v12 }
 0x7bc   : > { %v8732_v7 = vsel %vm21320_vm10, %v21319_v3, %v8731_v21  ;;  %v19426_v5 = vadd.f32 %v18940_v61, %v19167_v50  ;;  %v8303_v11 = vshrl.u32 %v18992_v23, 16  ;;  %v7472_v61 = vand.u32 2147483647, %v19357_v60 }
 0x7bd   : > { %v7452_v27 = vadd.f32 %v14460_v28, %v7451_v30  ;;  %v8613_v30 = vunpack.c.l.b16 %v8586_v48  ;;  %v7345_v0 = vadd.f32 %v7322_v26, %v7103_v4  ;;  %v7474_v50 = vand.u32 2147483648, %v19357_v60 }
 0x7be   : > { %vm7468_vm1 = vweird.f32 %v19357_v60  ;;  %vm19462_vm6 = vcmp.eq.f32.partialorder %v7472_v61, 8.507059e+37  ;;  %v7327_v61 = vadd.f32 %v19128_v6, %v19114_v51 }
 0x7bf   : > { %v7456_v46 = vsel %vm7455_vm14, %v14460_v28, %v7452_v27  ;;  %7999 = vmatmul.bf16.gmra.mxu3 %v21316_v55  ;;  %v14464_v43 = vpop.eup %14463  ;;  %v7361_v49 = vmul.f32 %v19202_v36, %v7345_v0  ;;  %v8620_v54 = vpack.c.b16 %v8613_v30, %v8613_v30  ;;  %v7324_v30 = vadd.f32 %v19105_v19, %v19102_v39  ;;  %v19420_v55 = vpop.f32.mrf.mxu0 }
 0x7c0   : > { %v7461_v9 = vsel %vm7458_vm0, %v7460_v10, %v7456_v46  ;;  %v19388_v28 = vpop.eup %14465  ;;  %v19397_v12 = vadd.f32 1.0, %v14464_v43  ;;  %v19418_v0 = vpop.f32.mrf.mxu2  ;;  %v8676_v43 = vshrl.u32 %v21311_v41, 16 }
 0x7c1   : > { %v7614_v52 = vmul.f32 %v7461_v9, %v19247_v45  ;;  %v7042_v45 = vpop.f32.mrf.mxu3  ;;  %v7464_v48 = vmul.f32 %v19388_v28, %v19357_v60  ;;  %v19405_v26 = vadd.f32 %v19209_v32, %v7361_v49  ;;  %v8733_v10 = vrot.slane %v8620_v54, 2 }
 0x7c2   : > { %14467 = vrcp.f32 %v19397_v12  ;;  %v7082_v4 = vadd.f32 %v7081_v62, %v7042_v45  ;;  %v21321_v49 = vrot.slane %v19309_v57, 2  ;;  %v8678_v19 = vor.u32 %v8676_v43, %v19350_v1  ;;  %v13894_v43 = vld [vmem:[%s20863_s17 + $0xa8] sm:$0xff] }
 0x7c3   : > { %v13969_v16 = vpack.c.bf16 %v7614_v52, %v7613_v15  ;;  %v7465_v27 = vsub.f32 1.0, %v7464_v48  ;;  %v12557_v42 = vmul.f32 -1.442695, %v19405_v26  ;;  %vm7469_vm5 = vweird.f32 %v19388_v28 }
 0x7c4   : > { %8038 = vmatmul.bf16.gmra.mxu1 %v7860_v18  ;;  %v7104_v9 = vadd.f32 %v7082_v4, %v19214_v22  ;;  %v8734_v39 = vsel %vm21322_vm3, %v21321_v49, %v8733_v10  ;;  %v8306_v45 = vshll.u32 %v18992_v23, 16  ;;  %vm19444_vm2 = vmor %vm7468_vm1, %vm7469_vm5  ;;  %v7487_v54 = vand.u32 2147483647, %v19397_v12  ;;  %v13895_v4 = vld [vmem:[%s20863_s17 + $0xb0] sm:$0xff] }
 0x7c5   : > { %13970 = vst [vmem:[%s19395_s29] sm:$0xff] %v13969_v16   ;;  %v7466_v46 = vmul.f32 %v19388_v28, %v7465_v27  ;;  %14469 = vpow2.f32 %v12557_v42  ;;  %v7489_v16 = vand.u32 2147483648, %v19397_v12  ;;  %v8735_v62 = vrot.slane %v8678_v19, 2  ;;  %v13824_v42 = vld [vmem:[%s20863_s17 + $0x148] sm:$0xff]  ;;  %9790 = vmatpush.bf16.msra.mxu2 %v13895_v4 }
 0x7c6   : > { %v7346_v15 = vadd.f32 %v7324_v30, %v7104_v9  ;;  %vm7483_vm4 = vweird.f32 %v19397_v12  ;;  %8529 = vmatpush.bf16.msra.mxu1 %v13824_v42  ;;  %v19477_v49 = vadd.f32 %v18958_v2, %v19183_v25  ;;  %vm7488_vm15 = vcmp.eq.f32.partialorder %v7487_v54, 8.507059e+37 }
 0x7c7   : > { %8912 = vmatmul.bf16.gmra.mxu0 %v8732_v7  ;;  %v7467_v29 = vadd.f32 %v19388_v28, %v7466_v46  ;;  %v7475_v7 = vor.u32 1.1754944e-38, %v7474_v50  ;;  %v19470_v9 = vpop.f32.mrf.mxu0  ;;  %v8305_v25 = vrot.slane %v8303_v11, 1 }
 0x7c8   : > { %v14468_v52 = vpop.eup %14467  ;;  %v7362_v41 = vmul.f32 %v19202_v36, %v7346_v15  ;;  %v19468_v46 = vpop.f32.mrf.mxu2 }
 0x7c9   : > { %v7479_v22 = vmul.f32 %v14468_v52, %v19397_v12  ;;  %v7471_v23 = vsel %vm19444_vm2, %v19388_v28, %v7467_v29  ;;  %vm7484_vm13 = vweird.f32 %v14468_v52  ;;  %v7084_v28 = vpop.f32.mrf.mxu1  ;;  %v7045_v10 = vpop.f32.mrf.mxu3  ;;  %9791 = vmatpush.bf16.msra.mxu2 %v13894_v43  ;;  %v8736_v12 = vsel %vm21328_vm12, %v8731_v21, %v8735_v62  ;;  %v13893_v21 = vld [vmem:[%s20863_s17 + $0xa0] sm:$0xff]  ;;  %vm21333_vm2 = vmmov %vm21329_vm7 }
 0x7ca   : > { %v19442_v37 = vadd.f32 %v19209_v32, %v7362_v41  ;;  %v7085_v15 = vadd.f32 %v7084_v28, %v7045_v10  ;;  %vm7485_vm11 = vmor %vm7483_vm4, %vm7484_vm13  ;;  %v7490_v41 = vor.u32 1.1754944e-38, %v7489_v16  ;;  %v13823_v62 = vld [vmem:[%s20863_s17 + $0x140] sm:$0xff]  ;;  %v13892_v10 = vld [vmem:[%s20863_s17 + $0x98] sm:$0xff]  ;;  %v7329_v43 = vadd.f32 %v19148_v13, %v19139_v38 }
 0x7cb   : > { %8878 = vmatmul.bf16.gmra.mxu2 %v8734_v39  ;;  %v14470_v57 = vpop.eup %14469  ;;  %v7480_v1 = vsub.f32 1.0, %v7479_v22  ;;  %v21327_v39 = vld [vmem:[#allocation9_spill] sm:$0xff]  ;;  %v7476_v22 = vsel %vm19462_vm6, %v7475_v7, %v7471_v23  ;;  %v13903_v7 = vld [vmem:[%s20863_s17 + $0xf0] sm:$0xff]  ;;  %8530 = vmatpush.bf16.msra.mxu1 %v13823_v62  ;;  %v8319_v38 = vshll.u32 %v19050_v40, 16  ;;  %vm21334_vm13 = vcmask 1046528  }
 0x7cc   : > { %v19450_v48 = vadd.f32 1.0, %v14470_v57  ;;  %v12558_v27 = vmul.f32 -1.442695, %v19442_v37  ;;  %v8295_v19 = vshrl.u32 %v21327_v39, 16  ;;  %v8298_v29 = vshll.u32 %v21327_v39, 16  ;;  %9829 = vmatpush.bf16.msra.mxu0 %v13903_v7 }
 0x7cd   : > { %v7481_v60 = vmul.f32 %v14468_v52, %v7480_v1  ;;  %v7105_v2 = vadd.f32 %v7085_v15, %v19242_v14  ;;  %v8308_v57 = vrot.slane %v8306_v45, 2  ;;  %v7615_v18 = vmul.f32 %v7476_v22, %v19291_v56  ;;  %9792 = vmatpush.bf16.msra.mxu2 %v13893_v21 }
 0x7ce   : > { %14471 = vrcp.f32 %v19450_v48  ;;  %v8297_v51 = vrot.slane %v8295_v19, 1  ;;  %v8300_v6 = vrot.slane %v8298_v29, 2  ;;  %vm7498_vm9 = vweird.f32 %v19450_v48 }
 0x7cf   : > { %v7482_v30 = vadd.f32 %v14468_v52, %v7481_v60  ;;  %14473 = vpow2.f32 %v12558_v27  ;;  %v7347_v23 = vadd.f32 %v7327_v61, %v7105_v2  ;;  %v19508_v45 = vor.u32 %v8308_v57, %v8305_v25  ;;  %v19531_v19 = vpop.f32.mrf.mxu0 }
 0x7d0   : > { %v19529_v39 = vpop.f32.mrf.mxu2 }
 0x7d1   : > { %v7486_v50 = vsel %vm7485_vm11, %v14468_v52, %v7482_v30  ;;  %v7363_v56 = vmul.f32 %v19202_v36, %v7347_v23  ;;  %v7086_v27 = vpop.f32.mrf.mxu1  ;;  %v7047_v42 = vpop.f32.mrf.mxu3  ;;  %v8301_v30 = vor.u32 %v8300_v6, %v8297_v51  ;;  %9793 = vmatpush.bf16.msra.mxu2 %v13892_v10  ;;  %v7504_v23 = vand.u32 2147483648, %v19450_v48 }
 0x7d2   : > { %v7491_v1 = vsel %vm7488_vm15, %v7490_v41, %v7486_v50  ;;  %v7087_v28 = vadd.f32 %v7086_v27, %v7047_v42  ;;  %v8316_v50 = vshrl.u32 %v19050_v40, 16  ;;  %v7502_v40 = vand.u32 2147483647, %v19450_v48 }
 0x7d3   : > { %v7616_v60 = vmul.f32 %v7491_v1, %v19329_v8  ;;  %v13816_v8 = vld [vmem:[%s20863_s17 + $0x108] sm:$0xff]  ;;  %v19517_v3 = vadd.f32 %v19209_v32, %v7363_v56  ;;  %v8310_v41 = vsel %vm21329_vm7, %v8301_v30, %v19508_v45  ;;  %v7505_v10 = vor.u32 1.1754944e-38, %v7504_v23 }
 0x7d4   : > { %v19494_v16 = vpop.eup %14471  ;;  %8490 = vmatpush.bf16.msra.mxu3 %v13816_v8  ;;  %v7106_v29 = vadd.f32 %v7087_v28, %v19271_v58  ;;  %8531 = vmatmul.bf16.vlgmr.msra.gmra.mxu1 %v8310_v41  ;;  %v8318_v1 = vrot.slane %v8316_v50, 1  ;;  %v7332_v28 = vadd.f32 %v19163_v31, %v19161_v24  ;;  %v13890_v30 = vld [vmem:[%s20863_s17 + $0x88] sm:$0xff]  ;;  %vm7503_vm10 = vcmp.eq.f32.partialorder %v7502_v40, 8.507059e+37  ;;  %v21332_v24 = vld [vmem:[#allocation16_spill] sm:$0xff] }
 0x7d5   : > { %v14474_v14 = vpop.eup %14473  ;;  %v13974_v52 = vpack.c.bf16 %v7616_v60, %v7615_v18  ;;  %v7494_v11 = vmul.f32 %v19494_v16, %v19450_v48  ;;  %v12559_v15 = vmul.f32 -1.442695, %v19517_v3  ;;  %vm7499_vm14 = vweird.f32 %v19494_v16 }
 0x7d6   : > { %v19510_v54 = vadd.f32 1.0, %v14474_v14  ;;  %v7348_v61 = vadd.f32 %v7329_v43, %v7106_v29  ;;  %v8321_v18 = vrot.slane %v8319_v38, 2  ;;  %vm19547_vm0 = vmor %vm7498_vm9, %vm7499_vm14  ;;  %v13902_v14 = vld [vmem:[%s20863_s17 + $0xe8] sm:$0xff]  ;;  %v14094_v29 = vld [vmem:[#allocation2 + $0x60] sm:$0xf0] }
 0x7d7   : > { %8917 = vmatmul.bf16.gmra.mxu0 %v8736_v12  ;;  %14076 = vst [vmem:[%s19395_s29 + $0x8] sm:$0xff] %v13974_v52   ;;  %v7495_v4 = vsub.f32 1.0, %v7494_v11  ;;  %v13815_v52 = vld [vmem:[%s20863_s17 + $0x100] sm:$0xff]  ;;  %v13891_v11 = vld [vmem:[%s20863_s17 + $0x90] sm:$0xff]  ;;  %v19589_v38 = vld [vmem:[#allocation2 + $0x68] sm:$0xff]  }
 0x7d8   : > { %14475 = vrcp.f32 %v19510_v54  ;;  %v7364_v13 = vmul.f32 %v19202_v36, %v7348_v61  ;;  %v7517_v56 = vand.u32 2147483647, %v19510_v54  ;;  %v7519_v8 = vand.u32 2147483648, %v19510_v54  ;;  %v19570_v42 = vpop.f32.mrf.mxu2  ;;  %9830 = vmatpush.bf16.msra.mxu0 %v13902_v14  ;;  %8491 = vmatpush.bf16.msra.mxu3 %v13815_v52  ;;  %vm21338_vm9 = vmmov %vm21333_vm2 }
 0x7d9   : > { %v7496_v22 = vmul.f32 %v19494_v16, %v7495_v4  ;;  %14477 = vpow2.f32 %v12559_v15  ;;  %v7089_v21 = vpop.f32.mrf.mxu1  ;;  %v7050_v62 = vpop.f32.mrf.mxu3  ;;  %9794 = vmatpush.bf16.msra.mxu2 %v13891_v11  ;;  %vm7513_vm3 = vweird.f32 %v19510_v54  ;;  %v19587_v31 = vor.u32 %v8321_v18, %v8318_v1  ;;  %v13900_v1 = vld [vmem:[%s20863_s17 + $0xd8] sm:$0xff]  ;;  %v13889_v18 = vld [vmem:[%s20863_s17 + $0x80] sm:$0xff]  ;;  %v13899_v11 = vld [vmem:[%s20863_s17 + $0xd0] sm:$0xff] }
 0x7da   : > { %v19545_v57 = vadd.f32 %v19209_v32, %v7364_v13  ;;  %v19572_v4 = vpop.f32.mrf.mxu0  ;;  %v7090_v7 = vadd.f32 %v7089_v21, %v7050_v62  ;;  %v7520_v41 = vor.u32 1.1754944e-38, %v7519_v8  ;;  %vm7518_vm1 = vcmp.eq.f32.partialorder %v7517_v56, 8.507059e+37  ;;  %v14095_v13 = vld [vmem:[#allocation2 + $0x60] sm:$0xe] }
 0x7db   : > { %v7497_v58 = vadd.f32 %v19494_v16, %v7496_v22  ;;  %8492 = vmatmul.bf16.vlgmr.msra.gmra.mxu3 %v21332_v24 }
 0x7dc   : > { %v12560_v6 = vmul.f32 -1.442695, %v19545_v57  ;;  %v7107_v15 = vadd.f32 %v7090_v7, %v19316_v47  ;;  %v8332_v7 = vshll.u32 %v19100_v20, 16 }
 0x7dd   : > { %v7501_v48 = vsel %vm19547_vm0, %v19494_v16, %v7497_v58  ;;  %v13901_v16 = vld [vmem:[%s20863_s17 + $0xe0] sm:$0xff]  ;;  %9795 = vmatpush.bf16.msra.mxu2 %v13890_v30 }
 0x7de   : > { %v14476_v2 = vpop.eup %14475  ;;  %14479 = vpow2.f32 %v12560_v6  ;;  %v7506_v22 = vsel %vm7503_vm10, %v7505_v10, %v7501_v48  ;;  %9831 = vmatpush.bf16.msra.mxu0 %v13901_v16  ;;  %v7349_v50 = vadd.f32 %v7332_v28, %v7107_v15  ;;  %v8329_v16 = vshrl.u32 %v19100_v20, 16 }
 0x7df   : > { %v7509_v25 = vmul.f32 %v14476_v2, %v19510_v54  ;;  %v14478_v12 = vpop.eup %14477  ;;  %vm7514_vm8 = vweird.f32 %v14476_v2  ;;  %v14096_v54 = vor.u32 %v14095_v13, %v14094_v29  ;;  %v7334_v10 = vadd.f32 %v19180_v34, %v19178_v17  ;;  %v9615_v29 = vld [vmem:[#allocation2 + $0x68] sm:$0xe] }
 0x7e0   : > { %v19568_v35 = vadd.f32 1.0, %v14478_v12  ;;  %vm7515_vm5 = vmor %vm7513_vm3, %vm7514_vm8  ;;  %v7365_v40 = vmul.f32 %v19202_v36, %v7349_v50  ;;  %v19622_v21 = vpop.f32.mrf.mxu2  ;;  %v8334_v24 = vrot.slane %v8332_v7, 2  ;;  %v14041_v13 = vunpack.c.h.b16 %v19589_v38 }
 0x7e1   : > { %v7510_v51 = vsub.f32 1.0, %v7509_v25  ;;  %v7617_v25 = vmul.f32 %v7506_v22, %v19405_v26  ;;  %v7052_v12 = vpop.f32.mrf.mxu3  ;;  %9796 = vmatpush.bf16.msra.mxu2 %v13889_v18  ;;  %v9665_v48 = vrot.slane %v14096_v54, 1  ;;  %v7091_v56 = vpop.f32.mrf.mxu1  ;;  %v19655_v18 = vld [vmem:[#allocation2 + $0x70] sm:$0xff]  ;;  %vm21339_vm8 = vmmov %vm21334_vm13 }
 0x7e2   : > { %14481 = vrcp.f32 %v19568_v35  ;;  %v19614_v52 = vadd.f32 %v19209_v32, %v7365_v40  ;;  %9832 = vmatpush.bf16.msra.mxu0 %v13900_v1  ;;  %v19624_v62 = vpop.f32.mrf.mxu0  ;;  %v7532_v34 = vand.u32 2147483647, %v19568_v35  ;;  %v7534_v50 = vand.u32 2147483648, %v19568_v35  ;;  %v21337_v1 = vld [vmem:[#allocation15_spill] sm:$0xff]  ;;  %vm21340_vm10 = vmmov %vm21339_vm8 }
 0x7e3   : > { %v7511_v27 = vmul.f32 %v14476_v2, %v7510_v51  ;;  %v8323_v51 = vsel %vm21333_vm2, %v19508_v45, %v19587_v31  ;;  %vm7528_vm4 = vweird.f32 %v19568_v35 }
 0x7e4   : > { %v14480_v47 = vpop.eup %14479  ;;  %8536 = vmatmul.bf16.gmra.mxu1 %v8323_v51  ;;  %v12561_v8 = vmul.f32 -1.442695, %v19614_v52  ;;  %vm7533_vm12 = vcmp.eq.f32.partialorder %v7532_v34, 8.507059e+37 }
 0x7e5   : > { %v7512_v43 = vadd.f32 %v14476_v2, %v7511_v27  ;;  %v19605_v26 = vadd.f32 1.0, %v14480_v47  ;;  %v7092_v27 = vadd.f32 %v7091_v56, %v7052_v12 }
 0x7e6   : > { %9833 = vmatpush.bf16.msra.mxu0 %v13899_v11  ;;  %v13859_v11 = vld [vmem:[%s20863_s17 + $0x238] sm:$0xff] }
 0x7e7   : > { %v7516_v61 = vsel %vm7515_vm5, %v14476_v2, %v7512_v43  ;;  %v13867_v2 = vld [vmem:[%s20863_s17 + $0x278] sm:$0xff]  ;;  %14483 = vrcp.f32 %v19605_v26  ;;  %v7108_v43 = vadd.f32 %v7092_v27, %v19370_v59  ;;  %v9626_v59 = vunpack.c.l.b16 %v9615_v29  ;;  %9086 = vmatpush.bf16.msrb.mxu3 %v13859_v11 }
 0x7e8   : > { %v7521_v58 = vsel %vm7518_vm1, %v7520_v41, %v7516_v61  ;;  %v19603_v23 = vpop.eup %14481  ;;  %9125 = vmatpush.bf16.msrb.mxu1 %v13867_v2  ;;  %14485 = vpow2.f32 %v12561_v8  ;;  %v8331_v41 = vrot.slane %v8329_v16, 1  ;;  %v7549_v40 = vand.u32 2147483648, %v19605_v26 }
 0x7e9   : > { %v7618_v60 = vmul.f32 %v7521_v58, %v19442_v37  ;;  %v9666_v37 = vrot.slane %v19589_v38, 1  ;;  %v7524_v14 = vmul.f32 %v19603_v23, %v19568_v35  ;;  %v7350_v15 = vadd.f32 %v7334_v10, %v7108_v43  ;;  %v7094_v8 = vpop.f32.mrf.mxu1  ;;  %v7055_v27 = vpop.f32.mrf.mxu3  ;;  %v13878_v38 = vld [vmem:[%s20863_s17 + $0x30] sm:$0xff] }
 0x7ea   : > { %vm7529_vm6 = vweird.f32 %v19603_v23  ;;  %v19657_v12 = vor.u32 %v8334_v24, %v8331_v41  ;;  %v19671_v56 = vpop.f32.mrf.mxu0  ;;  %v19679_v16 = vpack.c.b16 %v14041_v13, %v9626_v59  ;;  %vm7543_vm7 = vweird.f32 %v19605_v26 }
 0x7eb   : > { %v13979_v6 = vpack.c.bf16 %v7618_v60, %v7617_v25  ;;  %v7525_v45 = vsub.f32 1.0, %v7524_v14  ;;  %v9667_v28 = vsel %vm21334_vm13, %v9665_v48, %v9666_v37  ;;  %v7366_v17 = vmul.f32 %v19202_v36, %v7350_v15  ;;  %vm19646_vm11 = vmor %vm7528_vm4, %vm7529_vm6  ;;  %8497 = vmatmul.bf16.gmra.mxu3 %v21337_v1  ;;  %v19663_v14 = vpop.f32.mrf.mxu2  ;;  %v13898_v48 = vld [vmem:[%s20863_s17 + $0xc8] sm:$0xff] }
 0x7ec   : > { %9797 = vmatmul.bf16.vlgmr.msra.gmra.mxu2 %v9667_v28  ;;  %v7547_v60 = vand.u32 2147483647, %v19605_v26  ;;  %9834 = vmatpush.bf16.msra.mxu0 %v13898_v48  ;;  %v13897_v28 = vld [vmem:[%s20863_s17 + $0xc0] sm:$0xff]  ;;  %v7095_v10 = vadd.f32 %v7094_v8, %v7055_v27  ;;  %v7550_v43 = vor.u32 1.1754944e-38, %v7549_v40  ;;  %v19687_v15 = vrot.slane %v19655_v18, 1  ;;  %v21343_v27 = vld [vmem:[#allocation18_spill] sm:$0xff]  ;;  %vm21347_vm6 = vmmov %vm21339_vm8 }
 0x7ed   : > { %14077 = vst [vmem:[%s19395_s29 + $0x10] sm:$0xff] %v13979_v6   ;;  %v7526_v30 = vmul.f32 %v19603_v23, %v7525_v45  ;;  %v14484_v22 = vpop.eup %14483  ;;  %v19644_v47 = vadd.f32 %v19209_v32, %v7366_v17  ;;  %v7535_v45 = vor.u32 1.1754944e-38, %v7534_v50  ;;  %v7337_v29 = vadd.f32 %v19196_v63, %v19194_v53 }
 0x7ee   : > { %v7539_v61 = vmul.f32 %v14484_v22, %v19605_v26  ;;  %v14486_v58 = vpop.eup %14485  ;;  %vm7544_vm15 = vweird.f32 %v14484_v22  ;;  %v8336_v26 = vsel %vm21338_vm9, %v19587_v31, %v19657_v12  ;;  %vm7548_vm0 = vcmp.eq.f32.partialorder %v7547_v60, 8.507059e+37 }
 0x7ef   : > { %v7527_v20 = vadd.f32 %v19603_v23, %v7526_v30  ;;  %v19652_v2 = vadd.f32 1.0, %v14486_v58  ;;  %v12562_v6 = vmul.f32 -1.442695, %v19644_v47  ;;  %vm7545_vm14 = vmor %vm7543_vm7, %vm7544_vm15  ;;  %v7109_v24 = vadd.f32 %v7095_v10, %v19426_v5 }
 0x7f0   : > { %v7540_v54 = vsub.f32 1.0, %v7539_v61  ;;  %9835 = vmatpush.bf16.msra.mxu0 %v13897_v28  ;;  %v9668_v50 = vrot.slane %v19679_v16, 1  ;;  %v9671_v53 = vsel %vm21339_vm8, %v9666_v37, %v19687_v15 }
 0x7f1   : > { %v7531_v35 = vsel %vm19646_vm11, %v19603_v23, %v7527_v20  ;;  %v13866_v23 = vld [vmem:[%s20863_s17 + $0x270] sm:$0xff]  ;;  %14487 = vrcp.f32 %v19652_v2  ;;  %v7351_v34 = vadd.f32 %v7337_v29, %v7109_v24  ;;  %v7057_v37 = vpop.f32.mrf.mxu3  ;;  %vm7558_vm5 = vweird.f32 %v19652_v2 }
 0x7f2   : > { %v7541_v51 = vmul.f32 %v14484_v22, %v7540_v54  ;;  %14489 = vpow2.f32 %v12562_v6  ;;  %v7536_v30 = vsel %vm7533_vm12, %v7535_v45, %v7531_v35  ;;  %9126 = vmatpush.bf16.msrb.mxu1 %v13866_v23  ;;  %v7096_v54 = vpop.f32.mrf.mxu1  ;;  %v19720_v1 = vpop.f32.mrf.mxu0  ;;  %v21342_v6 = vld [vmem:[#allocation8_spill] sm:$0xff]  ;;  %v7564_v29 = vand.u32 2147483648, %v19652_v2 }
 0x7f3   : > { %v7619_v61 = vmul.f32 %v7536_v30, %v19517_v3  ;;  %v7367_v3 = vmul.f32 %v19202_v36, %v7351_v34  ;;  %v19718_v40 = vpop.f32.mrf.mxu2  ;;  %v7097_v35 = vadd.f32 %v7096_v54, %v7057_v37 }
 0x7f4   : > { %v7542_v7 = vadd.f32 %v14484_v22, %v7541_v51  ;;  %8541 = vmatmul.bf16.gmra.mxu1 %v8336_v26  ;;  %v21341_v51 = vld [vmem:[#allocation20_spill] sm:$0xff] }
 0x7f5   : > { %v19716_v60 = vadd.f32 %v19209_v32, %v7367_v3  ;;  %v7339_v11 = vadd.f32 %v21342_v6, %v21341_v51  ;;  %v7110_v23 = vadd.f32 %v7097_v35, %v19477_v49  ;;  %v7562_v49 = vand.u32 2147483647, %v19652_v2 }
 0x7f6   : > { %v7546_v41 = vsel %vm7545_vm14, %v14484_v22, %v7542_v7  ;;  %v13858_v22 = vld [vmem:[%s20863_s17 + $0x230] sm:$0xff]  ;;  %v19729_v7 = vld [vmem:[#allocation2 + $0x78] sm:$0xff]  ;;  %vm21353_vm14 = vmmov %vm21347_vm6 }
 0x7f7   : > { %v7551_v20 = vsel %vm7548_vm0, %v7550_v43, %v7546_v41  ;;  %v19698_v59 = vpop.eup %14487  ;;  %9087 = vmatpush.bf16.msrb.mxu3 %v13858_v22  ;;  %v12563_v48 = vmul.f32 -1.442695, %v19716_v60  ;;  %v7352_v8 = vadd.f32 %v7339_v11, %v7110_v23  ;;  %v9672_v41 = vrot.slane %v19729_v7, 1  ;;  %v13863_v23 = vld [vmem:[%s20863_s17 + $0x258] sm:$0xff] }
 0x7f8   : > { %v7620_v17 = vmul.f32 %v7551_v20, %v19545_v57  ;;  %v14490_v63 = vpop.eup %14489  ;;  %v7554_v31 = vmul.f32 %v19698_v59, %v19652_v2  ;;  %v9670_v57 = vsel %vm21340_vm10, %v9668_v50, %v19687_v15  ;;  %vm7559_vm3 = vweird.f32 %v19698_v59  ;;  %v13857_v2 = vld [vmem:[%s20863_s17 + $0x228] sm:$0xff] }
 0x7f9   : > { %v19712_v58 = vadd.f32 1.0, %v14490_v63  ;;  %9836 = vmatmul.bf16.vlgmr.msra.gmra.mxu0 %v9670_v57  ;;  %v7368_v28 = vmul.f32 %v19202_v36, %v7352_v8  ;;  %vm19742_vm1 = vmor %vm7558_vm5, %vm7559_vm3  ;;  %v21346_v50 = vld [vmem:[#allocation29_spill] sm:$0xff]  ;;  %v7975_v22 = vpop.f32.mrf.mxu3  ;;  %v9673_v35 = vsel %vm21347_vm6, %v19687_v15, %v9672_v41  ;;  %vm7563_vm4 = vcmp.eq.f32.partialorder %v7562_v49, 8.507059e+37  ;;  %v13855_v15 = vld [vmem:[%s20863_s17 + $0x218] sm:$0xff] }
 0x7fa   : > { %v13984_v5 = vpack.c.bf16 %v7620_v17, %v7619_v61  ;;  %v7555_v25 = vsub.f32 1.0, %v7554_v31  ;;  %v19752_v34 = vpop.f32.mrf.mxu0  ;;  %v8014_v57 = vpop.f32.mrf.mxu1 }
 0x7fb   : > { %14491 = vrcp.f32 %v19712_v58  ;;  %8502 = vmatmul.bf16.gmra.mxu3 %v21343_v27  ;;  %v19736_v26 = vadd.f32 %v19209_v32, %v7368_v28  ;;  %v19747_v17 = vpop.f32.mrf.mxu2  ;;  %v13865_v32 = vld [vmem:[%s20863_s17 + $0x268] sm:$0xff]  ;;  %v7579_v31 = vand.u32 2147483648, %v19712_v58  ;;  %v19767_v37 = vadd.f32 %v8014_v57, %v7975_v22  ;;  %v21351_v57 = vld [vmem:[#allocation23_spill] sm:$0xff] }
 0x7fc   : > { %9802 = vmatmul.bf16.gmra.mxu2 %v9671_v53  ;;  %14078 = vst [vmem:[%s19395_s29 + $0x18] sm:$0xff] %v13984_v5   ;;  %v7556_v45 = vmul.f32 %v19698_v59, %v7555_v25  ;;  %14493 = vpow2.f32 %v12563_v48  ;;  %v8349_v53 = vsel %vm21333_vm2, %v19657_v12, %v21346_v50  ;;  %v7577_v5 = vand.u32 2147483647, %v19712_v58  ;;  %9127 = vmatpush.bf16.msrb.mxu1 %v13865_v32  ;;  %v13864_v12 = vld [vmem:[%s20863_s17 + $0x260] sm:$0xff] }
 0x7fd   : > { %v12564_v61 = vmul.f32 -1.442695, %v19736_v26  ;;  %9088 = vmatpush.bf16.msrb.mxu3 %v13857_v2  ;;  %v7565_v25 = vor.u32 1.1754944e-38, %v7564_v29  ;;  %vm7573_vm11 = vweird.f32 %v19712_v58  ;;  %v7580_v11 = vor.u32 1.1754944e-38, %v7579_v31  ;;  %v21349_v32 = vld [vmem:[#allocation17_spill] sm:$0xff] }
 0x7fe   : > { %v7557_v30 = vadd.f32 %v19698_v59, %v7556_v45  ;;  %vm7578_vm12 = vcmp.eq.f32.partialorder %v7577_v5, 8.507059e+37  ;;  %v19813_v2 = vld [vmem:[#allocation2 + $0x80] sm:$0xff] }
 0x7ff   : > { %14495 = vpow2.f32 %v12564_v61  ;;  %v13854_v61 = vld [vmem:[%s20863_s17 + $0x210] sm:$0xff]  ;;  %v9674_v31 = vrot.slane %v19813_v2, 1 }
 0x800   : > { %v7561_v63 = vsel %vm19742_vm1, %v19698_v59, %v7557_v30  ;;  %v13856_v59 = vld [vmem:[%s20863_s17 + $0x220] sm:$0xff]  ;;  %9128 = vmatpush.bf16.msrb.mxu1 %v13864_v12 }
 0x801   : > { %v14492_v10 = vpop.eup %14491  ;;  %v7566_v6 = vsel %vm7563_vm4, %v7565_v25, %v7561_v63  ;;  %9089 = vmatpush.bf16.msrb.mxu3 %v13856_v59  ;;  %v7977_v29 = vpop.f32.mrf.mxu3  ;;  %v13861_v59 = vld [vmem:[%s20863_s17 + $0x248] sm:$0xff]  ;;  %v13911_v25 = vld [vmem:[%s20863_s17 + $0x130] sm:$0xff] }
 0x802   : > { %v7569_v43 = vmul.f32 %v14492_v10, %v19712_v58  ;;  %v14494_v24 = vpop.eup %14493  ;;  %vm7574_vm13 = vweird.f32 %v14492_v10  ;;  %v7621_v8 = vmul.f32 %v7566_v6, %v19614_v52  ;;  %v8016_v49 = vpop.f32.mrf.mxu1 }
 0x803   : > { %v19765_v3 = vadd.f32 1.0, %v14494_v24  ;;  %vm7575_vm15 = vmor %vm7573_vm11, %vm7574_vm13  ;;  %v19790_v28 = vpop.f32.mrf.mxu2  ;;  %v13912_v24 = vld [vmem:[%s20863_s17 + $0x138] sm:$0xff] }
 0x804   : > { %v7570_v20 = vsub.f32 1.0, %v7569_v43  ;;  %8546 = vmatmul.bf16.gmra.mxu1 %v8349_v53  ;;  %10307 = vmatpush.bf16.msrb.mxu2 %v13912_v24  ;;  %v21350_v53 = vld [vmem:[#allocation12_spill] sm:$0xff]  ;;  %vm21359_vm13 = vmmov %vm21347_vm6 }
 0x805   : > { %14497 = vrcp.f32 %v19765_v3  ;;  %v14496_v58 = vpop.eup %14495  ;;  %9129 = vmatpush.bf16.msrb.mxu1 %v13863_v23  ;;  %9090 = vmatpush.bf16.msrb.mxu3 %v13855_v15  ;;  %v8247_v63 = vshrl.u32 %v21350_v53, 16  ;;  %vm7588_vm9 = vweird.f32 %v19765_v3  ;;  %vm21361_vm6 = vmmov %vm21333_vm2 }
 0x806   : > { %v7571_v54 = vmul.f32 %v14492_v10, %v7570_v20  ;;  %v19796_v43 = vadd.f32 1.0, %v14496_v58  ;;  %v13862_v20 = vld [vmem:[%s20863_s17 + $0x250] sm:$0xff]  ;;  %v13910_v58 = vld [vmem:[%s20863_s17 + $0x128] sm:$0xff]  ;;  %vm21364_vm4 = vmmov %vm21359_vm13 }
 0x807   : > { %v8249_v22 = vor.u32 %v8247_v63, %v21351_v57  ;;  %vm21365_vm11 = vmmov %vm21364_vm4 }
 0x808   : > { %v7572_v51 = vadd.f32 %v14492_v10, %v7571_v54  ;;  %14499 = vrcp.f32 %v19796_v43  ;;  %10308 = vmatpush.bf16.msrb.mxu2 %v13911_v25  ;;  %vm7603_vm3 = vweird.f32 %v19796_v43 }
 0x809   : > { %9841 = vmatmul.bf16.gmra.mxu0 %v9673_v35  ;;  %9130 = vmatpush.bf16.msrb.mxu1 %v13862_v20  ;;  %v7609_v20 = vand.u32 2147483648, %v19796_v43 }
 0x80a   : > { %v7576_v48 = vsel %vm7575_vm15, %v14492_v10, %v7572_v51  ;;  %v19792_v10 = vpop.f32.mrf.mxu0  ;;  %9091 = vmatpush.bf16.msrb.mxu3 %v13854_v61  ;;  %v8019_v6 = vpop.f32.mrf.mxu1  ;;  %vm21369_vm15 = vmmov %vm21333_vm2 }
 0x80b   : > { %v7581_v45 = vsel %vm7578_vm12, %v7580_v11, %v7576_v48  ;;  %21348 = vst [vmem:[#allocation22_spill] sm:$0xff] %v19792_v10  ;;  %v19794_v30 = vpop.eup %14497  ;;  %8507 = vmatmul.bf16.gmra.mxu3 %v21349_v32  ;;  %v8854_v54 = vpop.f32.mrf.mxu2  ;;  %v21352_v48 = vld [vmem:[#allocation31_spill] sm:$0xff]  ;;  %v7607_v32 = vand.u32 2147483647, %v19796_v43  ;;  %vm21370_vm12 = vmmov %vm21364_vm4  ;;  %v21375_v10 = vld [vmem:[#allocation21_spill] sm:$0xff] }
 0x80c   : > { %9807 = vmatmul.bf16.gmra.mxu2 %v9673_v35  ;;  %v7622_v27 = vmul.f32 %v7581_v45, %v19644_v47  ;;  %v7584_v52 = vmul.f32 %v19794_v30, %v19765_v3  ;;  %v19803_v47 = vadd.f32 %v8016_v49, %v7977_v29  ;;  %v7980_v11 = vpop.f32.mrf.mxu3  ;;  %vm7589_vm7 = vweird.f32 %v19794_v30 }
 0x80d   : > { %v19834_v45 = vadd.f32 %v8019_v6, %v7980_v11  ;;  %9131 = vmatpush.bf16.msrb.mxu1 %v13861_v59  ;;  %v8368_v49 = vshrl.u32 %v8249_v22, 16  ;;  %v7592_v29 = vand.u32 2147483647, %v19765_v3  ;;  %vm19847_vm0 = vmor %vm7588_vm9, %vm7589_vm7  ;;  %10309 = vmatpush.bf16.msrb.mxu2 %v13910_v58  ;;  %v13909_v59 = vld [vmem:[%s20863_s17 + $0x120] sm:$0xff]  ;;  %v7610_v6 = vor.u32 1.1754944e-38, %v7609_v20  ;;  %v14618_v20 = vld [vmem:[#allocation2 + $0x88] sm:$0xff] }
 0x80e   : > { %v13989_v36 = vpack.c.bf16 %v7622_v27, %v7621_v8  ;;  %v7585_v50 = vsub.f32 1.0, %v7584_v52  ;;  %v14500_v35 = vpop.eup %14499  ;;  %v7594_v8 = vand.u32 2147483648, %v19765_v3  ;;  %v9675_v27 = vsel %vm21353_vm14, %v9672_v41, %v9674_v31  ;;  %vm21376_vm9 = vmmov %vm21333_vm2 }
 0x80f   : > { %v7599_v15 = vmul.f32 %v14500_v35, %v19796_v43  ;;  %vm7604_vm8 = vweird.f32 %v14500_v35  ;;  %vm7593_vm10 = vcmp.eq.f32.partialorder %v7592_v29, 8.507059e+37  ;;  %vm7608_vm1 = vcmp.eq.f32.partialorder %v7607_v32, 8.507059e+37  ;;  %v13908_v29 = vld [vmem:[%s20863_s17 + $0x118] sm:$0xff] }
 0x810   : > { %14079 = vst [vmem:[%s19395_s29 + $0x20] sm:$0xff] %v13989_v36   ;;  %v7586_v5 = vmul.f32 %v19794_v30, %v7585_v50  ;;  %v8371_v36 = vshll.u32 %v8249_v22, 16  ;;  %v7595_v3 = vor.u32 1.1754944e-38, %v7594_v8  ;;  %v8370_v50 = vrot.slane %v8368_v49, 1  ;;  %vm7605_vm5 = vmor %vm7603_vm3, %vm7604_vm8  ;;  %v13919_v8 = vld [vmem:[%s20863_s17 + $0x170] sm:$0xff] }
 0x811   : > { %v7600_v24 = vsub.f32 1.0, %v7599_v15  ;;  %v21356_v49 = vld [vmem:[#allocation7_spill] sm:$0xff]  ;;  %10310 = vmatpush.bf16.msrb.mxu2 %v13909_v59  ;;  %v21358_v59 = vshll.u32 %v21350_v53, 16  ;;  %vm21371_vm7 = vsmask.f32 7424 }
 0x812   : > { %v8893_v12 = vpop.f32.mrf.mxu0  ;;  %v7587_v23 = vadd.f32 %v19794_v30, %v7586_v5  ;;  %v8021_v11 = vpop.f32.mrf.mxu1  ;;  %vm21372_vm14 = vmmov %vm21371_vm7 }
 0x813   : > { %v19828_v51 = vadd.f32 %v8893_v12, %v8854_v54  ;;  %v7601_v41 = vmul.f32 %v14500_v35, %v7600_v24  ;;  %v8856_v57 = vpop.f32.mrf.mxu2  ;;  %v8373_v54 = vrot.slane %v8371_v36, 2  ;;  %v13853_v12 = vld [vmem:[%s20863_s17 + $0x208] sm:$0xff]  ;;  %vm21378_vm8 = vmmov %vm21371_vm7 }
 0x814   : > { %8551 = vmatmul.bf16.gmra.mxu1 %v21352_v48  ;;  %v7591_v61 = vsel %vm19847_vm0, %v19794_v30, %v7587_v23  ;;  %v13920_v30 = vld [vmem:[%s20863_s17 + $0x178] sm:$0xff]  ;;  %v7982_v48 = vpop.f32.mrf.mxu3  ;;  %v13860_v23 = vld [vmem:[%s20863_s17 + $0x240] sm:$0xff]  ;;  %9092 = vmatpush.bf16.msrb.mxu3 %v13853_v12  ;;  %vm21377_vm0 = vmmov %vm21333_vm2 }
 0x815   : > { %v7602_v5 = vadd.f32 %v14500_v35, %v7601_v41  ;;  %v7596_v25 = vsel %vm7593_vm10, %v7595_v3, %v7591_v61  ;;  %v19872_v58 = vadd.f32 %v8021_v11, %v7982_v48  ;;  %10346 = vmatpush.bf16.msrb.mxu0 %v13920_v30  ;;  %v8374_v36 = vor.u32 %v8373_v54, %v8370_v50  ;;  %v21357_v3 = vld [vmem:[#allocation30_spill] sm:$0xff]  ;;  %vm21382_vm10 = vmmov %vm21377_vm0 }
 0x816   : > { %9132 = vmatpush.bf16.msrb.mxu1 %v13860_v23  ;;  %v19883_v61 = vrot.slane %v14618_v20, 1  ;;  %10311 = vmatpush.bf16.msrb.mxu2 %v13908_v29  ;;  %v13907_v50 = vld [vmem:[%s20863_s17 + $0x110] sm:$0xff]  ;;  %v8363_v30 = vrot.slane %v8247_v63, 1  ;;  %v13906_v48 = vld [vmem:[%s20863_s17 + $0x108] sm:$0xff]  ;;  %vm21383_vm3 = vmmov %vm21377_vm0 }
 0x817   : > { %v7606_v15 = vsel %vm7605_vm5, %v14500_v35, %v7602_v5  ;;  %v7623_v35 = vmul.f32 %v7596_v25, %v19716_v60  ;;  %v8375_v5 = vsel %vm21333_vm2, %v21357_v3, %v8374_v36  ;;  %v13918_v60 = vld [vmem:[%s20863_s17 + $0x168] sm:$0xff]  ;;  %v8364_v25 = vrot.slane %v21358_v59, 2  ;;  %v19933_v20 = vld [vmem:[#allocation2 + $0x90] sm:$0xff]  ;;  %vm21385_vm5 = vmmov %vm21371_vm7 }
 0x818   : > { %v9677_v11 = vsel %vm21359_vm13, %v9674_v31, %v19883_v61  ;;  %v13916_v31 = vld [vmem:[%s20863_s17 + $0x158] sm:$0xff]  ;;  %vm21397_vm2 = vmmov %vm21377_vm0 }
 0x819   : > { %9846 = vmatmul.bf16.gmra.mxu0 %v9675_v27  ;;  %v8365_v53 = vor.u32 %v8364_v25, %v8363_v30  ;;  %v21362_v30 = vld [vmem:[#allocation37_spill] sm:$0xff]  ;;  %v21363_v25 = vld [vmem:[#allocation24_spill] sm:$0xff]  ;;  %vm21399_vm13 = vmmov %vm21385_vm5 }
 0x81a   : > { %v8895_v22 = vpop.f32.mrf.mxu0  ;;  %10347 = vmatpush.bf16.msrb.mxu0 %v13919_v8  ;;  %10312 = vmatpush.bf16.msrb.mxu2 %v13907_v50  ;;  %v13905_v8 = vld [vmem:[%s20863_s17 + $0x100] sm:$0xff]  ;;  %v9680_v59 = vrot.slane %v21362_v30, 1 }
 0x81b   : > { %v19867_v43 = vadd.f32 %v8895_v22, %v8856_v57  ;;  %8512 = vmatmul.bf16.gmra.mxu3 %v21356_v49  ;;  %v8859_v41 = vpop.f32.mrf.mxu2  ;;  %v8024_v22 = vpop.f32.mrf.mxu1 }
 0x81c   : > { %9812 = vmatmul.bf16.gmra.mxu2 %v9675_v27  ;;  %v7611_v27 = vsel %vm7608_vm1, %v7610_v6, %v7606_v15  ;;  %v7985_v54 = vpop.f32.mrf.mxu3  ;;  %v13917_v6 = vld [vmem:[%s20863_s17 + $0x160] sm:$0xff]  ;;  %v13887_v15 = vld [vmem:[%s20863_s17 + $0x78] sm:$0xff]  ;;  %vm21395_vm1 = vmmov %vm21377_vm0 }
 0x81d   : > { %v7624_v24 = vmul.f32 %v7611_v27, %v19736_v26  ;;  %v13852_v26 = vld [vmem:[%s20863_s17 + $0x200] sm:$0xff]  ;;  %v19899_v12 = vadd.f32 %v8024_v22, %v7985_v54  ;;  %10002 = vmatpush.bf16.msra.mxu1 %v13887_v15  ;;  %v9618_v15 = vld [vmem:[#allocation2 + $0x98] sm:$0x1] }
 0x81e   : > { %10348 = vmatpush.bf16.msrb.mxu0 %v13918_v60  ;;  %9093 = vmatpush.bf16.msrb.mxu3 %v13852_v26  ;;  %v13879_v60 = vld [vmem:[%s20863_s17 + $0x38] sm:$0xff]  ;;  %v13914_v26 = vld [vmem:[%s20863_s17 + $0x148] sm:$0xff] }
 0x81f   : > { %v13994_v52 = vpack.c.bf16 %v7624_v24, %v7623_v35  ;;  %10313 = vmatpush.bf16.msrb.mxu2 %v13906_v48  ;;  %v21360_v24 = vld [vmem:[#allocation11_spill] sm:$0xff]  ;;  %v13913_v48 = vld [vmem:[%s20863_s17 + $0x140] sm:$0xff] }
 0x820   : > { %v8366_v36 = vsel %vm21361_vm6, %v21360_v24, %v8365_v53  ;;  %vm21406_vm6 = vmmov %vm21377_vm0 }
 0x821   : > { %14080 = vst [vmem:[%s19395_s29 + $0x28] sm:$0xff] %v13994_v52   ;;  %v13915_v52 = vld [vmem:[%s20863_s17 + $0x150] sm:$0xff] }
 0x822   : > { %v8898_v32 = vpop.f32.mrf.mxu0  ;;  %10349 = vmatpush.bf16.msrb.mxu0 %v13917_v6  ;;  %v13886_v6 = vld [vmem:[%s20863_s17 + $0x70] sm:$0xff]  ;;  %9963 = vmatpush.bf16.msra.mxu3 %v13879_v60 }
 0x823   : > { %v19897_v57 = vadd.f32 %v8898_v32, %v8859_v41  ;;  %v8861_v63 = vpop.f32.mrf.mxu2  ;;  %v8026_v49 = vpop.f32.mrf.mxu1  ;;  %10314 = vmatpush.bf16.msrb.mxu2 %v13905_v8  ;;  %v10042_v41 = vld [vmem:[#allocation2 + $0x68] sm:$0xc]  ;;  %10003 = vmatpush.bf16.msra.mxu1 %v13886_v6  ;;  %v9540_v8 = vshll.u32 %v19655_v18, 16 }
 0x824   : > { %8556 = vmatmul.bf16.gmra.mxu1 %v8375_v5  ;;  %v7987_v29 = vpop.f32.mrf.mxu3  ;;  %v9678_v5 = vrot.slane %v19933_v20, 1  ;;  %v10047_v53 = vunpack.c.l.b16 %v10042_v41 }
 0x825   : > { %v19926_v35 = vadd.f32 %v8026_v49, %v7987_v29  ;;  %v9544_v49 = vshrl.u32 %v19655_v18, 16  ;;  %v10114_v60 = vrot.slane %v9540_v8, 2  ;;  %v19975_v6 = vrot.slane %v9540_v8, 1 }
 0x826   : > { %10350 = vmatpush.bf16.msrb.mxu0 %v13916_v31  ;;  %v10048_v31 = vpack.c.b16 %v14041_v13, %v10047_v53  ;;  %9964 = vmatpush.bf16.msra.mxu3 %v13878_v38 }
 0x827   : > { %v10113_v18 = vrot.slane %v9544_v49, 1 }
 0x829   : > { %9851 = vmatmul.bf16.gmra.mxu0 %v9677_v11 }
 0x82a   : > { %v8900_v23 = vpop.f32.mrf.mxu0  ;;  %10351 = vmatpush.bf16.msrb.mxu0 %v13915_v52 }
 0x82b   : > { %v19924_v27 = vadd.f32 %v8900_v23, %v8861_v63  ;;  %8517 = vmatmul.bf16.gmra.mxu3 %v8366_v36  ;;  %v8864_v32 = vpop.f32.mrf.mxu2  ;;  %v8029_v22 = vpop.f32.mrf.mxu1  ;;  %v9681_v63 = vsel %vm21364_vm4, %v19883_v61, %v9680_v59  ;;  %v9679_v23 = vsel %vm21365_vm11, %v19883_v61, %v9678_v5  ;;  %v9629_v36 = vunpack.c.l.b16 %v9618_v15  ;;  %vm21408_vm4 = vmmov %vm21377_vm0 }
 0x82c   : > { %9817 = vmatmul.bf16.gmra.mxu2 %v9677_v11  ;;  %v7990_v54 = vpop.f32.mrf.mxu3  ;;  %v10106_v61 = vshrl.u32 %v19679_v16, 16  ;;  %v9548_v59 = vshll.u32 %v19729_v7, 16  ;;  %vm21409_vm11 = vmmov %vm21385_vm5 }
 0x82d   : > { %v19949_v11 = vadd.f32 %v8029_v22, %v7990_v54  ;;  %v9632_v22 = vpack.c.b16 %v9629_v36, %v9629_v36 }
 0x82e   : > { %10352 = vmatpush.bf16.msrb.mxu0 %v13914_v26  ;;  %v10052_v26 = vshll.u32 %v10048_v31, 16  ;;  %v10108_v54 = vrot.slane %v10106_v61, 1  ;;  %v21368_v61 = vld [vmem:[#allocation25_spill] sm:$0xff] }
 0x832   : > { %v8903_v3 = vpop.f32.mrf.mxu0  ;;  %10353 = vmatpush.bf16.msrb.mxu0 %v13913_v48  ;;  %v10054_v48 = vrot.slane %v10052_v26, 1 }
 0x833   : > { %v19942_v50 = vadd.f32 %v8903_v3, %v8864_v32  ;;  %v8866_v29 = vpop.f32.mrf.mxu2  ;;  %v8031_v41 = vpop.f32.mrf.mxu1  ;;  %v10109_v3 = vshll.u32 %v19679_v16, 16  ;;  %v10115_v16 = vor.u32 %v10114_v60, %v10113_v18 }
 0x834   : > { %9133 = vmatmul.bf16.vlgmr.msrb.gmra.mxu1 %v21363_v25  ;;  %v7992_v32 = vpop.f32.mrf.mxu3 }
 0x835   : > { %v19971_v13 = vadd.f32 %v8031_v41, %v7992_v32  ;;  %v10111_v30 = vrot.slane %v10109_v3, 2  ;;  %v9550_v41 = vrot.slane %v9548_v59, 1  ;;  %v10050_v32 = vshrl.u32 %v10048_v31, 16 }
 0x836   : > { %v9546_v3 = vor.u32 %v9544_v49, %v19975_v6 }
 0x837   : > { %v10112_v36 = vor.u32 %v10111_v30, %v10108_v54  ;;  %v10055_v18 = vor.u32 %v10054_v48, %v10050_v32  ;;  %v10135_v32 = vrot.slane %v9548_v59, 2 }
 0x838   : > { %v19991_v26 = vsel %vm21371_vm7, %v9546_v3, %v9550_v41  ;;  %vm21412_vm7 = vmmov %vm21377_vm0 }
 0x839   : > { %9856 = vmatmul.bf16.gmra.mxu0 %v9679_v23  ;;  %v9682_v23 = vrot.slane %v9632_v22, 1  ;;  %v10116_v38 = vsel %vm21369_vm15, %v10112_v36, %v10115_v16  ;;  %v10056_v31 = vsel %vm21372_vm14, %v10055_v18, %v19975_v6  ;;  %v9552_v22 = vshrl.u32 %v19729_v7, 16  ;;  %vm21410_vm15 = vmmov %vm21385_vm5 }
 0x83a   : > { %v8905_v24 = vpop.f32.mrf.mxu0  ;;  %v10126_v49 = vshrl.u32 %v19991_v26, 16  ;;  %v10129_v48 = vshll.u32 %v19991_v26, 16  ;;  %v10118_v7 = vshrl.u32 %v10056_v31, 16  ;;  %v9556_v18 = vshll.u32 %v19813_v2, 16  ;;  %vm21413_vm14 = vmmov %vm21385_vm5 }
 0x83b   : > { %v19964_v52 = vadd.f32 %v8905_v24, %v8866_v29  ;;  %9094 = vmatmul.bf16.vlgmr.msrb.gmra.mxu3 %v21363_v25  ;;  %v8869_v53 = vpop.f32.mrf.mxu2  ;;  %v13885_v25 = vld [vmem:[%s20863_s17 + $0x68] sm:$0xff]  ;;  %v8034_v29 = vpop.f32.mrf.mxu1  ;;  %v9683_v60 = vsel %vm21370_vm12, %v9678_v5, %v9682_v23  ;;  %v10134_v36 = vrot.slane %v9552_v22, 1  ;;  %vm21411_vm12 = vmmov %vm21377_vm0 }
 0x83c   : > { %9822 = vmatmul.bf16.gmra.mxu2 %v9681_v63  ;;  %v7995_v24 = vpop.f32.mrf.mxu3  ;;  %10004 = vmatpush.bf16.msra.mxu1 %v13885_v25  ;;  %v13877_v5 = vld [vmem:[%s20863_s17 + $0x28] sm:$0xff]  ;;  %v13884_v25 = vld [vmem:[%s20863_s17 + $0x60] sm:$0xff]  ;;  %v10128_v3 = vrot.slane %v10126_v49, 1  ;;  %v9554_v49 = vor.u32 %v9552_v22, %v9550_v41  ;;  %v13883_v22 = vld [vmem:[%s20863_s17 + $0x58] sm:$0xff] }
 0x83d   : > { %21366 = vst [vmem:[#allocation43_spill] sm:$0xff] %v19964_v52  ;;  %v19983_v8 = vadd.f32 %v8034_v29, %v7995_v24  ;;  %v10121_v24 = vshll.u32 %v10056_v31, 16  ;;  %9965 = vmatpush.bf16.msra.mxu3 %v13877_v5  ;;  %v9558_v5 = vrot.slane %v9556_v18, 1 }
 0x840   : > { %10005 = vmatpush.bf16.msra.mxu1 %v13884_v25  ;;  %v13876_v25 = vld [vmem:[%s20863_s17 + $0x20] sm:$0xff] }
 0x841   : > { %9966 = vmatpush.bf16.msra.mxu3 %v13876_v25 }
 0x842   : > { %v8908_v63 = vpop.f32.mrf.mxu0 }
 0x843   : > { %v19980_v15 = vadd.f32 %v8908_v63, %v8869_v53  ;;  %v8871_v54 = vpop.f32.mrf.mxu2  ;;  %v8036_v63 = vpop.f32.mrf.mxu1 }
 0x844   : > { %9138 = vmatmul.bf16.gmra.mxu1 %v21368_v61  ;;  %v7997_v23 = vpop.f32.mrf.mxu3 }
 0x845   : > { %21367 = vst [vmem:[#allocation13_spill] sm:$0xff] %v19980_v15  ;;  %v20006_v29 = vadd.f32 %v8036_v63, %v7997_v23  ;;  %10006 = vmatpush.bf16.msra.mxu1 %v13883_v22 }
 0x849   : > { %9861 = vmatmul.bf16.gmra.mxu0 %v9683_v60  ;;  %v10120_v60 = vrot.slane %v10118_v7, 1 }
 0x84a   : > { %v8910_v30 = vpop.f32.mrf.mxu0 }
 0x84b   : > { %v20001_v53 = vadd.f32 %v8910_v30, %v8871_v54  ;;  %9099 = vmatmul.bf16.gmra.mxu3 %v21368_v61  ;;  %v10123_v54 = vrot.slane %v10121_v24, 2  ;;  %v10136_v30 = vor.u32 %v10135_v32, %v10134_v36  ;;  %v8039_v23 = vpop.f32.mrf.mxu1 }
 0x84c   : > { %10315 = vmatmul.bf16.vlgmr.msrb.gmra.mxu2 %v10116_v38  ;;  %v10131_v38 = vrot.slane %v10129_v48, 2  ;;  %v8000_v31 = vpop.f32.mrf.mxu3 }
 0x84d   : > { %21373 = vst [vmem:[#allocation28_spill] sm:$0xff] %v20001_v53  ;;  %v8874_v53 = vpop.f32.mrf.mxu2  ;;  %v20013_v61 = vadd.f32 %v8039_v23, %v8000_v31  ;;  %v10124_v59 = vor.u32 %v10123_v54, %v10120_v60  ;;  %v10137_v48 = vsel %vm21376_vm9, %v10115_v16, %v10136_v30  ;;  %v10148_v54 = vrot.slane %v9556_v18, 2  ;;  %v21381_v18 = vld [vmem:[#allocation35_spill] sm:$0xff] }
 0x84e   : > { %v10132_v52 = vor.u32 %v10131_v38, %v10128_v3  ;;  %vm21414_vm9 = vcmask 1044480  }
 0x850   : > { %v10133_v7 = vsel %vm21377_vm0, %v10124_v59, %v10132_v52  ;;  %v21379_v59 = vld [vmem:[#allocation19_spill] sm:$0xff] }
 0x852   : > { %v8913_v15 = vpop.f32.mrf.mxu0 }
 0x853   : > { %v20010_v63 = vadd.f32 %v8913_v15, %v8874_v53  ;;  %v20021_v15 = vsel %vm21378_vm8, %v9554_v49, %v9558_v5  ;;  %v9560_v53 = vshrl.u32 %v19813_v2, 16  ;;  %v8041_v3 = vpop.f32.mrf.mxu1  ;;  %v8150_v49 = vadd.f32 %v21379_v59, %v19767_v37  ;;  %vm21417_vm8 = vmmov %vm21414_vm9 }
 0x854   : > { %9143 = vmatmul.bf16.gmra.mxu1 %v21375_v10  ;;  %v10139_v41 = vshrl.u32 %v20021_v15, 16  ;;  %v10142_v16 = vshll.u32 %v20021_v15, 16  ;;  %v8002_v38 = vpop.f32.mrf.mxu3 }
 0x855   : > { %21374 = vst [vmem:[#allocation14_spill] sm:$0xff] %v20010_v63  ;;  %v8876_v24 = vpop.f32.mrf.mxu2  ;;  %v20031_v60 = vadd.f32 %v8041_v3, %v8002_v38  ;;  %v10147_v2 = vrot.slane %v9560_v53, 1  ;;  %v9562_v38 = vor.u32 %v9560_v53, %v9558_v5 }
 0x856   : > { %v10141_v23 = vrot.slane %v10139_v41, 1  ;;  %v10144_v31 = vrot.slane %v10142_v16, 2  ;;  %v8189_v41 = vadd.f32 %v21381_v18, %v8150_v49  ;;  %v21386_v49 = vld [vmem:[#allocation39_spill] sm:$0xff] }
 0x857   : > { %v8152_v5 = vadd.f32 %v21386_v49, %v19803_v47 }
 0x858   : > { %v10145_v63 = vor.u32 %v10144_v31, %v10141_v23  ;;  %v21384_v31 = vld [vmem:[#allocation38_spill] sm:$0xff] }
 0x859   : > { %10354 = vmatmul.bf16.vlgmr.msrb.gmra.mxu0 %v10133_v7  ;;  %v20052_v59 = vsel %vm21385_vm5, %v9562_v38, %v21384_v31  ;;  %v20072_v31 = vld [vmem:[%s20863_s17 + $0x238] sm:$0xff] }
 0x85a   : > { %v8915_v36 = vpop.f32.mrf.mxu0  ;;  %v10146_v23 = vsel %vm21383_vm3, %v10132_v52, %v10145_v63  ;;  %21391 = vst [vmem:[#allocation9_spill] sm:$0xff] %v20072_v31  ;;  %14111 = vmatpush.bf16.msra.mxu2 %v20072_v31  ;;  %vm21421_vm3 = vmmov %vm21417_vm8 }
 0x85b   : > { %v20029_v32 = vadd.f32 %v8915_v36, %v8876_v24  ;;  %9104 = vmatmul.bf16.gmra.mxu3 %v21375_v10  ;;  %v13875_v24 = vld [vmem:[%s20863_s17 + $0x18] sm:$0xff]  ;;  %v8532_v22 = vpop.f32.mrf.mxu1  ;;  %v21380_v10 = vld [vmem:[#allocation26_spill] sm:$0xff]  ;;  %vm21424_vm5 = vmmov %vm21421_vm3 }
 0x85c   : > { %10320 = vmatmul.bf16.gmra.mxu2 %v10137_v48  ;;  %v10149_v48 = vor.u32 %v10148_v54, %v10147_v2  ;;  %9967 = vmatpush.bf16.msra.mxu3 %v13875_v24  ;;  %v13882_v2 = vld [vmem:[%s20863_s17 + $0x50] sm:$0xff] }
 0x85d   : > { %v8879_v25 = vpop.f32.mrf.mxu2  ;;  %10007 = vmatpush.bf16.msra.mxu1 %v13882_v2 }
 0x85e   : > { %v8493_v3 = vpop.f32.mrf.mxu3  ;;  %v10150_v37 = vsel %vm21382_vm10, %v10136_v30, %v10149_v48  ;;  %vm21418_vm10 = vmmov %vm21417_vm8 }
 0x85f   : > { %v8533_v16 = vadd.f32 %v8532_v22, %v8493_v3  ;;  %v21387_v3 = vld [vmem:[#allocation10_spill] sm:$0xff] }
 0x860   : > { %v8191_v18 = vadd.f32 %v21387_v3, %v8152_v5 }
 0x861   : > { %v20047_v54 = vadd.f32 %v8533_v16, %v8189_v41  ;;  %v21388_v16 = vld [vmem:[#allocation36_spill] sm:$0xff] }
 0x862   : > { %v8918_v7 = vpop.f32.mrf.mxu0  ;;  %v21389_v38 = vshrl.u32 %v21388_v16, 16  ;;  %v21390_v47 = vshll.u32 %v21388_v16, 16 }
 0x863   : > { %v20039_v36 = vadd.f32 %v8918_v7, %v8879_v25  ;;  %v10152_v25 = vshrl.u32 %v20052_v59, 16  ;;  %v10155_v7 = vshll.u32 %v20052_v59, 16  ;;  %v8534_v22 = vpop.f32.mrf.mxu1 }
 0x864   : > { %9148 = vmatmul.bf16.gmra.mxu1 %v21380_v10  ;;  %v10161_v2 = vrot.slane %v21390_v47, 2  ;;  %v10041_v47 = vld [vmem:[#allocation2 + $0x98] sm:$0x3] }
 0x865   : > { %v8881_v53 = vpop.f32.mrf.mxu2  ;;  %v10154_v5 = vrot.slane %v10152_v25, 1  ;;  %v20090_v25 = vld [vmem:[%s20863_s17 + $0x230] sm:$0xff] }
 0x866   : > { %v8495_v52 = vpop.f32.mrf.mxu3  ;;  %21392 = vst [vmem:[#allocation16_spill] sm:$0xff] %v20090_v25  ;;  %14112 = vmatpush.bf16.msra.mxu2 %v20090_v25  ;;  %v13880_v25 = vld [vmem:[%s20863_s17 + $0x40] sm:$0xff] }
 0x867   : > { %v8535_v41 = vadd.f32 %v8534_v22, %v8495_v52 }
 0x869   : > { %10359 = vmatmul.bf16.gmra.mxu0 %v10146_v23  ;;  %v13874_v23 = vld [vmem:[%s20863_s17 + $0x10] sm:$0xff]  ;;  %v20074_v49 = vadd.f32 %v8535_v41, %v8191_v18  ;;  %v13881_v18 = vld [vmem:[%s20863_s17 + $0x48] sm:$0xff] }
 0x86a   : > { %v8920_v30 = vpop.f32.mrf.mxu0  ;;  %9968 = vmatpush.bf16.msra.mxu3 %v13874_v23  ;;  %10008 = vmatpush.bf16.msra.mxu1 %v13881_v18 }
 0x86b   : > { %v20058_v24 = vadd.f32 %v8920_v30, %v8881_v53  ;;  %9109 = vmatmul.bf16.gmra.mxu3 %v21380_v10  ;;  %v10157_v53 = vrot.slane %v10155_v7, 2  ;;  %v10058_v10 = vshll.u32 %v19933_v20, 16  ;;  %v8155_v30 = vadd.f32 %v19363_v33, %v19834_v45  ;;  %v8537_v7 = vpop.f32.mrf.mxu1 }
 0x86c   : > { %10325 = vmatmul.bf16.gmra.mxu2 %v10150_v37  ;;  %v10160_v37 = vrot.slane %v21389_v38, 1  ;;  %v21393_v38 = vld [vmem:[#allocation27_spill] sm:$0xff] }
 0x86d   : > { %v20082_v3 = vor.u32 %v10157_v53, %v10154_v5  ;;  %v10060_v16 = vrot.slane %v10058_v10, 1  ;;  %v8194_v45 = vadd.f32 %v19365_v44, %v8155_v30  ;;  %v20102_v5 = vld [vmem:[%s20863_s17 + $0x228] sm:$0xff]  ;;  %v21398_v30 = vld [vmem:[#allocation40_spill] sm:$0xff] }
 0x86e   : > { %v20080_v22 = vor.u32 %v10161_v2, %v10160_v37  ;;  %v8498_v41 = vpop.f32.mrf.mxu3  ;;  %21396 = vst [vmem:[#allocation20_spill] sm:$0xff] %v20102_v5  ;;  %14113 = vmatpush.bf16.msra.mxu2 %v20102_v5  ;;  %v10174_v5 = vrot.slane %v10058_v10, 2  ;;  %10009 = vmatpush.bf16.msra.mxu1 %v13880_v25 }
 0x86f   : > { %v9798_v52 = vpop.f32.mrf.mxu2  ;;  %v8538_v37 = vadd.f32 %v8537_v7, %v8498_v41  ;;  %v10159_v44 = vsel %vm21397_vm2, %v10145_v63, %v20082_v3  ;;  %v10061_v18 = vsel %vm21399_vm13, %v21398_v30, %v10060_v16  ;;  %v8157_v7 = vadd.f32 %v19418_v0, %v19872_v58  ;;  %v13873_v63 = vld [vmem:[%s20863_s17 + $0x8] sm:$0xff]  ;;  %vm21428_vm2 = vmmov %vm21421_vm3 }
 0x870   : > { %v10163_v23 = vsel %vm21395_vm1, %v10149_v48, %v20080_v22  ;;  %v10062_v48 = vshrl.u32 %v19933_v20, 16  ;;  %9969 = vmatpush.bf16.msra.mxu3 %v13873_v63  ;;  %v8160_v63 = vadd.f32 %v19468_v46, %v19899_v12  ;;  %v20162_v46 = vld [vmem:[%s20863_s17 + $0x210] sm:$0xff] }
 0x871   : > { %v20104_v53 = vadd.f32 %v8538_v37, %v8194_v45  ;;  %v10168_v45 = vshll.u32 %v10061_v18, 16  ;;  %v13957_v37 = vld [vmem:[%s20863_s17 + $0x278] sm:$0xff]  ;;  %21403 = vst [vmem:[#allocation17_spill] sm:$0xff] %v20162_v46 }
 0x872   : > { %10948 = vmatpush.bf16.msra.mxu0 %v13957_v37 }
 0x873   : > { %v8539_v0 = vpop.f32.mrf.mxu1 }
 0x874   : > { %9153 = vmatmul.bf16.gmra.mxu1 %v21393_v38 }
 0x876   : > { %v9837_v33 = vpop.f32.mrf.mxu0  ;;  %v8500_v58 = vpop.f32.mrf.mxu3 }
 0x877   : > { %v20095_v2 = vadd.f32 %v9837_v33, %v9798_v52  ;;  %v10044_v52 = vunpack.c.l.b16 %v10041_v47  ;;  %v9800_v41 = vpop.f32.mrf.mxu2  ;;  %v10165_v33 = vshrl.u32 %v10061_v18, 16  ;;  %v20123_v47 = vld [vmem:[%s20863_s17 + $0x220] sm:$0xff]  ;;  %v8540_v30 = vadd.f32 %v8539_v0, %v8500_v58 }
 0x878   : > { %21400 = vst [vmem:[#allocation8_spill] sm:$0xff] %v20123_v47  ;;  %14114 = vmatpush.bf16.msra.mxu2 %v20123_v47  ;;  %v13952_v47 = vld [vmem:[%s20863_s17 + $0x250] sm:$0xff] }
 0x879   : > { %21394 = vst [vmem:[#allocation15_spill] sm:$0xff] %v20095_v2  ;;  %10364 = vmatmul.bf16.gmra.mxu0 %v10159_v44  ;;  %v8196_v44 = vadd.f32 %v19420_v55, %v8157_v7  ;;  %v10173_v2 = vrot.slane %v10062_v48, 1  ;;  %v20141_v55 = vld [vmem:[%s20863_s17 + $0x218] sm:$0xff] }
 0x87a   : > { %21402 = vst [vmem:[#allocation29_spill] sm:$0xff] %v20141_v55 }
 0x87b   : > { %9114 = vmatmul.bf16.gmra.mxu3 %v21393_v38  ;;  %v20143_v7 = vadd.f32 %v8540_v30, %v8196_v44  ;;  %v10167_v38 = vrot.slane %v10165_v33, 1  ;;  %v20148_v37 = vor.u32 %v10174_v5, %v10173_v2  ;;  %v13872_v33 = vld [vmem:[%s20863_s17] sm:$0xff]  ;;  %v8542_v12 = vpop.f32.mrf.mxu1  ;;  %v10064_v2 = vor.u32 %v10062_v48, %v10060_v16 }
 0x87c   : > { %10330 = vmatmul.bf16.gmra.mxu2 %v10163_v23  ;;  %v20125_v23 = vpack.c.b16 %v10044_v52, %v10044_v52  ;;  %v13956_v52 = vld [vmem:[%s20863_s17 + $0x270] sm:$0xff]  ;;  %v8199_v30 = vadd.f32 %v19470_v9, %v8160_v63  ;;  %9970 = vmatpush.bf16.msra.mxu3 %v13872_v33  ;;  %v13954_v16 = vld [vmem:[%s20863_s17 + $0x260] sm:$0xff]  ;;  %v20182_v9 = vld [vmem:[%s20863_s17 + $0x208] sm:$0xff] }
 0x87d   : > { %10949 = vmatpush.bf16.msra.mxu0 %v13956_v52  ;;  %14115 = vmatpush.bf16.msra.mxu2 %v20141_v55  ;;  %21407 = vst [vmem:[#allocation23_spill] sm:$0xff] %v20182_v9 }
 0x87e   : > { %v9839_v20 = vpop.f32.mrf.mxu0  ;;  %v10066_v10 = vshll.u32 %v20125_v23, 16  ;;  %v8503_v25 = vpop.f32.mrf.mxu3  ;;  %v10070_v33 = vshrl.u32 %v20125_v23, 16 }
 0x87f   : > { %v20128_v18 = vadd.f32 %v9839_v20, %v9800_v41  ;;  %v10170_v41 = vrot.slane %v10168_v45, 2  ;;  %v9803_v0 = vpop.f32.mrf.mxu2  ;;  %v13955_v20 = vld [vmem:[%s20863_s17 + $0x268] sm:$0xff]  ;;  %v8543_v52 = vadd.f32 %v8542_v12, %v8503_v25 }
 0x880   : > { %v20164_v5 = vrot.slane %v10066_v10, 1  ;;  %v21404_v45 = vld [vmem:[#allocation33_spill] sm:$0xff] }
 0x881   : > { %21401 = vst [vmem:[#allocation18_spill] sm:$0xff] %v20128_v18  ;;  %v20151_v58 = vor.u32 %v10170_v41, %v10167_v38  ;;  %10950 = vmatpush.bf16.msra.mxu0 %v13955_v20  ;;  %v10176_v41 = vsel %vm21406_vm6, %v20080_v22, %v20148_v37  ;;  %14116 = vmatpush.bf16.msra.mxu2 %v20162_v46  ;;  %v20174_v18 = vld [vmem:[#allocation2 + $0x60] sm:$0xff]   ;;  %v10187_v46 = vrot.slane %v10066_v10, 2 }
 0x882   : > { %v20184_v48 = vadd.f32 %v8543_v52, %v8199_v30  ;;  %v10069_v22 = vsel %vm21409_vm11, %v10064_v2, %v20164_v5  ;;  %v9527_v20 = vshll.u32 %v20174_v18, 16  ;;  %v20196_v30 = vld [vmem:[#allocation2 + $0x68] sm:$0xff]   ;;  %v13941_v2 = vld [vmem:[%s20863_s17 + $0x1f8] sm:$0xff]  ;;  %v9525_v55 = vshrl.u32 %v20174_v18, 16 }
 0x883   : > { %v10172_v63 = vsel %vm21408_vm4, %v20082_v3, %v20151_v58  ;;  %v10178_v25 = vshrl.u32 %v10069_v22, 16  ;;  %v9532_v3 = vshll.u32 %v20196_v30, 16  ;;  %v8544_v23 = vpop.f32.mrf.mxu1  ;;  %10707 = vmatpush.bf16.msrb.mxu1 %v13941_v2 }
 0x884   : > { %9158 = vmatmul.bf16.gmra.mxu1 %v21404_v45 }
 0x885   : > { %10951 = vmatpush.bf16.msra.mxu0 %v13954_v16  ;;  %14117 = vmatpush.bf16.msra.mxu2 %v20182_v9  ;;  %v10186_v9 = vrot.slane %v10070_v33, 1 }
 0x886   : > { %v9842_v44 = vpop.f32.mrf.mxu0  ;;  %v8505_v52 = vpop.f32.mrf.mxu3 }
 0x887   : > { %v20168_v38 = vadd.f32 %v9842_v44, %v9803_v0  ;;  %v8162_v0 = vadd.f32 %v19529_v39, %v19926_v35  ;;  %v9805_v12 = vpop.f32.mrf.mxu2  ;;  %v10181_v44 = vshll.u32 %v10069_v22, 16  ;;  %v13953_v39 = vld [vmem:[%s20863_s17 + $0x258] sm:$0xff]  ;;  %v20208_v35 = vld [vmem:[%s20863_s17 + $0x200] sm:$0xff]  ;;  %v9529_v22 = vrot.slane %v9527_v20, 1 }
 0x888   : > { %v9534_v20 = vrot.slane %v9532_v3, 1 }
 0x889   : > { %21405 = vst [vmem:[#allocation12_spill] sm:$0xff] %v20168_v38  ;;  %10369 = vmatmul.bf16.gmra.mxu0 %v10172_v63  ;;  %v8201_v16 = vadd.f32 %v19531_v19, %v8162_v0  ;;  %v8545_v63 = vadd.f32 %v8544_v23, %v8505_v52  ;;  %14118 = vmatpush.bf16.msra.mxu2 %v20208_v35  ;;  %v10180_v19 = vrot.slane %v10178_v25, 1  ;;  %v10183_v0 = vrot.slane %v10181_v44, 2  ;;  %v13933_v52 = vld [vmem:[%s20863_s17 + $0x1b8] sm:$0xff]  ;;  %v13951_v25 = vld [vmem:[%s20863_s17 + $0x248] sm:$0xff] }
 0x88a   : > { %10952 = vmatpush.bf16.msra.mxu0 %v13953_v39  ;;  %v9530_v2 = vor.u32 %v9529_v22, %v9525_v55  ;;  %10668 = vmatpush.bf16.msrb.mxu3 %v13933_v52  ;;  %v8167_v22 = vadd.f32 %v19622_v21, %v19971_v13  ;;  %v20267_v52 = vadd.f32 %v19867_v43, %v20074_v49 }
 0x88b   : > { %9119 = vmatmul.bf16.gmra.mxu3 %v21404_v45  ;;  %v20219_v31 = vadd.f32 %v8545_v63, %v8201_v16  ;;  %v10188_v45 = vor.u32 %v10187_v46, %v10186_v9  ;;  %v20223_v39 = vor.u32 %v10183_v0, %v10180_v19  ;;  %v8547_v44 = vpop.f32.mrf.mxu1  ;;  %v13940_v9 = vld [vmem:[%s20863_s17 + $0x1f0] sm:$0xff]  ;;  %v10072_v63 = vor.u32 %v10070_v33, %v20164_v5 }
 0x88c   : > { %10335 = vmatmul.bf16.gmra.mxu2 %v10176_v41  ;;  %v9535_v23 = vsel %vm21410_vm15, %v9530_v2, %v9534_v20  ;;  %10708 = vmatpush.bf16.msrb.mxu1 %v13940_v9  ;;  %v9536_v33 = vshrl.u32 %v20196_v30, 16 }
 0x88d   : > { %v10189_v46 = vsel %vm21411_vm12, %v20148_v37, %v10188_v45  ;;  %v20251_v37 = vadd.f32 %v19828_v51, %v20047_v54  ;;  %v10191_v0 = vshrl.u32 %v10072_v63, 16  ;;  %v13932_v51 = vld [vmem:[%s20863_s17 + $0x1b0] sm:$0xff] }
 0x88e   : > { %v9844_v41 = vpop.f32.mrf.mxu0  ;;  %10953 = vmatpush.bf16.msra.mxu0 %v13952_v47  ;;  %v8508_v3 = vpop.f32.mrf.mxu3  ;;  %10669 = vmatpush.bf16.msrb.mxu3 %v13932_v51 }
 0x88f   : > { %v20211_v38 = vadd.f32 %v9844_v41, %v9805_v12  ;;  %v8165_v12 = vadd.f32 %v19570_v42, %v19949_v11  ;;  %v9808_v10 = vpop.f32.mrf.mxu2  ;;  %v8548_v47 = vadd.f32 %v8547_v44, %v8508_v3  ;;  %v13950_v41 = vld [vmem:[%s20863_s17 + $0x240] sm:$0xff]  ;;  %v10193_v21 = vrot.slane %v10191_v0, 1 }
 0x891   : > { %v8204_v11 = vadd.f32 %v19572_v4, %v8165_v12  ;;  %v10185_v4 = vsel %vm21412_vm7, %v20151_v58, %v20223_v39  ;;  %v10194_v12 = vshll.u32 %v10072_v63, 16  ;;  %v8206_v58 = vadd.f32 %v19624_v62, %v8167_v22 }
 0x892   : > { %10954 = vmatpush.bf16.msra.mxu0 %v13951_v25  ;;  %v8170_v62 = vadd.f32 %v19663_v14, %v19983_v8  ;;  %v9538_v25 = vor.u32 %v9536_v33, %v9534_v20  ;;  %v20289_v22 = vadd.f32 %v19897_v57, %v20104_v53  ;;  %v20301_v57 = vadd.f32 %v19924_v27, %v20143_v7 }
 0x893   : > { %v20243_v16 = vadd.f32 %v8548_v47, %v8204_v11  ;;  %v8549_v2 = vpop.f32.mrf.mxu1  ;;  %v10196_v13 = vrot.slane %v10194_v12, 2  ;;  %v13939_v47 = vld [vmem:[%s20863_s17 + $0x1e8] sm:$0xff] }
 0x894   : > { %10010 = vmatmul.bf16.vlgmr.msra.gmra.mxu1 %v9535_v23  ;;  %v9543_v11 = vsel %vm21413_vm14, %v9538_v25, %v19975_v6  ;;  %v8209_v14 = vadd.f32 %v19671_v56, %v8170_v62  ;;  %v8172_v56 = vadd.f32 %v19718_v40, %v20006_v29  ;;  %v8175_v40 = vadd.f32 %v19747_v17, %v20013_v61  ;;  %v21415_v29 = vld [vmem:[#allocation32_spill] sm:$0xff] }
 0x895   : > { %10709 = vmatpush.bf16.msrb.mxu1 %v13939_v47  ;;  %v21416_v53 = vunpack.c.l.b16 %v21415_v29  ;;  %v13931_v29 = vld [vmem:[%s20863_s17 + $0x1a8] sm:$0xff] }
 0x896   : > { %v9847_v42 = vpop.f32.mrf.mxu0  ;;  %10955 = vmatpush.bf16.msra.mxu0 %v13950_v41  ;;  %v8510_v45 = vpop.f32.mrf.mxu3  ;;  %v14621_v41 = vld [vmem:[#allocation2 + $0x78] sm:$0xff]  ;;  %10670 = vmatpush.bf16.msrb.mxu3 %v13931_v29 }
 0x897   : > { %v20233_v55 = vadd.f32 %v9847_v42, %v9808_v10  ;;  %v9810_v19 = vpop.f32.mrf.mxu2  ;;  %v8550_v23 = vadd.f32 %v8549_v2, %v8510_v45  ;;  %v10197_v42 = vor.u32 %v10196_v13, %v10193_v21  ;;  %v10795_v43 = vrot.slane %v14621_v41, 3  ;;  %v14622_v13 = vld [vmem:[#allocation2 + $0x88] sm:$0xff] }
 0x899   : > { %10374 = vmatmul.bf16.gmra.mxu0 %v10185_v4  ;;  %v20262_v54 = vadd.f32 %v8550_v23, %v8206_v58  ;;  %v10198_v63 = vsel %vm21377_vm0, %v20223_v39, %v10197_v42 }
 0x89b   : > { %9971 = vmatmul.bf16.vlgmr.msra.gmra.mxu3 %v20174_v18  ;;  %v14620_v18 = vld [vmem:[#allocation2 + $0x80] sm:$0xff] }
 0x89c   : > { %10340 = vmatmul.bf16.gmra.mxu2 %v10189_v46  ;;  %v10797_v44 = vrot.slane %v14620_v18, 3  ;;  %v8552_v46 = vpop.f32.mrf.mxu1  ;;  %v8214_v18 = vadd.f32 %v19752_v34, %v8175_v40  ;;  %v8177_v34 = vadd.f32 %v19790_v28, %v20031_v60 }
 0x89e   : > { %v9849_v10 = vpop.f32.mrf.mxu0  ;;  %v8513_v9 = vpop.f32.mrf.mxu3  ;;  %v20280_v4 = vsel %vm21414_vm9, %v10795_v43, %v10797_v44 }
 0x89f   : > { %v20256_v5 = vadd.f32 %v9849_v10, %v9810_v19  ;;  %v9813_v3 = vpop.f32.mrf.mxu2  ;;  %v8553_v8 = vadd.f32 %v8552_v46, %v8513_v9  ;;  %v10758_v19 = vld [vmem:[#allocation2 + $0x70] sm:$0x8]  ;;  %v8211_v10 = vadd.f32 %v19720_v1, %v8172_v56  ;;  %v10799_v1 = vrot.slane %v14622_v13, 3 }
 0x8a0   : > { %v10760_v23 = vunpack.c.l.b16 %v10758_v19  ;;  %v21419_v9 = vld [vmem:[#allocation22_spill] sm:$0xff] }
 0x8a1   : > { %v20282_v6 = vadd.f32 %v8553_v8, %v8209_v14  ;;  %v20312_v7 = vsel %vm21417_vm8, %v10797_v44, %v10799_v1  ;;  %v8216_v41 = vadd.f32 %v21419_v9, %v8177_v34  ;;  %v14623_v14 = vld [vmem:[#allocation2 + $0x70] sm:$0xff]  ;;  %v14626_v34 = vld [vmem:[#allocation2 + $0x98] sm:$0xff] }
 0x8a2   : > { %v10761_v21 = vpack.c.b16 %v21416_v53, %v10760_v23 }
 0x8a4   : > { %10015 = vmatmul.bf16.gmra.mxu1 %v9543_v11  ;;  %v8554_v12 = vpop.f32.mrf.mxu1  ;;  %v10794_v42 = vrot.slane %v10761_v21, 3 }
 0x8a6   : > { %v9852_v49 = vpop.f32.mrf.mxu0  ;;  %v8515_v2 = vpop.f32.mrf.mxu3  ;;  %v20317_v61 = vsel %vm21418_vm10, %v10794_v42, %v10795_v43 }
 0x8a7   : > { %v20277_v20 = vadd.f32 %v9852_v49, %v9813_v3  ;;  %v9815_v0 = vpop.f32.mrf.mxu2  ;;  %v8555_v58 = vadd.f32 %v8554_v12, %v8515_v2  ;;  %v20340_v2 = vld [vmem:[%s20864_s18] ss:$0 sm:$0xff] }
 0x8a9   : > { %10379 = vmatmul.bf16.gmra.mxu0 %v10198_v63  ;;  %v20297_v51 = vadd.f32 %v8555_v58, %v8211_v10  ;;  %v21420_v63 = vld [vmem:[#allocation43_spill] sm:$0xff]  ;;  %v20351_v58 = vld [vmem:[%s20865_s19] ss:$0 sm:$0xff] }
 0x8ab   : > { %9976 = vmatmul.bf16.gmra.mxu3 %v20196_v30 }
 0x8ac   : > { %10922 = vmatmul.bf16.vlgmr.msra.gmra.mxu2 %v20280_v4  ;;  %v8557_v62 = vpop.f32.mrf.mxu1 }
 0x8ae   : > { %v9854_v45 = vpop.f32.mrf.mxu0  ;;  %v8518_v25 = vpop.f32.mrf.mxu3 }
 0x8af   : > { %v20294_v39 = vadd.f32 %v9854_v45, %v9815_v0  ;;  %v9818_v33 = vpop.f32.mrf.mxu2  ;;  %v8558_v3 = vadd.f32 %v8557_v62, %v8518_v25  ;;  %v14625_v25 = vld [vmem:[#allocation2 + $0x78] sm:$0xff] }
 0x8b1   : > { %v20314_v17 = vadd.f32 %v8558_v3, %v8214_v18  ;;  %v21423_v18 = vld [vmem:[#allocation28_spill] sm:$0xff] }
 0x8b2   : > { %v20375_v3 = vadd.f32 %v21423_v18, %v20262_v54 }
 0x8b4   : > { %10020 = vmatmul.bf16.gmra.mxu1 %v19991_v26  ;;  %v20323_v26 = vadd.f32 %v19942_v50, %v20184_v48  ;;  %v8559_v47 = vpop.f32.mrf.mxu1  ;;  %v20334_v50 = vadd.f32 %v21420_v63, %v20219_v31  ;;  %v14624_v48 = vld [vmem:[#allocation2 + $0x90] sm:$0xff] }
 0x8b5   : > { %v10801_v56 = vrot.slane %v14624_v48, 3 }
 0x8b6   : > { %v9857_v30 = vpop.f32.mrf.mxu0  ;;  %v8520_v44 = vpop.f32.mrf.mxu3 }
 0x8b7   : > { %v20309_v27 = vadd.f32 %v9857_v30, %v9818_v33  ;;  %v9820_v11 = vpop.f32.mrf.mxu2  ;;  %v8560_v49 = vadd.f32 %v8559_v47, %v8520_v44  ;;  %v20345_v10 = vsel %vm21421_vm3, %v10799_v1, %v10801_v56 }
 0x8b9   : > { %10956 = vmatmul.bf16.vlgmr.msra.gmra.mxu0 %v20317_v61  ;;  %v20330_v8 = vadd.f32 %v8560_v49, %v8216_v41 }
 0x8bb   : > { %9981 = vmatmul.bf16.gmra.mxu3 %v14623_v14 }
 0x8bc   : > { %10927 = vmatmul.bf16.gmra.mxu2 %v20312_v7  ;;  %v9134_v60 = vpop.f32.mrf.mxu1 }
 0x8be   : > { %v9859_v46 = vpop.f32.mrf.mxu0  ;;  %v9095_v19 = vpop.f32.mrf.mxu3 }
 0x8bf   : > { %v20328_v43 = vadd.f32 %v9859_v46, %v9820_v11  ;;  %v9823_v28 = vpop.f32.mrf.mxu2  ;;  %v9135_v12 = vadd.f32 %v9134_v60, %v9095_v19  ;;  %v10803_v11 = vrot.slane %v14626_v34, 3  ;;  %v21425_v60 = vld [vmem:[#allocation14_spill] sm:$0xff] }
 0x8c0   : > { %v20399_v19 = vadd.f32 %v21425_v60, %v20282_v6 }
 0x8c1   : > { %v9164_v31 = vadd.f32 %v9135_v12, %v20251_v37  ;;  %v13938_v37 = vld [vmem:[%s20863_s17 + $0x1e0] sm:$0xff]  ;;  %v20391_v48 = vsel %vm21424_vm5, %v10801_v56, %v10803_v11  ;;  %v13937_v56 = vld [vmem:[%s20863_s17 + $0x1d8] sm:$0xff] }
 0x8c2   : > { %10710 = vmatpush.bf16.msrb.mxu1 %v13938_v37 }
 0x8c3   : > { %v9180_v40 = vmul.f32 %v20340_v2, %v9164_v31 }
 0x8c4   : > { %10025 = vmatmul.bf16.gmra.mxu1 %v20021_v15  ;;  %v21422_v15 = vld [vmem:[#allocation13_spill] sm:$0xff] }
 0x8c5   : > { %v20357_v23 = vadd.f32 %v21422_v15, %v20243_v16  ;;  %v20367_v53 = vadd.f32 %v20351_v58, %v9180_v40 }
 0x8c6   : > { %v9862_v0 = vpop.f32.mrf.mxu0  ;;  %v9097_v13 = vpop.f32.mrf.mxu3  ;;  %10711 = vmatpush.bf16.msrb.mxu1 %v13937_v56 }
 0x8c7   : > { %v20342_v45 = vadd.f32 %v9862_v0, %v9823_v28  ;;  %v9825_v21 = vpop.f32.mrf.mxu2  ;;  %v13053_v16 = vmul.f32 -1.442695, %v20367_v53 }
 0x8c9   : > { %10961 = vmatmul.bf16.gmra.mxu0 %v20280_v4  ;;  %v9136_v4 = vpop.f32.mrf.mxu1  ;;  %14501 = vpow2.f32 %v13053_v16 }
 0x8ca   : > { %v9137_v33 = vadd.f32 %v9136_v4, %v9097_v13 }
 0x8cb   : > { %9986 = vmatmul.bf16.gmra.mxu3 %v14625_v25  ;;  %v20418_v25 = vadd.f32 %v20029_v32, %v20297_v51 }
 0x8cc   : > { %10932 = vmatmul.bf16.gmra.mxu2 %v20345_v10  ;;  %v9165_v30 = vadd.f32 %v9137_v33, %v20267_v52  ;;  %v13930_v52 = vld [vmem:[%s20863_s17 + $0x1a0] sm:$0xff] }
 0x8cd   : > { %10671 = vmatpush.bf16.msrb.mxu3 %v13930_v52 }
 0x8ce   : > { %v9864_v1 = vpop.f32.mrf.mxu0  ;;  %v9181_v42 = vmul.f32 %v20340_v2, %v9165_v30  ;;  %v9100_v63 = vpop.f32.mrf.mxu3  ;;  %v21426_v30 = vld [vmem:[#allocation48_spill] sm:$0xff] }
 0x8cf   : > { %v20370_v62 = vadd.f32 %v9864_v1, %v9825_v21  ;;  %v14502_v44 = vpop.eup %14501  ;;  %v10316_v9 = vpop.f32.mrf.mxu2  ;;  %v14627_v21 = vld [vmem:[#allocation2 + $0x80] sm:$0xff]  ;;  %v10805_v18 = vrot.slane %v21426_v30, 3 }
 0x8d0   : > { %v20379_v47 = vadd.f32 %v20351_v58, %v9181_v42  ;;  %v20386_v54 = vadd.f32 1.0, %v14502_v44  ;;  %v21427_v44 = vld [vmem:[#allocation41_spill] sm:$0xff] }
 0x8d1   : > { %v9139_v14 = vpop.f32.mrf.mxu1 }
 0x8d2   : > { %v13054_v46 = vmul.f32 -1.442695, %v20379_v47  ;;  %vm9261_vm1 = vweird.f32 %v20386_v54 }
 0x8d4   : > { %10030 = vmatmul.bf16.gmra.mxu1 %v20052_v59  ;;  %14503 = vpow2.f32 %v13054_v46  ;;  %v9140_v59 = vadd.f32 %v9139_v14, %v9100_v63  ;;  %v13929_v63 = vld [vmem:[%s20863_s17 + $0x198] sm:$0xff] }
 0x8d5   : > { %14505 = vrcp.f32 %v20386_v54  ;;  %10672 = vmatpush.bf16.msrb.mxu3 %v13929_v63 }
 0x8d6   : > { %v10355_v41 = vpop.f32.mrf.mxu0  ;;  %v9166_v28 = vadd.f32 %v9140_v59, %v20289_v22  ;;  %v9102_v37 = vpop.f32.mrf.mxu3 }
 0x8d7   : > { %v20388_v49 = vadd.f32 %v10355_v41, %v10316_v9  ;;  %v10318_v15 = vpop.f32.mrf.mxu2  ;;  %v20428_v41 = vsel %vm21428_vm2, %v10803_v11, %v10805_v18  ;;  %v9267_v11 = vand.u32 2147483648, %v20386_v54  ;;  %v14628_v18 = vld [vmem:[#allocation2 + $0x88] sm:$0xff] }
 0x8d8   : > { %v9182_v0 = vmul.f32 %v20340_v2, %v9166_v28  ;;  %v13936_v28 = vld [vmem:[%s20863_s17 + $0x1d0] sm:$0xff] }
 0x8d9   : > { %10966 = vmatmul.bf16.gmra.mxu0 %v20312_v7  ;;  %v9141_v6 = vpop.f32.mrf.mxu1  ;;  %10712 = vmatpush.bf16.msrb.mxu1 %v13936_v28 }
 0x8da   : > { %v14504_v12 = vpop.eup %14503  ;;  %v20406_v31 = vadd.f32 %v20351_v58, %v9182_v0  ;;  %v9142_v16 = vadd.f32 %v9141_v6, %v9102_v37 }
 0x8db   : > { %v14506_v7 = vpop.eup %14505  ;;  %v20408_v29 = vadd.f32 1.0, %v14504_v12  ;;  %9991 = vmatmul.bf16.gmra.mxu3 %v14627_v21 }
 0x8dc   : > { %10937 = vmatmul.bf16.gmra.mxu2 %v20391_v48  ;;  %v9257_v4 = vmul.f32 %v14506_v7, %v20386_v54  ;;  %v13055_v13 = vmul.f32 -1.442695, %v20406_v31  ;;  %v9167_v33 = vadd.f32 %v9142_v16, %v20301_v57  ;;  %vm9262_vm13 = vweird.f32 %v14506_v7 }
 0x8dd   : > { %14507 = vrcp.f32 %v20408_v29  ;;  %vm9263_vm6 = vmor %vm9261_vm1, %vm9262_vm13  ;;  %v9280_v21 = vand.u32 2147483647, %v20408_v29  ;;  %vm9276_vm15 = vweird.f32 %v20408_v29 }
 0x8de   : > { %v10357_v40 = vpop.f32.mrf.mxu0  ;;  %v9258_v1 = vsub.f32 1.0, %v9257_v4  ;;  %14509 = vpow2.f32 %v13055_v13  ;;  %v9183_v34 = vmul.f32 %v20340_v2, %v9167_v33  ;;  %v9105_v12 = vpop.f32.mrf.mxu3  ;;  %v9282_v4 = vand.u32 2147483648, %v20408_v29 }
 0x8df   : > { %v20410_v22 = vadd.f32 %v10357_v40, %v10318_v15  ;;  %v10321_v14 = vpop.f32.mrf.mxu2  ;;  %v20447_v15 = vadd.f32 %v20039_v36, %v20314_v17  ;;  %v9265_v40 = vand.u32 2147483647, %v20386_v54  ;;  %v9268_v13 = vor.u32 1.1754944e-38, %v9267_v11  ;;  %v13928_v54 = vld [vmem:[%s20863_s17 + $0x190] sm:$0xff] }
 0x8e0   : > { %v9259_v42 = vmul.f32 %v14506_v7, %v9258_v1  ;;  %v20424_v46 = vadd.f32 %v20351_v58, %v9183_v34  ;;  %v9283_v30 = vor.u32 1.1754944e-38, %v9282_v4  ;;  %vm9281_vm7 = vcmp.eq.f32.partialorder %v9280_v21, 8.507059e+37  ;;  %10673 = vmatpush.bf16.msrb.mxu3 %v13928_v54 }
 0x8e1   : > { %v9144_v56 = vpop.f32.mrf.mxu1  ;;  %vm9266_vm11 = vcmp.eq.f32.partialorder %v9265_v40, 8.507059e+37 }
 0x8e2   : > { %v9260_v52 = vadd.f32 %v14506_v7, %v9259_v42  ;;  %v13056_v51 = vmul.f32 -1.442695, %v20424_v46  ;;  %v9145_v37 = vadd.f32 %v9144_v56, %v9105_v12 }
 0x8e3   : > { %v14508_v9 = vpop.eup %14507 }
 0x8e4   : > { %10035 = vmatmul.bf16.gmra.mxu1 %v21427_v44  ;;  %v14510_v57 = vpop.eup %14509  ;;  %v9272_v32 = vmul.f32 %v14508_v9, %v20408_v29  ;;  %14511 = vpow2.f32 %v13056_v51  ;;  %vm9277_vm4 = vweird.f32 %v14508_v9  ;;  %v9168_v17 = vadd.f32 %v9145_v37, %v20323_v26 }
 0x8e5   : > { %v20440_v60 = vadd.f32 1.0, %v14510_v57  ;;  %vm9278_vm12 = vmor %vm9276_vm15, %vm9277_vm4 }
 0x8e6   : > { %v10360_v59 = vpop.f32.mrf.mxu0  ;;  %v9273_v6 = vsub.f32 1.0, %v9272_v32  ;;  %v9184_v1 = vmul.f32 %v20340_v2, %v9168_v17  ;;  %v9107_v51 = vpop.f32.mrf.mxu3 }
 0x8e7   : > { %v20442_v0 = vadd.f32 %v10360_v59, %v10321_v14  ;;  %14513 = vrcp.f32 %v20440_v60  ;;  %v10323_v34 = vpop.f32.mrf.mxu2  ;;  %v20469_v14 = vadd.f32 %v20058_v24, %v20330_v8  ;;  %v9297_v24 = vand.u32 2147483648, %v20440_v60 }
 0x8e8   : > { %v9274_v36 = vmul.f32 %v14508_v9, %v9273_v6  ;;  %v20463_v26 = vadd.f32 %v20351_v58, %v9184_v1  ;;  %vm9291_vm9 = vweird.f32 %v20440_v60 }
 0x8e9   : > { %10971 = vmatmul.bf16.gmra.mxu0 %v20345_v10  ;;  %v9264_v10 = vsel %vm9263_vm6, %v14506_v7, %v9260_v52  ;;  %v9146_v11 = vpop.f32.mrf.mxu1  ;;  %v9298_v17 = vor.u32 1.1754944e-38, %v9297_v24 }
 0x8ea   : > { %v9275_v16 = vadd.f32 %v14508_v9, %v9274_v36  ;;  %v9269_v33 = vsel %vm9266_vm11, %v9268_v13, %v9264_v10  ;;  %v14512_v7 = vpop.eup %14511  ;;  %v13057_v28 = vmul.f32 -1.442695, %v20463_v26  ;;  %v9147_v40 = vadd.f32 %v9146_v11, %v9107_v51  ;;  %v13927_v11 = vld [vmem:[%s20863_s17 + $0x188] sm:$0xff] }
 0x8eb   : > { %9996 = vmatmul.bf16.gmra.mxu3 %v14628_v18  ;;  %v9247_v52 = vadd.f32 1.0, %v14512_v7  ;;  %v9295_v36 = vand.u32 2147483647, %v20440_v60 }
 0x8ec   : > { %10942 = vmatmul.bf16.gmra.mxu2 %v20428_v41  ;;  %v9279_v42 = vsel %vm9278_vm12, %v14508_v9, %v9275_v16  ;;  %v9436_v9 = vmul.f32 %v9269_v33, %v20367_v53  ;;  %v9169_v37 = vadd.f32 %v9147_v40, %v20334_v50  ;;  %v13935_v33 = vld [vmem:[%s20863_s17 + $0x1c8] sm:$0xff]  ;;  %10674 = vmatpush.bf16.msrb.mxu3 %v13927_v11 }
 0x8ed   : > { %v14514_v29 = vpop.eup %14513  ;;  %v9284_v57 = vsel %vm9281_vm7, %v9283_v30, %v9279_v42  ;;  %14515 = vrcp.f32 %v9247_v52  ;;  %v9310_v1 = vand.u32 2147483647, %v9247_v52  ;;  %v9312_v18 = vand.u32 2147483648, %v9247_v52  ;;  %10713 = vmatpush.bf16.msrb.mxu1 %v13935_v33 }
 0x8ee   : > { %v10362_v44 = vpop.f32.mrf.mxu0  ;;  %v9437_v63 = vmul.f32 %v9284_v57, %v20379_v47  ;;  %v9287_v59 = vmul.f32 %v14514_v29, %v20440_v60  ;;  %14517 = vpow2.f32 %v13057_v28  ;;  %v9185_v8 = vmul.f32 %v20340_v2, %v9169_v37  ;;  %v9110_v42 = vpop.f32.mrf.mxu3 }
 0x8ef   : > { %v20465_v32 = vadd.f32 %v10362_v44, %v10323_v34  ;;  %vm9292_vm14 = vweird.f32 %v14514_v29  ;;  %v10326_v54 = vpop.f32.mrf.mxu2  ;;  %vm9296_vm10 = vcmp.eq.f32.partialorder %v9295_v36, 8.507059e+37  ;;  %vm9306_vm3 = vweird.f32 %v9247_v52  ;;  %v21431_v36 = vld [vmem:[#allocation9_spill] sm:$0xff] }
 0x8f0   : > { %v14007_v56 = vpack.c.bf16 %v9437_v63, %v9436_v9  ;;  %v9288_v12 = vsub.f32 1.0, %v9287_v59  ;;  %v20481_v10 = vadd.f32 %v20351_v58, %v9185_v8  ;;  %vm20487_vm0 = vmor %vm9291_vm9, %vm9292_vm14  ;;  %vm9311_vm1 = vcmp.eq.f32.partialorder %v9310_v1, 8.507059e+37  ;;  %v21432_v1 = vld [vmem:[#allocation45_spill] sm:$0xff] }
 0x8f1   : > { %v9149_v7 = vpop.f32.mrf.mxu1 }
 0x8f2   : > { %14086 = vst [vmem:[%s19395_s29 + $0x30] sm:$0xff] %v14007_v56   ;;  %v9289_v6 = vmul.f32 %v14514_v29, %v9288_v12  ;;  %v9150_v57 = vadd.f32 %v9149_v7, %v9110_v42  ;;  %v13934_v56 = vld [vmem:[%s20863_s17 + $0x1c0] sm:$0xff] }
 0x8f3   : > { %v14516_v53 = vpop.eup %14515  ;;  %10714 = vmatpush.bf16.msrb.mxu1 %v13934_v56  ;;  %v21434_v7 = vld [vmem:[#allocation20_spill] sm:$0xff] }
 0x8f4   : > { %v9290_v47 = vadd.f32 %v14514_v29, %v9289_v6  ;;  %v14518_v21 = vpop.eup %14517  ;;  %v9302_v4 = vmul.f32 %v14516_v53, %v9247_v52  ;;  %vm9307_vm8 = vweird.f32 %v14516_v53  ;;  %v9170_v63 = vadd.f32 %v9150_v57, %v20357_v23 }
 0x8f5   : > { %v20485_v50 = vadd.f32 1.0, %v14518_v21  ;;  %vm9308_vm5 = vmor %vm9306_vm3, %vm9307_vm8 }
 0x8f6   : > { %v9303_v16 = vsub.f32 1.0, %v9302_v4  ;;  %v10365_v30 = vpop.f32.mrf.mxu0  ;;  %v9294_v60 = vsel %vm20487_vm0, %v14514_v29, %v9290_v47  ;;  %v9313_v29 = vor.u32 1.1754944e-38, %v9312_v18  ;;  %v9186_v28 = vmul.f32 %v20340_v2, %v9170_v63  ;;  %10715 = vmatmul.bf16.vlgmr.msrb.gmra.mxu1 %v21432_v1  ;;  %v21439_v1 = vld [vmem:[#allocation29_spill] sm:$0xff] }
 0x8f7   : > { %14519 = vrcp.f32 %v20485_v50  ;;  %v20498_v44 = vadd.f32 %v10365_v30, %v10326_v54  ;;  %v9299_v51 = vsel %vm9296_vm10, %v9298_v17, %v9294_v60  ;;  %v10328_v8 = vpop.f32.mrf.mxu2  ;;  %10909 = vmatpush.bf16.msra.mxu1 %v21431_v36  ;;  %v21433_v54 = vld [vmem:[#allocation16_spill] sm:$0xff]  ;;  %vm9321_vm13 = vweird.f32 %v20485_v50  ;;  %v21438_v36 = vld [vmem:[#allocation34_spill] sm:$0xff] }
 0x8f8   : > { %v9304_v34 = vmul.f32 %v14516_v53, %v9303_v16  ;;  %v9438_v52 = vmul.f32 %v9299_v51, %v20406_v31  ;;  %v20516_v24 = vadd.f32 %v20351_v58, %v9186_v28  ;;  %v9112_v31 = vpop.f32.mrf.mxu3  ;;  %v13926_v51 = vld [vmem:[%s20863_s17 + $0x180] sm:$0xff]  ;;  %v9327_v63 = vand.u32 2147483648, %v20485_v50 }
 0x8f9   : > { %10976 = vmatmul.bf16.gmra.mxu0 %v20391_v48  ;;  %v13058_v48 = vmul.f32 -1.442695, %v20481_v10  ;;  %v9151_v4 = vpop.f32.mrf.mxu1  ;;  %v9325_v56 = vand.u32 2147483647, %v20485_v50  ;;  %10675 = vmatpush.bf16.msrb.mxu3 %v13926_v51 }
 0x8fa   : > { %v9305_v9 = vadd.f32 %v14516_v53, %v9304_v34  ;;  %v13059_v13 = vmul.f32 -1.442695, %v20516_v24  ;;  %v9152_v16 = vadd.f32 %v9151_v4, %v9112_v31  ;;  %v9328_v31 = vor.u32 1.1754944e-38, %v9327_v63  ;;  %v21441_v63 = vld [vmem:[#allocation17_spill] sm:$0xff] }
 0x8fb   : > { %14521 = vpow2.f32 %v13058_v48  ;;  %10910 = vmatpush.bf16.msra.mxu1 %v21433_v54  ;;  %vm9326_vm11 = vcmp.eq.f32.partialorder %v9325_v56, 8.507059e+37 }
 0x8fc   : > { %v9309_v59 = vsel %vm9308_vm5, %v14516_v53, %v9305_v9  ;;  %v9171_v48 = vadd.f32 %v9152_v16, %v20375_v3  ;;  %10676 = vmatmul.bf16.vlgmr.msrb.gmra.mxu3 %v21438_v36 }
 0x8fd   : > { %v20509_v12 = vpop.eup %14519  ;;  %v9314_v23 = vsel %vm9311_vm1, %v9313_v29, %v9309_v59 }
 0x8fe   : > { %v9439_v6 = vmul.f32 %v9314_v23, %v20424_v46  ;;  %v9317_v37 = vmul.f32 %v20509_v12, %v20485_v50  ;;  %v10367_v53 = vpop.f32.mrf.mxu0  ;;  %v9187_v30 = vmul.f32 %v20340_v2, %v9171_v48  ;;  %vm9322_vm2 = vweird.f32 %v20509_v12 }
 0x8ff   : > { %v20518_v21 = vadd.f32 %v10367_v53, %v10328_v8  ;;  %10911 = vmatpush.bf16.msra.mxu1 %v21434_v7  ;;  %v10331_v57 = vpop.f32.mrf.mxu2  ;;  %vm20548_vm6 = vmor %vm9321_vm13, %vm9322_vm2  ;;  %v21437_v8 = vld [vmem:[#allocation8_spill] sm:$0xff] }
 0x900   : > { %v14012_v17 = vpack.c.bf16 %v9439_v6, %v9438_v52  ;;  %v9318_v46 = vsub.f32 1.0, %v9317_v37  ;;  %v20530_v60 = vadd.f32 %v20351_v58, %v9187_v30  ;;  %v9115_v11 = vpop.f32.mrf.mxu3 }
 0x901   : > { %v14522_v40 = vpop.eup %14521  ;;  %v9154_v28 = vpop.f32.mrf.mxu1 }
 0x902   : > { %v9249_v47 = vadd.f32 1.0, %v14522_v40  ;;  %14087 = vst [vmem:[%s19395_s29 + $0x38] sm:$0xff] %v14012_v17   ;;  %v9319_v33 = vmul.f32 %v20509_v12, %v9318_v46  ;;  %v9155_v23 = vadd.f32 %v9154_v28, %v9115_v11  ;;  %v21442_v40 = vld [vmem:[#allocation23_spill] sm:$0xff] }
 0x903   : > { %10912 = vmatpush.bf16.msra.mxu1 %v21437_v8 }
 0x904   : > { %14523 = vrcp.f32 %v9249_v47  ;;  %v9320_v34 = vadd.f32 %v20509_v12, %v9319_v33  ;;  %v9340_v6 = vand.u32 2147483647, %v9249_v47  ;;  %v9342_v37 = vand.u32 2147483648, %v9249_v47 }
 0x905   : > { %14525 = vpow2.f32 %v13059_v13  ;;  %v9172_v4 = vadd.f32 %v9155_v23, %v20399_v19  ;;  %vm9336_vm15 = vweird.f32 %v9249_v47 }
 0x906   : > { %v10370_v9 = vpop.f32.mrf.mxu0  ;;  %v9324_v50 = vsel %vm20548_vm6, %v20509_v12, %v9320_v34  ;;  %v9343_v16 = vor.u32 1.1754944e-38, %v9342_v37  ;;  %vm9341_vm7 = vcmp.eq.f32.partialorder %v9340_v6, 8.507059e+37 }
 0x907   : > { %v20543_v59 = vadd.f32 %v10370_v9, %v10331_v57  ;;  %v9188_v46 = vmul.f32 %v20340_v2, %v9172_v4  ;;  %v9329_v13 = vsel %vm9326_vm11, %v9328_v31, %v9324_v50  ;;  %10913 = vmatpush.bf16.msra.mxu1 %v21439_v1  ;;  %v10333_v19 = vpop.f32.mrf.mxu2 }
 0x908   : > { %v9117_v34 = vpop.f32.mrf.mxu3 }
 0x909   : > { %10981 = vmatmul.bf16.gmra.mxu0 %v20428_v41  ;;  %v13060_v41 = vmul.f32 -1.442695, %v20530_v60  ;;  %v20562_v12 = vadd.f32 %v20351_v58, %v9188_v46  ;;  %v9156_v9 = vpop.f32.mrf.mxu1 }
 0x90a   : > { %v14524_v18 = vpop.eup %14523  ;;  %v9157_v56 = vadd.f32 %v9156_v9, %v9117_v34 }
 0x90b   : > { %v14526_v42 = vpop.eup %14525  ;;  %v9332_v3 = vmul.f32 %v14524_v18, %v9249_v47  ;;  %14527 = vpow2.f32 %v13060_v41  ;;  %vm9337_vm4 = vweird.f32 %v14524_v18  ;;  %v9440_v41 = vmul.f32 %v9329_v13, %v20463_v26  ;;  %10914 = vmatpush.bf16.msra.mxu1 %v21441_v63 }
 0x90c   : > { %v20541_v29 = vadd.f32 1.0, %v14526_v42  ;;  %vm9338_vm12 = vmor %vm9336_vm15, %vm9337_vm4  ;;  %v13061_v51 = vmul.f32 -1.442695, %v20562_v12  ;;  %v9173_v23 = vadd.f32 %v9157_v56, %v20418_v25 }
 0x90d   : > { %v9333_v52 = vsub.f32 1.0, %v9332_v3  ;;  %v21440_v3 = vld [vmem:[#allocation46_spill] sm:$0xff] }
 0x90e   : > { %14529 = vrcp.f32 %v20541_v29  ;;  %v10372_v33 = vpop.f32.mrf.mxu0  ;;  %10720 = vmatmul.bf16.gmra.mxu1 %v21440_v3  ;;  %v9189_v26 = vmul.f32 %v20340_v2, %v9173_v23  ;;  %vm9351_vm9 = vweird.f32 %v20541_v29  ;;  %v9357_v4 = vand.u32 2147483648, %v20541_v29 }
 0x90f   : > { %v9334_v53 = vmul.f32 %v14524_v18, %v9333_v52  ;;  %v20564_v47 = vadd.f32 %v10372_v33, %v10333_v19  ;;  %10915 = vmatpush.bf16.msra.mxu1 %v21442_v40  ;;  %v10336_v13 = vpop.f32.mrf.mxu2 }
 0x910   : > { %v20577_v50 = vadd.f32 %v20351_v58, %v9189_v26  ;;  %v9358_v34 = vor.u32 1.1754944e-38, %v9357_v4 }
 0x911   : > { %v9335_v17 = vadd.f32 %v14524_v18, %v9334_v53  ;;  %v14528_v48 = vpop.eup %14527  ;;  %v9355_v53 = vand.u32 2147483647, %v20541_v29 }
 0x912   : > { %v9251_v42 = vadd.f32 1.0, %v14528_v48  ;;  %v13062_v46 = vmul.f32 -1.442695, %v20577_v50 }
 0x913   : > { %v9339_v54 = vsel %vm9338_vm12, %v14524_v18, %v9335_v17  ;;  %10916 = vmatpush.bf16.msra.mxu1 %v20208_v35  ;;  %v9159_v35 = vpop.f32.mrf.mxu1  ;;  %vm9356_vm10 = vcmp.eq.f32.partialorder %v9355_v53, 8.507059e+37 }
 0x914   : > { %v14530_v30 = vpop.eup %14529  ;;  %v9344_v7 = vsel %vm9341_vm7, %v9343_v16, %v9339_v54  ;;  %14531 = vrcp.f32 %v9251_v42  ;;  %v9370_v17 = vand.u32 2147483647, %v9251_v42  ;;  %v9372_v48 = vand.u32 2147483648, %v9251_v42  ;;  %v9120_v54 = vpop.f32.mrf.mxu3 }
 0x915   : > { %v9441_v57 = vmul.f32 %v9344_v7, %v20481_v10  ;;  %v9347_v18 = vmul.f32 %v14530_v30, %v20541_v29  ;;  %14533 = vpow2.f32 %v13061_v51  ;;  %vm9352_vm14 = vweird.f32 %v14530_v30  ;;  %v21445_v29 = vld [vmem:[#allocation42_spill] sm:$0xff] }
 0x916   : > { %vm20585_vm0 = vmor %vm9351_vm9, %vm9352_vm14  ;;  %v10375_v16 = vpop.f32.mrf.mxu0  ;;  %10681 = vmatmul.bf16.gmra.mxu3 %v21445_v29  ;;  %v9160_v7 = vadd.f32 %v9159_v35, %v9120_v54  ;;  %vm9366_vm3 = vweird.f32 %v9251_v42  ;;  %vm9371_vm1 = vcmp.eq.f32.partialorder %v9370_v17, 8.507059e+37 }
 0x917   : > { %v14017_v28 = vpack.c.bf16 %v9441_v57, %v9440_v41  ;;  %v9348_v11 = vsub.f32 1.0, %v9347_v18  ;;  %v20594_v33 = vadd.f32 %v10375_v16, %v10336_v13  ;;  %v9373_v57 = vor.u32 1.1754944e-38, %v9372_v48  ;;  %v21446_v18 = vld [vmem:[#allocation50_spill] sm:$0xff]  ;;  %v10338_v23 = vpop.f32.mrf.mxu2  ;;  %v21447_v13 = vld [vmem:[#allocation44_spill] sm:$0xff] }
 0x918   : > { %v9174_v41 = vadd.f32 %v9160_v7, %v20447_v15 }
 0x919   : > { %14088 = vst [vmem:[%s19395_s29 + $0x40] sm:$0xff] %v14017_v28   ;;  %v9349_v52 = vmul.f32 %v14530_v30, %v9348_v11 }
 0x91a   : > { %v14532_v10 = vpop.eup %14531  ;;  %v9190_v9 = vmul.f32 %v20340_v2, %v9174_v41  ;;  %v21448_v41 = vld [vmem:[#allocation15_spill] sm:$0xff] }
 0x91b   : > { %v9350_v6 = vadd.f32 %v14530_v30, %v9349_v52  ;;  %v14534_v37 = vpop.eup %14533  ;;  %v9362_v8 = vmul.f32 %v14532_v10, %v9251_v42  ;;  %vm9367_vm8 = vweird.f32 %v14532_v10 }
 0x91c   : > { %v20582_v31 = vadd.f32 1.0, %v14534_v37  ;;  %vm9368_vm5 = vmor %vm9366_vm3, %vm9367_vm8  ;;  %v20604_v52 = vadd.f32 %v20351_v58, %v9190_v9  ;;  %v9122_v37 = vpop.f32.mrf.mxu3 }
 0x91d   : > { %v9363_v36 = vsub.f32 1.0, %v9362_v8  ;;  %v9354_v1 = vsel %vm20585_vm0, %v14530_v30, %v9350_v6  ;;  %v9161_v6 = vpop.f32.mrf.mxu1 }
 0x91e   : > { %14535 = vrcp.f32 %v20582_v31  ;;  %v9359_v30 = vsel %vm9356_vm10, %v9358_v34, %v9354_v1  ;;  %10725 = vmatmul.bf16.gmra.mxu1 %v21446_v18  ;;  %v10377_v40 = vpop.f32.mrf.mxu0  ;;  %v13063_v4 = vmul.f32 -1.442695, %v20604_v52  ;;  %v9162_v25 = vadd.f32 %v9161_v6, %v9122_v37 }
 0x91f   : > { %v9364_v19 = vmul.f32 %v14532_v10, %v9363_v36  ;;  %14537 = vpow2.f32 %v13062_v46  ;;  %v9442_v56 = vmul.f32 %v9359_v30, %v20516_v24  ;;  %v10341_v35 = vpop.f32.mrf.mxu2  ;;  %vm9381_vm13 = vweird.f32 %v20582_v31 }
 0x920   : > { %v9175_v24 = vadd.f32 %v9162_v25, %v20469_v14  ;;  %v9387_v14 = vand.u32 2147483648, %v20582_v31  ;;  %v9385_v34 = vand.u32 2147483647, %v20582_v31 }
 0x921   : > { %v9365_v3 = vadd.f32 %v14532_v10, %v9364_v19 }
 0x922   : > { %v9191_v36 = vmul.f32 %v20340_v2, %v9175_v24  ;;  %vm9386_vm11 = vcmp.eq.f32.partialorder %v9385_v34, 8.507059e+37  ;;  %v21452_v34 = vld [vmem:[#allocation12_spill] sm:$0xff] }
 0x923   : > { %v9369_v51 = vsel %vm9368_vm5, %v14532_v10, %v9365_v3  ;;  %v20606_v10 = vadd.f32 %v10377_v40, %v10338_v23 }
 0x924   : > { %v14536_v63 = vpop.eup %14535  ;;  %v9374_v28 = vsel %vm9371_vm1, %v9373_v57, %v9369_v51  ;;  %v20613_v17 = vadd.f32 %v20351_v58, %v9191_v36  ;;  %v9972_v7 = vpop.f32.mrf.mxu3  ;;  %v21449_v51 = vld [vmem:[#allocation52_spill] sm:$0xff] }
 0x925   : > { %v14538_v11 = vpop.eup %14537  ;;  %v9443_v42 = vmul.f32 %v9374_v28, %v20530_v60  ;;  %v9377_v15 = vmul.f32 %v14536_v63, %v20582_v31  ;;  %vm9382_vm2 = vweird.f32 %v14536_v63  ;;  %v10011_v58 = vpop.f32.mrf.mxu1  ;;  %v9973_v30 = vadd.f32 %v9972_v7, %v21448_v41  ;;  %v21453_v41 = vld [vmem:[#allocation53_spill] sm:$0xff] }
 0x926   : > { %v9253_v26 = vadd.f32 1.0, %v14538_v11  ;;  %10686 = vmatmul.bf16.gmra.mxu3 %v21447_v13  ;;  %v13064_v29 = vmul.f32 -1.442695, %v20613_v17  ;;  %v10380_v54 = vpop.f32.mrf.mxu0  ;;  %vm9383_vm6 = vmor %vm9381_vm13, %vm9382_vm2  ;;  %v21450_v13 = vld [vmem:[#allocation18_spill] sm:$0xff]  ;;  %vm21458_vm2 = vcmask 1045504  }
 0x927   : > { %v14022_v8 = vpack.c.bf16 %v9443_v42, %v9442_v56  ;;  %v9378_v53 = vsub.f32 1.0, %v9377_v15  ;;  %v20621_v2 = vadd.f32 %v10380_v54, %v10341_v35  ;;  %v20628_v11 = vadd.f32 %v10011_v58, %v9973_v30  ;;  %v10343_v6 = vpop.f32.mrf.mxu2  ;;  %v21451_v35 = vld [vmem:[#allocation49_spill] sm:$0xff] }
 0x928   : > { %14539 = vrcp.f32 %v9253_v26  ;;  %v9400_v57 = vand.u32 2147483647, %v9253_v26  ;;  %v9402_v18 = vand.u32 2147483648, %v9253_v26  ;;  %v9388_v56 = vor.u32 1.1754944e-38, %v9387_v14 }
 0x929   : > { %14089 = vst [vmem:[%s19395_s29 + $0x48] sm:$0xff] %v14022_v8   ;;  %14541 = vpow2.f32 %v13063_v4  ;;  %v9379_v60 = vmul.f32 %v14536_v63, %v9378_v53  ;;  %vm9396_vm15 = vweird.f32 %v9253_v26 }
 0x92a   : > { %14543 = vpow2.f32 %v13064_v29  ;;  %v9403_v15 = vor.u32 1.1754944e-38, %v9402_v18  ;;  %vm9401_vm7 = vcmp.eq.f32.partialorder %v9400_v57, 8.507059e+37 }
 0x92b   : > { %v9380_v1 = vadd.f32 %v14536_v63, %v9379_v60 }
 0x92c   : > { %v9974_v24 = vpop.f32.mrf.mxu3 }
 0x92d   : > { %v9384_v9 = vsel %vm9383_vm6, %v14536_v63, %v9380_v1  ;;  %v10013_v25 = vpop.f32.mrf.mxu1 }
 0x92e   : > { %v14540_v46 = vpop.eup %14539  ;;  %10730 = vmatmul.bf16.gmra.mxu1 %v21449_v51  ;;  %v9389_v42 = vsel %vm9386_vm11, %v9388_v56, %v9384_v9  ;;  %v10382_v37 = vpop.f32.mrf.mxu0 }
 0x92f   : > { %v14542_v16 = vpop.eup %14541  ;;  %v9392_v48 = vmul.f32 %v14540_v46, %v9253_v26  ;;  %vm9397_vm4 = vweird.f32 %v14540_v46  ;;  %v20630_v4 = vadd.f32 %v10382_v37, %v10343_v6  ;;  %v9444_v60 = vmul.f32 %v9389_v42, %v20562_v12 }
 0x930   : > { %v20619_v19 = vadd.f32 1.0, %v14542_v16  ;;  %vm9398_vm12 = vmor %vm9396_vm15, %vm9397_vm4  ;;  %v14544_v23 = vpop.eup %14543  ;;  %v9975_v16 = vadd.f32 %v9974_v24, %v21450_v13 }
 0x931   : > { %v9393_v3 = vsub.f32 1.0, %v9392_v48  ;;  %v9255_v63 = vadd.f32 1.0, %v14544_v23 }
 0x932   : > { %14545 = vrcp.f32 %v20619_v19  ;;  %v10014_v48 = vadd.f32 %v10013_v25, %v9975_v16  ;;  %vm9411_vm9 = vweird.f32 %v20619_v19  ;;  %v9415_v30 = vand.u32 2147483647, %v20619_v19 }
 0x933   : > { %v9394_v28 = vmul.f32 %v14540_v46, %v9393_v3  ;;  %14547 = vrcp.f32 %v9255_v63  ;;  %v9417_v3 = vand.u32 2147483648, %v20619_v19  ;;  %v9432_v51 = vand.u32 2147483648, %v9255_v63 }
 0x934   : > { %v9977_v58 = vpop.f32.mrf.mxu3  ;;  %v9430_v56 = vand.u32 2147483647, %v9255_v63  ;;  %vm9416_vm10 = vcmp.eq.f32.partialorder %v9415_v30, 8.507059e+37  ;;  %vm9426_vm3 = vweird.f32 %v9255_v63 }
 0x935   : > { %v9395_v31 = vadd.f32 %v14540_v46, %v9394_v28  ;;  %v10016_v14 = vpop.f32.mrf.mxu1  ;;  %v9433_v23 = vor.u32 1.1754944e-38, %v9432_v51 }
 0x936   : > { %10691 = vmatmul.bf16.gmra.mxu3 %v21451_v35  ;;  %vm9431_vm1 = vcmp.eq.f32.partialorder %v9430_v56, 8.507059e+37 }
 0x937   : > { %v9399_v40 = vsel %vm9398_vm12, %v14540_v46, %v9395_v31  ;;  %v9418_v31 = vor.u32 1.1754944e-38, %v9417_v3 }
 0x938   : > { %v14546_v8 = vpop.eup %14545  ;;  %v9404_v53 = vsel %vm9401_vm7, %v9403_v15, %v9399_v40 }
 0x939   : > { %v9445_v26 = vmul.f32 %v9404_v53, %v20577_v50  ;;  %v9407_v36 = vmul.f32 %v14546_v8, %v20619_v19  ;;  %v14548_v54 = vpop.eup %14547  ;;  %vm9412_vm14 = vweird.f32 %v14546_v8  ;;  %v9978_v50 = vadd.f32 %v9977_v58, %v21452_v34 }
 0x93a   : > { %v9422_v12 = vmul.f32 %v14548_v54, %v9255_v63  ;;  %vm9413_vm0 = vmor %vm9411_vm9, %vm9412_vm14  ;;  %vm9427_vm8 = vweird.f32 %v14548_v54  ;;  %v10409_v63 = vld [vmem:[#allocation2 + $0xa0] sm:$0x3] }
 0x93b   : > { %v14027_v46 = vpack.c.bf16 %v9445_v26, %v9444_v60  ;;  %v9408_v1 = vsub.f32 1.0, %v9407_v36  ;;  %v10017_v18 = vadd.f32 %v10016_v14, %v9978_v50  ;;  %vm9428_vm5 = vmor %vm9426_vm3, %vm9427_vm8  ;;  %v21454_v26 = vld [vmem:[#allocation51_spill] sm:$0xff] }
 0x93c   : > { %v9423_v57 = vsub.f32 1.0, %v9422_v12  ;;  %v9979_v6 = vpop.f32.mrf.mxu3  ;;  %v21456_v12 = vld [vmem:[#allocation47_spill] sm:$0xff] }
 0x93d   : > { %14090 = vst [vmem:[%s19395_s29 + $0x50] sm:$0xff] %v14027_v46   ;;  %v9409_v29 = vmul.f32 %v14546_v8, %v9408_v1  ;;  %v10018_v40 = vpop.f32.mrf.mxu1  ;;  %v9980_v19 = vadd.f32 %v9979_v6, %v20211_v38  ;;  %v10436_v46 = vunpack.c.l.b16 %v10409_v63  ;;  %v21455_v1 = vld [vmem:[#allocation54_spill] sm:$0xff]  ;;  %v10385_v38 = vadd.f32 %v20388_v49, %v20628_v11 }
 0x93e   : > { %10735 = vmatmul.bf16.gmra.mxu1 %v21453_v41  ;;  %v9424_v28 = vmul.f32 %v14548_v54, %v9423_v57  ;;  %v21457_v34 = vrot.slane %v21456_v12, 2  ;;  %v10387_v11 = vadd.f32 %v20442_v0, %v10017_v18 }
 0x93f   : > { %v9410_v7 = vadd.f32 %v14546_v8, %v9409_v29  ;;  %v10019_v24 = vadd.f32 %v10018_v40, %v9980_v19 }
 0x940   : > { %v9425_v42 = vadd.f32 %v14548_v54, %v9424_v28 }
 0x941   : > { %v9414_v9 = vsel %vm9413_vm0, %v14546_v8, %v9410_v7  ;;  %v10386_v7 = vadd.f32 %v20410_v22, %v10014_v48  ;;  %v10388_v22 = vadd.f32 %v20465_v32, %v10019_v24 }
 0x942   : > { %v9419_v15 = vsel %vm9416_vm10, %v9418_v31, %v9414_v9  ;;  %v9429_v37 = vsel %vm9428_vm5, %v14548_v54, %v9425_v42 }
 0x943   : > { %v9434_v53 = vsel %vm9431_vm1, %v9433_v23, %v9429_v37  ;;  %v9446_v8 = vmul.f32 %v9419_v15, %v20604_v52  ;;  %v10443_v52 = vpack.c.b16 %v10436_v46, %v10436_v46  ;;  %v20675_v37 = vpop.f32.mrf.mxu0 }
 0x944   : > { %v9447_v25 = vmul.f32 %v9434_v53, %v20613_v17  ;;  %v9982_v13 = vpop.f32.mrf.mxu3 }
 0x945   : > { %v10021_v36 = vpop.f32.mrf.mxu1  ;;  %v9983_v16 = vadd.f32 %v9982_v13, %v20233_v55  ;;  %v10556_v14 = vrot.slane %v10443_v52, 2  ;;  %v10923_v13 = vpop.f32.mrf.mxu2 }
 0x946   : > { %v14032_v60 = vpack.c.bf16 %v9447_v25, %v9446_v8  ;;  %10696 = vmatmul.bf16.gmra.mxu3 %v21454_v26 }
 0x947   : > { %v10022_v29 = vadd.f32 %v10021_v36, %v9983_v16  ;;  %v10557_v55 = vsel %vm21458_vm2, %v21457_v34, %v10556_v14 }
 0x948   : > { %14091 = vst [vmem:[%s19395_s29 + $0x58] sm:$0xff] %v14032_v60  }
 0x949   : > { %v20664_v31 = vadd.f32 %v20498_v44, %v10022_v29 }
 0x94b   : > { %v20680_v25 = vpop.f32.mrf.mxu0 }
 0x94c   : > { %v9984_v17 = vpop.f32.mrf.mxu3 }
 0x94d   : > { %v10023_v35 = vpop.f32.mrf.mxu1  ;;  %v9985_v54 = vadd.f32 %v9984_v17, %v20256_v5  ;;  %v10925_v12 = vpop.f32.mrf.mxu2 }
 0x94e   : > { %10740 = vmatmul.bf16.gmra.mxu1 %v21455_v1 }
 0x94f   : > { %v10024_v58 = vadd.f32 %v10023_v35, %v9985_v54 }
 0x951   : > { %v20668_v18 = vadd.f32 %v20518_v21, %v10024_v58 }
 0x954   : > { %v9987_v3 = vpop.f32.mrf.mxu3 }
 0x955   : > { %v10026_v50 = vpop.f32.mrf.mxu1  ;;  %v9988_v41 = vadd.f32 %v9987_v3, %v20277_v20 }
 0x956   : > { %10701 = vmatmul.bf16.gmra.mxu3 %v10557_v55 }
 0x957   : > { %v10027_v49 = vadd.f32 %v10026_v50, %v9988_v41 }
 0x959   : > { %v20672_v40 = vadd.f32 %v20543_v59, %v10027_v49 }
 0x95c   : > { %v9989_v5 = vpop.f32.mrf.mxu3 }
 0x95d   : > { %v10028_v30 = vpop.f32.mrf.mxu1  ;;  %v9990_v57 = vadd.f32 %v9989_v5, %v20294_v39 }
 0x95e   : > { %10917 = vmatmul.bf16.vlgmr.msra.gmra.mxu1 %v20317_v61 }
 0x95f   : > { %v10029_v51 = vadd.f32 %v10028_v30, %v9990_v57 }
 0x964   : > { %v9992_v9 = vpop.f32.mrf.mxu3 }
 0x965   : > { %v10031_v48 = vpop.f32.mrf.mxu1  ;;  %v9993_v28 = vadd.f32 %v9992_v9, %v20309_v27 }
 0x967   : > { %v10032_v56 = vadd.f32 %v10031_v48, %v9993_v28  ;;  %v10928_v48 = vpop.f32.mrf.mxu2 }
 0x969   : > { %v20685_v59 = vadd.f32 %v20594_v33, %v10032_v56  ;;  %v20695_v33 = vld [vmem:[%s20864_s18] ss:$0 sm:$0xff] }
 0x96c   : > { %v9994_v61 = vpop.f32.mrf.mxu3 }
 0x96d   : > { %v10033_v20 = vpop.f32.mrf.mxu1  ;;  %v9995_v42 = vadd.f32 %v9994_v61, %v20328_v43  ;;  %v20678_v43 = vadd.f32 %v20564_v47, %v10029_v51  ;;  %v10962_v47 = vpop.f32.mrf.mxu0 }
 0x96e   : > { %v10963_v1 = vadd.f32 %v10962_v47, %v10923_v13 }
 0x96f   : > { %v10034_v0 = vadd.f32 %v10033_v20, %v9995_v42 }
 0x971   : > { %v20690_v63 = vadd.f32 %v20606_v10, %v10034_v0  ;;  %v20703_v10 = vld [vmem:[%s20865_s19] ss:$0 sm:$0xff] }
 0x974   : > { %v9997_v15 = vpop.f32.mrf.mxu3 }
 0x975   : > { %v10036_v39 = vpop.f32.mrf.mxu1  ;;  %v9998_v32 = vadd.f32 %v9997_v15, %v20342_v45  ;;  %v10964_v35 = vpop.f32.mrf.mxu0 }
 0x976   : > { %v10965_v34 = vadd.f32 %v10964_v35, %v10925_v12 }
 0x977   : > { %v10037_v23 = vadd.f32 %v10036_v39, %v9998_v32 }
 0x97c   : > { %v9999_v6 = vpop.f32.mrf.mxu3 }
 0x97d   : > { %v10038_v27 = vpop.f32.mrf.mxu1  ;;  %v10000_v44 = vadd.f32 %v9999_v6, %v20370_v62 }
 0x97f   : > { %v10039_v19 = vadd.f32 %v10038_v27, %v10000_v44  ;;  %v10930_v44 = vpop.f32.mrf.mxu2 }
 0x981   : > { %v20711_v50 = vadd.f32 %v20630_v4, %v10039_v19 }
 0x984   : > { %v10677_v53 = vpop.f32.mrf.mxu3 }
 0x985   : > { %v10716_v21 = vpop.f32.mrf.mxu1 }
 0x986   : > { %v10717_v8 = vadd.f32 %v10716_v21, %v10677_v53 }
 0x988   : > { %v20682_v45 = vadd.f32 %v10717_v8, %v10385_v38  ;;  %v20698_v38 = vadd.f32 %v20621_v2, %v10037_v23 }
 0x98c   : > { %v10679_v60 = vpop.f32.mrf.mxu3 }
 0x98d   : > { %v10718_v24 = vpop.f32.mrf.mxu1 }
 0x98e   : > { %v10719_v26 = vadd.f32 %v10718_v24, %v10679_v60 }
 0x990   : > { %v20687_v62 = vadd.f32 %v10719_v26, %v10386_v7 }
 0x995   : > { %v10721_v36 = vpop.f32.mrf.mxu1 }
 0x999   : > { %v10682_v16 = vpop.f32.mrf.mxu3 }
 0x99a   : > { %v10722_v46 = vadd.f32 %v10721_v36, %v10682_v16 }
 0x99c   : > { %v10748_v29 = vadd.f32 %v10722_v46, %v10387_v11  ;;  %v10967_v11 = vpop.f32.mrf.mxu0 }
 0x99d   : > { %v10723_v54 = vpop.f32.mrf.mxu1  ;;  %v10968_v4 = vadd.f32 %v10967_v11, %v10928_v48 }
 0x99e   : > { %v10989_v52 = vadd.f32 %v10963_v1, %v10748_v29 }
 0x9a0   : > { %v11005_v17 = vmul.f32 %v20695_v33, %v10989_v52 }
 0x9a1   : > { %v10684_v14 = vpop.f32.mrf.mxu3 }
 0x9a2   : > { %v20707_v58 = vadd.f32 %v20703_v10, %v11005_v17  ;;  %v10724_v7 = vadd.f32 %v10723_v54, %v10684_v14  ;;  %v10933_v54 = vpop.f32.mrf.mxu2 }
 0x9a4   : > { %v13555_v2 = vmul.f32 -1.442695, %v20707_v58  ;;  %v10749_v55 = vadd.f32 %v10724_v7, %v10388_v22  ;;  %v10969_v15 = vpop.f32.mrf.mxu0 }
 0x9a5   : > { %v10726_v57 = vpop.f32.mrf.mxu1  ;;  %v10970_v19 = vadd.f32 %v10969_v15, %v10930_v44 }
 0x9a6   : > { %14549 = vpow2.f32 %v13555_v2  ;;  %v10990_v3 = vadd.f32 %v10965_v34, %v10749_v55 }
 0x9a8   : > { %v11006_v41 = vmul.f32 %v20695_v33, %v10990_v3 }
 0x9a9   : > { %v10687_v51 = vpop.f32.mrf.mxu3 }
 0x9aa   : > { %v20715_v49 = vadd.f32 %v20703_v10, %v11006_v41  ;;  %v10727_v28 = vadd.f32 %v10726_v57, %v10687_v51  ;;  %v10935_v44 = vpop.f32.mrf.mxu2 }
 0x9ac   : > { %v14550_v30 = vpop.eup %14549  ;;  %v13556_v5 = vmul.f32 -1.442695, %v20715_v49  ;;  %v10750_v22 = vadd.f32 %v10727_v28, %v20664_v31  ;;  %v10972_v16 = vpop.f32.mrf.mxu0 }
 0x9ad   : > { %v11069_v9 = vadd.f32 1.0, %v14550_v30  ;;  %v10728_v42 = vpop.f32.mrf.mxu1  ;;  %v10973_v41 = vadd.f32 %v10972_v16, %v10933_v54 }
 0x9ae   : > { %14551 = vpow2.f32 %v13556_v5  ;;  %v10991_v56 = vadd.f32 %v10968_v4, %v10750_v22 }
 0x9af   : > { %14553 = vrcp.f32 %v11069_v9  ;;  %v11120_v46 = vand.u32 2147483648, %v11069_v9  ;;  %vm11114_vm6 = vweird.f32 %v11069_v9  ;;  %v11118_v29 = vand.u32 2147483647, %v11069_v9 }
 0x9b0   : > { %v11007_v61 = vmul.f32 %v20695_v33, %v10991_v56 }
 0x9b1   : > { %v10689_v0 = vpop.f32.mrf.mxu3  ;;  %v11121_v11 = vor.u32 1.1754944e-38, %v11120_v46  ;;  %vm11119_vm15 = vcmp.eq.f32.partialorder %v11118_v29, 8.507059e+37 }
 0x9b2   : > { %v10729_v23 = vadd.f32 %v10728_v42, %v10689_v0  ;;  %v20721_v6 = vadd.f32 %v20703_v10, %v11007_v61 }
 0x9b4   : > { %v14552_v20 = vpop.eup %14551  ;;  %v13557_v31 = vmul.f32 -1.442695, %v20721_v6  ;;  %v10751_v53 = vadd.f32 %v10729_v23, %v20668_v18 }
 0x9b5   : > { %v14554_v39 = vpop.eup %14553  ;;  %v11070_v32 = vadd.f32 1.0, %v14552_v20  ;;  %v10731_v35 = vpop.f32.mrf.mxu1 }
 0x9b6   : > { %v11110_v27 = vmul.f32 %v14554_v39, %v11069_v9  ;;  %v10992_v24 = vadd.f32 %v10970_v19, %v10751_v53  ;;  %vm11115_vm13 = vweird.f32 %v14554_v39 }
 0x9b7   : > { %14555 = vrcp.f32 %v11070_v32  ;;  %vm20730_vm4 = vmor %vm11114_vm6, %vm11115_vm13  ;;  %v11133_v7 = vand.u32 2147483647, %v11070_v32  ;;  %v11135_v12 = vand.u32 2147483648, %v11070_v32  ;;  %vm11129_vm12 = vweird.f32 %v11070_v32 }
 0x9b8   : > { %v11111_v21 = vsub.f32 1.0, %v11110_v27  ;;  %14557 = vpow2.f32 %v13557_v31  ;;  %v11008_v60 = vmul.f32 %v20695_v33, %v10992_v24 }
 0x9b9   : > { %v10692_v17 = vpop.f32.mrf.mxu3  ;;  %v11136_v51 = vor.u32 1.1754944e-38, %v11135_v12  ;;  %vm11134_vm14 = vcmp.eq.f32.partialorder %v11133_v7, 8.507059e+37 }
 0x9ba   : > { %v11112_v8 = vmul.f32 %v14554_v39, %v11111_v21  ;;  %v20727_v13 = vadd.f32 %v20703_v10, %v11008_v60  ;;  %v10732_v2 = vadd.f32 %v10731_v35, %v10692_v17  ;;  %v10938_v35 = vpop.f32.mrf.mxu2 }
 0x9bc   : > { %v11113_v47 = vadd.f32 %v14554_v39, %v11112_v8  ;;  %v13558_v18 = vmul.f32 -1.442695, %v20727_v13  ;;  %v10752_v5 = vadd.f32 %v10732_v2, %v20672_v40 }
 0x9bd   : > { %v14556_v26 = vpop.eup %14555  ;;  %v10733_v61 = vpop.f32.mrf.mxu1 }
 0x9be   : > { %v11125_v36 = vmul.f32 %v14556_v26, %v11070_v32  ;;  %v14558_v1 = vpop.eup %14557  ;;  %v11117_v55 = vsel %vm20730_vm4, %v14554_v39, %v11113_v47  ;;  %vm11130_vm11 = vweird.f32 %v14556_v26  ;;  %14559 = vpow2.f32 %v13558_v18  ;;  %v10974_v39 = vpop.f32.mrf.mxu0 }
 0x9bf   : > { %v20734_v34 = vadd.f32 1.0, %v14558_v1  ;;  %v11122_v57 = vsel %vm11119_vm15, %v11121_v11, %v11117_v55  ;;  %vm11131_vm7 = vmor %vm11129_vm12, %vm11130_vm11  ;;  %v10993_v9 = vadd.f32 %v10973_v41, %v10752_v5  ;;  %v10975_v19 = vadd.f32 %v10974_v39, %v10935_v44 }
 0x9c0   : > { %v11126_v52 = vsub.f32 1.0, %v11125_v36  ;;  %v11261_v22 = vmul.f32 %v11122_v57, %v20707_v58 }
 0x9c1   : > { %14561 = vrcp.f32 %v20734_v34  ;;  %v11009_v20 = vmul.f32 %v20695_v33, %v10993_v9  ;;  %v10694_v42 = vpop.f32.mrf.mxu3  ;;  %v11150_v16 = vand.u32 2147483648, %v20734_v34  ;;  %vm11144_vm0 = vweird.f32 %v20734_v34 }
 0x9c2   : > { %v11127_v3 = vmul.f32 %v14556_v26, %v11126_v52  ;;  %v10734_v15 = vadd.f32 %v10733_v61, %v10694_v42 }
 0x9c3   : > { %v20745_v27 = vadd.f32 %v20703_v10, %v11009_v20 }
 0x9c4   : > { %v11128_v30 = vadd.f32 %v14556_v26, %v11127_v3  ;;  %v14560_v4 = vpop.eup %14559  ;;  %v10753_v21 = vadd.f32 %v10734_v15, %v20678_v43  ;;  %v11148_v43 = vand.u32 2147483647, %v20734_v34  ;;  %v11151_v3 = vor.u32 1.1754944e-38, %v11150_v16 }
 0x9c5   : > { %v11072_v40 = vadd.f32 1.0, %v14560_v4  ;;  %v10736_v52 = vpop.f32.mrf.mxu1 }
 0x9c6   : > { %v11132_v48 = vsel %vm11131_vm7, %v14556_v26, %v11128_v30  ;;  %v10994_v53 = vadd.f32 %v10975_v19, %v10753_v21  ;;  %v10977_v36 = vpop.f32.mrf.mxu0  ;;  %vm11149_vm3 = vcmp.eq.f32.partialorder %v11148_v43, 8.507059e+37 }
 0x9c7   : > { %v11137_v28 = vsel %vm11134_vm14, %v11136_v51, %v11132_v48  ;;  %v14562_v0 = vpop.eup %14561  ;;  %14563 = vrcp.f32 %v11072_v40  ;;  %v11163_v54 = vand.u32 2147483647, %v11072_v40  ;;  %v11165_v14 = vand.u32 2147483648, %v11072_v40 }
 0x9c8   : > { %v11262_v56 = vmul.f32 %v11137_v28, %v20715_v49  ;;  %v11140_v23 = vmul.f32 %v14562_v0, %v20734_v34  ;;  %v13559_v49 = vmul.f32 -1.442695, %v20745_v27  ;;  %v11010_v8 = vmul.f32 %v20695_v33, %v10994_v53 }
 0x9c9   : > { %vm11145_vm9 = vweird.f32 %v14562_v0  ;;  %v10697_v18 = vpop.f32.mrf.mxu3  ;;  %v10978_v34 = vadd.f32 %v10977_v36, %v10938_v35  ;;  %vm11159_vm5 = vweird.f32 %v11072_v40  ;;  %v11166_v5 = vor.u32 1.1754944e-38, %v11165_v14 }
 0x9ca   : > { %v14050_v32 = vpack.c.bf16 %v11262_v56, %v11261_v22  ;;  %v11141_v58 = vsub.f32 1.0, %v11140_v23  ;;  %14565 = vpow2.f32 %v13559_v49  ;;  %v20752_v47 = vadd.f32 %v20703_v10, %v11010_v8  ;;  %vm20758_vm8 = vmor %vm11144_vm0, %vm11145_vm9 }
 0x9cb   : > { %v10737_v12 = vadd.f32 %v10736_v52, %v10697_v18  ;;  %vm11164_vm2 = vcmp.eq.f32.partialorder %v11163_v54, 8.507059e+37 }
 0x9cc   : > { %14098 = vst [vmem:[%s19395_s29 + $0x68] sm:$0xff] %v14050_v32   ;;  %v11142_v31 = vmul.f32 %v14562_v0, %v11141_v58  ;;  %v13560_v29 = vmul.f32 -1.442695, %v20752_v47  ;;  %v10940_v32 = vpop.f32.mrf.mxu2 }
 0x9cd   : > { %v14564_v24 = vpop.eup %14563  ;;  %v10754_v11 = vadd.f32 %v10737_v12, %v20685_v59  ;;  %v10738_v56 = vpop.f32.mrf.mxu1 }
 0x9ce   : > { %v11143_v60 = vadd.f32 %v14562_v0, %v11142_v31  ;;  %v11155_v26 = vmul.f32 %v14564_v24, %v11072_v40  ;;  %vm11160_vm10 = vweird.f32 %v14564_v24  ;;  %14567 = vpow2.f32 %v13560_v29  ;;  %v10979_v42 = vpop.f32.mrf.mxu0 }
 0x9cf   : > { %vm11161_vm1 = vmor %vm11159_vm5, %vm11160_vm10  ;;  %v10995_v51 = vadd.f32 %v10978_v34, %v10754_v11  ;;  %v10980_v23 = vadd.f32 %v10979_v42, %v10940_v32 }
 0x9d0   : > { %v14566_v46 = vpop.eup %14565  ;;  %v11156_v1 = vsub.f32 1.0, %v11155_v26  ;;  %v11147_v2 = vsel %vm20758_vm8, %v14562_v0, %v11143_v60 }
 0x9d1   : > { %v20762_v7 = vadd.f32 1.0, %v14566_v46  ;;  %v11152_v30 = vsel %vm11149_vm3, %v11151_v3, %v11147_v2  ;;  %v11011_v22 = vmul.f32 %v20695_v33, %v10995_v51  ;;  %v10699_v20 = vpop.f32.mrf.mxu3 }
 0x9d2   : > { %v11157_v55 = vmul.f32 %v14564_v24, %v11156_v1  ;;  %v11263_v28 = vmul.f32 %v11152_v30, %v20721_v6  ;;  %v10739_v0 = vadd.f32 %v10738_v56, %v10699_v20 }
 0x9d3   : > { %14569 = vrcp.f32 %v20762_v7  ;;  %v20773_v15 = vadd.f32 %v20703_v10, %v11011_v22  ;;  %v11180_v60 = vand.u32 2147483648, %v20762_v7  ;;  %vm11174_vm6 = vweird.f32 %v20762_v7 }
 0x9d4   : > { %v11158_v41 = vadd.f32 %v14564_v24, %v11157_v55  ;;  %v14568_v9 = vpop.eup %14567  ;;  %v10755_v44 = vadd.f32 %v10739_v0, %v20690_v63  ;;  %v11178_v63 = vand.u32 2147483647, %v20762_v7  ;;  %v10943_v1 = vpop.f32.mrf.mxu2 }
 0x9d5   : > { %v11074_v59 = vadd.f32 1.0, %v14568_v9  ;;  %v10741_v46 = vpop.f32.mrf.mxu1  ;;  %v11181_v12 = vor.u32 1.1754944e-38, %v11180_v60 }
 0x9d6   : > { %v11162_v57 = vsel %vm11161_vm1, %v14564_v24, %v11158_v41  ;;  %v10996_v58 = vadd.f32 %v10980_v23, %v10755_v44  ;;  %v10982_v24 = vpop.f32.mrf.mxu0  ;;  %vm11179_vm15 = vcmp.eq.f32.partialorder %v11178_v63, 8.507059e+37 }
 0x9d7   : > { %v11167_v48 = vsel %vm11164_vm2, %v11166_v5, %v11162_v57  ;;  %14571 = vrcp.f32 %v11074_v59  ;;  %v11193_v52 = vand.u32 2147483647, %v11074_v59  ;;  %v11195_v18 = vand.u32 2147483648, %v11074_v59 }
 0x9d8   : > { %v11264_v4 = vmul.f32 %v11167_v48, %v20727_v13  ;;  %v13561_v13 = vmul.f32 -1.442695, %v20773_v15  ;;  %v11012_v49 = vmul.f32 %v20695_v33, %v10996_v58  ;;  %vm11189_vm12 = vweird.f32 %v11074_v59 }
 0x9d9   : > { %v14570_v61 = vpop.eup %14569  ;;  %v10702_v43 = vpop.f32.mrf.mxu3  ;;  %v11196_v3 = vor.u32 1.1754944e-38, %v11195_v18  ;;  %vm11194_vm14 = vcmp.eq.f32.partialorder %v11193_v52, 8.507059e+37 }
 0x9da   : > { %v14055_v39 = vpack.c.bf16 %v11264_v4, %v11263_v28  ;;  %v11170_v40 = vmul.f32 %v14570_v61, %v20762_v7  ;;  %14573 = vpow2.f32 %v13561_v13  ;;  %vm11175_vm13 = vweird.f32 %v14570_v61 }
 0x9db   : > { %v20780_v8 = vadd.f32 %v20703_v10, %v11012_v49  ;;  %vm20786_vm4 = vmor %vm11174_vm6, %vm11175_vm13  ;;  %v10742_v17 = vadd.f32 %v10741_v46, %v10702_v43  ;;  %v10983_v7 = vadd.f32 %v10982_v24, %v10943_v1 }
 0x9dc   : > { %14099 = vst [vmem:[%s19395_s29 + $0x70] sm:$0xff] %v14055_v39   ;;  %v11171_v6 = vsub.f32 1.0, %v11170_v40 }
 0x9dd   : > { %v14572_v21 = vpop.eup %14571  ;;  %v13562_v16 = vmul.f32 -1.442695, %v20780_v8  ;;  %v10756_v55 = vadd.f32 %v10742_v17, %v20698_v38  ;;  %v10743_v9 = vpop.f32.mrf.mxu1 }
 0x9de   : > { %v11172_v19 = vmul.f32 %v14570_v61, %v11171_v6  ;;  %v11185_v53 = vmul.f32 %v14572_v21, %v11074_v59  ;;  %vm11190_vm11 = vweird.f32 %v14572_v21  ;;  %v10984_v22 = vpop.f32.mrf.mxu0  ;;  %v10945_v59 = vpop.f32.mrf.mxu2 }
 0x9df   : > { %14575 = vpow2.f32 %v13562_v16  ;;  %vm11191_vm7 = vmor %vm11189_vm12, %vm11190_vm11  ;;  %v10997_v11 = vadd.f32 %v10983_v7, %v10756_v55  ;;  %v10985_v0 = vadd.f32 %v10984_v22, %v10945_v59 }
 0x9e0   : > { %v11173_v31 = vadd.f32 %v14570_v61, %v11172_v19  ;;  %v14574_v26 = vpop.eup %14573  ;;  %v11186_v36 = vsub.f32 1.0, %v11185_v53 }
 0x9e1   : > { %v20790_v35 = vadd.f32 1.0, %v14574_v26  ;;  %v11013_v48 = vmul.f32 %v20695_v33, %v10997_v11  ;;  %v10704_v28 = vpop.f32.mrf.mxu3 }
 0x9e2   : > { %v11177_v54 = vsel %vm20786_vm4, %v14570_v61, %v11173_v31  ;;  %v11187_v14 = vmul.f32 %v14572_v21, %v11186_v36  ;;  %v10744_v56 = vadd.f32 %v10743_v9, %v10704_v28 }
 0x9e3   : > { %14577 = vrcp.f32 %v20790_v35  ;;  %v11182_v34 = vsel %vm11179_vm15, %v11181_v12, %v11177_v54  ;;  %v20801_v42 = vadd.f32 %v20703_v10, %v11013_v48  ;;  %v11210_v58 = vand.u32 2147483648, %v20790_v35 }
 0x9e4   : > { %v11188_v2 = vadd.f32 %v14572_v21, %v11187_v14  ;;  %v11265_v57 = vmul.f32 %v11182_v34, %v20745_v27  ;;  %v10757_v39 = vadd.f32 %v10744_v56, %v20711_v50  ;;  %vm11204_vm0 = vweird.f32 %v20790_v35 }
 0x9e5   : > { %v14576_v5 = vpop.eup %14575  ;;  %v10918_v53 = vpop.f32.mrf.mxu1  ;;  %v11211_v43 = vor.u32 1.1754944e-38, %v11210_v58 }
 0x9e6   : > { %v11192_v41 = vsel %vm11191_vm7, %v14572_v21, %v11188_v2  ;;  %v11076_v38 = vadd.f32 1.0, %v14576_v5  ;;  %v10998_v32 = vadd.f32 %v10985_v0, %v10757_v39  ;;  %v11208_v21 = vand.u32 2147483647, %v20790_v35 }
 0x9e7   : > { %v11197_v30 = vsel %vm11194_vm14, %v11196_v3, %v11192_v41  ;;  %v10958_v36 = vadd.f32 %v20675_v37, %v10918_v53 }
 0x9e8   : > { %v11266_v51 = vmul.f32 %v11197_v30, %v20752_v47  ;;  %14579 = vrcp.f32 %v11076_v38  ;;  %v13563_v47 = vmul.f32 -1.442695, %v20801_v42  ;;  %v11014_v23 = vmul.f32 %v20695_v33, %v10998_v32 }
 0x9e9   : > { %v14578_v4 = vpop.eup %14577  ;;  %v11223_v60 = vand.u32 2147483647, %v11076_v38  ;;  %v11225_v26 = vand.u32 2147483648, %v11076_v38  ;;  %vm11209_vm3 = vcmp.eq.f32.partialorder %v11208_v21, 8.507059e+37  ;;  %vm11219_vm5 = vweird.f32 %v11076_v38 }
 0x9ea   : > { %v14060_v20 = vpack.c.bf16 %v11266_v51, %v11265_v57  ;;  %v11200_v61 = vmul.f32 %v14578_v4, %v20790_v35  ;;  %14581 = vpow2.f32 %v13563_v47  ;;  %vm11205_vm9 = vweird.f32 %v14578_v4 }
 0x9eb   : > { %v20808_v19 = vadd.f32 %v20703_v10, %v11014_v23  ;;  %vm20814_vm8 = vmor %vm11204_vm0, %vm11205_vm9  ;;  %v10987_v29 = vadd.f32 %v10958_v36, %v20682_v45  ;;  %v11226_v18 = vor.u32 1.1754944e-38, %v11225_v26  ;;  %vm11224_vm2 = vcmp.eq.f32.partialorder %v11223_v60, 8.507059e+37 }
 0x9ec   : > { %14100 = vst [vmem:[%s19395_s29 + $0x78] sm:$0xff] %v14060_v20   ;;  %v11201_v27 = vsub.f32 1.0, %v11200_v61 }
 0x9ed   : > { %v13564_v31 = vmul.f32 -1.442695, %v20808_v19  ;;  %v11003_v37 = vmul.f32 %v20695_v33, %v10987_v29  ;;  %v10920_v2 = vpop.f32.mrf.mxu1 }
 0x9ee   : > { %v11202_v40 = vmul.f32 %v14578_v4, %v11201_v27  ;;  %v14580_v6 = vpop.eup %14579  ;;  %v10960_v34 = vadd.f32 %v20680_v25, %v10920_v2 }
 0x9ef   : > { %v11215_v44 = vmul.f32 %v14580_v6, %v11076_v38  ;;  %vm11220_vm10 = vweird.f32 %v14580_v6  ;;  %14583 = vpow2.f32 %v13564_v31  ;;  %v20826_v12 = vadd.f32 %v20703_v10, %v11003_v37 }
 0x9f0   : > { %v11203_v13 = vadd.f32 %v14578_v4, %v11202_v40  ;;  %v14582_v49 = vpop.eup %14581  ;;  %vm11221_vm1 = vmor %vm11219_vm5, %vm11220_vm10 }
 0x9f1   : > { %v11216_v50 = vsub.f32 1.0, %v11215_v44  ;;  %v11077_v63 = vadd.f32 1.0, %v14582_v49  ;;  %v13553_v11 = vmul.f32 -1.442695, %v20826_v12 }
 0x9f2   : > { %v11207_v16 = vsel %vm20814_vm8, %v14578_v4, %v11203_v13 }
 0x9f3   : > { %v11217_v46 = vmul.f32 %v14580_v6, %v11216_v50  ;;  %14585 = vrcp.f32 %v11077_v63  ;;  %v11212_v52 = vsel %vm11209_vm3, %v11211_v43, %v11207_v16  ;;  %v11240_v4 = vand.u32 2147483648, %v11077_v63 }
 0x9f4   : > { %v11267_v14 = vmul.f32 %v11212_v52, %v20773_v15  ;;  %v10988_v15 = vadd.f32 %v10960_v34, %v20687_v62  ;;  %vm11234_vm6 = vweird.f32 %v11077_v63  ;;  %v11238_v38 = vand.u32 2147483647, %v11077_v63 }
 0x9f5   : > { %v11218_v1 = vadd.f32 %v14580_v6, %v11217_v46  ;;  %v14584_v54 = vpop.eup %14583  ;;  %v11241_v61 = vor.u32 1.1754944e-38, %v11240_v4 }
 0x9f6   : > { %v11078_v45 = vadd.f32 1.0, %v14584_v54  ;;  %vm11239_vm15 = vcmp.eq.f32.partialorder %v11238_v38, 8.507059e+37 }
 0x9f7   : > { %v11222_v35 = vsel %vm11221_vm1, %v14580_v6, %v11218_v1 }
 0x9f8   : > { %v11227_v17 = vsel %vm11224_vm2, %v11226_v18, %v11222_v35  ;;  %14587 = vrcp.f32 %v11078_v45  ;;  %v11255_v62 = vand.u32 2147483648, %v11078_v45  ;;  %vm11249_vm12 = vweird.f32 %v11078_v45 }
 0x9f9   : > { %v11268_v7 = vmul.f32 %v11227_v17, %v20780_v8  ;;  %v14586_v55 = vpop.eup %14585  ;;  %14589 = vpow2.f32 %v13553_v11  ;;  %v11004_v8 = vmul.f32 %v20695_v33, %v10988_v15 }
 0x9fa   : > { %v11230_v41 = vmul.f32 %v14586_v55, %v11077_v63  ;;  %vm11235_vm13 = vweird.f32 %v14586_v55  ;;  %v11256_v27 = vor.u32 1.1754944e-38, %v11255_v62 }
 0x9fb   : > { %v14065_v3 = vpack.c.bf16 %v11268_v7, %v11267_v14  ;;  %v20834_v57 = vadd.f32 %v20703_v10, %v11004_v8  ;;  %vm11236_vm4 = vmor %vm11234_vm6, %vm11235_vm13  ;;  %v11253_v10 = vand.u32 2147483647, %v11078_v45 }
 0x9fc   : > { %v11231_v30 = vsub.f32 1.0, %v11230_v41 }
 0x9fd   : > { %14101 = vst [vmem:[%s19395_s29 + $0x80] sm:$0xff] %v14065_v3   ;;  %v13554_v28 = vmul.f32 -1.442695, %v20834_v57  ;;  %vm11254_vm14 = vcmp.eq.f32.partialorder %v11253_v10, 8.507059e+37 }
 0x9fe   : > { %v11232_v5 = vmul.f32 %v14586_v55, %v11231_v30  ;;  %v14588_v51 = vpop.eup %14587 }
 0x9ff   : > { %v14590_v48 = vpop.eup %14589  ;;  %v11245_v25 = vmul.f32 %v14588_v51, %v11078_v45  ;;  %14591 = vpow2.f32 %v13554_v28  ;;  %vm11250_vm11 = vweird.f32 %v14588_v51 }
 0xa00   : > { %v11233_v9 = vadd.f32 %v14586_v55, %v11232_v5  ;;  %v11067_v22 = vadd.f32 1.0, %v14590_v48  ;;  %vm11251_vm7 = vmor %vm11249_vm12, %vm11250_vm11 }
 0xa01   : > { %v11246_v56 = vsub.f32 1.0, %v11245_v25 }
 0xa02   : > { %14593 = vrcp.f32 %v11067_v22  ;;  %v11237_v33 = vsel %vm11236_vm4, %v14586_v55, %v11233_v9  ;;  %v11090_v24 = vand.u32 2147483648, %v11067_v22  ;;  %vm11084_vm0 = vweird.f32 %v11067_v22 }
 0xa03   : > { %v11247_v20 = vmul.f32 %v14588_v51, %v11246_v56  ;;  %v11242_v0 = vsel %vm11239_vm15, %v11241_v61, %v11237_v33  ;;  %v11088_v60 = vand.u32 2147483647, %v11067_v22 }
 0xa04   : > { %v11269_v6 = vmul.f32 %v11242_v0, %v20801_v42  ;;  %v11091_v16 = vor.u32 1.1754944e-38, %v11090_v24 }
 0xa05   : > { %v11248_v59 = vadd.f32 %v14588_v51, %v11247_v20  ;;  %v14592_v47 = vpop.eup %14591  ;;  %vm11089_vm3 = vcmp.eq.f32.partialorder %v11088_v60, 8.507059e+37 }
 0xa06   : > { %v11068_v23 = vadd.f32 1.0, %v14592_v47 }
 0xa07   : > { %v11252_v39 = vsel %vm11251_vm7, %v14588_v51, %v11248_v59 }
 0xa08   : > { %v14594_v40 = vpop.eup %14593  ;;  %v11257_v32 = vsel %vm11254_vm14, %v11256_v27, %v11252_v39  ;;  %14595 = vrcp.f32 %v11068_v23  ;;  %v11105_v63 = vand.u32 2147483648, %v11068_v23  ;;  %vm11099_vm5 = vweird.f32 %v11068_v23 }
 0xa09   : > { %v11270_v13 = vmul.f32 %v11257_v32, %v20808_v19  ;;  %v11080_v44 = vmul.f32 %v14594_v40, %v11067_v22  ;;  %vm11085_vm9 = vweird.f32 %v14594_v40  ;;  %v11103_v19 = vand.u32 2147483647, %v11068_v23 }
 0xa0a   : > { %vm11086_vm8 = vmor %vm11084_vm0, %vm11085_vm9  ;;  %v11106_v1 = vor.u32 1.1754944e-38, %v11105_v63 }
 0xa0b   : > { %v14070_v58 = vpack.c.bf16 %v11270_v13, %v11269_v6  ;;  %v11081_v49 = vsub.f32 1.0, %v11080_v44  ;;  %vm11104_vm2 = vcmp.eq.f32.partialorder %v11103_v19, 8.507059e+37 }
 0xa0d   : > { %14102 = vst [vmem:[%s19395_s29 + $0x88] sm:$0xff] %v14070_v58   ;;  %v11082_v21 = vmul.f32 %v14594_v40, %v11081_v49 }
 0xa0e   : > { %v14596_v50 = vpop.eup %14595 }
 0xa0f   : > { %v11083_v31 = vadd.f32 %v14594_v40, %v11082_v21  ;;  %v11095_v53 = vmul.f32 %v14596_v50, %v11068_v23  ;;  %vm11100_vm10 = vweird.f32 %v14596_v50 }
 0xa10   : > { %vm11101_vm1 = vmor %vm11099_vm5, %vm11100_vm10 }
 0xa11   : > { %v11096_v26 = vsub.f32 1.0, %v11095_v53  ;;  %v11087_v36 = vsel %vm11086_vm8, %v14594_v40, %v11083_v31 }
 0xa12   : > { %v11092_v43 = vsel %vm11089_vm3, %v11091_v16, %v11087_v36 }
 0xa13   : > { %v11097_v42 = vmul.f32 %v14596_v50, %v11096_v26  ;;  %v11259_v18 = vmul.f32 %v11092_v43, %v20826_v12 }
 0xa15   : > { %v11098_v46 = vadd.f32 %v14596_v50, %v11097_v42 }
 0xa17   : > { %v11102_v29 = vsel %vm11101_vm1, %v14596_v50, %v11098_v46 }
 0xa18   : > { %v11107_v52 = vsel %vm11104_vm2, %v11106_v1, %v11102_v29 }
 0xa19   : > { %v11260_v35 = vmul.f32 %v11107_v52, %v20834_v57 }
 0xa1b   : > { %v14045_v37 = vpack.c.bf16 %v11260_v35, %v11259_v18 }
 0xa1d   : > { %14097 = vst [vmem:[%s19395_s29 + $0x60] sm:$0xff] %v14045_v37  }
 0xa1e PF: > { %s33_s2 = sadd.s32 1, %s14654_s2  }
 0xa1f   : > { %p30_p7 = scmp.ge.s32.totalorder %s33_s2, 4  }
 0xa21   :  { %32 = sbr.rel (!%p30_p7) target bundleno = 8 (0x8), region = 163 }
 0xa26   :  { %11328 = vsyncpa [#allocation5], 1 }
 0xa27   :  { %11330 = vsyncpa [#allocation5 + $0x1], 1 }

</bundles_post_ra>
